<compile_context>
chip_gen: v7x
topology: tpu7x:2x2x1
jax: 0.10.0
libtpu: 0.0.40
codegen_flags: <defaults>
</compile_context>

<pallas_src>
import jax
import jax.numpy as jnp
import numpy as np
from jax.experimental import pallas as pl
from jax.experimental.pallas import tpu as pltpu


# ===========================================================================
# Fused kernel
# ===========================================================================
def fused_forward_kernel(xt_ref, bias_ref,
                         wih0_ref, whh0_ref, b0_ref,
                         wih1_ref, whh1_ref, b1_ref,
                         wq_ref, bq_ref, wk_ref, bk_ref, wv_ref, bv_ref,
                         fw1_ref, fb1_ref, fw2t_ref, fb2_ref,
                         out_ref,
                         gin_f, gin_b, act_f, act_b):
    # xt_ref  : (T, B, D)     time-major input
    # bias_ref: (T*B, T*B)    additive attention mask (0 same batch, -1e30 otherwise)
    # wihX    : (Din, 8H)     [fwd 4H | bwd 4H], per-direction gate order [i,f,o,g]
    # whhX    : (2H, 8H)      block-diagonal: rows 0:H -> cols 0:4H, rows H:2H -> cols 4H:8H
    # bX      : (1, 8H)       b_ih + b_hh, same layout as wih
    # wq/wk/wv: (2H, 2H)      bq/bk/bv: (1, 2H)
    # fw1: (2H, 32)  fb1: (1, 32)  fw2t: (1, 32)  fb2: (1, 1)
    # out_ref : (T*B, 1)      sigmoid(logits); rows t-major (r = t*B + b)
    # scratch : gin_f/gin_b (T,B,4H), act_f/act_b (T,B,H)
    T, B, _ = xt_ref.shape
    H = act_f.shape[-1]
    H2, H3, H4 = 2 * H, 3 * H, 4 * H
    TB = T * B
    f32 = jnp.float32

    def bidir_lstm_layer(x_flat, wih_ref_, whh_ref_, b_ref_):
        # Hoisted input projection + bias for ALL timesteps (one big MXU matmul).
        gin = jnp.dot(x_flat, wih_ref_[...],
                      preferred_element_type=f32) + b_ref_[...]          # (T*B, 8H)
        gin_f[...] = gin[:, :H4].reshape(T, B, H4)
        gin_b[...] = gin[:, H4:].reshape(T, B, H4)
        whh = whh_ref_[...]                                              # (2H, 8H)

        def step(s, carry):
            h, c = carry                     # (B, 2H) = [fwd | bwd] each
            tb = T - 1 - s
            # One block-diagonal hidden matmul drives BOTH directions (K = 2H).
            hh = jnp.dot(h, whh, preferred_element_type=f32)             # (B, 8H)
            gf = gin_f[s] + hh[:, :H4]       # forward-dir gates at time s
            gb = gin_b[tb] + hh[:, H4:]      # backward-dir gates at time T-1-s
            # per-direction gate layout: [i | f | o | g]
            sfo_f = jax.nn.sigmoid(gf[:, :H3])
            sfo_b = jax.nn.sigmoid(gb[:, :H3])
            g_f = jnp.tanh(gf[:, H3:])
            g_b = jnp.tanh(gb[:, H3:])
            c_f = sfo_f[:, H:H2] * c[:, :H] + sfo_f[:, :H] * g_f
            c_b = sfo_b[:, H:H2] * c[:, H:] + sfo_b[:, :H] * g_b
            h_f = sfo_f[:, H2:H3] * jnp.tanh(c_f)
            h_b = sfo_b[:, H2:H3] * jnp.tanh(c_b)
            act_f[s] = h_f                   # forward output aligned to time s
            act_b[tb] = h_b                  # backward output aligned to time T-1-s
            return (jnp.concatenate([h_f, h_b], axis=-1),
                    jnp.concatenate([c_f, c_b], axis=-1))

        zeros = jnp.zeros((B, H2), f32)
        jax.lax.fori_loop(0, T, step, (zeros, zeros), unroll=True)
        # Bidirectional (T, B, 2H) output, flattened t-major, stays in VMEM.
        return jnp.concatenate([act_f[...], act_b[...]],
                               axis=-1).reshape(TB, H2)

    # ---- stacked bidirectional LSTM (inter-layer dropout = identity at eval)
    x_flat = xt_ref[...].reshape(TB, xt_ref.shape[-1])
    a0 = bidir_lstm_layer(x_flat, wih0_ref, whh0_ref, b0_ref)            # (T*B, 2H)
    a1 = bidir_lstm_layer(a0, wih1_ref, whh1_ref, b1_ref)                # (T*B, 2H)

    # ---- attention: all batches at once, block-masked so batches don't mix
    q = jnp.dot(a1, wq_ref[...], preferred_element_type=f32) + bq_ref[...]
    k = jnp.dot(a1, wk_ref[...], preferred_element_type=f32) + bk_ref[...]
    v = jnp.dot(a1, wv_ref[...], preferred_element_type=f32) + bv_ref[...]
    # q @ k^T without materializing k.T: contract last dims of both operands.
    energy = jax.lax.dot_general(q, k, (((1,), (1,)), ((), ())),
                                 preferred_element_type=f32)             # (T*B, T*B)
    energy = energy * (1.0 / (float(H2) ** 0.5)) + bias_ref[...]
    e = jnp.exp(energy - jnp.max(energy, axis=-1, keepdims=True))
    attn = e / jnp.sum(e, axis=-1, keepdims=True)
    ctx = jnp.dot(attn, v, preferred_element_type=f32)                   # (T*B, 2H)

    # ---- MLP head
    d1 = jnp.maximum(jnp.dot(ctx, fw1_ref[...], preferred_element_type=f32)
                     + fb1_ref[...], 0.0)                                # (T*B, 32)
    # TODO(synk): nn.Dropout is identity at inference; training-mode dropout not implemented.
    logits = jnp.sum(d1 * fw2t_ref[...], axis=-1, keepdims=True) + fb2_ref[...]
    out_ref[...] = jax.nn.sigmoid(logits)                                # (T*B, 1)


# ===========================================================================
# Wrapper: one fused pallas_call, tiny XLA transposes at the boundary only
# ===========================================================================
@jax.jit
def model_forward(x, kp):
    """x: (B, T, D) batch-first (like the PyTorch module). Returns (B, T, 1)."""
    B, T, D = x.shape
    H = kp['whh0'].shape[0] // 2
    TB = T * B
    xt = jnp.transpose(x, (1, 0, 2))                  # (T, B, D), time-major

    # Additive attention mask computed at trace time: rows are t-major
    # (r = t*B + b) so batch id = r % B; cross-batch entries get -1e30.
    bid = np.arange(TB, dtype=np.int32) % B
    attn_bias = np.where(bid[:, None] == bid[None, :], 0.0, -1e30).astype(np.float32)

    out_flat = pl.pallas_call(
        fused_forward_kernel,
        out_shape=jax.ShapeDtypeStruct((TB, 1), jnp.float32),
        scratch_shapes=[
            pltpu.VMEM((T, B, 4 * H), jnp.float32),   # gin_f (hoisted input proj, fwd)
            pltpu.VMEM((T, B, 4 * H), jnp.float32),   # gin_b (hoisted input proj, bwd)
            pltpu.VMEM((T, B, H), jnp.float32),       # act_f (per-layer fwd hiddens)
            pltpu.VMEM((T, B, H), jnp.float32),       # act_b (per-layer bwd hiddens)
        ],
    )(xt, attn_bias,
      kp['wih0'], kp['whh0'], kp['b0'],
      kp['wih1'], kp['whh1'], kp['b1'],
      kp['wq'], kp['bq'], kp['wk'], kp['bk'], kp['wv'], kp['bv'],
      kp['fw1'], kp['fb1'], kp['fw2t'], kp['fb2'])

    # rows are (t, b) t-major -> batch-first (B, T, 1)
    return jnp.transpose(out_flat.reshape(T, B), (1, 0))[:, :, None]


# ===========================================================================
# Parameters: PyTorch layout for the reference; packed layout for the kernel
# ===========================================================================
def init_params(key, input_dim, hidden_dim):
    """PyTorch-style parameters (weights (out, in), LSTM gate order i,f,g,o)."""
    H = hidden_dim
    keys = iter(jax.random.split(key, 32))
    nrm = lambda shp: (0.1 * jax.random.normal(next(keys), shp)).astype(jnp.float32)
    p = {'w_ih': [], 'w_hh': [], 'b_ih': [], 'b_hh': []}
    for layer in range(2):
        din = input_dim if layer == 0 else 2 * H
        p['w_ih'].append([nrm((4 * H, din)) for _ in range(2)])   # [fwd, bwd]
        p['w_hh'].append([nrm((4 * H, H)) for _ in range(2)])
        p['b_ih'].append([nrm((4 * H,)) for _ in range(2)])
        p['b_hh'].append([nrm((4 * H,)) for _ in range(2)])
    p['Wq'] = nrm((2 * H, 2 * H)); p['bq'] = nrm((2 * H,))
    p['Wk'] = nrm((2 * H, 2 * H)); p['bk'] = nrm((2 * H,))
    p['Wv'] = nrm((2 * H, 2 * H)); p['bv'] = nrm((2 * H,))
    p['W1'] = nrm((32, 2 * H)); p['b1'] = nrm((32,))
    p['W2'] = nrm((1, 32)); p['b2'] = nrm((1,))
    return p


def pack_params(p, hidden_dim):
    """Repack PyTorch-layout params into the fused-kernel layout."""
    H = hidden_dim
    # Per-direction gate order i,f,g,o -> i,f,o,g (contiguous sigmoid slab).
    perm = np.concatenate([np.arange(0, H), np.arange(H, 2 * H),
                           np.arange(3 * H, 4 * H), np.arange(2 * H, 3 * H)])

    def pack_layer(layer):
        din = p['w_ih'][layer][0].shape[1]
        wih = np.zeros((din, 8 * H), np.float32)
        whh = np.zeros((2 * H, 8 * H), np.float32)      # block-diagonal
        b = np.zeros((1, 8 * H), np.float32)
        for d in range(2):
            sl = slice(d * 4 * H, (d + 1) * 4 * H)
            wih[:, sl] = np.asarray(p['w_ih'][layer][d])[perm, :].T
            whh[d * H:(d + 1) * H, sl] = np.asarray(p['w_hh'][layer][d])[perm, :].T
            b[0, sl] = (np.asarray(p['b_ih'][layer][d])
                        + np.asarray(p['b_hh'][layer][d]))[perm]
        return jnp.asarray(wih), jnp.asarray(whh), jnp.asarray(b)

    kp = {}
    kp['wih0'], kp['whh0'], kp['b0'] = pack_layer(0)
    kp['wih1'], kp['whh1'], kp['b1'] = pack_layer(1)
    kp['wq'] = jnp.asarray(np.asarray(p['Wq']).T)
    kp['wk'] = jnp.asarray(np.asarray(p['Wk']).T)
    kp['wv'] = jnp.asarray(np.asarray(p['Wv']).T)
    kp['bq'] = jnp.asarray(np.asarray(p['bq']).reshape(1, -1))
    kp['bk'] = jnp.asarray(np.asarray(p['bk']).reshape(1, -1))
    kp['bv'] = jnp.asarray(np.asarray(p['bv']).reshape(1, -1))
    kp['fw1'] = jnp.asarray(np.asarray(p['W1']).T)                 # (2H, 32)
    kp['fb1'] = jnp.asarray(np.asarray(p['b1']).reshape(1, -1))
    kp['fw2t'] = jnp.asarray(np.asarray(p['W2']).reshape(1, -1))   # (1, 32)
    kp['fb2'] = jnp.asarray(np.asarray(p['b2']).reshape(1, 1))
    return kp


# ===========================================================================
# Pure-JAX reference (PyTorch semantics) for correctness checking
# ===========================================================================
def reference_forward(x, p):
    with jax.default_matmul_precision('float32'):
        H = p['w_hh'][0][0].shape[1]
        xt = jnp.transpose(x, (1, 0, 2))                 # (T, B, D)

        def run_dir(seq, w_ih, w_hh, b_ih, b_hh, reverse):
            Bn = seq.shape[1]
            inp = seq[::-1] if reverse else seq

            def step(carry, x_t):
                h, c = carry
                gates = x_t @ w_ih.T + h @ w_hh.T + b_ih + b_hh
                i = jax.nn.sigmoid(gates[:, :H])
                f = jax.nn.sigmoid(gates[:, H:2 * H])
                g = jnp.tanh(gates[:, 2 * H:3 * H])
                o = jax.nn.sigmoid(gates[:, 3 * H:])
                c = f * c + i * g
                h = o * jnp.tanh(c)
                return (h, c), h

            init = (jnp.zeros((Bn, H), jnp.float32),
                    jnp.zeros((Bn, H), jnp.float32))
            _, hs = jax.lax.scan(step, init, inp)
            return hs[::-1] if reverse else hs

        layer_in = xt
        for layer in range(2):
            hf = run_dir(layer_in, p['w_ih'][layer][0], p['w_hh'][layer][0],
                         p['b_ih'][layer][0], p['b_hh'][layer][0], False)
            hb = run_dir(layer_in, p['w_ih'][layer][1], p['w_hh'][layer][1],
                         p['b_ih'][layer][1], p['b_hh'][layer][1], True)
            layer_in = jnp.concatenate([hf, hb], axis=-1)   # (T, B, 2H)

        lo = jnp.transpose(layer_in, (1, 0, 2))             # (B, T, 2H)
        q = lo @ p['Wq'].T + p['bq']
        k = lo @ p['Wk'].T + p['bk']
        v = lo @ p['Wv'].T + p['bv']
        energy = jnp.einsum('btd,bsd->bts', q, k) / jnp.sqrt(
            jnp.float32(lo.shape[-1]))
        attn = jax.nn.softmax(energy, axis=-1)
        ctx = jnp.einsum('bts,bsd->btd', attn, v)
        d1 = jax.nn.relu(ctx @ p['W1'].T + p['b1'])
        logits = d1 @ p['W2'].T + p['b2']
        return jax.nn.sigmoid(logits)


if __name__ == "__main__":
    B, T, D, H = 8, 8, 16, 64            # batch, seq_len, input_dim, hidden_dim
    key = jax.random.PRNGKey(0)
    kx, kparam = jax.random.split(key)
    x = jax.random.normal(kx, (B, T, D), dtype=jnp.float32)
    params = init_params(kparam, D, H)
    kp = pack_params(params, H)

    out = jax.block_until_ready(model_forward(x, kp))
    assert out.shape == (B, T, 1)

    ref = jax.block_until_ready(reference_forward(x, params))
    np.testing.assert_allclose(np.asarray(out), np.asarray(ref),
                               atol=5e-3, rtol=5e-3)
    print("KERNEL_OK")
</pallas_src>

<mosaic_0001>
module attributes {stable_mosaic.version = 11 : i64} {
  func.func @fused_forward_kernel(%arg0: memref<8x8x16xf32, #tpu.memory_space<vmem>>, %arg1: memref<64x64xf32, #tpu.memory_space<vmem>>, %arg2: memref<16x512xf32, #tpu.memory_space<vmem>>, %arg3: memref<128x512xf32, #tpu.memory_space<vmem>>, %arg4: memref<1x512xf32, #tpu.memory_space<vmem>>, %arg5: memref<128x512xf32, #tpu.memory_space<vmem>>, %arg6: memref<128x512xf32, #tpu.memory_space<vmem>>, %arg7: memref<1x512xf32, #tpu.memory_space<vmem>>, %arg8: memref<128x128xf32, #tpu.memory_space<vmem>>, %arg9: memref<1x128xf32, #tpu.memory_space<vmem>>, %arg10: memref<128x128xf32, #tpu.memory_space<vmem>>, %arg11: memref<1x128xf32, #tpu.memory_space<vmem>>, %arg12: memref<128x128xf32, #tpu.memory_space<vmem>>, %arg13: memref<1x128xf32, #tpu.memory_space<vmem>>, %arg14: memref<128x32xf32, #tpu.memory_space<vmem>>, %arg15: memref<1x32xf32, #tpu.memory_space<vmem>>, %arg16: memref<1x32xf32, #tpu.memory_space<vmem>>, %arg17: memref<1x1xf32, #tpu.memory_space<vmem>>, %arg18: memref<64x1xf32, #tpu.memory_space<vmem>>, %arg19: memref<8x8x256xf32, #tpu.memory_space<vmem>>, %arg20: memref<8x8x256xf32, #tpu.memory_space<vmem>>, %arg21: memref<8x8x64xf32, #tpu.memory_space<vmem>>, %arg22: memref<8x8x64xf32, #tpu.memory_space<vmem>>) attributes {dimension_semantics = [], scalar_prefetch = 0 : i64, scratch_operands = 4 : i64, tpu.core_type = #tpu.core_type<tc>} {
    %c0 = arith.constant 0 : index
    %c0_0 = arith.constant 0 : index
    %c0_1 = arith.constant 0 : index
    %0 = vector.load %arg0[%c0, %c0_0, %c0_1] : memref<8x8x16xf32, #tpu.memory_space<vmem>>, vector<8x8x16xf32>
    %1 = vector.shape_cast %0 : vector<8x8x16xf32> to vector<64x16xf32>
    %c0_2 = arith.constant 0 : index
    %c0_3 = arith.constant 0 : index
    %2 = vector.load %arg2[%c0_2, %c0_3] : memref<16x512xf32, #tpu.memory_space<vmem>>, vector<16x512xf32>
    %cst = arith.constant dense<0.000000e+00> : vector<64x512xf32>
    %3 = tpu.matmul %1, %2, %cst {dimension_numbers = #tpu.dot_dimension_numbers<[1], [0], [0], [1], [0, 0, 1, 1], [], []>} : vector<64x16xf32>, vector<16x512xf32>, vector<64x512xf32> -> vector<64x512xf32>
    %c0_4 = arith.constant 0 : index
    %c0_5 = arith.constant 0 : index
    %4 = vector.load %arg4[%c0_4, %c0_5] : memref<1x512xf32, #tpu.memory_space<vmem>>, vector<1x512xf32>
    %5 = vector.broadcast %4 : vector<1x512xf32> to vector<64x512xf32>
    %6 = arith.addf %3, %5 : vector<64x512xf32>
    %7 = vector.extract_strided_slice %6 {offsets = [0, 0], sizes = [64, 256], strides = [1, 1]} : vector<64x512xf32> to vector<64x256xf32>
    %8 = vector.shape_cast %7 : vector<64x256xf32> to vector<8x8x256xf32>
    %c0_6 = arith.constant 0 : index
    %c0_7 = arith.constant 0 : index
    %c0_8 = arith.constant 0 : index
    %9 = vector.load %arg19[%c0_6, %c0_7, %c0_8] : memref<8x8x256xf32, #tpu.memory_space<vmem>>, vector<8x8x256xf32>
    tpu.vector_store %arg19[%c0_6, %c0_7, %c0_8], %8 {strides = array<i32>} : memref<8x8x256xf32, #tpu.memory_space<vmem>>, vector<8x8x256xf32>,
    %10 = vector.extract_strided_slice %6 {offsets = [0, 256], sizes = [64, 256], strides = [1, 1]} : vector<64x512xf32> to vector<64x256xf32>
    %11 = vector.shape_cast %10 : vector<64x256xf32> to vector<8x8x256xf32>
    %c0_9 = arith.constant 0 : index
    %c0_10 = arith.constant 0 : index
    %c0_11 = arith.constant 0 : index
    %12 = vector.load %arg20[%c0_9, %c0_10, %c0_11] : memref<8x8x256xf32, #tpu.memory_space<vmem>>, vector<8x8x256xf32>
    tpu.vector_store %arg20[%c0_9, %c0_10, %c0_11], %11 {strides = array<i32>} : memref<8x8x256xf32, #tpu.memory_space<vmem>>, vector<8x8x256xf32>,
    %c0_12 = arith.constant 0 : index
    %c0_13 = arith.constant 0 : index
    %13 = vector.load %arg3[%c0_12, %c0_13] : memref<128x512xf32, #tpu.memory_space<vmem>>, vector<128x512xf32>
    %cst_14 = arith.constant 0.000000e+00 : f32
    %14 = vector.broadcast %cst_14 : f32 to vector<8x128xf32>
    %c0_i32 = arith.constant 0 : i32
    %c7_i32 = arith.constant 7 : i32
    %15 = arith.subi %c7_i32, %c0_i32 : i32
    %cst_15 = arith.constant dense<0.000000e+00> : vector<8x512xf32>
    %16 = tpu.matmul %14, %13, %cst_15 {dimension_numbers = #tpu.dot_dimension_numbers<[1], [0], [0], [1], [0, 0, 1, 1], [], []>} : vector<8x128xf32>, vector<128x512xf32>, vector<8x512xf32> -> vector<8x512xf32>
    %17 = arith.index_cast %c0_i32 : i32 to index
    %c0_16 = arith.constant 0 : index
    %c0_17 = arith.constant 0 : index
    %18 = vector.load %arg19[%17, %c0_16, %c0_17] : memref<8x8x256xf32, #tpu.memory_space<vmem>>, vector<1x8x256xf32>
    %19 = vector.shape_cast %18 : vector<1x8x256xf32> to vector<8x256xf32>
    %20 = vector.extract_strided_slice %16 {offsets = [0, 0], sizes = [8, 256], strides = [1, 1]} : vector<8x512xf32> to vector<8x256xf32>
    %21 = arith.addf %19, %20 : vector<8x256xf32>
    %22 = arith.index_cast %15 : i32 to index
    %c0_18 = arith.constant 0 : index
    %c0_19 = arith.constant 0 : index
    %23 = vector.load %arg20[%22, %c0_18, %c0_19] : memref<8x8x256xf32, #tpu.memory_space<vmem>>, vector<1x8x256xf32>
    %24 = vector.shape_cast %23 : vector<1x8x256xf32> to vector<8x256xf32>
    %25 = vector.extract_strided_slice %16 {offsets = [0, 256], sizes = [8, 256], strides = [1, 1]} : vector<8x512xf32> to vector<8x256xf32>
    %26 = arith.addf %24, %25 : vector<8x256xf32>
    %27 = vector.extract_strided_slice %21 {offsets = [0, 0], sizes = [8, 192], strides = [1, 1]} : vector<8x256xf32> to vector<8x192xf32>
    %28 = arith.negf %27 : vector<8x192xf32>
    %29 = math.exp %28 : vector<8x192xf32>
    %cst_20 = arith.constant 1.000000e+00 : f32
    %30 = vector.broadcast %cst_20 : f32 to vector<8x192xf32>
    %31 = arith.addf %30, %29 : vector<8x192xf32>
    %32 = arith.divf %30, %31 : vector<8x192xf32>
    %33 = vector.extract_strided_slice %26 {offsets = [0, 0], sizes = [8, 192], strides = [1, 1]} : vector<8x256xf32> to vector<8x192xf32>
    %34 = arith.negf %33 : vector<8x192xf32>
    %35 = math.exp %34 : vector<8x192xf32>
    %cst_21 = arith.constant 1.000000e+00 : f32
    %36 = vector.broadcast %cst_21 : f32 to vector<8x192xf32>
    %37 = arith.addf %36, %35 : vector<8x192xf32>
    %38 = arith.divf %36, %37 : vector<8x192xf32>
    %39 = vector.extract_strided_slice %21 {offsets = [0, 192], sizes = [8, 64], strides = [1, 1]} : vector<8x256xf32> to vector<8x64xf32>
    %40 = math.tanh %39 : vector<8x64xf32>
    %41 = vector.extract_strided_slice %26 {offsets = [0, 192], sizes = [8, 64], strides = [1, 1]} : vector<8x256xf32> to vector<8x64xf32>
    %42 = math.tanh %41 : vector<8x64xf32>
    %43 = vector.extract_strided_slice %32 {offsets = [0, 64], sizes = [8, 64], strides = [1, 1]} : vector<8x192xf32> to vector<8x64xf32>
    %44 = vector.extract_strided_slice %14 {offsets = [0, 0], sizes = [8, 64], strides = [1, 1]} : vector<8x128xf32> to vector<8x64xf32>
    %45 = arith.mulf %43, %44 : vector<8x64xf32>
    %46 = vector.extract_strided_slice %32 {offsets = [0, 0], sizes = [8, 64], strides = [1, 1]} : vector<8x192xf32> to vector<8x64xf32>
    %47 = arith.mulf %46, %40 : vector<8x64xf32>
    %48 = arith.addf %45, %47 : vector<8x64xf32>
    %49 = vector.extract_strided_slice %38 {offsets = [0, 64], sizes = [8, 64], strides = [1, 1]} : vector<8x192xf32> to vector<8x64xf32>
    %50 = vector.extract_strided_slice %14 {offsets = [0, 64], sizes = [8, 64], strides = [1, 1]} : vector<8x128xf32> to vector<8x64xf32>
    %51 = arith.mulf %49, %50 : vector<8x64xf32>
    %52 = vector.extract_strided_slice %38 {offsets = [0, 0], sizes = [8, 64], strides = [1, 1]} : vector<8x192xf32> to vector<8x64xf32>
    %53 = arith.mulf %52, %42 : vector<8x64xf32>
    %54 = arith.addf %51, %53 : vector<8x64xf32>
    %55 = vector.extract_strided_slice %32 {offsets = [0, 128], sizes = [8, 64], strides = [1, 1]} : vector<8x192xf32> to vector<8x64xf32>
    %56 = math.tanh %48 : vector<8x64xf32>
    %57 = arith.mulf %55, %56 : vector<8x64xf32>
    %58 = vector.extract_strided_slice %38 {offsets = [0, 128], sizes = [8, 64], strides = [1, 1]} : vector<8x192xf32> to vector<8x64xf32>
    %59 = math.tanh %54 : vector<8x64xf32>
    %60 = arith.mulf %58, %59 : vector<8x64xf32>
    %61 = arith.index_cast %c0_i32 : i32 to index
    %c0_22 = arith.constant 0 : index
    %c0_23 = arith.constant 0 : index
    %62 = vector.load %arg21[%61, %c0_22, %c0_23] : memref<8x8x64xf32, #tpu.memory_space<vmem>>, vector<1x8x64xf32>
    %63 = vector.shape_cast %62 : vector<1x8x64xf32> to vector<8x64xf32>
    %64 = vector.shape_cast %57 : vector<8x64xf32> to vector<1x8x64xf32>
    tpu.vector_store %arg21[%61, %c0_22, %c0_23], %64 {strides = array<i32>} : memref<8x8x64xf32, #tpu.memory_space<vmem>>, vector<1x8x64xf32>,
    %65 = arith.index_cast %15 : i32 to index
    %c0_24 = arith.constant 0 : index
    %c0_25 = arith.constant 0 : index
    %66 = vector.load %arg22[%65, %c0_24, %c0_25] : memref<8x8x64xf32, #tpu.memory_space<vmem>>, vector<1x8x64xf32>
    %67 = vector.shape_cast %66 : vector<1x8x64xf32> to vector<8x64xf32>
    %68 = vector.shape_cast %60 : vector<8x64xf32> to vector<1x8x64xf32>
    tpu.vector_store %arg22[%65, %c0_24, %c0_25], %68 {strides = array<i32>} : memref<8x8x64xf32, #tpu.memory_space<vmem>>, vector<1x8x64xf32>,
    %69 = tpu.concatenate %57, %60 in 1 : vector<8x64xf32>, vector<8x64xf32> -> vector<8x128xf32>
    %70 = tpu.concatenate %48, %54 in 1 : vector<8x64xf32>, vector<8x64xf32> -> vector<8x128xf32>
    %c1_i32 = arith.constant 1 : i32
    %c7_i32_26 = arith.constant 7 : i32
    %71 = arith.subi %c7_i32_26, %c1_i32 : i32
    %cst_27 = arith.constant dense<0.000000e+00> : vector<8x512xf32>
    %72 = tpu.matmul %69, %13, %cst_27 {dimension_numbers = #tpu.dot_dimension_numbers<[1], [0], [0], [1], [0, 0, 1, 1], [], []>} : vector<8x128xf32>, vector<128x512xf32>, vector<8x512xf32> -> vector<8x512xf32>
    %73 = arith.index_cast %c1_i32 : i32 to index
    %c0_28 = arith.constant 0 : index
    %c0_29 = arith.constant 0 : index
    %74 = vector.load %arg19[%73, %c0_28, %c0_29] : memref<8x8x256xf32, #tpu.memory_space<vmem>>, vector<1x8x256xf32>
    %75 = vector.shape_cast %74 : vector<1x8x256xf32> to vector<8x256xf32>
    %76 = vector.extract_strided_slice %72 {offsets = [0, 0], sizes = [8, 256], strides = [1, 1]} : vector<8x512xf32> to vector<8x256xf32>
    %77 = arith.addf %75, %76 : vector<8x256xf32>
    %78 = arith.index_cast %71 : i32 to index
    %c0_30 = arith.constant 0 : index
    %c0_31 = arith.constant 0 : index
    %79 = vector.load %arg20[%78, %c0_30, %c0_31] : memref<8x8x256xf32, #tpu.memory_space<vmem>>, vector<1x8x256xf32>
    %80 = vector.shape_cast %79 : vector<1x8x256xf32> to vector<8x256xf32>
    %81 = vector.extract_strided_slice %72 {offsets = [0, 256], sizes = [8, 256], strides = [1, 1]} : vector<8x512xf32> to vector<8x256xf32>
    %82 = arith.addf %80, %81 : vector<8x256xf32>
    %83 = vector.extract_strided_slice %77 {offsets = [0, 0], sizes = [8, 192], strides = [1, 1]} : vector<8x256xf32> to vector<8x192xf32>
    %84 = arith.negf %83 : vector<8x192xf32>
    %85 = math.exp %84 : vector<8x192xf32>
    %cst_32 = arith.constant 1.000000e+00 : f32
    %86 = vector.broadcast %cst_32 : f32 to vector<8x192xf32>
    %87 = arith.addf %86, %85 : vector<8x192xf32>
    %88 = arith.divf %86, %87 : vector<8x192xf32>
    %89 = vector.extract_strided_slice %82 {offsets = [0, 0], sizes = [8, 192], strides = [1, 1]} : vector<8x256xf32> to vector<8x192xf32>
    %90 = arith.negf %89 : vector<8x192xf32>
    %91 = math.exp %90 : vector<8x192xf32>
    %cst_33 = arith.constant 1.000000e+00 : f32
    %92 = vector.broadcast %cst_33 : f32 to vector<8x192xf32>
    %93 = arith.addf %92, %91 : vector<8x192xf32>
    %94 = arith.divf %92, %93 : vector<8x192xf32>
    %95 = vector.extract_strided_slice %77 {offsets = [0, 192], sizes = [8, 64], strides = [1, 1]} : vector<8x256xf32> to vector<8x64xf32>
    %96 = math.tanh %95 : vector<8x64xf32>
    %97 = vector.extract_strided_slice %82 {offsets = [0, 192], sizes = [8, 64], strides = [1, 1]} : vector<8x256xf32> to vector<8x64xf32>
    %98 = math.tanh %97 : vector<8x64xf32>
    %99 = vector.extract_strided_slice %88 {offsets = [0, 64], sizes = [8, 64], strides = [1, 1]} : vector<8x192xf32> to vector<8x64xf32>
    %100 = vector.extract_strided_slice %70 {offsets = [0, 0], sizes = [8, 64], strides = [1, 1]} : vector<8x128xf32> to vector<8x64xf32>
    %101 = arith.mulf %99, %100 : vector<8x64xf32>
    %102 = vector.extract_strided_slice %88 {offsets = [0, 0], sizes = [8, 64], strides = [1, 1]} : vector<8x192xf32> to vector<8x64xf32>
    %103 = arith.mulf %102, %96 : vector<8x64xf32>
    %104 = arith.addf %101, %103 : vector<8x64xf32>
    %105 = vector.extract_strided_slice %94 {offsets = [0, 64], sizes = [8, 64], strides = [1, 1]} : vector<8x192xf32> to vector<8x64xf32>
    %106 = vector.extract_strided_slice %70 {offsets = [0, 64], sizes = [8, 64], strides = [1, 1]} : vector<8x128xf32> to vector<8x64xf32>
    %107 = arith.mulf %105, %106 : vector<8x64xf32>
    %108 = vector.extract_strided_slice %94 {offsets = [0, 0], sizes = [8, 64], strides = [1, 1]} : vector<8x192xf32> to vector<8x64xf32>
    %109 = arith.mulf %108, %98 : vector<8x64xf32>
    %110 = arith.addf %107, %109 : vector<8x64xf32>
    %111 = vector.extract_strided_slice %88 {offsets = [0, 128], sizes = [8, 64], strides = [1, 1]} : vector<8x192xf32> to vector<8x64xf32>
    %112 = math.tanh %104 : vector<8x64xf32>
    %113 = arith.mulf %111, %112 : vector<8x64xf32>
    %114 = vector.extract_strided_slice %94 {offsets = [0, 128], sizes = [8, 64], strides = [1, 1]} : vector<8x192xf32> to vector<8x64xf32>
    %115 = math.tanh %110 : vector<8x64xf32>
    %116 = arith.mulf %114, %115 : vector<8x64xf32>
    %117 = arith.index_cast %c1_i32 : i32 to index
    %c0_34 = arith.constant 0 : index
    %c0_35 = arith.constant 0 : index
    %118 = vector.load %arg21[%117, %c0_34, %c0_35] : memref<8x8x64xf32, #tpu.memory_space<vmem>>, vector<1x8x64xf32>
    %119 = vector.shape_cast %118 : vector<1x8x64xf32> to vector<8x64xf32>
    %120 = vector.shape_cast %113 : vector<8x64xf32> to vector<1x8x64xf32>
    tpu.vector_store %arg21[%117, %c0_34, %c0_35], %120 {strides = array<i32>} : memref<8x8x64xf32, #tpu.memory_space<vmem>>, vector<1x8x64xf32>,
    %121 = arith.index_cast %71 : i32 to index
    %c0_36 = arith.constant 0 : index
    %c0_37 = arith.constant 0 : index
    %122 = vector.load %arg22[%121, %c0_36, %c0_37] : memref<8x8x64xf32, #tpu.memory_space<vmem>>, vector<1x8x64xf32>
    %123 = vector.shape_cast %122 : vector<1x8x64xf32> to vector<8x64xf32>
    %124 = vector.shape_cast %116 : vector<8x64xf32> to vector<1x8x64xf32>
    tpu.vector_store %arg22[%121, %c0_36, %c0_37], %124 {strides = array<i32>} : memref<8x8x64xf32, #tpu.memory_space<vmem>>, vector<1x8x64xf32>,
    %125 = tpu.concatenate %113, %116 in 1 : vector<8x64xf32>, vector<8x64xf32> -> vector<8x128xf32>
    %126 = tpu.concatenate %104, %110 in 1 : vector<8x64xf32>, vector<8x64xf32> -> vector<8x128xf32>
    %c2_i32 = arith.constant 2 : i32
    %c7_i32_38 = arith.constant 7 : i32
    %127 = arith.subi %c7_i32_38, %c2_i32 : i32
    %cst_39 = arith.constant dense<0.000000e+00> : vector<8x512xf32>
    %128 = tpu.matmul %125, %13, %cst_39 {dimension_numbers = #tpu.dot_dimension_numbers<[1], [0], [0], [1], [0, 0, 1, 1], [], []>} : vector<8x128xf32>, vector<128x512xf32>, vector<8x512xf32> -> vector<8x512xf32>
    %129 = arith.index_cast %c2_i32 : i32 to index
    %c0_40 = arith.constant 0 : index
    %c0_41 = arith.constant 0 : index
    %130 = vector.load %arg19[%129, %c0_40, %c0_41] : memref<8x8x256xf32, #tpu.memory_space<vmem>>, vector<1x8x256xf32>
    %131 = vector.shape_cast %130 : vector<1x8x256xf32> to vector<8x256xf32>
    %132 = vector.extract_strided_slice %128 {offsets = [0, 0], sizes = [8, 256], strides = [1, 1]} : vector<8x512xf32> to vector<8x256xf32>
    %133 = arith.addf %131, %132 : vector<8x256xf32>
    %134 = arith.index_cast %127 : i32 to index
    %c0_42 = arith.constant 0 : index
    %c0_43 = arith.constant 0 : index
    %135 = vector.load %arg20[%134, %c0_42, %c0_43] : memref<8x8x256xf32, #tpu.memory_space<vmem>>, vector<1x8x256xf32>
    %136 = vector.shape_cast %135 : vector<1x8x256xf32> to vector<8x256xf32>
    %137 = vector.extract_strided_slice %128 {offsets = [0, 256], sizes = [8, 256], strides = [1, 1]} : vector<8x512xf32> to vector<8x256xf32>
    %138 = arith.addf %136, %137 : vector<8x256xf32>
    %139 = vector.extract_strided_slice %133 {offsets = [0, 0], sizes = [8, 192], strides = [1, 1]} : vector<8x256xf32> to vector<8x192xf32>
    %140 = arith.negf %139 : vector<8x192xf32>
    %141 = math.exp %140 : vector<8x192xf32>
    %cst_44 = arith.constant 1.000000e+00 : f32
    %142 = vector.broadcast %cst_44 : f32 to vector<8x192xf32>
    %143 = arith.addf %142, %141 : vector<8x192xf32>
    %144 = arith.divf %142, %143 : vector<8x192xf32>
    %145 = vector.extract_strided_slice %138 {offsets = [0, 0], sizes = [8, 192], strides = [1, 1]} : vector<8x256xf32> to vector<8x192xf32>
    %146 = arith.negf %145 : vector<8x192xf32>
    %147 = math.exp %146 : vector<8x192xf32>
    %cst_45 = arith.constant 1.000000e+00 : f32
    %148 = vector.broadcast %cst_45 : f32 to vector<8x192xf32>
    %149 = arith.addf %148, %147 : vector<8x192xf32>
    %150 = arith.divf %148, %149 : vector<8x192xf32>
    %151 = vector.extract_strided_slice %133 {offsets = [0, 192], sizes = [8, 64], strides = [1, 1]} : vector<8x256xf32> to vector<8x64xf32>
    %152 = math.tanh %151 : vector<8x64xf32>
    %153 = vector.extract_strided_slice %138 {offsets = [0, 192], sizes = [8, 64], strides = [1, 1]} : vector<8x256xf32> to vector<8x64xf32>
    %154 = math.tanh %153 : vector<8x64xf32>
    %155 = vector.extract_strided_slice %144 {offsets = [0, 64], sizes = [8, 64], strides = [1, 1]} : vector<8x192xf32> to vector<8x64xf32>
    %156 = vector.extract_strided_slice %126 {offsets = [0, 0], sizes = [8, 64], strides = [1, 1]} : vector<8x128xf32> to vector<8x64xf32>
    %157 = arith.mulf %155, %156 : vector<8x64xf32>
    %158 = vector.extract_strided_slice %144 {offsets = [0, 0], sizes = [8, 64], strides = [1, 1]} : vector<8x192xf32> to vector<8x64xf32>
    %159 = arith.mulf %158, %152 : vector<8x64xf32>
    %160 = arith.addf %157, %159 : vector<8x64xf32>
    %161 = vector.extract_strided_slice %150 {offsets = [0, 64], sizes = [8, 64], strides = [1, 1]} : vector<8x192xf32> to vector<8x64xf32>
    %162 = vector.extract_strided_slice %126 {offsets = [0, 64], sizes = [8, 64], strides = [1, 1]} : vector<8x128xf32> to vector<8x64xf32>
    %163 = arith.mulf %161, %162 : vector<8x64xf32>
    %164 = vector.extract_strided_slice %150 {offsets = [0, 0], sizes = [8, 64], strides = [1, 1]} : vector<8x192xf32> to vector<8x64xf32>
    %165 = arith.mulf %164, %154 : vector<8x64xf32>
    %166 = arith.addf %163, %165 : vector<8x64xf32>
    %167 = vector.extract_strided_slice %144 {offsets = [0, 128], sizes = [8, 64], strides = [1, 1]} : vector<8x192xf32> to vector<8x64xf32>
    %168 = math.tanh %160 : vector<8x64xf32>
    %169 = arith.mulf %167, %168 : vector<8x64xf32>
    %170 = vector.extract_strided_slice %150 {offsets = [0, 128], sizes = [8, 64], strides = [1, 1]} : vector<8x192xf32> to vector<8x64xf32>
    %171 = math.tanh %166 : vector<8x64xf32>
    %172 = arith.mulf %170, %171 : vector<8x64xf32>
    %173 = arith.index_cast %c2_i32 : i32 to index
    %c0_46 = arith.constant 0 : index
    %c0_47 = arith.constant 0 : index
    %174 = vector.load %arg21[%173, %c0_46, %c0_47] : memref<8x8x64xf32, #tpu.memory_space<vmem>>, vector<1x8x64xf32>
    %175 = vector.shape_cast %174 : vector<1x8x64xf32> to vector<8x64xf32>
    %176 = vector.shape_cast %169 : vector<8x64xf32> to vector<1x8x64xf32>
    tpu.vector_store %arg21[%173, %c0_46, %c0_47], %176 {strides = array<i32>} : memref<8x8x64xf32, #tpu.memory_space<vmem>>, vector<1x8x64xf32>,
    %177 = arith.index_cast %127 : i32 to index
    %c0_48 = arith.constant 0 : index
    %c0_49 = arith.constant 0 : index
    %178 = vector.load %arg22[%177, %c0_48, %c0_49] : memref<8x8x64xf32, #tpu.memory_space<vmem>>, vector<1x8x64xf32>
    %179 = vector.shape_cast %178 : vector<1x8x64xf32> to vector<8x64xf32>
    %180 = vector.shape_cast %172 : vector<8x64xf32> to vector<1x8x64xf32>
    tpu.vector_store %arg22[%177, %c0_48, %c0_49], %180 {strides = array<i32>} : memref<8x8x64xf32, #tpu.memory_space<vmem>>, vector<1x8x64xf32>,
    %181 = tpu.concatenate %169, %172 in 1 : vector<8x64xf32>, vector<8x64xf32> -> vector<8x128xf32>
    %182 = tpu.concatenate %160, %166 in 1 : vector<8x64xf32>, vector<8x64xf32> -> vector<8x128xf32>
    %c3_i32 = arith.constant 3 : i32
    %c7_i32_50 = arith.constant 7 : i32
    %183 = arith.subi %c7_i32_50, %c3_i32 : i32
    %cst_51 = arith.constant dense<0.000000e+00> : vector<8x512xf32>
    %184 = tpu.matmul %181, %13, %cst_51 {dimension_numbers = #tpu.dot_dimension_numbers<[1], [0], [0], [1], [0, 0, 1, 1], [], []>} : vector<8x128xf32>, vector<128x512xf32>, vector<8x512xf32> -> vector<8x512xf32>
    %185 = arith.index_cast %c3_i32 : i32 to index
    %c0_52 = arith.constant 0 : index
    %c0_53 = arith.constant 0 : index
    %186 = vector.load %arg19[%185, %c0_52, %c0_53] : memref<8x8x256xf32, #tpu.memory_space<vmem>>, vector<1x8x256xf32>
    %187 = vector.shape_cast %186 : vector<1x8x256xf32> to vector<8x256xf32>
    %188 = vector.extract_strided_slice %184 {offsets = [0, 0], sizes = [8, 256], strides = [1, 1]} : vector<8x512xf32> to vector<8x256xf32>
    %189 = arith.addf %187, %188 : vector<8x256xf32>
    %190 = arith.index_cast %183 : i32 to index
    %c0_54 = arith.constant 0 : index
    %c0_55 = arith.constant 0 : index
    %191 = vector.load %arg20[%190, %c0_54, %c0_55] : memref<8x8x256xf32, #tpu.memory_space<vmem>>, vector<1x8x256xf32>
    %192 = vector.shape_cast %191 : vector<1x8x256xf32> to vector<8x256xf32>
    %193 = vector.extract_strided_slice %184 {offsets = [0, 256], sizes = [8, 256], strides = [1, 1]} : vector<8x512xf32> to vector<8x256xf32>
    %194 = arith.addf %192, %193 : vector<8x256xf32>
    %195 = vector.extract_strided_slice %189 {offsets = [0, 0], sizes = [8, 192], strides = [1, 1]} : vector<8x256xf32> to vector<8x192xf32>
    %196 = arith.negf %195 : vector<8x192xf32>
    %197 = math.exp %196 : vector<8x192xf32>
    %cst_56 = arith.constant 1.000000e+00 : f32
    %198 = vector.broadcast %cst_56 : f32 to vector<8x192xf32>
    %199 = arith.addf %198, %197 : vector<8x192xf32>
    %200 = arith.divf %198, %199 : vector<8x192xf32>
    %201 = vector.extract_strided_slice %194 {offsets = [0, 0], sizes = [8, 192], strides = [1, 1]} : vector<8x256xf32> to vector<8x192xf32>
    %202 = arith.negf %201 : vector<8x192xf32>
    %203 = math.exp %202 : vector<8x192xf32>
    %cst_57 = arith.constant 1.000000e+00 : f32
    %204 = vector.broadcast %cst_57 : f32 to vector<8x192xf32>
    %205 = arith.addf %204, %203 : vector<8x192xf32>
    %206 = arith.divf %204, %205 : vector<8x192xf32>
    %207 = vector.extract_strided_slice %189 {offsets = [0, 192], sizes = [8, 64], strides = [1, 1]} : vector<8x256xf32> to vector<8x64xf32>
    %208 = math.tanh %207 : vector<8x64xf32>
    %209 = vector.extract_strided_slice %194 {offsets = [0, 192], sizes = [8, 64], strides = [1, 1]} : vector<8x256xf32> to vector<8x64xf32>
    %210 = math.tanh %209 : vector<8x64xf32>
    %211 = vector.extract_strided_slice %200 {offsets = [0, 64], sizes = [8, 64], strides = [1, 1]} : vector<8x192xf32> to vector<8x64xf32>
    %212 = vector.extract_strided_slice %182 {offsets = [0, 0], sizes = [8, 64], strides = [1, 1]} : vector<8x128xf32> to vector<8x64xf32>
    %213 = arith.mulf %211, %212 : vector<8x64xf32>
    %214 = vector.extract_strided_slice %200 {offsets = [0, 0], sizes = [8, 64], strides = [1, 1]} : vector<8x192xf32> to vector<8x64xf32>
    %215 = arith.mulf %214, %208 : vector<8x64xf32>
    %216 = arith.addf %213, %215 : vector<8x64xf32>
    %217 = vector.extract_strided_slice %206 {offsets = [0, 64], sizes = [8, 64], strides = [1, 1]} : vector<8x192xf32> to vector<8x64xf32>
    %218 = vector.extract_strided_slice %182 {offsets = [0, 64], sizes = [8, 64], strides = [1, 1]} : vector<8x128xf32> to vector<8x64xf32>
    %219 = arith.mulf %217, %218 : vector<8x64xf32>
    %220 = vector.extract_strided_slice %206 {offsets = [0, 0], sizes = [8, 64], strides = [1, 1]} : vector<8x192xf32> to vector<8x64xf32>
    %221 = arith.mulf %220, %210 : vector<8x64xf32>
    %222 = arith.addf %219, %221 : vector<8x64xf32>
    %223 = vector.extract_strided_slice %200 {offsets = [0, 128], sizes = [8, 64], strides = [1, 1]} : vector<8x192xf32> to vector<8x64xf32>
    %224 = math.tanh %216 : vector<8x64xf32>
    %225 = arith.mulf %223, %224 : vector<8x64xf32>
    %226 = vector.extract_strided_slice %206 {offsets = [0, 128], sizes = [8, 64], strides = [1, 1]} : vector<8x192xf32> to vector<8x64xf32>
    %227 = math.tanh %222 : vector<8x64xf32>
    %228 = arith.mulf %226, %227 : vector<8x64xf32>
    %229 = arith.index_cast %c3_i32 : i32 to index
    %c0_58 = arith.constant 0 : index
    %c0_59 = arith.constant 0 : index
    %230 = vector.load %arg21[%229, %c0_58, %c0_59] : memref<8x8x64xf32, #tpu.memory_space<vmem>>, vector<1x8x64xf32>
    %231 = vector.shape_cast %230 : vector<1x8x64xf32> to vector<8x64xf32>
    %232 = vector.shape_cast %225 : vector<8x64xf32> to vector<1x8x64xf32>
    tpu.vector_store %arg21[%229, %c0_58, %c0_59], %232 {strides = array<i32>} : memref<8x8x64xf32, #tpu.memory_space<vmem>>, vector<1x8x64xf32>,
    %233 = arith.index_cast %183 : i32 to index
    %c0_60 = arith.constant 0 : index
    %c0_61 = arith.constant 0 : index
    %234 = vector.load %arg22[%233, %c0_60, %c0_61] : memref<8x8x64xf32, #tpu.memory_space<vmem>>, vector<1x8x64xf32>
    %235 = vector.shape_cast %234 : vector<1x8x64xf32> to vector<8x64xf32>
    %236 = vector.shape_cast %228 : vector<8x64xf32> to vector<1x8x64xf32>
    tpu.vector_store %arg22[%233, %c0_60, %c0_61], %236 {strides = array<i32>} : memref<8x8x64xf32, #tpu.memory_space<vmem>>, vector<1x8x64xf32>,
    %237 = tpu.concatenate %225, %228 in 1 : vector<8x64xf32>, vector<8x64xf32> -> vector<8x128xf32>
    %238 = tpu.concatenate %216, %222 in 1 : vector<8x64xf32>, vector<8x64xf32> -> vector<8x128xf32>
    %c4_i32 = arith.constant 4 : i32
    %c7_i32_62 = arith.constant 7 : i32
    %239 = arith.subi %c7_i32_62, %c4_i32 : i32
    %cst_63 = arith.constant dense<0.000000e+00> : vector<8x512xf32>
    %240 = tpu.matmul %237, %13, %cst_63 {dimension_numbers = #tpu.dot_dimension_numbers<[1], [0], [0], [1], [0, 0, 1, 1], [], []>} : vector<8x128xf32>, vector<128x512xf32>, vector<8x512xf32> -> vector<8x512xf32>
    %241 = arith.index_cast %c4_i32 : i32 to index
    %c0_64 = arith.constant 0 : index
    %c0_65 = arith.constant 0 : index
    %242 = vector.load %arg19[%241, %c0_64, %c0_65] : memref<8x8x256xf32, #tpu.memory_space<vmem>>, vector<1x8x256xf32>
    %243 = vector.shape_cast %242 : vector<1x8x256xf32> to vector<8x256xf32>
    %244 = vector.extract_strided_slice %240 {offsets = [0, 0], sizes = [8, 256], strides = [1, 1]} : vector<8x512xf32> to vector<8x256xf32>
    %245 = arith.addf %243, %244 : vector<8x256xf32>
    %246 = arith.index_cast %239 : i32 to index
    %c0_66 = arith.constant 0 : index
    %c0_67 = arith.constant 0 : index
    %247 = vector.load %arg20[%246, %c0_66, %c0_67] : memref<8x8x256xf32, #tpu.memory_space<vmem>>, vector<1x8x256xf32>
    %248 = vector.shape_cast %247 : vector<1x8x256xf32> to vector<8x256xf32>
    %249 = vector.extract_strided_slice %240 {offsets = [0, 256], sizes = [8, 256], strides = [1, 1]} : vector<8x512xf32> to vector<8x256xf32>
    %250 = arith.addf %248, %249 : vector<8x256xf32>
    %251 = vector.extract_strided_slice %245 {offsets = [0, 0], sizes = [8, 192], strides = [1, 1]} : vector<8x256xf32> to vector<8x192xf32>
    %252 = arith.negf %251 : vector<8x192xf32>
    %253 = math.exp %252 : vector<8x192xf32>
    %cst_68 = arith.constant 1.000000e+00 : f32
    %254 = vector.broadcast %cst_68 : f32 to vector<8x192xf32>
    %255 = arith.addf %254, %253 : vector<8x192xf32>
    %256 = arith.divf %254, %255 : vector<8x192xf32>
    %257 = vector.extract_strided_slice %250 {offsets = [0, 0], sizes = [8, 192], strides = [1, 1]} : vector<8x256xf32> to vector<8x192xf32>
    %258 = arith.negf %257 : vector<8x192xf32>
    %259 = math.exp %258 : vector<8x192xf32>
    %cst_69 = arith.constant 1.000000e+00 : f32
    %260 = vector.broadcast %cst_69 : f32 to vector<8x192xf32>
    %261 = arith.addf %260, %259 : vector<8x192xf32>
    %262 = arith.divf %260, %261 : vector<8x192xf32>
    %263 = vector.extract_strided_slice %245 {offsets = [0, 192], sizes = [8, 64], strides = [1, 1]} : vector<8x256xf32> to vector<8x64xf32>
    %264 = math.tanh %263 : vector<8x64xf32>
    %265 = vector.extract_strided_slice %250 {offsets = [0, 192], sizes = [8, 64], strides = [1, 1]} : vector<8x256xf32> to vector<8x64xf32>
    %266 = math.tanh %265 : vector<8x64xf32>
    %267 = vector.extract_strided_slice %256 {offsets = [0, 64], sizes = [8, 64], strides = [1, 1]} : vector<8x192xf32> to vector<8x64xf32>
    %268 = vector.extract_strided_slice %238 {offsets = [0, 0], sizes = [8, 64], strides = [1, 1]} : vector<8x128xf32> to vector<8x64xf32>
    %269 = arith.mulf %267, %268 : vector<8x64xf32>
    %270 = vector.extract_strided_slice %256 {offsets = [0, 0], sizes = [8, 64], strides = [1, 1]} : vector<8x192xf32> to vector<8x64xf32>
    %271 = arith.mulf %270, %264 : vector<8x64xf32>
    %272 = arith.addf %269, %271 : vector<8x64xf32>
    %273 = vector.extract_strided_slice %262 {offsets = [0, 64], sizes = [8, 64], strides = [1, 1]} : vector<8x192xf32> to vector<8x64xf32>
    %274 = vector.extract_strided_slice %238 {offsets = [0, 64], sizes = [8, 64], strides = [1, 1]} : vector<8x128xf32> to vector<8x64xf32>
    %275 = arith.mulf %273, %274 : vector<8x64xf32>
    %276 = vector.extract_strided_slice %262 {offsets = [0, 0], sizes = [8, 64], strides = [1, 1]} : vector<8x192xf32> to vector<8x64xf32>
    %277 = arith.mulf %276, %266 : vector<8x64xf32>
    %278 = arith.addf %275, %277 : vector<8x64xf32>
    %279 = vector.extract_strided_slice %256 {offsets = [0, 128], sizes = [8, 64], strides = [1, 1]} : vector<8x192xf32> to vector<8x64xf32>
    %280 = math.tanh %272 : vector<8x64xf32>
    %281 = arith.mulf %279, %280 : vector<8x64xf32>
    %282 = vector.extract_strided_slice %262 {offsets = [0, 128], sizes = [8, 64], strides = [1, 1]} : vector<8x192xf32> to vector<8x64xf32>
    %283 = math.tanh %278 : vector<8x64xf32>
    %284 = arith.mulf %282, %283 : vector<8x64xf32>
    %285 = arith.index_cast %c4_i32 : i32 to index
    %c0_70 = arith.constant 0 : index
    %c0_71 = arith.constant 0 : index
    %286 = vector.load %arg21[%285, %c0_70, %c0_71] : memref<8x8x64xf32, #tpu.memory_space<vmem>>, vector<1x8x64xf32>
    %287 = vector.shape_cast %286 : vector<1x8x64xf32> to vector<8x64xf32>
    %288 = vector.shape_cast %281 : vector<8x64xf32> to vector<1x8x64xf32>
    tpu.vector_store %arg21[%285, %c0_70, %c0_71], %288 {strides = array<i32>} : memref<8x8x64xf32, #tpu.memory_space<vmem>>, vector<1x8x64xf32>,
    %289 = arith.index_cast %239 : i32 to index
    %c0_72 = arith.constant 0 : index
    %c0_73 = arith.constant 0 : index
    %290 = vector.load %arg22[%289, %c0_72, %c0_73] : memref<8x8x64xf32, #tpu.memory_space<vmem>>, vector<1x8x64xf32>
    %291 = vector.shape_cast %290 : vector<1x8x64xf32> to vector<8x64xf32>
    %292 = vector.shape_cast %284 : vector<8x64xf32> to vector<1x8x64xf32>
    tpu.vector_store %arg22[%289, %c0_72, %c0_73], %292 {strides = array<i32>} : memref<8x8x64xf32, #tpu.memory_space<vmem>>, vector<1x8x64xf32>,
    %293 = tpu.concatenate %281, %284 in 1 : vector<8x64xf32>, vector<8x64xf32> -> vector<8x128xf32>
    %294 = tpu.concatenate %272, %278 in 1 : vector<8x64xf32>, vector<8x64xf32> -> vector<8x128xf32>
    %c5_i32 = arith.constant 5 : i32
    %c7_i32_74 = arith.constant 7 : i32
    %295 = arith.subi %c7_i32_74, %c5_i32 : i32
    %cst_75 = arith.constant dense<0.000000e+00> : vector<8x512xf32>
    %296 = tpu.matmul %293, %13, %cst_75 {dimension_numbers = #tpu.dot_dimension_numbers<[1], [0], [0], [1], [0, 0, 1, 1], [], []>} : vector<8x128xf32>, vector<128x512xf32>, vector<8x512xf32> -> vector<8x512xf32>
    %297 = arith.index_cast %c5_i32 : i32 to index
    %c0_76 = arith.constant 0 : index
    %c0_77 = arith.constant 0 : index
    %298 = vector.load %arg19[%297, %c0_76, %c0_77] : memref<8x8x256xf32, #tpu.memory_space<vmem>>, vector<1x8x256xf32>
    %299 = vector.shape_cast %298 : vector<1x8x256xf32> to vector<8x256xf32>
    %300 = vector.extract_strided_slice %296 {offsets = [0, 0], sizes = [8, 256], strides = [1, 1]} : vector<8x512xf32> to vector<8x256xf32>
    %301 = arith.addf %299, %300 : vector<8x256xf32>
    %302 = arith.index_cast %295 : i32 to index
    %c0_78 = arith.constant 0 : index
    %c0_79 = arith.constant 0 : index
    %303 = vector.load %arg20[%302, %c0_78, %c0_79] : memref<8x8x256xf32, #tpu.memory_space<vmem>>, vector<1x8x256xf32>
    %304 = vector.shape_cast %303 : vector<1x8x256xf32> to vector<8x256xf32>
    %305 = vector.extract_strided_slice %296 {offsets = [0, 256], sizes = [8, 256], strides = [1, 1]} : vector<8x512xf32> to vector<8x256xf32>
    %306 = arith.addf %304, %305 : vector<8x256xf32>
    %307 = vector.extract_strided_slice %301 {offsets = [0, 0], sizes = [8, 192], strides = [1, 1]} : vector<8x256xf32> to vector<8x192xf32>
    %308 = arith.negf %307 : vector<8x192xf32>
    %309 = math.exp %308 : vector<8x192xf32>
    %cst_80 = arith.constant 1.000000e+00 : f32
    %310 = vector.broadcast %cst_80 : f32 to vector<8x192xf32>
    %311 = arith.addf %310, %309 : vector<8x192xf32>
    %312 = arith.divf %310, %311 : vector<8x192xf32>
    %313 = vector.extract_strided_slice %306 {offsets = [0, 0], sizes = [8, 192], strides = [1, 1]} : vector<8x256xf32> to vector<8x192xf32>
    %314 = arith.negf %313 : vector<8x192xf32>
    %315 = math.exp %314 : vector<8x192xf32>
    %cst_81 = arith.constant 1.000000e+00 : f32
    %316 = vector.broadcast %cst_81 : f32 to vector<8x192xf32>
    %317 = arith.addf %316, %315 : vector<8x192xf32>
    %318 = arith.divf %316, %317 : vector<8x192xf32>
    %319 = vector.extract_strided_slice %301 {offsets = [0, 192], sizes = [8, 64], strides = [1, 1]} : vector<8x256xf32> to vector<8x64xf32>
    %320 = math.tanh %319 : vector<8x64xf32>
    %321 = vector.extract_strided_slice %306 {offsets = [0, 192], sizes = [8, 64], strides = [1, 1]} : vector<8x256xf32> to vector<8x64xf32>
    %322 = math.tanh %321 : vector<8x64xf32>
    %323 = vector.extract_strided_slice %312 {offsets = [0, 64], sizes = [8, 64], strides = [1, 1]} : vector<8x192xf32> to vector<8x64xf32>
    %324 = vector.extract_strided_slice %294 {offsets = [0, 0], sizes = [8, 64], strides = [1, 1]} : vector<8x128xf32> to vector<8x64xf32>
    %325 = arith.mulf %323, %324 : vector<8x64xf32>
    %326 = vector.extract_strided_slice %312 {offsets = [0, 0], sizes = [8, 64], strides = [1, 1]} : vector<8x192xf32> to vector<8x64xf32>
    %327 = arith.mulf %326, %320 : vector<8x64xf32>
    %328 = arith.addf %325, %327 : vector<8x64xf32>
    %329 = vector.extract_strided_slice %318 {offsets = [0, 64], sizes = [8, 64], strides = [1, 1]} : vector<8x192xf32> to vector<8x64xf32>
    %330 = vector.extract_strided_slice %294 {offsets = [0, 64], sizes = [8, 64], strides = [1, 1]} : vector<8x128xf32> to vector<8x64xf32>
    %331 = arith.mulf %329, %330 : vector<8x64xf32>
    %332 = vector.extract_strided_slice %318 {offsets = [0, 0], sizes = [8, 64], strides = [1, 1]} : vector<8x192xf32> to vector<8x64xf32>
    %333 = arith.mulf %332, %322 : vector<8x64xf32>
    %334 = arith.addf %331, %333 : vector<8x64xf32>
    %335 = vector.extract_strided_slice %312 {offsets = [0, 128], sizes = [8, 64], strides = [1, 1]} : vector<8x192xf32> to vector<8x64xf32>
    %336 = math.tanh %328 : vector<8x64xf32>
    %337 = arith.mulf %335, %336 : vector<8x64xf32>
    %338 = vector.extract_strided_slice %318 {offsets = [0, 128], sizes = [8, 64], strides = [1, 1]} : vector<8x192xf32> to vector<8x64xf32>
    %339 = math.tanh %334 : vector<8x64xf32>
    %340 = arith.mulf %338, %339 : vector<8x64xf32>
    %341 = arith.index_cast %c5_i32 : i32 to index
    %c0_82 = arith.constant 0 : index
    %c0_83 = arith.constant 0 : index
    %342 = vector.load %arg21[%341, %c0_82, %c0_83] : memref<8x8x64xf32, #tpu.memory_space<vmem>>, vector<1x8x64xf32>
    %343 = vector.shape_cast %342 : vector<1x8x64xf32> to vector<8x64xf32>
    %344 = vector.shape_cast %337 : vector<8x64xf32> to vector<1x8x64xf32>
    tpu.vector_store %arg21[%341, %c0_82, %c0_83], %344 {strides = array<i32>} : memref<8x8x64xf32, #tpu.memory_space<vmem>>, vector<1x8x64xf32>,
    %345 = arith.index_cast %295 : i32 to index
    %c0_84 = arith.constant 0 : index
    %c0_85 = arith.constant 0 : index
    %346 = vector.load %arg22[%345, %c0_84, %c0_85] : memref<8x8x64xf32, #tpu.memory_space<vmem>>, vector<1x8x64xf32>
    %347 = vector.shape_cast %346 : vector<1x8x64xf32> to vector<8x64xf32>
    %348 = vector.shape_cast %340 : vector<8x64xf32> to vector<1x8x64xf32>
    tpu.vector_store %arg22[%345, %c0_84, %c0_85], %348 {strides = array<i32>} : memref<8x8x64xf32, #tpu.memory_space<vmem>>, vector<1x8x64xf32>,
    %349 = tpu.concatenate %337, %340 in 1 : vector<8x64xf32>, vector<8x64xf32> -> vector<8x128xf32>
    %350 = tpu.concatenate %328, %334 in 1 : vector<8x64xf32>, vector<8x64xf32> -> vector<8x128xf32>
    %c6_i32 = arith.constant 6 : i32
    %c7_i32_86 = arith.constant 7 : i32
    %351 = arith.subi %c7_i32_86, %c6_i32 : i32
    %cst_87 = arith.constant dense<0.000000e+00> : vector<8x512xf32>
    %352 = tpu.matmul %349, %13, %cst_87 {dimension_numbers = #tpu.dot_dimension_numbers<[1], [0], [0], [1], [0, 0, 1, 1], [], []>} : vector<8x128xf32>, vector<128x512xf32>, vector<8x512xf32> -> vector<8x512xf32>
    %353 = arith.index_cast %c6_i32 : i32 to index
    %c0_88 = arith.constant 0 : index
    %c0_89 = arith.constant 0 : index
    %354 = vector.load %arg19[%353, %c0_88, %c0_89] : memref<8x8x256xf32, #tpu.memory_space<vmem>>, vector<1x8x256xf32>
    %355 = vector.shape_cast %354 : vector<1x8x256xf32> to vector<8x256xf32>
    %356 = vector.extract_strided_slice %352 {offsets = [0, 0], sizes = [8, 256], strides = [1, 1]} : vector<8x512xf32> to vector<8x256xf32>
    %357 = arith.addf %355, %356 : vector<8x256xf32>
    %358 = arith.index_cast %351 : i32 to index
    %c0_90 = arith.constant 0 : index
    %c0_91 = arith.constant 0 : index
    %359 = vector.load %arg20[%358, %c0_90, %c0_91] : memref<8x8x256xf32, #tpu.memory_space<vmem>>, vector<1x8x256xf32>
    %360 = vector.shape_cast %359 : vector<1x8x256xf32> to vector<8x256xf32>
    %361 = vector.extract_strided_slice %352 {offsets = [0, 256], sizes = [8, 256], strides = [1, 1]} : vector<8x512xf32> to vector<8x256xf32>
    %362 = arith.addf %360, %361 : vector<8x256xf32>
    %363 = vector.extract_strided_slice %357 {offsets = [0, 0], sizes = [8, 192], strides = [1, 1]} : vector<8x256xf32> to vector<8x192xf32>
    %364 = arith.negf %363 : vector<8x192xf32>
    %365 = math.exp %364 : vector<8x192xf32>
    %cst_92 = arith.constant 1.000000e+00 : f32
    %366 = vector.broadcast %cst_92 : f32 to vector<8x192xf32>
    %367 = arith.addf %366, %365 : vector<8x192xf32>
    %368 = arith.divf %366, %367 : vector<8x192xf32>
    %369 = vector.extract_strided_slice %362 {offsets = [0, 0], sizes = [8, 192], strides = [1, 1]} : vector<8x256xf32> to vector<8x192xf32>
    %370 = arith.negf %369 : vector<8x192xf32>
    %371 = math.exp %370 : vector<8x192xf32>
    %cst_93 = arith.constant 1.000000e+00 : f32
    %372 = vector.broadcast %cst_93 : f32 to vector<8x192xf32>
    %373 = arith.addf %372, %371 : vector<8x192xf32>
    %374 = arith.divf %372, %373 : vector<8x192xf32>
    %375 = vector.extract_strided_slice %357 {offsets = [0, 192], sizes = [8, 64], strides = [1, 1]} : vector<8x256xf32> to vector<8x64xf32>
    %376 = math.tanh %375 : vector<8x64xf32>
    %377 = vector.extract_strided_slice %362 {offsets = [0, 192], sizes = [8, 64], strides = [1, 1]} : vector<8x256xf32> to vector<8x64xf32>
    %378 = math.tanh %377 : vector<8x64xf32>
    %379 = vector.extract_strided_slice %368 {offsets = [0, 64], sizes = [8, 64], strides = [1, 1]} : vector<8x192xf32> to vector<8x64xf32>
    %380 = vector.extract_strided_slice %350 {offsets = [0, 0], sizes = [8, 64], strides = [1, 1]} : vector<8x128xf32> to vector<8x64xf32>
    %381 = arith.mulf %379, %380 : vector<8x64xf32>
    %382 = vector.extract_strided_slice %368 {offsets = [0, 0], sizes = [8, 64], strides = [1, 1]} : vector<8x192xf32> to vector<8x64xf32>
    %383 = arith.mulf %382, %376 : vector<8x64xf32>
    %384 = arith.addf %381, %383 : vector<8x64xf32>
    %385 = vector.extract_strided_slice %374 {offsets = [0, 64], sizes = [8, 64], strides = [1, 1]} : vector<8x192xf32> to vector<8x64xf32>
    %386 = vector.extract_strided_slice %350 {offsets = [0, 64], sizes = [8, 64], strides = [1, 1]} : vector<8x128xf32> to vector<8x64xf32>
    %387 = arith.mulf %385, %386 : vector<8x64xf32>
    %388 = vector.extract_strided_slice %374 {offsets = [0, 0], sizes = [8, 64], strides = [1, 1]} : vector<8x192xf32> to vector<8x64xf32>
    %389 = arith.mulf %388, %378 : vector<8x64xf32>
    %390 = arith.addf %387, %389 : vector<8x64xf32>
    %391 = vector.extract_strided_slice %368 {offsets = [0, 128], sizes = [8, 64], strides = [1, 1]} : vector<8x192xf32> to vector<8x64xf32>
    %392 = math.tanh %384 : vector<8x64xf32>
    %393 = arith.mulf %391, %392 : vector<8x64xf32>
    %394 = vector.extract_strided_slice %374 {offsets = [0, 128], sizes = [8, 64], strides = [1, 1]} : vector<8x192xf32> to vector<8x64xf32>
    %395 = math.tanh %390 : vector<8x64xf32>
    %396 = arith.mulf %394, %395 : vector<8x64xf32>
    %397 = arith.index_cast %c6_i32 : i32 to index
    %c0_94 = arith.constant 0 : index
    %c0_95 = arith.constant 0 : index
    %398 = vector.load %arg21[%397, %c0_94, %c0_95] : memref<8x8x64xf32, #tpu.memory_space<vmem>>, vector<1x8x64xf32>
    %399 = vector.shape_cast %398 : vector<1x8x64xf32> to vector<8x64xf32>
    %400 = vector.shape_cast %393 : vector<8x64xf32> to vector<1x8x64xf32>
    tpu.vector_store %arg21[%397, %c0_94, %c0_95], %400 {strides = array<i32>} : memref<8x8x64xf32, #tpu.memory_space<vmem>>, vector<1x8x64xf32>,
    %401 = arith.index_cast %351 : i32 to index
    %c0_96 = arith.constant 0 : index
    %c0_97 = arith.constant 0 : index
    %402 = vector.load %arg22[%401, %c0_96, %c0_97] : memref<8x8x64xf32, #tpu.memory_space<vmem>>, vector<1x8x64xf32>
    %403 = vector.shape_cast %402 : vector<1x8x64xf32> to vector<8x64xf32>
    %404 = vector.shape_cast %396 : vector<8x64xf32> to vector<1x8x64xf32>
    tpu.vector_store %arg22[%401, %c0_96, %c0_97], %404 {strides = array<i32>} : memref<8x8x64xf32, #tpu.memory_space<vmem>>, vector<1x8x64xf32>,
    %405 = tpu.concatenate %393, %396 in 1 : vector<8x64xf32>, vector<8x64xf32> -> vector<8x128xf32>
    %406 = tpu.concatenate %384, %390 in 1 : vector<8x64xf32>, vector<8x64xf32> -> vector<8x128xf32>
    %c7_i32_98 = arith.constant 7 : i32
    %c7_i32_99 = arith.constant 7 : i32
    %407 = arith.subi %c7_i32_99, %c7_i32_98 : i32
    %cst_100 = arith.constant dense<0.000000e+00> : vector<8x512xf32>
    %408 = tpu.matmul %405, %13, %cst_100 {dimension_numbers = #tpu.dot_dimension_numbers<[1], [0], [0], [1], [0, 0, 1, 1], [], []>} : vector<8x128xf32>, vector<128x512xf32>, vector<8x512xf32> -> vector<8x512xf32>
    %409 = arith.index_cast %c7_i32_98 : i32 to index
    %c0_101 = arith.constant 0 : index
    %c0_102 = arith.constant 0 : index
    %410 = vector.load %arg19[%409, %c0_101, %c0_102] : memref<8x8x256xf32, #tpu.memory_space<vmem>>, vector<1x8x256xf32>
    %411 = vector.shape_cast %410 : vector<1x8x256xf32> to vector<8x256xf32>
    %412 = vector.extract_strided_slice %408 {offsets = [0, 0], sizes = [8, 256], strides = [1, 1]} : vector<8x512xf32> to vector<8x256xf32>
    %413 = arith.addf %411, %412 : vector<8x256xf32>
    %414 = arith.index_cast %407 : i32 to index
    %c0_103 = arith.constant 0 : index
    %c0_104 = arith.constant 0 : index
    %415 = vector.load %arg20[%414, %c0_103, %c0_104] : memref<8x8x256xf32, #tpu.memory_space<vmem>>, vector<1x8x256xf32>
    %416 = vector.shape_cast %415 : vector<1x8x256xf32> to vector<8x256xf32>
    %417 = vector.extract_strided_slice %408 {offsets = [0, 256], sizes = [8, 256], strides = [1, 1]} : vector<8x512xf32> to vector<8x256xf32>
    %418 = arith.addf %416, %417 : vector<8x256xf32>
    %419 = vector.extract_strided_slice %413 {offsets = [0, 0], sizes = [8, 192], strides = [1, 1]} : vector<8x256xf32> to vector<8x192xf32>
    %420 = arith.negf %419 : vector<8x192xf32>
    %421 = math.exp %420 : vector<8x192xf32>
    %cst_105 = arith.constant 1.000000e+00 : f32
    %422 = vector.broadcast %cst_105 : f32 to vector<8x192xf32>
    %423 = arith.addf %422, %421 : vector<8x192xf32>
    %424 = arith.divf %422, %423 : vector<8x192xf32>
    %425 = vector.extract_strided_slice %418 {offsets = [0, 0], sizes = [8, 192], strides = [1, 1]} : vector<8x256xf32> to vector<8x192xf32>
    %426 = arith.negf %425 : vector<8x192xf32>
    %427 = math.exp %426 : vector<8x192xf32>
    %cst_106 = arith.constant 1.000000e+00 : f32
    %428 = vector.broadcast %cst_106 : f32 to vector<8x192xf32>
    %429 = arith.addf %428, %427 : vector<8x192xf32>
    %430 = arith.divf %428, %429 : vector<8x192xf32>
    %431 = vector.extract_strided_slice %413 {offsets = [0, 192], sizes = [8, 64], strides = [1, 1]} : vector<8x256xf32> to vector<8x64xf32>
    %432 = math.tanh %431 : vector<8x64xf32>
    %433 = vector.extract_strided_slice %418 {offsets = [0, 192], sizes = [8, 64], strides = [1, 1]} : vector<8x256xf32> to vector<8x64xf32>
    %434 = math.tanh %433 : vector<8x64xf32>
    %435 = vector.extract_strided_slice %424 {offsets = [0, 64], sizes = [8, 64], strides = [1, 1]} : vector<8x192xf32> to vector<8x64xf32>
    %436 = vector.extract_strided_slice %406 {offsets = [0, 0], sizes = [8, 64], strides = [1, 1]} : vector<8x128xf32> to vector<8x64xf32>
    %437 = arith.mulf %435, %436 : vector<8x64xf32>
    %438 = vector.extract_strided_slice %424 {offsets = [0, 0], sizes = [8, 64], strides = [1, 1]} : vector<8x192xf32> to vector<8x64xf32>
    %439 = arith.mulf %438, %432 : vector<8x64xf32>
    %440 = arith.addf %437, %439 : vector<8x64xf32>
    %441 = vector.extract_strided_slice %430 {offsets = [0, 64], sizes = [8, 64], strides = [1, 1]} : vector<8x192xf32> to vector<8x64xf32>
    %442 = vector.extract_strided_slice %406 {offsets = [0, 64], sizes = [8, 64], strides = [1, 1]} : vector<8x128xf32> to vector<8x64xf32>
    %443 = arith.mulf %441, %442 : vector<8x64xf32>
    %444 = vector.extract_strided_slice %430 {offsets = [0, 0], sizes = [8, 64], strides = [1, 1]} : vector<8x192xf32> to vector<8x64xf32>
    %445 = arith.mulf %444, %434 : vector<8x64xf32>
    %446 = arith.addf %443, %445 : vector<8x64xf32>
    %447 = vector.extract_strided_slice %424 {offsets = [0, 128], sizes = [8, 64], strides = [1, 1]} : vector<8x192xf32> to vector<8x64xf32>
    %448 = math.tanh %440 : vector<8x64xf32>
    %449 = arith.mulf %447, %448 : vector<8x64xf32>
    %450 = vector.extract_strided_slice %430 {offsets = [0, 128], sizes = [8, 64], strides = [1, 1]} : vector<8x192xf32> to vector<8x64xf32>
    %451 = math.tanh %446 : vector<8x64xf32>
    %452 = arith.mulf %450, %451 : vector<8x64xf32>
    %453 = arith.index_cast %c7_i32_98 : i32 to index
    %c0_107 = arith.constant 0 : index
    %c0_108 = arith.constant 0 : index
    %454 = vector.load %arg21[%453, %c0_107, %c0_108] : memref<8x8x64xf32, #tpu.memory_space<vmem>>, vector<1x8x64xf32>
    %455 = vector.shape_cast %454 : vector<1x8x64xf32> to vector<8x64xf32>
    %456 = vector.shape_cast %449 : vector<8x64xf32> to vector<1x8x64xf32>
    tpu.vector_store %arg21[%453, %c0_107, %c0_108], %456 {strides = array<i32>} : memref<8x8x64xf32, #tpu.memory_space<vmem>>, vector<1x8x64xf32>,
    %457 = arith.index_cast %407 : i32 to index
    %c0_109 = arith.constant 0 : index
    %c0_110 = arith.constant 0 : index
    %458 = vector.load %arg22[%457, %c0_109, %c0_110] : memref<8x8x64xf32, #tpu.memory_space<vmem>>, vector<1x8x64xf32>
    %459 = vector.shape_cast %458 : vector<1x8x64xf32> to vector<8x64xf32>
    %460 = vector.shape_cast %452 : vector<8x64xf32> to vector<1x8x64xf32>
    tpu.vector_store %arg22[%457, %c0_109, %c0_110], %460 {strides = array<i32>} : memref<8x8x64xf32, #tpu.memory_space<vmem>>, vector<1x8x64xf32>,
    %461 = tpu.concatenate %449, %452 in 1 : vector<8x64xf32>, vector<8x64xf32> -> vector<8x128xf32>
    %462 = tpu.concatenate %440, %446 in 1 : vector<8x64xf32>, vector<8x64xf32> -> vector<8x128xf32>
    %c8_i32 = arith.constant 8 : i32
    %c0_111 = arith.constant 0 : index
    %c0_112 = arith.constant 0 : index
    %c0_113 = arith.constant 0 : index
    %463 = vector.load %arg21[%c0_111, %c0_112, %c0_113] : memref<8x8x64xf32, #tpu.memory_space<vmem>>, vector<8x8x64xf32>
    %c0_114 = arith.constant 0 : index
    %c0_115 = arith.constant 0 : index
    %c0_116 = arith.constant 0 : index
    %464 = vector.load %arg22[%c0_114, %c0_115, %c0_116] : memref<8x8x64xf32, #tpu.memory_space<vmem>>, vector<8x8x64xf32>
    %465 = tpu.concatenate %463, %464 in 2 : vector<8x8x64xf32>, vector<8x8x64xf32> -> vector<8x8x128xf32>
    %466 = vector.shape_cast %465 : vector<8x8x128xf32> to vector<64x128xf32>
    %c0_117 = arith.constant 0 : index
    %c0_118 = arith.constant 0 : index
    %467 = vector.load %arg5[%c0_117, %c0_118] : memref<128x512xf32, #tpu.memory_space<vmem>>, vector<128x512xf32>
    %cst_119 = arith.constant dense<0.000000e+00> : vector<64x512xf32>
    %468 = tpu.matmul %466, %467, %cst_119 {dimension_numbers = #tpu.dot_dimension_numbers<[1], [0], [0], [1], [0, 0, 1, 1], [], []>} : vector<64x128xf32>, vector<128x512xf32>, vector<64x512xf32> -> vector<64x512xf32>
    %c0_120 = arith.constant 0 : index
    %c0_121 = arith.constant 0 : index
    %469 = vector.load %arg7[%c0_120, %c0_121] : memref<1x512xf32, #tpu.memory_space<vmem>>, vector<1x512xf32>
    %470 = vector.broadcast %469 : vector<1x512xf32> to vector<64x512xf32>
    %471 = arith.addf %468, %470 : vector<64x512xf32>
    %472 = vector.extract_strided_slice %471 {offsets = [0, 0], sizes = [64, 256], strides = [1, 1]} : vector<64x512xf32> to vector<64x256xf32>
    %473 = vector.shape_cast %472 : vector<64x256xf32> to vector<8x8x256xf32>
    %c0_122 = arith.constant 0 : index
    %c0_123 = arith.constant 0 : index
    %c0_124 = arith.constant 0 : index
    %474 = vector.load %arg19[%c0_122, %c0_123, %c0_124] : memref<8x8x256xf32, #tpu.memory_space<vmem>>, vector<8x8x256xf32>
    tpu.vector_store %arg19[%c0_122, %c0_123, %c0_124], %473 {strides = array<i32>} : memref<8x8x256xf32, #tpu.memory_space<vmem>>, vector<8x8x256xf32>,
    %475 = vector.extract_strided_slice %471 {offsets = [0, 256], sizes = [64, 256], strides = [1, 1]} : vector<64x512xf32> to vector<64x256xf32>
    %476 = vector.shape_cast %475 : vector<64x256xf32> to vector<8x8x256xf32>
    %c0_125 = arith.constant 0 : index
    %c0_126 = arith.constant 0 : index
    %c0_127 = arith.constant 0 : index
    %477 = vector.load %arg20[%c0_125, %c0_126, %c0_127] : memref<8x8x256xf32, #tpu.memory_space<vmem>>, vector<8x8x256xf32>
    tpu.vector_store %arg20[%c0_125, %c0_126, %c0_127], %476 {strides = array<i32>} : memref<8x8x256xf32, #tpu.memory_space<vmem>>, vector<8x8x256xf32>,
    %c0_128 = arith.constant 0 : index
    %c0_129 = arith.constant 0 : index
    %478 = vector.load %arg6[%c0_128, %c0_129] : memref<128x512xf32, #tpu.memory_space<vmem>>, vector<128x512xf32>
    %cst_130 = arith.constant 0.000000e+00 : f32
    %479 = vector.broadcast %cst_130 : f32 to vector<8x128xf32>
    %c0_i32_131 = arith.constant 0 : i32
    %c7_i32_132 = arith.constant 7 : i32
    %480 = arith.subi %c7_i32_132, %c0_i32_131 : i32
    %cst_133 = arith.constant dense<0.000000e+00> : vector<8x512xf32>
    %481 = tpu.matmul %479, %478, %cst_133 {dimension_numbers = #tpu.dot_dimension_numbers<[1], [0], [0], [1], [0, 0, 1, 1], [], []>} : vector<8x128xf32>, vector<128x512xf32>, vector<8x512xf32> -> vector<8x512xf32>
    %482 = arith.index_cast %c0_i32_131 : i32 to index
    %c0_134 = arith.constant 0 : index
    %c0_135 = arith.constant 0 : index
    %483 = vector.load %arg19[%482, %c0_134, %c0_135] : memref<8x8x256xf32, #tpu.memory_space<vmem>>, vector<1x8x256xf32>
    %484 = vector.shape_cast %483 : vector<1x8x256xf32> to vector<8x256xf32>
    %485 = vector.extract_strided_slice %481 {offsets = [0, 0], sizes = [8, 256], strides = [1, 1]} : vector<8x512xf32> to vector<8x256xf32>
    %486 = arith.addf %484, %485 : vector<8x256xf32>
    %487 = arith.index_cast %480 : i32 to index
    %c0_136 = arith.constant 0 : index
    %c0_137 = arith.constant 0 : index
    %488 = vector.load %arg20[%487, %c0_136, %c0_137] : memref<8x8x256xf32, #tpu.memory_space<vmem>>, vector<1x8x256xf32>
    %489 = vector.shape_cast %488 : vector<1x8x256xf32> to vector<8x256xf32>
    %490 = vector.extract_strided_slice %481 {offsets = [0, 256], sizes = [8, 256], strides = [1, 1]} : vector<8x512xf32> to vector<8x256xf32>
    %491 = arith.addf %489, %490 : vector<8x256xf32>
    %492 = vector.extract_strided_slice %486 {offsets = [0, 0], sizes = [8, 192], strides = [1, 1]} : vector<8x256xf32> to vector<8x192xf32>
    %493 = arith.negf %492 : vector<8x192xf32>
    %494 = math.exp %493 : vector<8x192xf32>
    %cst_138 = arith.constant 1.000000e+00 : f32
    %495 = vector.broadcast %cst_138 : f32 to vector<8x192xf32>
    %496 = arith.addf %495, %494 : vector<8x192xf32>
    %497 = arith.divf %495, %496 : vector<8x192xf32>
    %498 = vector.extract_strided_slice %491 {offsets = [0, 0], sizes = [8, 192], strides = [1, 1]} : vector<8x256xf32> to vector<8x192xf32>
    %499 = arith.negf %498 : vector<8x192xf32>
    %500 = math.exp %499 : vector<8x192xf32>
    %cst_139 = arith.constant 1.000000e+00 : f32
    %501 = vector.broadcast %cst_139 : f32 to vector<8x192xf32>
    %502 = arith.addf %501, %500 : vector<8x192xf32>
    %503 = arith.divf %501, %502 : vector<8x192xf32>
    %504 = vector.extract_strided_slice %486 {offsets = [0, 192], sizes = [8, 64], strides = [1, 1]} : vector<8x256xf32> to vector<8x64xf32>
    %505 = math.tanh %504 : vector<8x64xf32>
    %506 = vector.extract_strided_slice %491 {offsets = [0, 192], sizes = [8, 64], strides = [1, 1]} : vector<8x256xf32> to vector<8x64xf32>
    %507 = math.tanh %506 : vector<8x64xf32>
    %508 = vector.extract_strided_slice %497 {offsets = [0, 64], sizes = [8, 64], strides = [1, 1]} : vector<8x192xf32> to vector<8x64xf32>
    %509 = vector.extract_strided_slice %479 {offsets = [0, 0], sizes = [8, 64], strides = [1, 1]} : vector<8x128xf32> to vector<8x64xf32>
    %510 = arith.mulf %508, %509 : vector<8x64xf32>
    %511 = vector.extract_strided_slice %497 {offsets = [0, 0], sizes = [8, 64], strides = [1, 1]} : vector<8x192xf32> to vector<8x64xf32>
    %512 = arith.mulf %511, %505 : vector<8x64xf32>
    %513 = arith.addf %510, %512 : vector<8x64xf32>
    %514 = vector.extract_strided_slice %503 {offsets = [0, 64], sizes = [8, 64], strides = [1, 1]} : vector<8x192xf32> to vector<8x64xf32>
    %515 = vector.extract_strided_slice %479 {offsets = [0, 64], sizes = [8, 64], strides = [1, 1]} : vector<8x128xf32> to vector<8x64xf32>
    %516 = arith.mulf %514, %515 : vector<8x64xf32>
    %517 = vector.extract_strided_slice %503 {offsets = [0, 0], sizes = [8, 64], strides = [1, 1]} : vector<8x192xf32> to vector<8x64xf32>
    %518 = arith.mulf %517, %507 : vector<8x64xf32>
    %519 = arith.addf %516, %518 : vector<8x64xf32>
    %520 = vector.extract_strided_slice %497 {offsets = [0, 128], sizes = [8, 64], strides = [1, 1]} : vector<8x192xf32> to vector<8x64xf32>
    %521 = math.tanh %513 : vector<8x64xf32>
    %522 = arith.mulf %520, %521 : vector<8x64xf32>
    %523 = vector.extract_strided_slice %503 {offsets = [0, 128], sizes = [8, 64], strides = [1, 1]} : vector<8x192xf32> to vector<8x64xf32>
    %524 = math.tanh %519 : vector<8x64xf32>
    %525 = arith.mulf %523, %524 : vector<8x64xf32>
    %526 = arith.index_cast %c0_i32_131 : i32 to index
    %c0_140 = arith.constant 0 : index
    %c0_141 = arith.constant 0 : index
    %527 = vector.load %arg21[%526, %c0_140, %c0_141] : memref<8x8x64xf32, #tpu.memory_space<vmem>>, vector<1x8x64xf32>
    %528 = vector.shape_cast %527 : vector<1x8x64xf32> to vector<8x64xf32>
    %529 = vector.shape_cast %522 : vector<8x64xf32> to vector<1x8x64xf32>
    tpu.vector_store %arg21[%526, %c0_140, %c0_141], %529 {strides = array<i32>} : memref<8x8x64xf32, #tpu.memory_space<vmem>>, vector<1x8x64xf32>,
    %530 = arith.index_cast %480 : i32 to index
    %c0_142 = arith.constant 0 : index
    %c0_143 = arith.constant 0 : index
    %531 = vector.load %arg22[%530, %c0_142, %c0_143] : memref<8x8x64xf32, #tpu.memory_space<vmem>>, vector<1x8x64xf32>
    %532 = vector.shape_cast %531 : vector<1x8x64xf32> to vector<8x64xf32>
    %533 = vector.shape_cast %525 : vector<8x64xf32> to vector<1x8x64xf32>
    tpu.vector_store %arg22[%530, %c0_142, %c0_143], %533 {strides = array<i32>} : memref<8x8x64xf32, #tpu.memory_space<vmem>>, vector<1x8x64xf32>,
    %534 = tpu.concatenate %522, %525 in 1 : vector<8x64xf32>, vector<8x64xf32> -> vector<8x128xf32>
    %535 = tpu.concatenate %513, %519 in 1 : vector<8x64xf32>, vector<8x64xf32> -> vector<8x128xf32>
    %c1_i32_144 = arith.constant 1 : i32
    %c7_i32_145 = arith.constant 7 : i32
    %536 = arith.subi %c7_i32_145, %c1_i32_144 : i32
    %cst_146 = arith.constant dense<0.000000e+00> : vector<8x512xf32>
    %537 = tpu.matmul %534, %478, %cst_146 {dimension_numbers = #tpu.dot_dimension_numbers<[1], [0], [0], [1], [0, 0, 1, 1], [], []>} : vector<8x128xf32>, vector<128x512xf32>, vector<8x512xf32> -> vector<8x512xf32>
    %538 = arith.index_cast %c1_i32_144 : i32 to index
    %c0_147 = arith.constant 0 : index
    %c0_148 = arith.constant 0 : index
    %539 = vector.load %arg19[%538, %c0_147, %c0_148] : memref<8x8x256xf32, #tpu.memory_space<vmem>>, vector<1x8x256xf32>
    %540 = vector.shape_cast %539 : vector<1x8x256xf32> to vector<8x256xf32>
    %541 = vector.extract_strided_slice %537 {offsets = [0, 0], sizes = [8, 256], strides = [1, 1]} : vector<8x512xf32> to vector<8x256xf32>
    %542 = arith.addf %540, %541 : vector<8x256xf32>
    %543 = arith.index_cast %536 : i32 to index
    %c0_149 = arith.constant 0 : index
    %c0_150 = arith.constant 0 : index
    %544 = vector.load %arg20[%543, %c0_149, %c0_150] : memref<8x8x256xf32, #tpu.memory_space<vmem>>, vector<1x8x256xf32>
    %545 = vector.shape_cast %544 : vector<1x8x256xf32> to vector<8x256xf32>
    %546 = vector.extract_strided_slice %537 {offsets = [0, 256], sizes = [8, 256], strides = [1, 1]} : vector<8x512xf32> to vector<8x256xf32>
    %547 = arith.addf %545, %546 : vector<8x256xf32>
    %548 = vector.extract_strided_slice %542 {offsets = [0, 0], sizes = [8, 192], strides = [1, 1]} : vector<8x256xf32> to vector<8x192xf32>
    %549 = arith.negf %548 : vector<8x192xf32>
    %550 = math.exp %549 : vector<8x192xf32>
    %cst_151 = arith.constant 1.000000e+00 : f32
    %551 = vector.broadcast %cst_151 : f32 to vector<8x192xf32>
    %552 = arith.addf %551, %550 : vector<8x192xf32>
    %553 = arith.divf %551, %552 : vector<8x192xf32>
    %554 = vector.extract_strided_slice %547 {offsets = [0, 0], sizes = [8, 192], strides = [1, 1]} : vector<8x256xf32> to vector<8x192xf32>
    %555 = arith.negf %554 : vector<8x192xf32>
    %556 = math.exp %555 : vector<8x192xf32>
    %cst_152 = arith.constant 1.000000e+00 : f32
    %557 = vector.broadcast %cst_152 : f32 to vector<8x192xf32>
    %558 = arith.addf %557, %556 : vector<8x192xf32>
    %559 = arith.divf %557, %558 : vector<8x192xf32>
    %560 = vector.extract_strided_slice %542 {offsets = [0, 192], sizes = [8, 64], strides = [1, 1]} : vector<8x256xf32> to vector<8x64xf32>
    %561 = math.tanh %560 : vector<8x64xf32>
    %562 = vector.extract_strided_slice %547 {offsets = [0, 192], sizes = [8, 64], strides = [1, 1]} : vector<8x256xf32> to vector<8x64xf32>
    %563 = math.tanh %562 : vector<8x64xf32>
    %564 = vector.extract_strided_slice %553 {offsets = [0, 64], sizes = [8, 64], strides = [1, 1]} : vector<8x192xf32> to vector<8x64xf32>
    %565 = vector.extract_strided_slice %535 {offsets = [0, 0], sizes = [8, 64], strides = [1, 1]} : vector<8x128xf32> to vector<8x64xf32>
    %566 = arith.mulf %564, %565 : vector<8x64xf32>
    %567 = vector.extract_strided_slice %553 {offsets = [0, 0], sizes = [8, 64], strides = [1, 1]} : vector<8x192xf32> to vector<8x64xf32>
    %568 = arith.mulf %567, %561 : vector<8x64xf32>
    %569 = arith.addf %566, %568 : vector<8x64xf32>
    %570 = vector.extract_strided_slice %559 {offsets = [0, 64], sizes = [8, 64], strides = [1, 1]} : vector<8x192xf32> to vector<8x64xf32>
    %571 = vector.extract_strided_slice %535 {offsets = [0, 64], sizes = [8, 64], strides = [1, 1]} : vector<8x128xf32> to vector<8x64xf32>
    %572 = arith.mulf %570, %571 : vector<8x64xf32>
    %573 = vector.extract_strided_slice %559 {offsets = [0, 0], sizes = [8, 64], strides = [1, 1]} : vector<8x192xf32> to vector<8x64xf32>
    %574 = arith.mulf %573, %563 : vector<8x64xf32>
    %575 = arith.addf %572, %574 : vector<8x64xf32>
    %576 = vector.extract_strided_slice %553 {offsets = [0, 128], sizes = [8, 64], strides = [1, 1]} : vector<8x192xf32> to vector<8x64xf32>
    %577 = math.tanh %569 : vector<8x64xf32>
    %578 = arith.mulf %576, %577 : vector<8x64xf32>
    %579 = vector.extract_strided_slice %559 {offsets = [0, 128], sizes = [8, 64], strides = [1, 1]} : vector<8x192xf32> to vector<8x64xf32>
    %580 = math.tanh %575 : vector<8x64xf32>
    %581 = arith.mulf %579, %580 : vector<8x64xf32>
    %582 = arith.index_cast %c1_i32_144 : i32 to index
    %c0_153 = arith.constant 0 : index
    %c0_154 = arith.constant 0 : index
    %583 = vector.load %arg21[%582, %c0_153, %c0_154] : memref<8x8x64xf32, #tpu.memory_space<vmem>>, vector<1x8x64xf32>
    %584 = vector.shape_cast %583 : vector<1x8x64xf32> to vector<8x64xf32>
    %585 = vector.shape_cast %578 : vector<8x64xf32> to vector<1x8x64xf32>
    tpu.vector_store %arg21[%582, %c0_153, %c0_154], %585 {strides = array<i32>} : memref<8x8x64xf32, #tpu.memory_space<vmem>>, vector<1x8x64xf32>,
    %586 = arith.index_cast %536 : i32 to index
    %c0_155 = arith.constant 0 : index
    %c0_156 = arith.constant 0 : index
    %587 = vector.load %arg22[%586, %c0_155, %c0_156] : memref<8x8x64xf32, #tpu.memory_space<vmem>>, vector<1x8x64xf32>
    %588 = vector.shape_cast %587 : vector<1x8x64xf32> to vector<8x64xf32>
    %589 = vector.shape_cast %581 : vector<8x64xf32> to vector<1x8x64xf32>
    tpu.vector_store %arg22[%586, %c0_155, %c0_156], %589 {strides = array<i32>} : memref<8x8x64xf32, #tpu.memory_space<vmem>>, vector<1x8x64xf32>,
    %590 = tpu.concatenate %578, %581 in 1 : vector<8x64xf32>, vector<8x64xf32> -> vector<8x128xf32>
    %591 = tpu.concatenate %569, %575 in 1 : vector<8x64xf32>, vector<8x64xf32> -> vector<8x128xf32>
    %c2_i32_157 = arith.constant 2 : i32
    %c7_i32_158 = arith.constant 7 : i32
    %592 = arith.subi %c7_i32_158, %c2_i32_157 : i32
    %cst_159 = arith.constant dense<0.000000e+00> : vector<8x512xf32>
    %593 = tpu.matmul %590, %478, %cst_159 {dimension_numbers = #tpu.dot_dimension_numbers<[1], [0], [0], [1], [0, 0, 1, 1], [], []>} : vector<8x128xf32>, vector<128x512xf32>, vector<8x512xf32> -> vector<8x512xf32>
    %594 = arith.index_cast %c2_i32_157 : i32 to index
    %c0_160 = arith.constant 0 : index
    %c0_161 = arith.constant 0 : index
    %595 = vector.load %arg19[%594, %c0_160, %c0_161] : memref<8x8x256xf32, #tpu.memory_space<vmem>>, vector<1x8x256xf32>
    %596 = vector.shape_cast %595 : vector<1x8x256xf32> to vector<8x256xf32>
    %597 = vector.extract_strided_slice %593 {offsets = [0, 0], sizes = [8, 256], strides = [1, 1]} : vector<8x512xf32> to vector<8x256xf32>
    %598 = arith.addf %596, %597 : vector<8x256xf32>
    %599 = arith.index_cast %592 : i32 to index
    %c0_162 = arith.constant 0 : index
    %c0_163 = arith.constant 0 : index
    %600 = vector.load %arg20[%599, %c0_162, %c0_163] : memref<8x8x256xf32, #tpu.memory_space<vmem>>, vector<1x8x256xf32>
    %601 = vector.shape_cast %600 : vector<1x8x256xf32> to vector<8x256xf32>
    %602 = vector.extract_strided_slice %593 {offsets = [0, 256], sizes = [8, 256], strides = [1, 1]} : vector<8x512xf32> to vector<8x256xf32>
    %603 = arith.addf %601, %602 : vector<8x256xf32>
    %604 = vector.extract_strided_slice %598 {offsets = [0, 0], sizes = [8, 192], strides = [1, 1]} : vector<8x256xf32> to vector<8x192xf32>
    %605 = arith.negf %604 : vector<8x192xf32>
    %606 = math.exp %605 : vector<8x192xf32>
    %cst_164 = arith.constant 1.000000e+00 : f32
    %607 = vector.broadcast %cst_164 : f32 to vector<8x192xf32>
    %608 = arith.addf %607, %606 : vector<8x192xf32>
    %609 = arith.divf %607, %608 : vector<8x192xf32>
    %610 = vector.extract_strided_slice %603 {offsets = [0, 0], sizes = [8, 192], strides = [1, 1]} : vector<8x256xf32> to vector<8x192xf32>
    %611 = arith.negf %610 : vector<8x192xf32>
    %612 = math.exp %611 : vector<8x192xf32>
    %cst_165 = arith.constant 1.000000e+00 : f32
    %613 = vector.broadcast %cst_165 : f32 to vector<8x192xf32>
    %614 = arith.addf %613, %612 : vector<8x192xf32>
    %615 = arith.divf %613, %614 : vector<8x192xf32>
    %616 = vector.extract_strided_slice %598 {offsets = [0, 192], sizes = [8, 64], strides = [1, 1]} : vector<8x256xf32> to vector<8x64xf32>
    %617 = math.tanh %616 : vector<8x64xf32>
    %618 = vector.extract_strided_slice %603 {offsets = [0, 192], sizes = [8, 64], strides = [1, 1]} : vector<8x256xf32> to vector<8x64xf32>
    %619 = math.tanh %618 : vector<8x64xf32>
    %620 = vector.extract_strided_slice %609 {offsets = [0, 64], sizes = [8, 64], strides = [1, 1]} : vector<8x192xf32> to vector<8x64xf32>
    %621 = vector.extract_strided_slice %591 {offsets = [0, 0], sizes = [8, 64], strides = [1, 1]} : vector<8x128xf32> to vector<8x64xf32>
    %622 = arith.mulf %620, %621 : vector<8x64xf32>
    %623 = vector.extract_strided_slice %609 {offsets = [0, 0], sizes = [8, 64], strides = [1, 1]} : vector<8x192xf32> to vector<8x64xf32>
    %624 = arith.mulf %623, %617 : vector<8x64xf32>
    %625 = arith.addf %622, %624 : vector<8x64xf32>
    %626 = vector.extract_strided_slice %615 {offsets = [0, 64], sizes = [8, 64], strides = [1, 1]} : vector<8x192xf32> to vector<8x64xf32>
    %627 = vector.extract_strided_slice %591 {offsets = [0, 64], sizes = [8, 64], strides = [1, 1]} : vector<8x128xf32> to vector<8x64xf32>
    %628 = arith.mulf %626, %627 : vector<8x64xf32>
    %629 = vector.extract_strided_slice %615 {offsets = [0, 0], sizes = [8, 64], strides = [1, 1]} : vector<8x192xf32> to vector<8x64xf32>
    %630 = arith.mulf %629, %619 : vector<8x64xf32>
    %631 = arith.addf %628, %630 : vector<8x64xf32>
    %632 = vector.extract_strided_slice %609 {offsets = [0, 128], sizes = [8, 64], strides = [1, 1]} : vector<8x192xf32> to vector<8x64xf32>
    %633 = math.tanh %625 : vector<8x64xf32>
    %634 = arith.mulf %632, %633 : vector<8x64xf32>
    %635 = vector.extract_strided_slice %615 {offsets = [0, 128], sizes = [8, 64], strides = [1, 1]} : vector<8x192xf32> to vector<8x64xf32>
    %636 = math.tanh %631 : vector<8x64xf32>
    %637 = arith.mulf %635, %636 : vector<8x64xf32>
    %638 = arith.index_cast %c2_i32_157 : i32 to index
    %c0_166 = arith.constant 0 : index
    %c0_167 = arith.constant 0 : index
    %639 = vector.load %arg21[%638, %c0_166, %c0_167] : memref<8x8x64xf32, #tpu.memory_space<vmem>>, vector<1x8x64xf32>
    %640 = vector.shape_cast %639 : vector<1x8x64xf32> to vector<8x64xf32>
    %641 = vector.shape_cast %634 : vector<8x64xf32> to vector<1x8x64xf32>
    tpu.vector_store %arg21[%638, %c0_166, %c0_167], %641 {strides = array<i32>} : memref<8x8x64xf32, #tpu.memory_space<vmem>>, vector<1x8x64xf32>,
    %642 = arith.index_cast %592 : i32 to index
    %c0_168 = arith.constant 0 : index
    %c0_169 = arith.constant 0 : index
    %643 = vector.load %arg22[%642, %c0_168, %c0_169] : memref<8x8x64xf32, #tpu.memory_space<vmem>>, vector<1x8x64xf32>
    %644 = vector.shape_cast %643 : vector<1x8x64xf32> to vector<8x64xf32>
    %645 = vector.shape_cast %637 : vector<8x64xf32> to vector<1x8x64xf32>
    tpu.vector_store %arg22[%642, %c0_168, %c0_169], %645 {strides = array<i32>} : memref<8x8x64xf32, #tpu.memory_space<vmem>>, vector<1x8x64xf32>,
    %646 = tpu.concatenate %634, %637 in 1 : vector<8x64xf32>, vector<8x64xf32> -> vector<8x128xf32>
    %647 = tpu.concatenate %625, %631 in 1 : vector<8x64xf32>, vector<8x64xf32> -> vector<8x128xf32>
    %c3_i32_170 = arith.constant 3 : i32
    %c7_i32_171 = arith.constant 7 : i32
    %648 = arith.subi %c7_i32_171, %c3_i32_170 : i32
    %cst_172 = arith.constant dense<0.000000e+00> : vector<8x512xf32>
    %649 = tpu.matmul %646, %478, %cst_172 {dimension_numbers = #tpu.dot_dimension_numbers<[1], [0], [0], [1], [0, 0, 1, 1], [], []>} : vector<8x128xf32>, vector<128x512xf32>, vector<8x512xf32> -> vector<8x512xf32>
    %650 = arith.index_cast %c3_i32_170 : i32 to index
    %c0_173 = arith.constant 0 : index
    %c0_174 = arith.constant 0 : index
    %651 = vector.load %arg19[%650, %c0_173, %c0_174] : memref<8x8x256xf32, #tpu.memory_space<vmem>>, vector<1x8x256xf32>
    %652 = vector.shape_cast %651 : vector<1x8x256xf32> to vector<8x256xf32>
    %653 = vector.extract_strided_slice %649 {offsets = [0, 0], sizes = [8, 256], strides = [1, 1]} : vector<8x512xf32> to vector<8x256xf32>
    %654 = arith.addf %652, %653 : vector<8x256xf32>
    %655 = arith.index_cast %648 : i32 to index
    %c0_175 = arith.constant 0 : index
    %c0_176 = arith.constant 0 : index
    %656 = vector.load %arg20[%655, %c0_175, %c0_176] : memref<8x8x256xf32, #tpu.memory_space<vmem>>, vector<1x8x256xf32>
    %657 = vector.shape_cast %656 : vector<1x8x256xf32> to vector<8x256xf32>
    %658 = vector.extract_strided_slice %649 {offsets = [0, 256], sizes = [8, 256], strides = [1, 1]} : vector<8x512xf32> to vector<8x256xf32>
    %659 = arith.addf %657, %658 : vector<8x256xf32>
    %660 = vector.extract_strided_slice %654 {offsets = [0, 0], sizes = [8, 192], strides = [1, 1]} : vector<8x256xf32> to vector<8x192xf32>
    %661 = arith.negf %660 : vector<8x192xf32>
    %662 = math.exp %661 : vector<8x192xf32>
    %cst_177 = arith.constant 1.000000e+00 : f32
    %663 = vector.broadcast %cst_177 : f32 to vector<8x192xf32>
    %664 = arith.addf %663, %662 : vector<8x192xf32>
    %665 = arith.divf %663, %664 : vector<8x192xf32>
    %666 = vector.extract_strided_slice %659 {offsets = [0, 0], sizes = [8, 192], strides = [1, 1]} : vector<8x256xf32> to vector<8x192xf32>
    %667 = arith.negf %666 : vector<8x192xf32>
    %668 = math.exp %667 : vector<8x192xf32>
    %cst_178 = arith.constant 1.000000e+00 : f32
    %669 = vector.broadcast %cst_178 : f32 to vector<8x192xf32>
    %670 = arith.addf %669, %668 : vector<8x192xf32>
    %671 = arith.divf %669, %670 : vector<8x192xf32>
    %672 = vector.extract_strided_slice %654 {offsets = [0, 192], sizes = [8, 64], strides = [1, 1]} : vector<8x256xf32> to vector<8x64xf32>
    %673 = math.tanh %672 : vector<8x64xf32>
    %674 = vector.extract_strided_slice %659 {offsets = [0, 192], sizes = [8, 64], strides = [1, 1]} : vector<8x256xf32> to vector<8x64xf32>
    %675 = math.tanh %674 : vector<8x64xf32>
    %676 = vector.extract_strided_slice %665 {offsets = [0, 64], sizes = [8, 64], strides = [1, 1]} : vector<8x192xf32> to vector<8x64xf32>
    %677 = vector.extract_strided_slice %647 {offsets = [0, 0], sizes = [8, 64], strides = [1, 1]} : vector<8x128xf32> to vector<8x64xf32>
    %678 = arith.mulf %676, %677 : vector<8x64xf32>
    %679 = vector.extract_strided_slice %665 {offsets = [0, 0], sizes = [8, 64], strides = [1, 1]} : vector<8x192xf32> to vector<8x64xf32>
    %680 = arith.mulf %679, %673 : vector<8x64xf32>
    %681 = arith.addf %678, %680 : vector<8x64xf32>
    %682 = vector.extract_strided_slice %671 {offsets = [0, 64], sizes = [8, 64], strides = [1, 1]} : vector<8x192xf32> to vector<8x64xf32>
    %683 = vector.extract_strided_slice %647 {offsets = [0, 64], sizes = [8, 64], strides = [1, 1]} : vector<8x128xf32> to vector<8x64xf32>
    %684 = arith.mulf %682, %683 : vector<8x64xf32>
    %685 = vector.extract_strided_slice %671 {offsets = [0, 0], sizes = [8, 64], strides = [1, 1]} : vector<8x192xf32> to vector<8x64xf32>
    %686 = arith.mulf %685, %675 : vector<8x64xf32>
    %687 = arith.addf %684, %686 : vector<8x64xf32>
    %688 = vector.extract_strided_slice %665 {offsets = [0, 128], sizes = [8, 64], strides = [1, 1]} : vector<8x192xf32> to vector<8x64xf32>
    %689 = math.tanh %681 : vector<8x64xf32>
    %690 = arith.mulf %688, %689 : vector<8x64xf32>
    %691 = vector.extract_strided_slice %671 {offsets = [0, 128], sizes = [8, 64], strides = [1, 1]} : vector<8x192xf32> to vector<8x64xf32>
    %692 = math.tanh %687 : vector<8x64xf32>
    %693 = arith.mulf %691, %692 : vector<8x64xf32>
    %694 = arith.index_cast %c3_i32_170 : i32 to index
    %c0_179 = arith.constant 0 : index
    %c0_180 = arith.constant 0 : index
    %695 = vector.load %arg21[%694, %c0_179, %c0_180] : memref<8x8x64xf32, #tpu.memory_space<vmem>>, vector<1x8x64xf32>
    %696 = vector.shape_cast %695 : vector<1x8x64xf32> to vector<8x64xf32>
    %697 = vector.shape_cast %690 : vector<8x64xf32> to vector<1x8x64xf32>
    tpu.vector_store %arg21[%694, %c0_179, %c0_180], %697 {strides = array<i32>} : memref<8x8x64xf32, #tpu.memory_space<vmem>>, vector<1x8x64xf32>,
    %698 = arith.index_cast %648 : i32 to index
    %c0_181 = arith.constant 0 : index
    %c0_182 = arith.constant 0 : index
    %699 = vector.load %arg22[%698, %c0_181, %c0_182] : memref<8x8x64xf32, #tpu.memory_space<vmem>>, vector<1x8x64xf32>
    %700 = vector.shape_cast %699 : vector<1x8x64xf32> to vector<8x64xf32>
    %701 = vector.shape_cast %693 : vector<8x64xf32> to vector<1x8x64xf32>
    tpu.vector_store %arg22[%698, %c0_181, %c0_182], %701 {strides = array<i32>} : memref<8x8x64xf32, #tpu.memory_space<vmem>>, vector<1x8x64xf32>,
    %702 = tpu.concatenate %690, %693 in 1 : vector<8x64xf32>, vector<8x64xf32> -> vector<8x128xf32>
    %703 = tpu.concatenate %681, %687 in 1 : vector<8x64xf32>, vector<8x64xf32> -> vector<8x128xf32>
    %c4_i32_183 = arith.constant 4 : i32
    %c7_i32_184 = arith.constant 7 : i32
    %704 = arith.subi %c7_i32_184, %c4_i32_183 : i32
    %cst_185 = arith.constant dense<0.000000e+00> : vector<8x512xf32>
    %705 = tpu.matmul %702, %478, %cst_185 {dimension_numbers = #tpu.dot_dimension_numbers<[1], [0], [0], [1], [0, 0, 1, 1], [], []>} : vector<8x128xf32>, vector<128x512xf32>, vector<8x512xf32> -> vector<8x512xf32>
    %706 = arith.index_cast %c4_i32_183 : i32 to index
    %c0_186 = arith.constant 0 : index
    %c0_187 = arith.constant 0 : index
    %707 = vector.load %arg19[%706, %c0_186, %c0_187] : memref<8x8x256xf32, #tpu.memory_space<vmem>>, vector<1x8x256xf32>
    %708 = vector.shape_cast %707 : vector<1x8x256xf32> to vector<8x256xf32>
    %709 = vector.extract_strided_slice %705 {offsets = [0, 0], sizes = [8, 256], strides = [1, 1]} : vector<8x512xf32> to vector<8x256xf32>
    %710 = arith.addf %708, %709 : vector<8x256xf32>
    %711 = arith.index_cast %704 : i32 to index
    %c0_188 = arith.constant 0 : index
    %c0_189 = arith.constant 0 : index
    %712 = vector.load %arg20[%711, %c0_188, %c0_189] : memref<8x8x256xf32, #tpu.memory_space<vmem>>, vector<1x8x256xf32>
    %713 = vector.shape_cast %712 : vector<1x8x256xf32> to vector<8x256xf32>
    %714 = vector.extract_strided_slice %705 {offsets = [0, 256], sizes = [8, 256], strides = [1, 1]} : vector<8x512xf32> to vector<8x256xf32>
    %715 = arith.addf %713, %714 : vector<8x256xf32>
    %716 = vector.extract_strided_slice %710 {offsets = [0, 0], sizes = [8, 192], strides = [1, 1]} : vector<8x256xf32> to vector<8x192xf32>
    %717 = arith.negf %716 : vector<8x192xf32>
    %718 = math.exp %717 : vector<8x192xf32>
    %cst_190 = arith.constant 1.000000e+00 : f32
    %719 = vector.broadcast %cst_190 : f32 to vector<8x192xf32>
    %720 = arith.addf %719, %718 : vector<8x192xf32>
    %721 = arith.divf %719, %720 : vector<8x192xf32>
    %722 = vector.extract_strided_slice %715 {offsets = [0, 0], sizes = [8, 192], strides = [1, 1]} : vector<8x256xf32> to vector<8x192xf32>
    %723 = arith.negf %722 : vector<8x192xf32>
    %724 = math.exp %723 : vector<8x192xf32>
    %cst_191 = arith.constant 1.000000e+00 : f32
    %725 = vector.broadcast %cst_191 : f32 to vector<8x192xf32>
    %726 = arith.addf %725, %724 : vector<8x192xf32>
    %727 = arith.divf %725, %726 : vector<8x192xf32>
    %728 = vector.extract_strided_slice %710 {offsets = [0, 192], sizes = [8, 64], strides = [1, 1]} : vector<8x256xf32> to vector<8x64xf32>
    %729 = math.tanh %728 : vector<8x64xf32>
    %730 = vector.extract_strided_slice %715 {offsets = [0, 192], sizes = [8, 64], strides = [1, 1]} : vector<8x256xf32> to vector<8x64xf32>
    %731 = math.tanh %730 : vector<8x64xf32>
    %732 = vector.extract_strided_slice %721 {offsets = [0, 64], sizes = [8, 64], strides = [1, 1]} : vector<8x192xf32> to vector<8x64xf32>
    %733 = vector.extract_strided_slice %703 {offsets = [0, 0], sizes = [8, 64], strides = [1, 1]} : vector<8x128xf32> to vector<8x64xf32>
    %734 = arith.mulf %732, %733 : vector<8x64xf32>
    %735 = vector.extract_strided_slice %721 {offsets = [0, 0], sizes = [8, 64], strides = [1, 1]} : vector<8x192xf32> to vector<8x64xf32>
    %736 = arith.mulf %735, %729 : vector<8x64xf32>
    %737 = arith.addf %734, %736 : vector<8x64xf32>
    %738 = vector.extract_strided_slice %727 {offsets = [0, 64], sizes = [8, 64], strides = [1, 1]} : vector<8x192xf32> to vector<8x64xf32>
    %739 = vector.extract_strided_slice %703 {offsets = [0, 64], sizes = [8, 64], strides = [1, 1]} : vector<8x128xf32> to vector<8x64xf32>
    %740 = arith.mulf %738, %739 : vector<8x64xf32>
    %741 = vector.extract_strided_slice %727 {offsets = [0, 0], sizes = [8, 64], strides = [1, 1]} : vector<8x192xf32> to vector<8x64xf32>
    %742 = arith.mulf %741, %731 : vector<8x64xf32>
    %743 = arith.addf %740, %742 : vector<8x64xf32>
    %744 = vector.extract_strided_slice %721 {offsets = [0, 128], sizes = [8, 64], strides = [1, 1]} : vector<8x192xf32> to vector<8x64xf32>
    %745 = math.tanh %737 : vector<8x64xf32>
    %746 = arith.mulf %744, %745 : vector<8x64xf32>
    %747 = vector.extract_strided_slice %727 {offsets = [0, 128], sizes = [8, 64], strides = [1, 1]} : vector<8x192xf32> to vector<8x64xf32>
    %748 = math.tanh %743 : vector<8x64xf32>
    %749 = arith.mulf %747, %748 : vector<8x64xf32>
    %750 = arith.index_cast %c4_i32_183 : i32 to index
    %c0_192 = arith.constant 0 : index
    %c0_193 = arith.constant 0 : index
    %751 = vector.load %arg21[%750, %c0_192, %c0_193] : memref<8x8x64xf32, #tpu.memory_space<vmem>>, vector<1x8x64xf32>
    %752 = vector.shape_cast %751 : vector<1x8x64xf32> to vector<8x64xf32>
    %753 = vector.shape_cast %746 : vector<8x64xf32> to vector<1x8x64xf32>
    tpu.vector_store %arg21[%750, %c0_192, %c0_193], %753 {strides = array<i32>} : memref<8x8x64xf32, #tpu.memory_space<vmem>>, vector<1x8x64xf32>,
    %754 = arith.index_cast %704 : i32 to index
    %c0_194 = arith.constant 0 : index
    %c0_195 = arith.constant 0 : index
    %755 = vector.load %arg22[%754, %c0_194, %c0_195] : memref<8x8x64xf32, #tpu.memory_space<vmem>>, vector<1x8x64xf32>
    %756 = vector.shape_cast %755 : vector<1x8x64xf32> to vector<8x64xf32>
    %757 = vector.shape_cast %749 : vector<8x64xf32> to vector<1x8x64xf32>
    tpu.vector_store %arg22[%754, %c0_194, %c0_195], %757 {strides = array<i32>} : memref<8x8x64xf32, #tpu.memory_space<vmem>>, vector<1x8x64xf32>,
    %758 = tpu.concatenate %746, %749 in 1 : vector<8x64xf32>, vector<8x64xf32> -> vector<8x128xf32>
    %759 = tpu.concatenate %737, %743 in 1 : vector<8x64xf32>, vector<8x64xf32> -> vector<8x128xf32>
    %c5_i32_196 = arith.constant 5 : i32
    %c7_i32_197 = arith.constant 7 : i32
    %760 = arith.subi %c7_i32_197, %c5_i32_196 : i32
    %cst_198 = arith.constant dense<0.000000e+00> : vector<8x512xf32>
    %761 = tpu.matmul %758, %478, %cst_198 {dimension_numbers = #tpu.dot_dimension_numbers<[1], [0], [0], [1], [0, 0, 1, 1], [], []>} : vector<8x128xf32>, vector<128x512xf32>, vector<8x512xf32> -> vector<8x512xf32>
    %762 = arith.index_cast %c5_i32_196 : i32 to index
    %c0_199 = arith.constant 0 : index
    %c0_200 = arith.constant 0 : index
    %763 = vector.load %arg19[%762, %c0_199, %c0_200] : memref<8x8x256xf32, #tpu.memory_space<vmem>>, vector<1x8x256xf32>
    %764 = vector.shape_cast %763 : vector<1x8x256xf32> to vector<8x256xf32>
    %765 = vector.extract_strided_slice %761 {offsets = [0, 0], sizes = [8, 256], strides = [1, 1]} : vector<8x512xf32> to vector<8x256xf32>
    %766 = arith.addf %764, %765 : vector<8x256xf32>
    %767 = arith.index_cast %760 : i32 to index
    %c0_201 = arith.constant 0 : index
    %c0_202 = arith.constant 0 : index
    %768 = vector.load %arg20[%767, %c0_201, %c0_202] : memref<8x8x256xf32, #tpu.memory_space<vmem>>, vector<1x8x256xf32>
    %769 = vector.shape_cast %768 : vector<1x8x256xf32> to vector<8x256xf32>
    %770 = vector.extract_strided_slice %761 {offsets = [0, 256], sizes = [8, 256], strides = [1, 1]} : vector<8x512xf32> to vector<8x256xf32>
    %771 = arith.addf %769, %770 : vector<8x256xf32>
    %772 = vector.extract_strided_slice %766 {offsets = [0, 0], sizes = [8, 192], strides = [1, 1]} : vector<8x256xf32> to vector<8x192xf32>
    %773 = arith.negf %772 : vector<8x192xf32>
    %774 = math.exp %773 : vector<8x192xf32>
    %cst_203 = arith.constant 1.000000e+00 : f32
    %775 = vector.broadcast %cst_203 : f32 to vector<8x192xf32>
    %776 = arith.addf %775, %774 : vector<8x192xf32>
    %777 = arith.divf %775, %776 : vector<8x192xf32>
    %778 = vector.extract_strided_slice %771 {offsets = [0, 0], sizes = [8, 192], strides = [1, 1]} : vector<8x256xf32> to vector<8x192xf32>
    %779 = arith.negf %778 : vector<8x192xf32>
    %780 = math.exp %779 : vector<8x192xf32>
    %cst_204 = arith.constant 1.000000e+00 : f32
    %781 = vector.broadcast %cst_204 : f32 to vector<8x192xf32>
    %782 = arith.addf %781, %780 : vector<8x192xf32>
    %783 = arith.divf %781, %782 : vector<8x192xf32>
    %784 = vector.extract_strided_slice %766 {offsets = [0, 192], sizes = [8, 64], strides = [1, 1]} : vector<8x256xf32> to vector<8x64xf32>
    %785 = math.tanh %784 : vector<8x64xf32>
    %786 = vector.extract_strided_slice %771 {offsets = [0, 192], sizes = [8, 64], strides = [1, 1]} : vector<8x256xf32> to vector<8x64xf32>
    %787 = math.tanh %786 : vector<8x64xf32>
    %788 = vector.extract_strided_slice %777 {offsets = [0, 64], sizes = [8, 64], strides = [1, 1]} : vector<8x192xf32> to vector<8x64xf32>
    %789 = vector.extract_strided_slice %759 {offsets = [0, 0], sizes = [8, 64], strides = [1, 1]} : vector<8x128xf32> to vector<8x64xf32>
    %790 = arith.mulf %788, %789 : vector<8x64xf32>
    %791 = vector.extract_strided_slice %777 {offsets = [0, 0], sizes = [8, 64], strides = [1, 1]} : vector<8x192xf32> to vector<8x64xf32>
    %792 = arith.mulf %791, %785 : vector<8x64xf32>
    %793 = arith.addf %790, %792 : vector<8x64xf32>
    %794 = vector.extract_strided_slice %783 {offsets = [0, 64], sizes = [8, 64], strides = [1, 1]} : vector<8x192xf32> to vector<8x64xf32>
    %795 = vector.extract_strided_slice %759 {offsets = [0, 64], sizes = [8, 64], strides = [1, 1]} : vector<8x128xf32> to vector<8x64xf32>
    %796 = arith.mulf %794, %795 : vector<8x64xf32>
    %797 = vector.extract_strided_slice %783 {offsets = [0, 0], sizes = [8, 64], strides = [1, 1]} : vector<8x192xf32> to vector<8x64xf32>
    %798 = arith.mulf %797, %787 : vector<8x64xf32>
    %799 = arith.addf %796, %798 : vector<8x64xf32>
    %800 = vector.extract_strided_slice %777 {offsets = [0, 128], sizes = [8, 64], strides = [1, 1]} : vector<8x192xf32> to vector<8x64xf32>
    %801 = math.tanh %793 : vector<8x64xf32>
    %802 = arith.mulf %800, %801 : vector<8x64xf32>
    %803 = vector.extract_strided_slice %783 {offsets = [0, 128], sizes = [8, 64], strides = [1, 1]} : vector<8x192xf32> to vector<8x64xf32>
    %804 = math.tanh %799 : vector<8x64xf32>
    %805 = arith.mulf %803, %804 : vector<8x64xf32>
    %806 = arith.index_cast %c5_i32_196 : i32 to index
    %c0_205 = arith.constant 0 : index
    %c0_206 = arith.constant 0 : index
    %807 = vector.load %arg21[%806, %c0_205, %c0_206] : memref<8x8x64xf32, #tpu.memory_space<vmem>>, vector<1x8x64xf32>
    %808 = vector.shape_cast %807 : vector<1x8x64xf32> to vector<8x64xf32>
    %809 = vector.shape_cast %802 : vector<8x64xf32> to vector<1x8x64xf32>
    tpu.vector_store %arg21[%806, %c0_205, %c0_206], %809 {strides = array<i32>} : memref<8x8x64xf32, #tpu.memory_space<vmem>>, vector<1x8x64xf32>,
    %810 = arith.index_cast %760 : i32 to index
    %c0_207 = arith.constant 0 : index
    %c0_208 = arith.constant 0 : index
    %811 = vector.load %arg22[%810, %c0_207, %c0_208] : memref<8x8x64xf32, #tpu.memory_space<vmem>>, vector<1x8x64xf32>
    %812 = vector.shape_cast %811 : vector<1x8x64xf32> to vector<8x64xf32>
    %813 = vector.shape_cast %805 : vector<8x64xf32> to vector<1x8x64xf32>
    tpu.vector_store %arg22[%810, %c0_207, %c0_208], %813 {strides = array<i32>} : memref<8x8x64xf32, #tpu.memory_space<vmem>>, vector<1x8x64xf32>,
    %814 = tpu.concatenate %802, %805 in 1 : vector<8x64xf32>, vector<8x64xf32> -> vector<8x128xf32>
    %815 = tpu.concatenate %793, %799 in 1 : vector<8x64xf32>, vector<8x64xf32> -> vector<8x128xf32>
    %c6_i32_209 = arith.constant 6 : i32
    %c7_i32_210 = arith.constant 7 : i32
    %816 = arith.subi %c7_i32_210, %c6_i32_209 : i32
    %cst_211 = arith.constant dense<0.000000e+00> : vector<8x512xf32>
    %817 = tpu.matmul %814, %478, %cst_211 {dimension_numbers = #tpu.dot_dimension_numbers<[1], [0], [0], [1], [0, 0, 1, 1], [], []>} : vector<8x128xf32>, vector<128x512xf32>, vector<8x512xf32> -> vector<8x512xf32>
    %818 = arith.index_cast %c6_i32_209 : i32 to index
    %c0_212 = arith.constant 0 : index
    %c0_213 = arith.constant 0 : index
    %819 = vector.load %arg19[%818, %c0_212, %c0_213] : memref<8x8x256xf32, #tpu.memory_space<vmem>>, vector<1x8x256xf32>
    %820 = vector.shape_cast %819 : vector<1x8x256xf32> to vector<8x256xf32>
    %821 = vector.extract_strided_slice %817 {offsets = [0, 0], sizes = [8, 256], strides = [1, 1]} : vector<8x512xf32> to vector<8x256xf32>
    %822 = arith.addf %820, %821 : vector<8x256xf32>
    %823 = arith.index_cast %816 : i32 to index
    %c0_214 = arith.constant 0 : index
    %c0_215 = arith.constant 0 : index
    %824 = vector.load %arg20[%823, %c0_214, %c0_215] : memref<8x8x256xf32, #tpu.memory_space<vmem>>, vector<1x8x256xf32>
    %825 = vector.shape_cast %824 : vector<1x8x256xf32> to vector<8x256xf32>
    %826 = vector.extract_strided_slice %817 {offsets = [0, 256], sizes = [8, 256], strides = [1, 1]} : vector<8x512xf32> to vector<8x256xf32>
    %827 = arith.addf %825, %826 : vector<8x256xf32>
    %828 = vector.extract_strided_slice %822 {offsets = [0, 0], sizes = [8, 192], strides = [1, 1]} : vector<8x256xf32> to vector<8x192xf32>
    %829 = arith.negf %828 : vector<8x192xf32>
    %830 = math.exp %829 : vector<8x192xf32>
    %cst_216 = arith.constant 1.000000e+00 : f32
    %831 = vector.broadcast %cst_216 : f32 to vector<8x192xf32>
    %832 = arith.addf %831, %830 : vector<8x192xf32>
    %833 = arith.divf %831, %832 : vector<8x192xf32>
    %834 = vector.extract_strided_slice %827 {offsets = [0, 0], sizes = [8, 192], strides = [1, 1]} : vector<8x256xf32> to vector<8x192xf32>
    %835 = arith.negf %834 : vector<8x192xf32>
    %836 = math.exp %835 : vector<8x192xf32>
    %cst_217 = arith.constant 1.000000e+00 : f32
    %837 = vector.broadcast %cst_217 : f32 to vector<8x192xf32>
    %838 = arith.addf %837, %836 : vector<8x192xf32>
    %839 = arith.divf %837, %838 : vector<8x192xf32>
    %840 = vector.extract_strided_slice %822 {offsets = [0, 192], sizes = [8, 64], strides = [1, 1]} : vector<8x256xf32> to vector<8x64xf32>
    %841 = math.tanh %840 : vector<8x64xf32>
    %842 = vector.extract_strided_slice %827 {offsets = [0, 192], sizes = [8, 64], strides = [1, 1]} : vector<8x256xf32> to vector<8x64xf32>
    %843 = math.tanh %842 : vector<8x64xf32>
    %844 = vector.extract_strided_slice %833 {offsets = [0, 64], sizes = [8, 64], strides = [1, 1]} : vector<8x192xf32> to vector<8x64xf32>
    %845 = vector.extract_strided_slice %815 {offsets = [0, 0], sizes = [8, 64], strides = [1, 1]} : vector<8x128xf32> to vector<8x64xf32>
    %846 = arith.mulf %844, %845 : vector<8x64xf32>
    %847 = vector.extract_strided_slice %833 {offsets = [0, 0], sizes = [8, 64], strides = [1, 1]} : vector<8x192xf32> to vector<8x64xf32>
    %848 = arith.mulf %847, %841 : vector<8x64xf32>
    %849 = arith.addf %846, %848 : vector<8x64xf32>
    %850 = vector.extract_strided_slice %839 {offsets = [0, 64], sizes = [8, 64], strides = [1, 1]} : vector<8x192xf32> to vector<8x64xf32>
    %851 = vector.extract_strided_slice %815 {offsets = [0, 64], sizes = [8, 64], strides = [1, 1]} : vector<8x128xf32> to vector<8x64xf32>
    %852 = arith.mulf %850, %851 : vector<8x64xf32>
    %853 = vector.extract_strided_slice %839 {offsets = [0, 0], sizes = [8, 64], strides = [1, 1]} : vector<8x192xf32> to vector<8x64xf32>
    %854 = arith.mulf %853, %843 : vector<8x64xf32>
    %855 = arith.addf %852, %854 : vector<8x64xf32>
    %856 = vector.extract_strided_slice %833 {offsets = [0, 128], sizes = [8, 64], strides = [1, 1]} : vector<8x192xf32> to vector<8x64xf32>
    %857 = math.tanh %849 : vector<8x64xf32>
    %858 = arith.mulf %856, %857 : vector<8x64xf32>
    %859 = vector.extract_strided_slice %839 {offsets = [0, 128], sizes = [8, 64], strides = [1, 1]} : vector<8x192xf32> to vector<8x64xf32>
    %860 = math.tanh %855 : vector<8x64xf32>
    %861 = arith.mulf %859, %860 : vector<8x64xf32>
    %862 = arith.index_cast %c6_i32_209 : i32 to index
    %c0_218 = arith.constant 0 : index
    %c0_219 = arith.constant 0 : index
    %863 = vector.load %arg21[%862, %c0_218, %c0_219] : memref<8x8x64xf32, #tpu.memory_space<vmem>>, vector<1x8x64xf32>
    %864 = vector.shape_cast %863 : vector<1x8x64xf32> to vector<8x64xf32>
    %865 = vector.shape_cast %858 : vector<8x64xf32> to vector<1x8x64xf32>
    tpu.vector_store %arg21[%862, %c0_218, %c0_219], %865 {strides = array<i32>} : memref<8x8x64xf32, #tpu.memory_space<vmem>>, vector<1x8x64xf32>,
    %866 = arith.index_cast %816 : i32 to index
    %c0_220 = arith.constant 0 : index
    %c0_221 = arith.constant 0 : index
    %867 = vector.load %arg22[%866, %c0_220, %c0_221] : memref<8x8x64xf32, #tpu.memory_space<vmem>>, vector<1x8x64xf32>
    %868 = vector.shape_cast %867 : vector<1x8x64xf32> to vector<8x64xf32>
    %869 = vector.shape_cast %861 : vector<8x64xf32> to vector<1x8x64xf32>
    tpu.vector_store %arg22[%866, %c0_220, %c0_221], %869 {strides = array<i32>} : memref<8x8x64xf32, #tpu.memory_space<vmem>>, vector<1x8x64xf32>,
    %870 = tpu.concatenate %858, %861 in 1 : vector<8x64xf32>, vector<8x64xf32> -> vector<8x128xf32>
    %871 = tpu.concatenate %849, %855 in 1 : vector<8x64xf32>, vector<8x64xf32> -> vector<8x128xf32>
    %c7_i32_222 = arith.constant 7 : i32
    %c7_i32_223 = arith.constant 7 : i32
    %872 = arith.subi %c7_i32_223, %c7_i32_222 : i32
    %cst_224 = arith.constant dense<0.000000e+00> : vector<8x512xf32>
    %873 = tpu.matmul %870, %478, %cst_224 {dimension_numbers = #tpu.dot_dimension_numbers<[1], [0], [0], [1], [0, 0, 1, 1], [], []>} : vector<8x128xf32>, vector<128x512xf32>, vector<8x512xf32> -> vector<8x512xf32>
    %874 = arith.index_cast %c7_i32_222 : i32 to index
    %c0_225 = arith.constant 0 : index
    %c0_226 = arith.constant 0 : index
    %875 = vector.load %arg19[%874, %c0_225, %c0_226] : memref<8x8x256xf32, #tpu.memory_space<vmem>>, vector<1x8x256xf32>
    %876 = vector.shape_cast %875 : vector<1x8x256xf32> to vector<8x256xf32>
    %877 = vector.extract_strided_slice %873 {offsets = [0, 0], sizes = [8, 256], strides = [1, 1]} : vector<8x512xf32> to vector<8x256xf32>
    %878 = arith.addf %876, %877 : vector<8x256xf32>
    %879 = arith.index_cast %872 : i32 to index
    %c0_227 = arith.constant 0 : index
    %c0_228 = arith.constant 0 : index
    %880 = vector.load %arg20[%879, %c0_227, %c0_228] : memref<8x8x256xf32, #tpu.memory_space<vmem>>, vector<1x8x256xf32>
    %881 = vector.shape_cast %880 : vector<1x8x256xf32> to vector<8x256xf32>
    %882 = vector.extract_strided_slice %873 {offsets = [0, 256], sizes = [8, 256], strides = [1, 1]} : vector<8x512xf32> to vector<8x256xf32>
    %883 = arith.addf %881, %882 : vector<8x256xf32>
    %884 = vector.extract_strided_slice %878 {offsets = [0, 0], sizes = [8, 192], strides = [1, 1]} : vector<8x256xf32> to vector<8x192xf32>
    %885 = arith.negf %884 : vector<8x192xf32>
    %886 = math.exp %885 : vector<8x192xf32>
    %cst_229 = arith.constant 1.000000e+00 : f32
    %887 = vector.broadcast %cst_229 : f32 to vector<8x192xf32>
    %888 = arith.addf %887, %886 : vector<8x192xf32>
    %889 = arith.divf %887, %888 : vector<8x192xf32>
    %890 = vector.extract_strided_slice %883 {offsets = [0, 0], sizes = [8, 192], strides = [1, 1]} : vector<8x256xf32> to vector<8x192xf32>
    %891 = arith.negf %890 : vector<8x192xf32>
    %892 = math.exp %891 : vector<8x192xf32>
    %cst_230 = arith.constant 1.000000e+00 : f32
    %893 = vector.broadcast %cst_230 : f32 to vector<8x192xf32>
    %894 = arith.addf %893, %892 : vector<8x192xf32>
    %895 = arith.divf %893, %894 : vector<8x192xf32>
    %896 = vector.extract_strided_slice %878 {offsets = [0, 192], sizes = [8, 64], strides = [1, 1]} : vector<8x256xf32> to vector<8x64xf32>
    %897 = math.tanh %896 : vector<8x64xf32>
    %898 = vector.extract_strided_slice %883 {offsets = [0, 192], sizes = [8, 64], strides = [1, 1]} : vector<8x256xf32> to vector<8x64xf32>
    %899 = math.tanh %898 : vector<8x64xf32>
    %900 = vector.extract_strided_slice %889 {offsets = [0, 64], sizes = [8, 64], strides = [1, 1]} : vector<8x192xf32> to vector<8x64xf32>
    %901 = vector.extract_strided_slice %871 {offsets = [0, 0], sizes = [8, 64], strides = [1, 1]} : vector<8x128xf32> to vector<8x64xf32>
    %902 = arith.mulf %900, %901 : vector<8x64xf32>
    %903 = vector.extract_strided_slice %889 {offsets = [0, 0], sizes = [8, 64], strides = [1, 1]} : vector<8x192xf32> to vector<8x64xf32>
    %904 = arith.mulf %903, %897 : vector<8x64xf32>
    %905 = arith.addf %902, %904 : vector<8x64xf32>
    %906 = vector.extract_strided_slice %895 {offsets = [0, 64], sizes = [8, 64], strides = [1, 1]} : vector<8x192xf32> to vector<8x64xf32>
    %907 = vector.extract_strided_slice %871 {offsets = [0, 64], sizes = [8, 64], strides = [1, 1]} : vector<8x128xf32> to vector<8x64xf32>
    %908 = arith.mulf %906, %907 : vector<8x64xf32>
    %909 = vector.extract_strided_slice %895 {offsets = [0, 0], sizes = [8, 64], strides = [1, 1]} : vector<8x192xf32> to vector<8x64xf32>
    %910 = arith.mulf %909, %899 : vector<8x64xf32>
    %911 = arith.addf %908, %910 : vector<8x64xf32>
    %912 = vector.extract_strided_slice %889 {offsets = [0, 128], sizes = [8, 64], strides = [1, 1]} : vector<8x192xf32> to vector<8x64xf32>
    %913 = math.tanh %905 : vector<8x64xf32>
    %914 = arith.mulf %912, %913 : vector<8x64xf32>
    %915 = vector.extract_strided_slice %895 {offsets = [0, 128], sizes = [8, 64], strides = [1, 1]} : vector<8x192xf32> to vector<8x64xf32>
    %916 = math.tanh %911 : vector<8x64xf32>
    %917 = arith.mulf %915, %916 : vector<8x64xf32>
    %918 = arith.index_cast %c7_i32_222 : i32 to index
    %c0_231 = arith.constant 0 : index
    %c0_232 = arith.constant 0 : index
    %919 = vector.load %arg21[%918, %c0_231, %c0_232] : memref<8x8x64xf32, #tpu.memory_space<vmem>>, vector<1x8x64xf32>
    %920 = vector.shape_cast %919 : vector<1x8x64xf32> to vector<8x64xf32>
    %921 = vector.shape_cast %914 : vector<8x64xf32> to vector<1x8x64xf32>
    tpu.vector_store %arg21[%918, %c0_231, %c0_232], %921 {strides = array<i32>} : memref<8x8x64xf32, #tpu.memory_space<vmem>>, vector<1x8x64xf32>,
    %922 = arith.index_cast %872 : i32 to index
    %c0_233 = arith.constant 0 : index
    %c0_234 = arith.constant 0 : index
    %923 = vector.load %arg22[%922, %c0_233, %c0_234] : memref<8x8x64xf32, #tpu.memory_space<vmem>>, vector<1x8x64xf32>
    %924 = vector.shape_cast %923 : vector<1x8x64xf32> to vector<8x64xf32>
    %925 = vector.shape_cast %917 : vector<8x64xf32> to vector<1x8x64xf32>
    tpu.vector_store %arg22[%922, %c0_233, %c0_234], %925 {strides = array<i32>} : memref<8x8x64xf32, #tpu.memory_space<vmem>>, vector<1x8x64xf32>,
    %926 = tpu.concatenate %914, %917 in 1 : vector<8x64xf32>, vector<8x64xf32> -> vector<8x128xf32>
    %927 = tpu.concatenate %905, %911 in 1 : vector<8x64xf32>, vector<8x64xf32> -> vector<8x128xf32>
    %c8_i32_235 = arith.constant 8 : i32
    %c0_236 = arith.constant 0 : index
    %c0_237 = arith.constant 0 : index
    %c0_238 = arith.constant 0 : index
    %928 = vector.load %arg21[%c0_236, %c0_237, %c0_238] : memref<8x8x64xf32, #tpu.memory_space<vmem>>, vector<8x8x64xf32>
    %c0_239 = arith.constant 0 : index
    %c0_240 = arith.constant 0 : index
    %c0_241 = arith.constant 0 : index
    %929 = vector.load %arg22[%c0_239, %c0_240, %c0_241] : memref<8x8x64xf32, #tpu.memory_space<vmem>>, vector<8x8x64xf32>
    %930 = tpu.concatenate %928, %929 in 2 : vector<8x8x64xf32>, vector<8x8x64xf32> -> vector<8x8x128xf32>
    %931 = vector.shape_cast %930 : vector<8x8x128xf32> to vector<64x128xf32>
    %c0_242 = arith.constant 0 : index
    %c0_243 = arith.constant 0 : index
    %932 = vector.load %arg8[%c0_242, %c0_243] : memref<128x128xf32, #tpu.memory_space<vmem>>, vector<128x128xf32>
    %cst_244 = arith.constant dense<0.000000e+00> : vector<64x128xf32>
    %933 = tpu.matmul %931, %932, %cst_244 {dimension_numbers = #tpu.dot_dimension_numbers<[1], [0], [0], [1], [0, 0, 1, 1], [], []>} : vector<64x128xf32>, vector<128x128xf32>, vector<64x128xf32> -> vector<64x128xf32>
    %c0_245 = arith.constant 0 : index
    %c0_246 = arith.constant 0 : index
    %934 = vector.load %arg9[%c0_245, %c0_246] : memref<1x128xf32, #tpu.memory_space<vmem>>, vector<1x128xf32>
    %935 = vector.broadcast %934 : vector<1x128xf32> to vector<64x128xf32>
    %936 = arith.addf %933, %935 : vector<64x128xf32>
    %c0_247 = arith.constant 0 : index
    %c0_248 = arith.constant 0 : index
    %937 = vector.load %arg10[%c0_247, %c0_248] : memref<128x128xf32, #tpu.memory_space<vmem>>, vector<128x128xf32>
    %cst_249 = arith.constant dense<0.000000e+00> : vector<64x128xf32>
    %938 = tpu.matmul %931, %937, %cst_249 {dimension_numbers = #tpu.dot_dimension_numbers<[1], [0], [0], [1], [0, 0, 1, 1], [], []>} : vector<64x128xf32>, vector<128x128xf32>, vector<64x128xf32> -> vector<64x128xf32>
    %c0_250 = arith.constant 0 : index
    %c0_251 = arith.constant 0 : index
    %939 = vector.load %arg11[%c0_250, %c0_251] : memref<1x128xf32, #tpu.memory_space<vmem>>, vector<1x128xf32>
    %940 = vector.broadcast %939 : vector<1x128xf32> to vector<64x128xf32>
    %941 = arith.addf %938, %940 : vector<64x128xf32>
    %c0_252 = arith.constant 0 : index
    %c0_253 = arith.constant 0 : index
    %942 = vector.load %arg12[%c0_252, %c0_253] : memref<128x128xf32, #tpu.memory_space<vmem>>, vector<128x128xf32>
    %cst_254 = arith.constant dense<0.000000e+00> : vector<64x128xf32>
    %943 = tpu.matmul %931, %942, %cst_254 {dimension_numbers = #tpu.dot_dimension_numbers<[1], [0], [0], [1], [0, 0, 1, 1], [], []>} : vector<64x128xf32>, vector<128x128xf32>, vector<64x128xf32> -> vector<64x128xf32>
    %c0_255 = arith.constant 0 : index
    %c0_256 = arith.constant 0 : index
    %944 = vector.load %arg13[%c0_255, %c0_256] : memref<1x128xf32, #tpu.memory_space<vmem>>, vector<1x128xf32>
    %945 = vector.broadcast %944 : vector<1x128xf32> to vector<64x128xf32>
    %946 = arith.addf %943, %945 : vector<64x128xf32>
    %cst_257 = arith.constant dense<0.000000e+00> : vector<64x64xf32>
    %947 = tpu.matmul %936, %941, %cst_257 {dimension_numbers = #tpu.dot_dimension_numbers<[1], [1], [0], [0], [0, 0, 1, 0], [], []>} : vector<64x128xf32>, vector<64x128xf32>, vector<64x64xf32> -> vector<64x64xf32>
    %cst_258 = arith.constant 0.0883883461 : f32
    %948 = vector.broadcast %cst_258 : f32 to vector<64x64xf32>
    %949 = arith.mulf %947, %948 : vector<64x64xf32>
    %c0_259 = arith.constant 0 : index
    %c0_260 = arith.constant 0 : index
    %950 = vector.load %arg1[%c0_259, %c0_260] : memref<64x64xf32, #tpu.memory_space<vmem>>, vector<64x64xf32>
    %951 = arith.addf %949, %950 : vector<64x64xf32>
    %cst_261 = arith.constant dense<0xFF800000> : vector<64xf32>
    %952 = vector.multi_reduction <maximumf>, %951, %cst_261 [1] : vector<64x64xf32> to vector<64xf32>
    %953 = vector.shape_cast %952 : vector<64xf32> to vector<64x1xf32>
    %954 = vector.broadcast %953 : vector<64x1xf32> to vector<64x64xf32>
    %955 = arith.subf %951, %954 : vector<64x64xf32>
    %956 = math.exp %955 : vector<64x64xf32>
    %cst_262 = arith.constant dense<0.000000e+00> : vector<64xf32>
    %957 = vector.multi_reduction <add>, %956, %cst_262 [1] : vector<64x64xf32> to vector<64xf32>
    %958 = vector.shape_cast %957 : vector<64xf32> to vector<64x1xf32>
    %959 = vector.broadcast %958 : vector<64x1xf32> to vector<64x64xf32>
    %960 = arith.divf %956, %959 : vector<64x64xf32>
    %cst_263 = arith.constant dense<0.000000e+00> : vector<64x128xf32>
    %961 = tpu.matmul %960, %946, %cst_263 {dimension_numbers = #tpu.dot_dimension_numbers<[1], [0], [0], [1], [0, 0, 1, 1], [], []>} : vector<64x64xf32>, vector<64x128xf32>, vector<64x128xf32> -> vector<64x128xf32>
    %c0_264 = arith.constant 0 : index
    %c0_265 = arith.constant 0 : index
    %962 = vector.load %arg14[%c0_264, %c0_265] : memref<128x32xf32, #tpu.memory_space<vmem>>, vector<128x32xf32>
    %cst_266 = arith.constant dense<0.000000e+00> : vector<64x32xf32>
    %963 = tpu.matmul %961, %962, %cst_266 {dimension_numbers = #tpu.dot_dimension_numbers<[1], [0], [0], [1], [0, 0, 1, 1], [], []>} : vector<64x128xf32>, vector<128x32xf32>, vector<64x32xf32> -> vector<64x32xf32>
    %c0_267 = arith.constant 0 : index
    %c0_268 = arith.constant 0 : index
    %964 = vector.load %arg15[%c0_267, %c0_268] : memref<1x32xf32, #tpu.memory_space<vmem>>, vector<1x32xf32>
    %965 = vector.broadcast %964 : vector<1x32xf32> to vector<64x32xf32>
    %966 = arith.addf %963, %965 : vector<64x32xf32>
    %cst_269 = arith.constant 0.000000e+00 : f32
    %967 = vector.broadcast %cst_269 : f32 to vector<64x32xf32>
    %968 = arith.maximumf %966, %967 : vector<64x32xf32>
    %c0_270 = arith.constant 0 : index
    %c0_271 = arith.constant 0 : index
    %969 = vector.load %arg16[%c0_270, %c0_271] : memref<1x32xf32, #tpu.memory_space<vmem>>, vector<1x32xf32>
    %970 = vector.broadcast %969 : vector<1x32xf32> to vector<64x32xf32>
    %971 = arith.mulf %968, %970 : vector<64x32xf32>
    %cst_272 = arith.constant dense<0.000000e+00> : vector<64xf32>
    %972 = vector.multi_reduction <add>, %971, %cst_272 [1] : vector<64x32xf32> to vector<64xf32>
    %973 = vector.shape_cast %972 : vector<64xf32> to vector<64x1xf32>
    %c0_273 = arith.constant 0 : index
    %c0_274 = arith.constant 0 : index
    %974 = vector.load %arg17[%c0_273, %c0_274] : memref<1x1xf32, #tpu.memory_space<vmem>>, vector<1x1xf32>
    %975 = vector.broadcast %974 : vector<1x1xf32> to vector<64x1xf32>
    %976 = arith.addf %973, %975 : vector<64x1xf32>
    %977 = arith.negf %976 : vector<64x1xf32>
    %978 = math.exp %977 : vector<64x1xf32>
    %cst_275 = arith.constant 1.000000e+00 : f32
    %979 = vector.broadcast %cst_275 : f32 to vector<64x1xf32>
    %980 = arith.addf %979, %978 : vector<64x1xf32>
    %981 = arith.divf %979, %980 : vector<64x1xf32>
    %c0_276 = arith.constant 0 : index
    %c0_277 = arith.constant 0 : index
    %982 = vector.load %arg18[%c0_276, %c0_277] : memref<64x1xf32, #tpu.memory_space<vmem>>, vector<64x1xf32>
    tpu.vector_store %arg18[%c0_276, %c0_277], %981 {strides = array<i32>} : memref<64x1xf32, #tpu.memory_space<vmem>>, vector<64x1xf32>,
    return
  }
}

</mosaic_0001>

<bundles_post_ra>
// kernel: model_forward.1
= control target key start
LH: loop header
LB: loop body
LE: loop exit
PB: predicated region body
PF: predicated region fallthrough
CT: control target
= control target key end

     0   :  { %s9941_s0 = inlined_call_operand.vmem [shape: f32[8,8,16], index: 0, kind: input, shape index: {}]   ;;  %s9942_s1 = inlined_call_operand.hbm [shape: f32[64,64], index: 1, kind: input, shape index: {}]   ;;  %s9943_s2 = inlined_call_operand.vmem [shape: f32[16,512], index: 2, kind: input, shape index: {}]   ;;  %s9944_s3 = inlined_call_operand.hbm [shape: f32[128,512], index: 3, kind: input, shape index: {}]   ;;  %s9945_s4 = inlined_call_operand.hbm [shape: f32[1,512], index: 4, kind: input, shape index: {}]   ;;  %s9946_s5 = inlined_call_operand.hbm [shape: f32[128,512], index: 5, kind: input, shape index: {}]   ;;  %s9947_s6 = inlined_call_operand.hbm [shape: f32[128,512], index: 6, kind: input, shape index: {}]   ;;  %s9948_s7 = inlined_call_operand.hbm [shape: f32[1,512], index: 7, kind: input, shape index: {}]   ;;  %s9949_s8 = inlined_call_operand.vmem [shape: f32[128,128], index: 8, kind: input, shape index: {}]   ;;  %s9950_s9 = inlined_call_operand.vmem [shape: f32[1,128], index: 9, kind: input, shape index: {}]   ;;  %s9951_s10 = inlined_call_operand.vmem [shape: f32[128,128], index: 10, kind: input, shape index: {}]   ;;  %s9952_s11 = inlined_call_operand.vmem [shape: f32[1,128], index: 11, kind: input, shape index: {}]   ;;  %s9953_s12 = inlined_call_operand.hbm [shape: f32[128,128], index: 12, kind: input, shape index: {}]   ;;  %s9954_s13 = inlined_call_operand.hbm [shape: f32[1,128], index: 13, kind: input, shape index: {}]   ;;  %s9955_s14 = inlined_call_operand.vmem [shape: f32[128,32], index: 14, kind: input, shape index: {}]   ;;  %s9956_s15 = inlined_call_operand.hbm [shape: f32[1,32], index: 15, kind: input, shape index: {}]   ;;  %s9957_s16 = inlined_call_operand.hbm [shape: f32[1,32], index: 16, kind: input, shape index: {}]   ;;  %s9958_s17 = inlined_call_operand.<no memory space> [shape: f32[1,1], index: 17, kind: input, shape index: {}]   ;;  %s9959_s18 = inlined_call_operand.vmem [shape: f32[64,1], index: 18, kind: output, shape index: {}]  }
   0x1   :  { %9963 = sst [smem:[#allocation29_spill]] %s9941_s0  ;;  %v23_v0 = vstv %s9958_s17 }
   0x2   :  { %9964 = sst [smem:[#allocation30_spill]] %s9942_s1  ;;  %24 = vst [vmem:[#allocation6] sm:$0x1] %v23_v0 }
   0x3   :  { %9965 = sst [smem:[#allocation31_spill]] %s9943_s2 }
   0x4   :  { %25 = vsyncpa [#allocation8], 0 }
   0x5   :  { %26 = vsyncpa [#allocation10], 0 }
   0x6   :  { %27 = vsyncpa [#allocation13], 0 }
   0x7   :  { %28 = vsyncpa [#allocation16], 0 }
   0x8   :  { %29 = vsyncpa [#allocation19], 0 }
   0x9   :  { %30 = vsyncpa [#allocation22], 0  ;;  %s8259_s29 = smov [#allocation9]   ;;  %s8027_s1 = scalar_lea.hbm %s9944_s3, 8192 }
   0xa   :  { %s52_s30 = sshll.u32 %s8259_s29, 4  ;;  %p8028_p0 = scmp.ne.s32.totalorder %s9944_s3, %s8027_s1  ;;  %s53_s30 = int_to_ptr.vmem [resolvable:$true] %s52_s30 }
   0xb   :  { %p8031_p1 = scmp.lt.u32.totalorder %s8027_s1, %s9944_s3 }
   0xd   :  { %p8033_p2 = pnand %p8031_p1, %p8028_p0 }
   0xf   :  { %8036 = shalt.err (!%p8033_p2)
}
  0x10   :  { %s8037_s2 = scalar_lea.vmem %s53_s30, 8192  ;;  %p8042_p4 = scmp.lt.s32.totalorder %s53_s30, %s53_s30 }
  0x11   :  { %p8038_p3 = scmp.ne.s32.totalorder %s53_s30, %s8037_s2  ;;  %p8043_p5 = scmp.lt.s32.totalorder %s8037_s2, %s8037_s2 }
  0x13   :  { %p8044_p6 = por %p8043_p5, %p8042_p4 }
  0x15   :  { %p8045_p7 = pnand %p8044_p6, %p8038_p3 }
  0x17   :  { %8048 = shalt.err (!%p8045_p7)
}
  0x18   :  { %s8260_s23 = smov 512   ;;  %s8261_s24 = smov 32  }
  0x19   :  { %58 = dma.hbm_to_vmem [thread:$0]  %s9944_s3, 8192, %s53_s30, [#allocation10], %s8260_s23, %s8260_s23, %s8261_s24  }
  0x1a   :  { %s8262_s27 = smov [#allocation12]   ;;  %s8263_s29 = smov [#allocation15]  }
  0x1b   :  { %s74_s28 = sshll.u32 %s8262_s27, 4  ;;  %s99_s0 = sshll.u32 %s8263_s29, 4  ;;  %s75_s28 = int_to_ptr.vmem [resolvable:$true] %s74_s28  ;;  %s100_s0 = int_to_ptr.vmem [resolvable:$true] %s99_s0 }
  0x1c   :  { %s8049_s20 = scalar_lea.hbm %s9946_s5, 8192 }
  0x1d   :  { %p8050_p8 = scmp.ne.s32.totalorder %s9946_s5, %s8049_s20  ;;  %p8053_p9 = scmp.lt.u32.totalorder %s8049_s20, %s9946_s5 }
  0x1f   :  { %p8055_p10 = pnand %p8053_p9, %p8050_p8 }
  0x21   :  { %8058 = shalt.err (!%p8055_p10)
}
  0x22   :  { %s8059_s3 = scalar_lea.vmem %s75_s28, 8192  ;;  %p8064_p12 = scmp.lt.s32.totalorder %s75_s28, %s75_s28 }
  0x23   :  { %p8060_p11 = scmp.ne.s32.totalorder %s75_s28, %s8059_s3  ;;  %p8065_p13 = scmp.lt.s32.totalorder %s8059_s3, %s8059_s3 }
  0x25   :  { %p8066_p0 = por %p8065_p13, %p8064_p12 }
  0x27   :  { %p8067_p1 = pnand %p8066_p0, %p8060_p11 }
  0x29   :  { %8070 = shalt.err (!%p8067_p1)
}
  0x2a   :  { %80 = dma.hbm_to_vmem [thread:$0]  %s9946_s5, 8192, %s75_s28, [#allocation13], %s8260_s23, %s8260_s23, %s8261_s24  }
  0x2b   :  { %s8071_s29 = scalar_lea.hbm %s9948_s7, 64 }
  0x2c   :  { %p8072_p2 = scmp.ne.s32.totalorder %s9948_s7, %s8071_s29  ;;  %p8075_p3 = scmp.lt.u32.totalorder %s8071_s29, %s9948_s7 }
  0x2e   :  { %p8077_p4 = pnand %p8075_p3, %p8072_p2 }
  0x30   :  { %8080 = shalt.err (!%p8077_p4)
}
  0x31   :  { %s8081_s22 = scalar_lea.vmem %s100_s0, 64  ;;  %p8086_p6 = scmp.lt.s32.totalorder %s100_s0, %s100_s0 }
  0x32   :  { %p8082_p5 = scmp.ne.s32.totalorder %s100_s0, %s8081_s22  ;;  %p8087_p7 = scmp.lt.s32.totalorder %s8081_s22, %s8081_s22 }
  0x34   :  { %p8088_p8 = por %p8087_p7, %p8086_p6 }
  0x36   :  { %p8089_p9 = pnand %p8088_p8, %p8082_p5 }
  0x38   :  { %8092 = shalt.err (!%p8089_p9)
}
  0x39   :  { %102 = dma.hbm_to_vmem [thread:$0]  %s9948_s7, 64, %s100_s0, [#allocation16]  }
  0x3a   :  { %s8264_s17 = smov [#allocation18]   ;;  %s8265_s3 = smov [#allocation7]  }
  0x3b   :  { %s129_s2 = sshll.u32 %s8264_s17, 4  ;;  %s38_s30 = sshll.u32 %s8265_s3, 4  ;;  %s130_s2 = int_to_ptr.vmem [resolvable:$true] %s129_s2  ;;  %s39_s30 = int_to_ptr.vmem [resolvable:$true] %s38_s30 }
  0x3c   :  { %s8093_s27 = scalar_lea.hbm %s9954_s13, 16 }
  0x3d   :  { %p8094_p10 = scmp.ne.s32.totalorder %s9954_s13, %s8093_s27  ;;  %p8097_p11 = scmp.lt.u32.totalorder %s8093_s27, %s9954_s13 }
  0x3f   :  { %p8099_p12 = pnand %p8097_p11, %p8094_p10 }
  0x41   :  { %8102 = shalt.err (!%p8099_p12)
}
  0x42   :  { %s8103_s7 = scalar_lea.vmem %s130_s2, 16  ;;  %s8107_s0 = scalar_lea.vmem %s130_s2, 32 }
  0x43   :  { %p8104_p13 = scmp.ne.s32.totalorder %s130_s2, %s8103_s7  ;;  %p8108_p0 = scmp.lt.s32.totalorder %s130_s2, %s130_s2 }
  0x44   :  { %p8109_p1 = scmp.lt.s32.totalorder %s8107_s0, %s8103_s7 }
  0x46   :  { %p8110_p2 = por %p8109_p1, %p8108_p0 }
  0x48   :  { %p8111_p3 = pnand %p8110_p2, %p8104_p13 }
  0x4a   :  { %8114 = shalt.err (!%p8111_p3)
}
  0x4b   :  { %132 = dma.hbm_to_vmem [thread:$0]  %s9954_s13, 16, %s130_s2, [#allocation19]  }
  0x4c   :  { %s9966_s17 = sld [smem:[#allocation30_spill]] }
  0x52   :  { %s8115_s3 = scalar_lea.hbm %s9966_s17, 1024 }
  0x53   :  { %p8116_p4 = scmp.ne.s32.totalorder %s9966_s17, %s8115_s3  ;;  %p8119_p5 = scmp.lt.u32.totalorder %s8115_s3, %s9966_s17 }
  0x55   :  { %p8121_p6 = pnand %p8119_p5, %p8116_p4 }
  0x57   :  { %8124 = shalt.err (!%p8121_p6)
}
  0x58   :  { %s8125_s19 = scalar_lea.vmem %s39_s30, 1024  ;;  %p8130_p8 = scmp.lt.s32.totalorder %s39_s30, %s39_s30 }
  0x59   :  { %p8126_p7 = scmp.ne.s32.totalorder %s39_s30, %s8125_s19  ;;  %p8131_p9 = scmp.lt.s32.totalorder %s8125_s19, %s8125_s19 }
  0x5b   :  { %p8132_p10 = por %p8131_p9, %p8130_p8 }
  0x5d   :  { %p8133_p11 = pnand %p8132_p10, %p8126_p7 }
  0x5f   :  { %8136 = shalt.err (!%p8133_p11)
}
  0x60   :  { %s8266_s13 = smov 128   ;;  %s8267_s2 = smov 8  }
  0x61   :  { %44 = dma.hbm_to_vmem [thread:$0]  %s9966_s17, 1024, %s39_s30, [#allocation8], %s8266_s13, %s8266_s13, %s8267_s2  }
  0x62   :  { %s8268_s7 = smov [#allocation11]   ;;  %s8269_s21 = smov [#allocation14]  }
  0x63   :  { %s65_s0 = sshll.u32 %s8268_s7, 4  ;;  %s86_s22 = sshll.u32 %s8269_s21, 4  ;;  %s66_s0 = int_to_ptr.vmem [resolvable:$true] %s65_s0  ;;  %s87_s22 = int_to_ptr.vmem [resolvable:$true] %s86_s22 }
  0x64   :  { %s8137_s3 = scalar_lea.hbm %s9945_s4, 64 }
  0x65   :  { %p8138_p12 = scmp.ne.s32.totalorder %s9945_s4, %s8137_s3  ;;  %p8141_p13 = scmp.lt.u32.totalorder %s8137_s3, %s9945_s4 }
  0x67   :  { %p8143_p0 = pnand %p8141_p13, %p8138_p12 }
  0x69   :  { %8146 = shalt.err (!%p8143_p0)
}
  0x6a   :  { %s8147_s30 = scalar_lea.vmem %s66_s0, 64  ;;  %p8152_p2 = scmp.lt.s32.totalorder %s66_s0, %s66_s0 }
  0x6b   :  { %p8148_p1 = scmp.ne.s32.totalorder %s66_s0, %s8147_s30  ;;  %p8153_p3 = scmp.lt.s32.totalorder %s8147_s30, %s8147_s30 }
  0x6d   :  { %p8154_p4 = por %p8153_p3, %p8152_p2 }
  0x6f   :  { %p8155_p5 = pnand %p8154_p4, %p8148_p1 }
  0x71   :  { %8158 = shalt.err (!%p8155_p5)
}
  0x72   :  { %68 = dma.hbm_to_vmem [thread:$0]  %s9945_s4, 64, %s66_s0, [#allocation10]  }
  0x73   :  { %s8159_s7 = scalar_lea.hbm %s9947_s6, 8192 }
  0x74   :  { %p8160_p6 = scmp.ne.s32.totalorder %s9947_s6, %s8159_s7  ;;  %p8163_p7 = scmp.lt.u32.totalorder %s8159_s7, %s9947_s6 }
  0x76   :  { %p8165_p8 = pnand %p8163_p7, %p8160_p6 }
  0x78   :  { %8168 = shalt.err (!%p8165_p8)
}
  0x79   :  { %s8169_s25 = scalar_lea.vmem %s87_s22, 8192  ;;  %p8174_p10 = scmp.lt.s32.totalorder %s87_s22, %s87_s22 }
  0x7a   :  { %p8170_p9 = scmp.ne.s32.totalorder %s87_s22, %s8169_s25  ;;  %p8175_p11 = scmp.lt.s32.totalorder %s8169_s25, %s8169_s25 }
  0x7c   :  { %p8176_p12 = por %p8175_p11, %p8174_p10 }
  0x7e   :  { %p8177_p13 = pnand %p8176_p12, %p8170_p9 }
  0x80   :  { %8180 = shalt.err (!%p8177_p13)
}
  0x81   :  { %92 = dma.hbm_to_vmem [thread:$0]  %s9947_s6, 8192, %s87_s22, [#allocation13], %s8260_s23, %s8260_s23, %s8261_s24  }
  0x82   :  { %s8270_s26 = smov [#allocation17]   ;;  %s8271_s29 = smov [#allocation20]  }
  0x83   :  { %s116_s27 = sshll.u32 %s8270_s26, 4  ;;  %s141_s30 = sshll.u32 %s8271_s29, 4  ;;  %s117_s27 = int_to_ptr.vmem [resolvable:$true] %s116_s27  ;;  %s142_s30 = int_to_ptr.vmem [resolvable:$true] %s141_s30 }
  0x84   :  { %s8181_s1 = scalar_lea.hbm %s9953_s12, 2048 }
  0x85   :  { %p8182_p0 = scmp.ne.s32.totalorder %s9953_s12, %s8181_s1  ;;  %p8185_p1 = scmp.lt.u32.totalorder %s8181_s1, %s9953_s12 }
  0x87   :  { %p8187_p2 = pnand %p8185_p1, %p8182_p0 }
  0x89   :  { %8190 = shalt.err (!%p8187_p2)
}
  0x8a   :  { %s8191_s6 = scalar_lea.vmem %s117_s27, 2048  ;;  %p8196_p4 = scmp.lt.s32.totalorder %s117_s27, %s117_s27 }
  0x8b   :  { %p8192_p3 = scmp.ne.s32.totalorder %s117_s27, %s8191_s6  ;;  %p8197_p5 = scmp.lt.s32.totalorder %s8191_s6, %s8191_s6 }
  0x8d   :  { %p8198_p6 = por %p8197_p5, %p8196_p4 }
  0x8f   :  { %p8199_p7 = pnand %p8198_p6, %p8192_p3 }
  0x91   :  { %8202 = shalt.err (!%p8199_p7)
}
  0x92   :  { %122 = dma.hbm_to_vmem [thread:$0]  %s9953_s12, 2048, %s117_s27, [#allocation16], %s8266_s13, %s8266_s13, %s8267_s2  }
  0x93   :  { %s8203_s3 = scalar_lea.hbm %s9956_s15, 16 }
  0x94   :  { %p8204_p8 = scmp.ne.s32.totalorder %s9956_s15, %s8203_s3  ;;  %p8207_p9 = scmp.lt.u32.totalorder %s8203_s3, %s9956_s15 }
  0x96   :  { %p8209_p10 = pnand %p8207_p9, %p8204_p8 }
  0x98   :  { %8212 = shalt.err (!%p8209_p10)
}
  0x99   :  { %s8213_s29 = scalar_lea.vmem %s142_s30, 16  ;;  %s8217_s17 = scalar_lea.vmem %s142_s30, 32 }
  0x9a   :  { %p8214_p11 = scmp.ne.s32.totalorder %s142_s30, %s8213_s29  ;;  %p8218_p12 = scmp.lt.s32.totalorder %s142_s30, %s142_s30 }
  0x9b   :  { %p8219_p13 = scmp.lt.s32.totalorder %s8217_s17, %s8213_s29 }
  0x9d   :  { %p8220_p0 = por %p8219_p13, %p8218_p12 }
  0x9f   :  { %p8221_p1 = pnand %p8220_p0, %p8214_p11 }
  0xa1   :  { %8224 = shalt.err (!%p8221_p1)
}
  0xa2   :  { %144 = dma.hbm_to_vmem [thread:$0]  %s9956_s15, 16, %s142_s30, [#allocation19]  }
  0xa3   :  { %s8272_s2 = smov [#allocation21]   ;;  %s8225_s20 = scalar_lea.hbm %s9957_s16, 16 }
  0xa4   :  { %s151_s27 = sshll.u32 %s8272_s2, 4  ;;  %p8226_p2 = scmp.ne.s32.totalorder %s9957_s16, %s8225_s20  ;;  %s152_s27 = int_to_ptr.vmem [resolvable:$true] %s151_s27 }
  0xa5   :  { %p8229_p3 = scmp.lt.u32.totalorder %s8225_s20, %s9957_s16 }
  0xa7   :  { %p8231_p4 = pnand %p8229_p3, %p8226_p2 }
  0xa9   :  { %8234 = shalt.err (!%p8231_p4)
}
  0xaa   :  { %s8235_s23 = scalar_lea.vmem %s152_s27, 16  ;;  %s8239_s15 = scalar_lea.vmem %s152_s27, 32 }
  0xab   :  { %p8236_p5 = scmp.ne.s32.totalorder %s152_s27, %s8235_s23  ;;  %p8240_p6 = scmp.lt.s32.totalorder %s152_s27, %s152_s27 }
  0xac   :  { %p8241_p7 = scmp.lt.s32.totalorder %s8239_s15, %s8235_s23 }
  0xae   :  { %p8242_p8 = por %p8241_p7, %p8240_p6 }
  0xb0   :  { %p8243_p9 = pnand %p8242_p8, %p8236_p5 }
  0xb2   :  { %8246 = shalt.err (!%p8243_p9)
}
  0xb3   :  { %154 = dma.hbm_to_vmem [thread:$0]  %s9957_s16, 16, %s152_s27, [#allocation22]  }
  0xb4   :  { %8247 = dma.done.wait [#allocation8], 1024  }
  0xb5   :  { %8248 = vsyncadd [#allocation8], 4294966272 }
  0xb6   :  { %8249 = dma.done.wait [#allocation10], 8256  }
  0xb7   :  { %8250 = vsyncadd [#allocation10], 4294959040 }
  0xb8   :  { %8251 = dma.done.wait [#allocation13], 16384  }
  0xb9   :  { %8252 = vsyncadd [#allocation13], 4294950912 }
  0xba   :  { %8253 = dma.done.wait [#allocation16], 2112  }
  0xbb   :  { %8254 = vsyncadd [#allocation16], 4294965184 }
  0xbc   :  { %8255 = dma.done.wait [#allocation19], 32  }
  0xbd   :  { %8256 = vsyncadd [#allocation19], 4294967264 }
  0xbe   :  { %8257 = dma.done.wait [#allocation22], 16  }
  0xbf   :  { %8258 = vsyncadd [#allocation22], 4294967280  ;;  %v8273_v1 = vmov 0.0   ;;  %s9967_s16 = sld [smem:[#allocation31_spill]]  ;;  %v511_v7 = vld [vmem:[#allocation9 + $0x18] sm:$0xff]  ;;  %v510_v10 = vld [vmem:[#allocation9 + $0x10] sm:$0xff] }
  0xc0   :  { %427 = vmatprep.mubr.f32.mxu1 %v8273_v1  ;;  %314 = vmatprep.mubr.f32.mxu0 %v8273_v1  ;;  %v515_v9 = vld [vmem:[#allocation9 + $0x38] sm:$0xff]  ;;  %v514_v11 = vld [vmem:[#allocation9 + $0x30] sm:$0xff]  ;;  %s9968_s13 = sld [smem:[#allocation29_spill]]  ;;  %vm225_vm0 = vcmask 130048   ;;  %v509_v26 = vld [vmem:[#allocation9 + $0x8] sm:$0xff]  ;;  %s8274_s17 = smov 64  }
  0xc1   :  { %v8525_v13 = vpack.c.bf16 %v515_v9, %v511_v7  ;;  %v8533_v16 = vpack.c.bf16 %v514_v11, %v510_v10  ;;  %v519_v20 = vld [vmem:[#allocation9 + $0x58] sm:$0xff]  ;;  %v518_v23 = vld [vmem:[#allocation9 + $0x50] sm:$0xff]  ;;  %v513_v27 = vld [vmem:[#allocation9 + $0x28] sm:$0xff]  ;;  %vm783_vm1 = vcmask 523264   ;;  %vm5590_vm2 = vcmask 261120  }
  0xc2   :  { %v523_v22 = vld [vmem:[#allocation9 + $0x78] sm:$0xff]  ;;  %v522_v24 = vld [vmem:[#allocation9 + $0x70] sm:$0xff]  ;;  %v8545_v28 = vpack.c.bf16 %v513_v27, %v509_v26  ;;  %v508_v29 = vld [vmem:[#allocation9] sm:$0xff]  ;;  %vm5678_vm3 = vcmask 7168  }
  0xc3   :  { %v8542_v25 = vpack.c.bf16 %v523_v22, %v519_v20  ;;  %v512_v30 = vld [vmem:[#allocation9 + $0x20] sm:$0xff]  ;;  %v527_v31 = vld [vmem:[#allocation9 + $0x98] sm:$0xff]  ;;  %v8552_v33 = vpack.c.bf16 %v522_v24, %v518_v23  ;;  %v526_v36 = vld [vmem:[#allocation9 + $0x90] sm:$0xff] }
  0xc4   :  { %v8554_v34 = vpack.c.bf16 %v512_v30, %v508_v29  ;;  %v531_v35 = vld [vmem:[#allocation9 + $0xb8] sm:$0xff]  ;;  %v530_v38 = vld [vmem:[#allocation9 + $0xb0] sm:$0xff]  ;;  %v517_v39 = vld [vmem:[#allocation9 + $0x48] sm:$0xff] }
  0xc5   :  { %v198_v2 = vld [vmem:[%s9967_s16 + $0x18] sm:$0xff]  ;;  %v197_v4 = vld [vmem:[%s9967_s16 + $0x10] sm:$0xff]  ;;  %v196_v14 = vld [vmem:[%s9967_s16 + $0x8] sm:$0xff]  ;;  %v8558_v37 = vpack.c.bf16 %v531_v35, %v527_v31  ;;  %v8572_v48 = vpack.c.bf16 %v530_v38, %v526_v36 }
  0xc6   :  { %v202_v3 = vld [vmem:[%s9967_s16 + $0x38] sm:$0xff]  ;;  %v201_v6 = vld [vmem:[%s9967_s16 + $0x30] sm:$0xff]  ;;  %v187_v12 = vld [vmem:[%s9968_s13] sm:$0xff] }
  0xc7   :  { %v6163_v5 = vpack.c.bf16 %v202_v3, %v198_v2  ;;  %v6165_v8 = vpack.c.bf16 %v201_v6, %v197_v4  ;;  %v200_v15 = vld [vmem:[%s9967_s16 + $0x28] sm:$0xff]  ;;  %v195_v18 = vld [vmem:[%s9967_s16] sm:$0xff]  ;;  %v189_v45 = vld [vmem:[%s9968_s13 + $0x10] sm:$0xff] }
  0xc8   :  { %v6159_v17 = vpack.c.bf16 %v200_v15, %v196_v14  ;;  %v199_v19 = vld [vmem:[%s9967_s16 + $0x20] sm:$0xff]  ;;  %v188_v32 = vld [vmem:[%s9968_s13 + $0x8] sm:$0xff]  ;;  %v534_v49 = vld [vmem:[#allocation9 + $0xd0] sm:$0xff] }
  0xc9   :  { %6164 = vmatprep.subr.bf16.mxu1 %v6163_v5  ;;  %v6161_v21 = vpack.c.bf16 %v199_v19, %v195_v18  ;;  %v521_v40 = vld [vmem:[#allocation9 + $0x68] sm:$0xff]  ;;  %v516_v42 = vld [vmem:[#allocation9 + $0x40] sm:$0xff]  ;;  %v535_v44 = vld [vmem:[#allocation9 + $0xd8] sm:$0xff] }
  0xca   :  { %6166 = vmatpush1.bf16.msra.mxu1 %v6165_v8  ;;  %6160 = vmatprep.subr.bf16.mxu0 %v6159_v17  ;;  %v8561_v41 = vpack.c.bf16 %v521_v40, %v517_v39  ;;  %v520_v43 = vld [vmem:[#allocation9 + $0x60] sm:$0xff]  ;;  %v539_v47 = vld [vmem:[#allocation9 + $0xf8] sm:$0xff]  ;;  %v525_v50 = vld [vmem:[#allocation9 + $0x88] sm:$0xff] }
  0xcb   :  { %6200 = vmatprep.subr.bf16.mxu1 %v8525_v13  ;;  %6162 = vmatpush1.bf16.msra.mxu0 %v6161_v21  ;;  %v8568_v46 = vpack.c.bf16 %v520_v43, %v516_v42  ;;  %v529_v51 = vld [vmem:[#allocation9 + $0xa8] sm:$0xff]  ;;  %v8576_v52 = vpack.c.bf16 %v539_v47, %v535_v44  ;;  %v538_v53 = vld [vmem:[#allocation9 + $0xf0] sm:$0xff]  ;;  %v524_v54 = vld [vmem:[#allocation9 + $0x80] sm:$0xff] }
  0xcc   :  { %6168 = vmatprep.subr.bf16.mxu0 %v8545_v28  ;;  %v528_v55 = vld [vmem:[#allocation9 + $0xa0] sm:$0xff]  ;;  %v8580_v56 = vpack.c.bf16 %v529_v51, %v525_v50  ;;  %v543_v57 = vld [vmem:[#allocation9 + $0x118] sm:$0xff]  ;;  %v533_v60 = vld [vmem:[#allocation9 + $0xc8] sm:$0xff]  ;;  %v8591_v63 = vpack.c.bf16 %v538_v53, %v534_v49 }
  0xcd   :  { %5705 = vmatmul.mubr.msk.f32.vlgmr.msra.gmra.mrb[0].mxu1 %vm225_vm0, %v187_v12  ;;  %v547_v58 = vld [vmem:[#allocation9 + $0x138] sm:$0xff]  ;;  %v8584_v59 = vpack.c.bf16 %v528_v55, %v524_v54  ;;  %v537_v61 = vld [vmem:[#allocation9 + $0xe8] sm:$0xff]  ;;  %v532_v0 = vld [vmem:[#allocation9 + $0xc0] sm:$0xff] }
  0xce   :  { %6202 = vmatpush1.bf16.msra.mxu1 %v8533_v16  ;;  %433 = vmatprep.mubr.f32.mxu1 %v8273_v1  ;;  %v190_v62 = vld [vmem:[%s9968_s13 + $0x18] sm:$0xff]  ;;  %v536_v2 = vld [vmem:[#allocation9 + $0xe0] sm:$0xff]  ;;  %v8595_v3 = vpack.c.bf16 %v547_v58, %v543_v57  ;;  %v8599_v6 = vpack.c.bf16 %v537_v61, %v533_v60  ;;  %v541_v10 = vld [vmem:[#allocation9 + $0x108] sm:$0xff] }
  0xcf   :  { %6204 = vmatprep.subr.bf16.mxu1 %v8542_v25  ;;  %5697 = vmatmul.mubr.msk.f32.vlgmr.msra.gmra.mrb[0].mxu0 %vm225_vm0, %v187_v12  ;;  %v542_v4 = vld [vmem:[#allocation9 + $0x110] sm:$0xff]  ;;  %v551_v7 = vld [vmem:[#allocation9 + $0x158] sm:$0xff]  ;;  %v8603_v9 = vpack.c.bf16 %v536_v2, %v532_v0  ;;  %v545_v11 = vld [vmem:[#allocation9 + $0x128] sm:$0xff] }
  0xd0   :  { %6170 = vmatpush1.bf16.msra.mxu0 %v8554_v34  ;;  %320 = vmatprep.mubr.f32.mxu0 %v8273_v1  ;;  %v546_v5 = vld [vmem:[#allocation9 + $0x130] sm:$0xff]  ;;  %v555_v8 = vld [vmem:[#allocation9 + $0x178] sm:$0xff]  ;;  %v540_v15 = vld [vmem:[#allocation9 + $0x100] sm:$0xff]  ;;  %v8618_v21 = vpack.c.bf16 %v545_v11, %v541_v10 }
  0xd1   :  { %5706 = vmatmul.mubr.msk.f32.gmra.mrb[2].mxu1 %vm225_vm0, %v188_v32  ;;  %6172 = vmatprep.subr.bf16.mxu0 %v8561_v41  ;;  %v191_v12 = vld [vmem:[%s9968_s13 + $0x20] sm:$0xff]  ;;  %v8610_v14 = vpack.c.bf16 %v546_v5, %v542_v4  ;;  %v8614_v18 = vpack.c.bf16 %v555_v8, %v551_v7  ;;  %v550_v19 = vld [vmem:[#allocation9 + $0x150] sm:$0xff]  ;;  %v549_v26 = vld [vmem:[#allocation9 + $0x148] sm:$0xff]  ;;  %v205_v8 = vlaneseq }
  0xd2   :  { %6206 = vmatpush1.bf16.msra.mxu1 %v8552_v33  ;;  %439 = vmatprep.mubr.f32.mxu1 %v8273_v1  ;;  %v544_v17 = vld [vmem:[#allocation9 + $0x120] sm:$0xff]  ;;  %v554_v20 = vld [vmem:[#allocation9 + $0x170] sm:$0xff]  ;;  %v559_v22 = vld [vmem:[#allocation9 + $0x198] sm:$0xff] }
  0xd3   :  { %6208 = vmatprep.subr.bf16.mxu1 %v8558_v37  ;;  %5698 = vmatmul.mubr.msk.f32.gmra.mrb[2].mxu0 %vm225_vm0, %v188_v32  ;;  %v563_v23 = vld [vmem:[#allocation9 + $0x1b8] sm:$0xff]  ;;  %v8622_v24 = vpack.c.bf16 %v544_v17, %v540_v15  ;;  %v553_v27 = vld [vmem:[#allocation9 + $0x168] sm:$0xff]  ;;  %v8629_v30 = vpack.c.bf16 %v554_v20, %v550_v19  ;;  %v548_v31 = vld [vmem:[#allocation9 + $0x140] sm:$0xff]  ;;  %v8724_v10 = vshrl.u32 %v205_v8, 7 }
  0xd4   :  { %6174 = vmatpush1.bf16.msra.mxu0 %v8568_v46  ;;  %326 = vmatprep.mubr.f32.mxu0 %v8273_v1  ;;  %v192_v29 = vld [vmem:[%s9968_s13 + $0x28] sm:$0xff]  ;;  %v8633_v35 = vpack.c.bf16 %v563_v23, %v559_v22  ;;  %v558_v36 = vld [vmem:[#allocation9 + $0x190] sm:$0xff]  ;;  %v8637_v39 = vpack.c.bf16 %v553_v27, %v549_v26  ;;  %v567_v44 = vld [vmem:[#allocation9 + $0x1d8] sm:$0xff] }
  0xd5   :  { %5707 = vmatmul.mubr.msk.f32.gmra.mrb[4].mxu1 %vm225_vm0, %v189_v45  ;;  %6176 = vmatprep.subr.bf16.mxu0 %v8580_v56  ;;  %v552_v32 = vld [vmem:[#allocation9 + $0x160] sm:$0xff]  ;;  %v562_v38 = vld [vmem:[#allocation9 + $0x1b0] sm:$0xff]  ;;  %v557_v40 = vld [vmem:[#allocation9 + $0x188] sm:$0xff]  ;;  %v219_v11 = vsub.s32 3, %v8724_v10 }
  0xd6   :  { %6210 = vmatpush1.bf16.msra.mxu1 %v8572_v48  ;;  %445 = vmatprep.mubr.f32.mxu1 %v8273_v1  ;;  %v561_v42 = vld [vmem:[#allocation9 + $0x1a8] sm:$0xff]  ;;  %v8641_v43 = vpack.c.bf16 %v552_v32, %v548_v31  ;;  %v8648_v49 = vpack.c.bf16 %v562_v38, %v558_v36  ;;  %v556_v50 = vld [vmem:[#allocation9 + $0x180] sm:$0xff]  ;;  %v566_v54 = vld [vmem:[#allocation9 + $0x1d0] sm:$0xff]  ;;  %v215_v36 = vsub.s32 2, %v8724_v10 }
  0xd7   :  { %6212 = vmatprep.subr.bf16.mxu1 %v8576_v52  ;;  %5699 = vmatmul.mubr.msk.f32.gmra.mrb[4].mxu0 %vm225_vm0, %v189_v45  ;;  %v571_v45 = vld [vmem:[#allocation9 + $0x1f8] sm:$0xff]  ;;  %v193_v47 = vld [vmem:[%s9968_s13 + $0x30] sm:$0xff]  ;;  %v560_v51 = vld [vmem:[#allocation9 + $0x1a0] sm:$0xff]  ;;  %v8652_v53 = vpack.c.bf16 %v561_v42, %v557_v40  ;;  %v207_v40 = vsub.s32 0, %v8724_v10 }
  0xd8   :  { %6178 = vmatpush1.bf16.msra.mxu0 %v8584_v59  ;;  %332 = vmatprep.mubr.f32.mxu0 %v8273_v1  ;;  %v570_v55 = vld [vmem:[#allocation9 + $0x1f0] sm:$0xff]  ;;  %v8656_v57 = vpack.c.bf16 %v571_v45, %v567_v44  ;;  %v565_v58 = vld [vmem:[#allocation9 + $0x1c8] sm:$0xff]  ;;  %v8660_v61 = vpack.c.bf16 %v560_v51, %v556_v50  ;;  %v564_v2 = vld [vmem:[#allocation9 + $0x1c0] sm:$0xff] }
  0xd9   :  { %5708 = vmatmul.mubr.msk.f32.gmra.mrb[6].mxu1 %vm225_vm0, %v190_v62  ;;  %6180 = vmatprep.subr.bf16.mxu0 %v8599_v6  ;;  %v569_v60 = vld [vmem:[#allocation9 + $0x1e8] sm:$0xff]  ;;  %v8667_v0 = vpack.c.bf16 %v570_v55, %v566_v54  ;;  %v568_v4 = vld [vmem:[#allocation9 + $0x1e0] sm:$0xff] }
  0xda   :  { %451 = vmatprep.mubr.f32.mxu1 %v8273_v1  ;;  %6214 = vmatpush1.bf16.msra.mxu1 %v8591_v63  ;;  %v8671_v5 = vpack.c.bf16 %v569_v60, %v565_v58  ;;  %v8677_v7 = vpack.c.bf16 %v568_v4, %v564_v2  ;;  %v203_v15 = vld [vmem:[#allocation11] sm:$0xf] }
  0xdb   :  { %6216 = vmatprep.subr.bf16.mxu1 %v8595_v3  ;;  %5700 = vmatmul.mubr.msk.f32.gmra.mrb[6].mxu0 %vm225_vm0, %v190_v62  ;;  %v194_v62 = vld [vmem:[%s9968_s13 + $0x38] sm:$0xff]  ;;  %v8730_v17 = vrot.slane %v203_v15, %v219_v11  ;;  %v8743_v38 = vrot.slane %v203_v15, %v215_v36  ;;  %v8749_v44 = vrot.slane %v203_v15, %v207_v40 }
  0xdc   :  { %6182 = vmatpush1.bf16.msra.mxu0 %v8603_v9  ;;  %338 = vmatprep.mubr.f32.mxu0 %v8273_v1 }
  0xdd   :  { %5709 = vmatmul.mubr.msk.f32.gmra.mrb[8].mxu1 %vm225_vm0, %v191_v12  ;;  %6184 = vmatprep.subr.bf16.mxu0 %v8618_v21 }
  0xde   :  { %457 = vmatprep.mubr.f32.mxu1 %v8273_v1  ;;  %6218 = vmatpush1.bf16.msra.mxu1 %v8610_v14 }
  0xdf   :  { %6220 = vmatprep.subr.bf16.mxu1 %v8614_v18  ;;  %5701 = vmatmul.mubr.msk.f32.gmra.mrb[8].mxu0 %vm225_vm0, %v191_v12  ;;  %v211_v12 = vsub.s32 1, %v8724_v10 }
  0xe0   :  { %6186 = vmatpush1.bf16.msra.mxu0 %v8622_v24  ;;  %344 = vmatprep.mubr.f32.mxu0 %v8273_v1 }
  0xe1   :  { %5710 = vmatmul.mubr.msk.f32.gmra.mrb[10].mxu1 %vm225_vm0, %v192_v29  ;;  %6188 = vmatprep.subr.bf16.mxu0 %v8637_v39  ;;  %v8734_v19 = vrot.slane %v203_v15, %v211_v12 }
  0xe2   :  { %463 = vmatprep.mubr.f32.mxu1 %v8273_v1  ;;  %6222 = vmatpush1.bf16.msra.mxu1 %v8629_v30 }
  0xe3   :  { %6224 = vmatprep.subr.bf16.mxu1 %v8633_v35  ;;  %5702 = vmatmul.mubr.msk.f32.gmra.mrb[10].mxu0 %vm225_vm0, %v192_v29 }
  0xe4   :  { %6190 = vmatpush1.bf16.msra.mxu0 %v8641_v43  ;;  %350 = vmatprep.mubr.f32.mxu0 %v8273_v1 }
  0xe5   :  { %5711 = vmatmul.mubr.msk.f32.gmra.mrb[12].mxu1 %vm225_vm0, %v193_v47  ;;  %6192 = vmatprep.subr.bf16.mxu0 %v8652_v53 }
  0xe6   :  { %469 = vmatprep.mubr.f32.mxu1 %v8273_v1  ;;  %6226 = vmatpush1.bf16.msra.mxu1 %v8648_v49 }
  0xe7   :  { %5703 = vmatmul.mubr.msk.f32.gmra.mrb[12].mxu0 %vm225_vm0, %v193_v47  ;;  %6228 = vmatprep.subr.bf16.mxu1 %v8656_v57 }
  0xe8   :  { %6194 = vmatpush1.bf16.msra.mxu0 %v8660_v61  ;;  %356 = vmatprep.mubr.f32.mxu0 %v8273_v1 }
  0xe9   :  { %5712 = vmatmul.mubr.msk.f32.gmra.mrb[14].mxu1 %vm225_vm0, %v194_v62  ;;  %6196 = vmatprep.subr.bf16.mxu0 %v8671_v5 }
  0xea   :  { %6230 = vmatpush1.bf16.msra.mxu1 %v8667_v0  ;;  %707 = vmatprep.mubr.f32.mxu1 %v8273_v1 }
  0xeb   :  { %5704 = vmatmul.mubr.msk.f32.gmra.mrb[14].mxu0 %vm225_vm0, %v194_v62  ;;  %6264 = vmatprep.subr.bf16.mxu1 %v8525_v13 }
  0xec   :  { %6198 = vmatpush1.bf16.msra.mxu0 %v8677_v7  ;;  %636 = vmatprep.mubr.f32.mxu0 %v8273_v1 }
  0xed   :  { %6232 = vmatprep.subr.bf16.mxu0 %v8545_v28 }
  0xef   :  { %637 = vmatmul.mubr.f32.vlgmr.msra.gmra.mrb[0].mxu0 %v8273_v1 }
  0xf0   :  { %6234 = vmatpush1.bf16.msra.mxu0 %v8554_v34  ;;  %861 = vmatprep.mubr.f32.mxu0 %v8273_v1 }
  0xf1   :  { %708 = vmatmul.mubr.f32.vlgmr.msra.gmra.mrb[14].mxu1 %v8273_v1  ;;  %6236 = vmatprep.subr.bf16.mxu0 %v8561_v41 }
  0xf2   :  { %6266 = vmatpush1.bf16.msra.mxu1 %v8533_v16  ;;  %932 = vmatprep.mubr.f32.mxu1 %v8273_v1 }
  0xf3   :  { %6268 = vmatprep.subr.bf16.mxu1 %v8542_v25 }
  0xf4   :  { %6238 = vmatpush1.bf16.msra.mxu0 %v8568_v46 }
  0xf5   :  { %6240 = vmatprep.subr.bf16.mxu0 %v8580_v56 }
  0xf6   :  { %6270 = vmatpush1.bf16.msra.mxu1 %v8552_v33 }
  0xf7   :  { %6272 = vmatprep.subr.bf16.mxu1 %v8558_v37 }
  0xf8   :  { %6242 = vmatpush1.bf16.msra.mxu0 %v8584_v59 }
  0xf9   :  { %6244 = vmatprep.subr.bf16.mxu0 %v8599_v6 }
  0xfa   :  { %6274 = vmatpush1.bf16.msra.mxu1 %v8572_v48 }
  0xfb   :  { %6276 = vmatprep.subr.bf16.mxu1 %v8576_v52 }
  0xfc   :  { %6246 = vmatpush1.bf16.msra.mxu0 %v8603_v9 }
  0xfd   :  { %6248 = vmatprep.subr.bf16.mxu0 %v8618_v21 }
  0xfe   :  { %6278 = vmatpush1.bf16.msra.mxu1 %v8591_v63 }
  0xff   :  { %6280 = vmatprep.subr.bf16.mxu1 %v8595_v3 }
 0x100   :  { %6250 = vmatpush1.bf16.msra.mxu0 %v8622_v24 }
 0x101   :  { %6252 = vmatprep.subr.bf16.mxu0 %v8637_v39 }
 0x102   :  { %6282 = vmatpush1.bf16.msra.mxu1 %v8610_v14 }
 0x103   :  { %6284 = vmatprep.subr.bf16.mxu1 %v8614_v18 }
 0x104   :  { %6254 = vmatpush1.bf16.msra.mxu0 %v8641_v43 }
 0x105   :  { %6256 = vmatprep.subr.bf16.mxu0 %v8652_v53 }
 0x106   :  { %6286 = vmatpush1.bf16.msra.mxu1 %v8629_v30 }
 0x107   :  { %6288 = vmatprep.subr.bf16.mxu1 %v8633_v35 }
 0x108   :  { %6258 = vmatpush1.bf16.msra.mxu0 %v8660_v61 }
 0x109   :  { %6260 = vmatprep.subr.bf16.mxu0 %v8671_v5 }
 0x10a   :  { %6290 = vmatpush1.bf16.msra.mxu1 %v8648_v49 }
 0x10b   :  { %6292 = vmatprep.subr.bf16.mxu1 %v8656_v57 }
 0x10c   :  { %6262 = vmatpush1.bf16.msra.mxu0 %v8677_v7 }
 0x10d   :  { %6296 = vmatprep.subr.bf16.mxu0 %v8545_v28 }
 0x10e   :  { %6294 = vmatpush1.bf16.msra.mxu1 %v8667_v0 }
 0x10f   :  { %6328 = vmatprep.subr.bf16.mxu1 %v8525_v13 }
 0x1c2   :  { %v638_v20 = vpop.f32.mrb[0].mxu0 }
 0x1c3   :  { %v640_v23 = vpop.f32.mrb[1].mxu0  ;;  %v7415_v47 = vadd.f32 %v638_v20, %v8749_v44 }
 0x1c4   :  { %v709_v22 = vpop.f32.mrb[14].mxu1  ;;  %v7416_v29 = vadd.f32 %v640_v23, %v8734_v19 }
 0x1c5   :  { %v711_v26 = vpop.f32.mrb[15].mxu1  ;;  %v7445_v42 = vadd.f32 %v709_v22, %v8743_v38  ;;  %v5713_v50 = vmul.f32 -1.442695, %v7415_v47 }
 0x1c6   :  { %v7446_v27 = vadd.f32 %v711_v26, %v8730_v17 }
 0x1c7   :  { %v5715_v45 = vmul.f32 -1.442695, %v7445_v42 }
 0x1c8   :  { %7579 = vtanh.f32 %v7446_v27  ;;  %v5716_v47 = vmul.f32 -1.442695, %v7446_v27 }
 0x1c9   :  { %7581 = vtanh.f32 %v7416_v29 }
 0x1ca   :  { %7583 = vpow2.f32 %v5715_v45 }
 0x1cb   :  { %7585 = vpow2.f32 %v5713_v50  ;;  %v5714_v50 = vmul.f32 -1.442695, %v7416_v29 }
 0x1d2   :  { %v7580_v31 = vpop.eup %7579 }
 0x1d3   :  { %762 = vrot.lane.b32.xlu0 %v7580_v31, %s8274_s17  ;;  %v7582_v32 = vpop.eup %7581 }
 0x1d4   :  { %v7584_v51 = vpop.eup %7583 }
 0x1d5   :  { %v741_v54 = vadd.f32 1.0, %v7584_v51  ;;  %v7586_v55 = vpop.eup %7585 }
 0x1d6   :  { %v729_v58 = vadd.f32 1.0, %v7586_v55 }
 0x1d7   :  { %751 = vrot.lane.b32.xlu0 %v7582_v32, %s8274_s17  ;;  %7587 = vrcp.f32 %v741_v54 }
 0x1d8   :  { %7589 = vrcp.f32 %v729_v58 }
 0x1e1   :  { %v7588_v60 = vpop.eup %7587 }
 0x1e2   :  { %v7590_v4 = vpop.eup %7589  ;;  %v760_v20 = vmul.f32 0.0, %v7588_v60 }
 0x1e3   :  { %v749_v26 = vmul.f32 0.0, %v7590_v4 }
 0x245   :  { %v763_v62 = vpop.permute.xlu0 %762 }
 0x246   :  { %v765_v2 = vmul.f32 %v7588_v60, %v763_v62 }
 0x248   :  { %767 = vrot.lane.b32.xlu1 %v765_v2, %s8274_s17 }
 0x249   :  { %v752_v8 = vpop.permute.xlu0 %751 }
 0x24a   :  { %v754_v15 = vmul.f32 %v7590_v4, %v752_v8 }
 0x24c   :  { %756 = vrot.lane.b32.xlu1 %v754_v15, %s8274_s17 }
 0x2ba   :  { %v768_v22 = vpop.permute.xlu1 %767 }
 0x2bb   :  { %v8754_v23 = vadd.f32 %v768_v22, %v760_v20 }
 0x2bd   :  { %7591 = vtanh.f32 %v8754_v23 }
 0x2be   :  { %v757_v31 = vpop.permute.xlu1 %756 }
 0x2bf   :  { %v759_v32 = vadd.f32 %v757_v31, %v749_v26 }
 0x2c1   :  { %7593 = vtanh.f32 %v759_v32 }
 0x2c2   :  { %7595 = vpow2.f32 %v5716_v47 }
 0x2c3   :  { %7597 = vpow2.f32 %v5714_v50 }
 0x2c7   :  { %v7592_v42 = vpop.eup %7591 }
 0x2c8   :  { %779 = vrot.lane.b32.xlu0 %v7592_v42, %s8274_s17 }
 0x2cb   :  { %v7594_v45 = vpop.eup %7593 }
 0x2cc   :  { %773 = vrot.lane.b32.xlu1 %v7594_v45, %s8274_s17  ;;  %v7596_v51 = vpop.eup %7595 }
 0x2cd   :  { %v742_v54 = vadd.f32 1.0, %v7596_v51  ;;  %v7598_v55 = vpop.eup %7597 }
 0x2ce   :  { %v730_v58 = vadd.f32 1.0, %v7598_v55 }
 0x2cf   :  { %7599 = vrcp.f32 %v742_v54 }
 0x2d0   :  { %7601 = vrcp.f32 %v730_v58 }
 0x2d9   :  { %v7600_v60 = vpop.eup %7599 }
 0x2da   :  { %v7602_v4 = vpop.eup %7601 }
 0x33a   :  { %v780_v62 = vpop.permute.xlu0 %779 }
 0x33b   :  { %v782_v2 = vmul.f32 %v7600_v60, %v780_v62 }
 0x33d   :  { %786 = vst.msk [vmem:[#allocation5 + $0x38] sm:$0xff] %vm783_vm1, %v782_v2  ;;  %788 = vrot.lane.b32.xlu0 %v782_v2, %s8274_s17 }
 0x33e   :  { %v774_v8 = vpop.permute.xlu1 %773 }
 0x33f   :  { %v776_v27 = vmul.f32 %v7602_v4, %v774_v8 }
 0x341   :  { %784 = vst.msk [vmem:[#allocation4] sm:$0xff] %vm783_vm1, %v776_v27  ;;  %793 = vrot.lane.b32.xlu0 %v759_v32, %s8274_s17 }
 0x3af   :  { %v789_v29 = vpop.permute.xlu0 %788 }
 0x3b0   :  { %v791_v15 = vsel %vm783_vm1, %v776_v27, %v789_v29 }
 0x3b1   :  { %862 = vmatmul.mubr.f32.vlgmr.msra.gmra.mrb[2].mxu0 %v791_v15  ;;  %933 = vmatmul.mubr.f32.vlgmr.msra.gmra.mrb[12].mxu1 %v791_v15 }
 0x3b2   :  { %6298 = vmatpush1.bf16.msra.mxu0 %v8554_v34  ;;  %6330 = vmatpush1.bf16.msra.mxu1 %v8533_v16 }
 0x3b3   :  { %6300 = vmatprep.subr.bf16.mxu0 %v8561_v41  ;;  %6332 = vmatprep.subr.bf16.mxu1 %v8542_v25  ;;  %v794_v50 = vpop.permute.xlu0 %793 }
 0x3b4   :  { %1091 = vmatprep.mubr.f32.mxu0 %v8273_v1  ;;  %1162 = vmatprep.mubr.f32.mxu1 %v8273_v1  ;;  %v796_v51 = vsel %vm783_vm1, %v794_v50, %v8754_v23 }
 0x3b6   :  { %6302 = vmatpush1.bf16.msra.mxu0 %v8568_v46  ;;  %6334 = vmatpush1.bf16.msra.mxu1 %v8552_v33 }
 0x3b7   :  { %6304 = vmatprep.subr.bf16.mxu0 %v8580_v56  ;;  %6336 = vmatprep.subr.bf16.mxu1 %v8558_v37 }
 0x3ba   :  { %6306 = vmatpush1.bf16.msra.mxu0 %v8584_v59  ;;  %6338 = vmatpush1.bf16.msra.mxu1 %v8572_v48 }
 0x3bb   :  { %6308 = vmatprep.subr.bf16.mxu0 %v8599_v6  ;;  %6340 = vmatprep.subr.bf16.mxu1 %v8576_v52 }
 0x3be   :  { %6310 = vmatpush1.bf16.msra.mxu0 %v8603_v9  ;;  %6342 = vmatpush1.bf16.msra.mxu1 %v8591_v63 }
 0x3bf   :  { %6312 = vmatprep.subr.bf16.mxu0 %v8618_v21  ;;  %6344 = vmatprep.subr.bf16.mxu1 %v8595_v3 }
 0x3c2   :  { %6314 = vmatpush1.bf16.msra.mxu0 %v8622_v24  ;;  %6346 = vmatpush1.bf16.msra.mxu1 %v8610_v14 }
 0x3c3   :  { %6316 = vmatprep.subr.bf16.mxu0 %v8637_v39  ;;  %6348 = vmatprep.subr.bf16.mxu1 %v8614_v18 }
 0x3c6   :  { %6318 = vmatpush1.bf16.msra.mxu0 %v8641_v43  ;;  %6350 = vmatpush1.bf16.msra.mxu1 %v8629_v30 }
 0x3c7   :  { %6320 = vmatprep.subr.bf16.mxu0 %v8652_v53  ;;  %6352 = vmatprep.subr.bf16.mxu1 %v8633_v35 }
 0x3ca   :  { %6322 = vmatpush1.bf16.msra.mxu0 %v8660_v61  ;;  %6354 = vmatpush1.bf16.msra.mxu1 %v8648_v49 }
 0x3cb   :  { %6324 = vmatprep.subr.bf16.mxu0 %v8671_v5  ;;  %6356 = vmatprep.subr.bf16.mxu1 %v8656_v57 }
 0x3ce   :  { %6326 = vmatpush1.bf16.msra.mxu0 %v8677_v7  ;;  %6358 = vmatpush1.bf16.msra.mxu1 %v8667_v0 }
 0x3cf   :  { %6360 = vmatprep.subr.bf16.mxu0 %v8545_v28  ;;  %6392 = vmatprep.subr.bf16.mxu1 %v8525_v13 }
 0x484   :  { %v863_v20 = vpop.f32.mrb[2].mxu0  ;;  %v934_v22 = vpop.f32.mrb[12].mxu1 }
 0x485   :  { %v865_v26 = vpop.f32.mrb[3].mxu0  ;;  %v936_v31 = vpop.f32.mrb[13].mxu1  ;;  %v7443_v54 = vadd.f32 %v934_v22, %v8743_v38  ;;  %v7417_v55 = vadd.f32 %v863_v20, %v8749_v44 }
 0x486   :  { %v7444_v32 = vadd.f32 %v936_v31, %v8730_v17  ;;  %v7418_v42 = vadd.f32 %v865_v26, %v8734_v19 }
 0x487   :  { %v5719_v58 = vmul.f32 -1.442695, %v7443_v54  ;;  %v5717_v60 = vmul.f32 -1.442695, %v7417_v55 }
 0x488   :  { %7603 = vtanh.f32 %v7444_v32 }
 0x489   :  { %7605 = vtanh.f32 %v7418_v42 }
 0x48a   :  { %7607 = vpow2.f32 %v5719_v58 }
 0x48b   :  { %7609 = vpow2.f32 %v5717_v60 }
 0x492   :  { %v7604_v45 = vpop.eup %7603 }
 0x493   :  { %992 = vrot.lane.b32.xlu1 %v7604_v45, %s8274_s17  ;;  %v7606_v47 = vpop.eup %7605 }
 0x494   :  { %v7608_v62 = vpop.eup %7607 }
 0x495   :  { %v967_v2 = vadd.f32 1.0, %v7608_v62  ;;  %v7610_v4 = vpop.eup %7609  ;;  %v5720_v62 = vmul.f32 -1.442695, %v7444_v32 }
 0x496   :  { %v955_v8 = vadd.f32 1.0, %v7610_v4 }
 0x497   :  { %981 = vrot.lane.b32.xlu1 %v7606_v47, %s8274_s17  ;;  %7611 = vrcp.f32 %v967_v2  ;;  %v5718_v2 = vmul.f32 -1.442695, %v7418_v42 }
 0x498   :  { %7613 = vrcp.f32 %v955_v8 }
 0x49b   :  { %976 = vrot.lane.b32.xlu1 %v796_v51, %s8274_s17 }
 0x4a1   :  { %v7612_v27 = vpop.eup %7611 }
 0x4a2   :  { %v7614_v23 = vpop.eup %7613  ;;  %v990_v20 = vmul.f32 %v7612_v27, %v796_v51 }
 0x505   :  { %v993_v29 = vpop.permute.xlu1 %992 }
 0x506   :  { %v995_v15 = vmul.f32 %v7612_v27, %v993_v29 }
 0x508   :  { %997 = vrot.lane.b32.xlu0 %v995_v15, %s8274_s17 }
 0x509   :  { %v982_v26 = vpop.permute.xlu1 %981 }
 0x50a   :  { %v984_v22 = vmul.f32 %v7614_v23, %v982_v26 }
 0x50c   :  { %986 = vrot.lane.b32.xlu0 %v984_v22, %s8274_s17 }
 0x50d   :  { %v977_v31 = vpop.permute.xlu1 %976 }
 0x50e   :  { %v979_v50 = vmul.f32 %v7614_v23, %v977_v31 }
 0x57a   :  { %v998_v45 = vpop.permute.xlu0 %997 }
 0x57b   :  { %v8809_v47 = vadd.f32 %v998_v45, %v990_v20 }
 0x57d   :  { %7615 = vtanh.f32 %v8809_v47 }
 0x57e   :  { %v987_v54 = vpop.permute.xlu0 %986 }
 0x57f   :  { %v989_v55 = vadd.f32 %v987_v54, %v979_v50 }
 0x581   :  { %7617 = vtanh.f32 %v989_v55 }
 0x582   :  { %7619 = vpow2.f32 %v5720_v62 }
 0x583   :  { %7621 = vpow2.f32 %v5718_v2 }
 0x587   :  { %v7616_v58 = vpop.eup %7615 }
 0x588   :  { %1009 = vrot.lane.b32.xlu1 %v7616_v58, %s8274_s17 }
 0x58b   :  { %v7618_v60 = vpop.eup %7617 }
 0x58c   :  { %1003 = vrot.lane.b32.xlu0 %v7618_v60, %s8274_s17  ;;  %v7620_v51 = vpop.eup %7619 }
 0x58d   :  { %v968_v4 = vadd.f32 1.0, %v7620_v51  ;;  %v7622_v8 = vpop.eup %7621 }
 0x58e   :  { %v956_v27 = vadd.f32 1.0, %v7622_v8 }
 0x58f   :  { %7623 = vrcp.f32 %v968_v4 }
 0x590   :  { %7625 = vrcp.f32 %v956_v27 }
 0x599   :  { %v7624_v29 = vpop.eup %7623 }
 0x59a   :  { %v7626_v26 = vpop.eup %7625 }
 0x5fa   :  { %v1010_v15 = vpop.permute.xlu1 %1009 }
 0x5fb   :  { %v1012_v23 = vmul.f32 %v7624_v29, %v1010_v15 }
 0x5fd   :  { %1016 = vst.msk [vmem:[#allocation5 + $0x30] sm:$0xff] %vm783_vm1, %v1012_v23  ;;  %1018 = vrot.lane.b32.xlu1 %v1012_v23, %s8274_s17 }
 0x5fe   :  { %v1004_v22 = vpop.permute.xlu0 %1003 }
 0x5ff   :  { %v1006_v20 = vmul.f32 %v7626_v26, %v1004_v22 }
 0x601   :  { %1014 = vst.msk [vmem:[#allocation4 + $0x8] sm:$0xff] %vm783_vm1, %v1006_v20  ;;  %1023 = vrot.lane.b32.xlu1 %v989_v55, %s8274_s17 }
 0x66f   :  { %v1019_v32 = vpop.permute.xlu1 %1018 }
 0x670   :  { %v1021_v42 = vsel %vm783_vm1, %v1006_v20, %v1019_v32 }
 0x671   :  { %1092 = vmatmul.mubr.f32.vlgmr.msra.gmra.mrb[4].mxu0 %v1021_v42  ;;  %1163 = vmatmul.mubr.f32.vlgmr.msra.gmra.mrb[10].mxu1 %v1021_v42 }
 0x672   :  { %6362 = vmatpush1.bf16.msra.mxu0 %v8554_v34  ;;  %6394 = vmatpush1.bf16.msra.mxu1 %v8533_v16 }
 0x673   :  { %6364 = vmatprep.subr.bf16.mxu0 %v8561_v41  ;;  %6396 = vmatprep.subr.bf16.mxu1 %v8542_v25  ;;  %v1024_v2 = vpop.permute.xlu1 %1023 }
 0x674   :  { %1321 = vmatprep.mubr.f32.mxu0 %v8273_v1  ;;  %1392 = vmatprep.mubr.f32.mxu1 %v8273_v1  ;;  %v1026_v51 = vsel %vm783_vm1, %v1024_v2, %v8809_v47 }
 0x676   :  { %6366 = vmatpush1.bf16.msra.mxu0 %v8568_v46  ;;  %6398 = vmatpush1.bf16.msra.mxu1 %v8552_v33 }
 0x677   :  { %6368 = vmatprep.subr.bf16.mxu0 %v8580_v56  ;;  %6400 = vmatprep.subr.bf16.mxu1 %v8558_v37 }
 0x67a   :  { %6370 = vmatpush1.bf16.msra.mxu0 %v8584_v59  ;;  %6402 = vmatpush1.bf16.msra.mxu1 %v8572_v48 }
 0x67b   :  { %6372 = vmatprep.subr.bf16.mxu0 %v8599_v6  ;;  %6404 = vmatprep.subr.bf16.mxu1 %v8576_v52 }
 0x67e   :  { %6374 = vmatpush1.bf16.msra.mxu0 %v8603_v9  ;;  %6406 = vmatpush1.bf16.msra.mxu1 %v8591_v63 }
 0x67f   :  { %6376 = vmatprep.subr.bf16.mxu0 %v8618_v21  ;;  %6408 = vmatprep.subr.bf16.mxu1 %v8595_v3 }
 0x682   :  { %6378 = vmatpush1.bf16.msra.mxu0 %v8622_v24  ;;  %6410 = vmatpush1.bf16.msra.mxu1 %v8610_v14 }
 0x683   :  { %6380 = vmatprep.subr.bf16.mxu0 %v8637_v39  ;;  %6412 = vmatprep.subr.bf16.mxu1 %v8614_v18 }
 0x686   :  { %6382 = vmatpush1.bf16.msra.mxu0 %v8641_v43  ;;  %6414 = vmatpush1.bf16.msra.mxu1 %v8629_v30 }
 0x687   :  { %6384 = vmatprep.subr.bf16.mxu0 %v8652_v53  ;;  %6416 = vmatprep.subr.bf16.mxu1 %v8633_v35 }
 0x68a   :  { %6386 = vmatpush1.bf16.msra.mxu0 %v8660_v61  ;;  %6418 = vmatpush1.bf16.msra.mxu1 %v8648_v49 }
 0x68b   :  { %6388 = vmatprep.subr.bf16.mxu0 %v8671_v5  ;;  %6420 = vmatprep.subr.bf16.mxu1 %v8656_v57 }
 0x68e   :  { %6390 = vmatpush1.bf16.msra.mxu0 %v8677_v7  ;;  %6422 = vmatpush1.bf16.msra.mxu1 %v8667_v0 }
 0x68f   :  { %6424 = vmatprep.subr.bf16.mxu0 %v8545_v28  ;;  %6456 = vmatprep.subr.bf16.mxu1 %v8525_v13 }
 0x744   :  { %v1093_v31 = vpop.f32.mrb[4].mxu0  ;;  %v1164_v45 = vpop.f32.mrb[10].mxu1 }
 0x745   :  { %v1095_v50 = vpop.f32.mrb[5].mxu0  ;;  %v1166_v54 = vpop.f32.mrb[11].mxu1  ;;  %v7441_v4 = vadd.f32 %v1164_v45, %v8743_v38  ;;  %v7419_v8 = vadd.f32 %v1093_v31, %v8749_v44 }
 0x746   :  { %v7442_v55 = vadd.f32 %v1166_v54, %v8730_v17  ;;  %v7420_v58 = vadd.f32 %v1095_v50, %v8734_v19 }
 0x747   :  { %v5723_v27 = vmul.f32 -1.442695, %v7441_v4  ;;  %v5721_v29 = vmul.f32 -1.442695, %v7419_v8 }
 0x748   :  { %7627 = vtanh.f32 %v7442_v55 }
 0x749   :  { %7629 = vtanh.f32 %v7420_v58 }
 0x74a   :  { %7631 = vpow2.f32 %v5723_v27 }
 0x74b   :  { %7633 = vpow2.f32 %v5721_v29 }
 0x752   :  { %v7628_v60 = vpop.eup %7627 }
 0x753   :  { %1222 = vrot.lane.b32.xlu0 %v7628_v60, %s8274_s17  ;;  %v7630_v62 = vpop.eup %7629 }
 0x754   :  { %v7632_v15 = vpop.eup %7631 }
 0x755   :  { %v1197_v23 = vadd.f32 1.0, %v7632_v15  ;;  %v7634_v26 = vpop.eup %7633  ;;  %v5724_v15 = vmul.f32 -1.442695, %v7442_v55 }
 0x756   :  { %v1185_v22 = vadd.f32 1.0, %v7634_v26 }
 0x757   :  { %1211 = vrot.lane.b32.xlu0 %v7630_v62, %s8274_s17  ;;  %7635 = vrcp.f32 %v1197_v23  ;;  %v5722_v23 = vmul.f32 -1.442695, %v7420_v58 }
 0x758   :  { %7637 = vrcp.f32 %v1185_v22 }
 0x75b   :  { %1206 = vrot.lane.b32.xlu0 %v1026_v51, %s8274_s17 }
 0x761   :  { %v7636_v20 = vpop.eup %7635 }
 0x762   :  { %v7638_v47 = vpop.eup %7637  ;;  %v1220_v31 = vmul.f32 %v7636_v20, %v1026_v51 }
 0x7c5   :  { %v1223_v32 = vpop.permute.xlu0 %1222 }
 0x7c6   :  { %v1225_v42 = vmul.f32 %v7636_v20, %v1223_v32 }
 0x7c8   :  { %1227 = vrot.lane.b32.xlu1 %v1225_v42, %s8274_s17 }
 0x7c9   :  { %v1212_v50 = vpop.permute.xlu0 %1211 }
 0x7ca   :  { %v1214_v45 = vmul.f32 %v7638_v47, %v1212_v50 }
 0x7cc   :  { %1216 = vrot.lane.b32.xlu1 %v1214_v45, %s8274_s17 }
 0x7cd   :  { %v1207_v54 = vpop.permute.xlu0 %1206 }
 0x7ce   :  { %v1209_v2 = vmul.f32 %v7638_v47, %v1207_v54 }
 0x83a   :  { %v1228_v60 = vpop.permute.xlu1 %1227 }
 0x83b   :  { %v8864_v62 = vadd.f32 %v1228_v60, %v1220_v31 }
 0x83d   :  { %7639 = vtanh.f32 %v8864_v62 }
 0x83e   :  { %v1217_v4 = vpop.permute.xlu1 %1216 }
 0x83f   :  { %v1219_v8 = vadd.f32 %v1217_v4, %v1209_v2 }
 0x841   :  { %7641 = vtanh.f32 %v1219_v8 }
 0x842   :  { %7643 = vpow2.f32 %v5724_v15 }
 0x843   :  { %7645 = vpow2.f32 %v5722_v23 }
 0x847   :  { %v7640_v27 = vpop.eup %7639 }
 0x848   :  { %1239 = vrot.lane.b32.xlu0 %v7640_v27, %s8274_s17 }
 0x84b   :  { %v7642_v29 = vpop.eup %7641 }
 0x84c   :  { %1233 = vrot.lane.b32.xlu1 %v7642_v29, %s8274_s17  ;;  %v7644_v51 = vpop.eup %7643 }
 0x84d   :  { %v1198_v26 = vadd.f32 1.0, %v7644_v51  ;;  %v7646_v22 = vpop.eup %7645 }
 0x84e   :  { %v1186_v20 = vadd.f32 1.0, %v7646_v22 }
 0x84f   :  { %7647 = vrcp.f32 %v1198_v26 }
 0x850   :  { %7649 = vrcp.f32 %v1186_v20 }
 0x859   :  { %v7648_v32 = vpop.eup %7647 }
 0x85a   :  { %v7650_v50 = vpop.eup %7649 }
 0x8ba   :  { %v1240_v42 = vpop.permute.xlu0 %1239 }
 0x8bb   :  { %v1242_v47 = vmul.f32 %v7648_v32, %v1240_v42 }
 0x8bd   :  { %1246 = vst.msk [vmem:[#allocation5 + $0x28] sm:$0xff] %vm783_vm1, %v1242_v47  ;;  %1248 = vrot.lane.b32.xlu0 %v1242_v47, %s8274_s17 }
 0x8be   :  { %v1234_v45 = vpop.permute.xlu1 %1233 }
 0x8bf   :  { %v1236_v31 = vmul.f32 %v7650_v50, %v1234_v45 }
 0x8c1   :  { %1244 = vst.msk [vmem:[#allocation4 + $0x10] sm:$0xff] %vm783_vm1, %v1236_v31  ;;  %1253 = vrot.lane.b32.xlu0 %v1219_v8, %s8274_s17 }
 0x92f   :  { %v1249_v55 = vpop.permute.xlu0 %1248 }
 0x930   :  { %v1251_v58 = vsel %vm783_vm1, %v1236_v31, %v1249_v55 }
 0x931   :  { %1322 = vmatmul.mubr.f32.vlgmr.msra.gmra.mrb[6].mxu0 %v1251_v58  ;;  %1393 = vmatmul.mubr.f32.vlgmr.msra.gmra.mrb[8].mxu1 %v1251_v58 }
 0x932   :  { %6426 = vmatpush1.bf16.msra.mxu0 %v8554_v34  ;;  %6458 = vmatpush1.bf16.msra.mxu1 %v8533_v16 }
 0x933   :  { %6428 = vmatprep.subr.bf16.mxu0 %v8561_v41  ;;  %6460 = vmatprep.subr.bf16.mxu1 %v8542_v25  ;;  %v1254_v23 = vpop.permute.xlu0 %1253 }
 0x934   :  { %1551 = vmatprep.mubr.f32.mxu0 %v8273_v1  ;;  %1622 = vmatprep.mubr.f32.mxu1 %v8273_v1  ;;  %v1256_v51 = vsel %vm783_vm1, %v1254_v23, %v8864_v62 }
 0x936   :  { %6430 = vmatpush1.bf16.msra.mxu0 %v8568_v46  ;;  %6462 = vmatpush1.bf16.msra.mxu1 %v8552_v33 }
 0x937   :  { %6432 = vmatprep.subr.bf16.mxu0 %v8580_v56  ;;  %6464 = vmatprep.subr.bf16.mxu1 %v8558_v37 }
 0x93a   :  { %6434 = vmatpush1.bf16.msra.mxu0 %v8584_v59  ;;  %6466 = vmatpush1.bf16.msra.mxu1 %v8572_v48 }
 0x93b   :  { %6436 = vmatprep.subr.bf16.mxu0 %v8599_v6  ;;  %6468 = vmatprep.subr.bf16.mxu1 %v8576_v52 }
 0x93e   :  { %6438 = vmatpush1.bf16.msra.mxu0 %v8603_v9  ;;  %6470 = vmatpush1.bf16.msra.mxu1 %v8591_v63 }
 0x93f   :  { %6440 = vmatprep.subr.bf16.mxu0 %v8618_v21  ;;  %6472 = vmatprep.subr.bf16.mxu1 %v8595_v3 }
 0x942   :  { %6442 = vmatpush1.bf16.msra.mxu0 %v8622_v24  ;;  %6474 = vmatpush1.bf16.msra.mxu1 %v8610_v14 }
 0x943   :  { %6444 = vmatprep.subr.bf16.mxu0 %v8637_v39  ;;  %6476 = vmatprep.subr.bf16.mxu1 %v8614_v18 }
 0x946   :  { %6446 = vmatpush1.bf16.msra.mxu0 %v8641_v43  ;;  %6478 = vmatpush1.bf16.msra.mxu1 %v8629_v30 }
 0x947   :  { %6448 = vmatprep.subr.bf16.mxu0 %v8652_v53  ;;  %6480 = vmatprep.subr.bf16.mxu1 %v8633_v35 }
 0x94a   :  { %6450 = vmatpush1.bf16.msra.mxu0 %v8660_v61  ;;  %6482 = vmatpush1.bf16.msra.mxu1 %v8648_v49 }
 0x94b   :  { %6452 = vmatprep.subr.bf16.mxu0 %v8671_v5  ;;  %6484 = vmatprep.subr.bf16.mxu1 %v8656_v57 }
 0x94e   :  { %6454 = vmatpush1.bf16.msra.mxu0 %v8677_v7  ;;  %6486 = vmatpush1.bf16.msra.mxu1 %v8667_v0 }
 0x94f   :  { %6488 = vmatprep.subr.bf16.mxu0 %v8545_v28  ;;  %6520 = vmatprep.subr.bf16.mxu1 %v8525_v13 }
 0xa04   :  { %v1323_v54 = vpop.f32.mrb[6].mxu0  ;;  %v1394_v60 = vpop.f32.mrb[8].mxu1 }
 0xa05   :  { %v1325_v2 = vpop.f32.mrb[7].mxu0  ;;  %v1396_v4 = vpop.f32.mrb[9].mxu1  ;;  %v7439_v26 = vadd.f32 %v1394_v60, %v8743_v38  ;;  %v7421_v22 = vadd.f32 %v1323_v54, %v8749_v44 }
 0xa06   :  { %v7440_v8 = vadd.f32 %v1396_v4, %v8730_v17  ;;  %v7422_v27 = vadd.f32 %v1325_v2, %v8734_v19 }
 0xa07   :  { %v5727_v20 = vmul.f32 -1.442695, %v7439_v26  ;;  %v5725_v32 = vmul.f32 -1.442695, %v7421_v22 }
 0xa08   :  { %7651 = vtanh.f32 %v7440_v8 }
 0xa09   :  { %7653 = vtanh.f32 %v7422_v27 }
 0xa0a   :  { %7655 = vpow2.f32 %v5727_v20 }
 0xa0b   :  { %7657 = vpow2.f32 %v5725_v32 }
 0xa12   :  { %v7652_v29 = vpop.eup %7651 }
 0xa13   :  { %1452 = vrot.lane.b32.xlu1 %v7652_v29, %s8274_s17  ;;  %v7654_v15 = vpop.eup %7653 }
 0xa14   :  { %v7656_v42 = vpop.eup %7655 }
 0xa15   :  { %v1427_v47 = vadd.f32 1.0, %v7656_v42  ;;  %v7658_v50 = vpop.eup %7657  ;;  %v5728_v42 = vmul.f32 -1.442695, %v7440_v8 }
 0xa16   :  { %v1415_v45 = vadd.f32 1.0, %v7658_v50 }
 0xa17   :  { %1441 = vrot.lane.b32.xlu1 %v7654_v15, %s8274_s17  ;;  %7659 = vrcp.f32 %v1427_v47  ;;  %v5726_v47 = vmul.f32 -1.442695, %v7422_v27 }
 0xa18   :  { %7661 = vrcp.f32 %v1415_v45 }
 0xa1b   :  { %1436 = vrot.lane.b32.xlu1 %v1256_v51, %s8274_s17 }
 0xa21   :  { %v7660_v31 = vpop.eup %7659 }
 0xa22   :  { %v7662_v62 = vpop.eup %7661  ;;  %v1450_v54 = vmul.f32 %v7660_v31, %v1256_v51 }
 0xa85   :  { %v1453_v55 = vpop.permute.xlu1 %1452 }
 0xa86   :  { %v1455_v58 = vmul.f32 %v7660_v31, %v1453_v55 }
 0xa88   :  { %1457 = vrot.lane.b32.xlu0 %v1455_v58, %s8274_s17 }
 0xa89   :  { %v1442_v2 = vpop.permute.xlu1 %1441 }
 0xa8a   :  { %v1444_v60 = vmul.f32 %v7662_v62, %v1442_v2 }
 0xa8c   :  { %1446 = vrot.lane.b32.xlu0 %v1444_v60, %s8274_s17 }
 0xa8d   :  { %v1437_v4 = vpop.permute.xlu1 %1436 }
 0xa8e   :  { %v1439_v23 = vmul.f32 %v7662_v62, %v1437_v4 }
 0xafa   :  { %v1458_v29 = vpop.permute.xlu0 %1457 }
 0xafb   :  { %v8919_v15 = vadd.f32 %v1458_v29, %v1450_v54 }
 0xafd   :  { %7663 = vtanh.f32 %v8919_v15 }
 0xafe   :  { %v1447_v26 = vpop.permute.xlu0 %1446 }
 0xaff   :  { %v1449_v22 = vadd.f32 %v1447_v26, %v1439_v23 }
 0xb01   :  { %7665 = vtanh.f32 %v1449_v22 }
 0xb02   :  { %7667 = vpow2.f32 %v5728_v42 }
 0xb03   :  { %7669 = vpow2.f32 %v5726_v47 }
 0xb07   :  { %v7664_v20 = vpop.eup %7663 }
 0xb08   :  { %1469 = vrot.lane.b32.xlu1 %v7664_v20, %s8274_s17 }
 0xb0b   :  { %v7666_v32 = vpop.eup %7665 }
 0xb0c   :  { %1463 = vrot.lane.b32.xlu0 %v7666_v32, %s8274_s17  ;;  %v7668_v51 = vpop.eup %7667 }
 0xb0d   :  { %v1428_v50 = vadd.f32 1.0, %v7668_v51  ;;  %v7670_v45 = vpop.eup %7669 }
 0xb0e   :  { %v1416_v31 = vadd.f32 1.0, %v7670_v45 }
 0xb0f   :  { %7671 = vrcp.f32 %v1428_v50 }
 0xb10   :  { %7673 = vrcp.f32 %v1416_v31 }
 0xb19   :  { %v7672_v55 = vpop.eup %7671 }
 0xb1a   :  { %v7674_v2 = vpop.eup %7673 }
 0xb7a   :  { %v1470_v58 = vpop.permute.xlu1 %1469 }
 0xb7b   :  { %v1472_v62 = vmul.f32 %v7672_v55, %v1470_v58 }
 0xb7d   :  { %1476 = vst.msk [vmem:[#allocation5 + $0x20] sm:$0xff] %vm783_vm1, %v1472_v62  ;;  %1478 = vrot.lane.b32.xlu1 %v1472_v62, %s8274_s17 }
 0xb7e   :  { %v1464_v60 = vpop.permute.xlu0 %1463 }
 0xb7f   :  { %v1466_v54 = vmul.f32 %v7674_v2, %v1464_v60 }
 0xb81   :  { %1474 = vst.msk [vmem:[#allocation4 + $0x18] sm:$0xff] %vm783_vm1, %v1466_v54  ;;  %1483 = vrot.lane.b32.xlu1 %v1449_v22, %s8274_s17 }
 0xbef   :  { %v1479_v8 = vpop.permute.xlu1 %1478 }
 0xbf0   :  { %v1481_v27 = vsel %vm783_vm1, %v1466_v54, %v1479_v8 }
 0xbf1   :  { %1552 = vmatmul.mubr.f32.vlgmr.msra.gmra.mrb[8].mxu0 %v1481_v27  ;;  %1623 = vmatmul.mubr.f32.vlgmr.msra.gmra.mrb[6].mxu1 %v1481_v27 }
 0xbf2   :  { %6490 = vmatpush1.bf16.msra.mxu0 %v8554_v34  ;;  %6522 = vmatpush1.bf16.msra.mxu1 %v8533_v16 }
 0xbf3   :  { %6492 = vmatprep.subr.bf16.mxu0 %v8561_v41  ;;  %6524 = vmatprep.subr.bf16.mxu1 %v8542_v25  ;;  %v1484_v47 = vpop.permute.xlu1 %1483 }
 0xbf4   :  { %1781 = vmatprep.mubr.f32.mxu0 %v8273_v1  ;;  %1852 = vmatprep.mubr.f32.mxu1 %v8273_v1  ;;  %v1486_v51 = vsel %vm783_vm1, %v1484_v47, %v8919_v15 }
 0xbf6   :  { %6494 = vmatpush1.bf16.msra.mxu0 %v8568_v46  ;;  %6526 = vmatpush1.bf16.msra.mxu1 %v8552_v33 }
 0xbf7   :  { %6496 = vmatprep.subr.bf16.mxu0 %v8580_v56  ;;  %6528 = vmatprep.subr.bf16.mxu1 %v8558_v37 }
 0xbfa   :  { %6498 = vmatpush1.bf16.msra.mxu0 %v8584_v59  ;;  %6530 = vmatpush1.bf16.msra.mxu1 %v8572_v48 }
 0xbfb   :  { %6500 = vmatprep.subr.bf16.mxu0 %v8599_v6  ;;  %6532 = vmatprep.subr.bf16.mxu1 %v8576_v52 }
 0xbfe   :  { %6502 = vmatpush1.bf16.msra.mxu0 %v8603_v9  ;;  %6534 = vmatpush1.bf16.msra.mxu1 %v8591_v63 }
 0xbff   :  { %6504 = vmatprep.subr.bf16.mxu0 %v8618_v21  ;;  %6536 = vmatprep.subr.bf16.mxu1 %v8595_v3 }
 0xc02   :  { %6506 = vmatpush1.bf16.msra.mxu0 %v8622_v24  ;;  %6538 = vmatpush1.bf16.msra.mxu1 %v8610_v14 }
 0xc03   :  { %6508 = vmatprep.subr.bf16.mxu0 %v8637_v39  ;;  %6540 = vmatprep.subr.bf16.mxu1 %v8614_v18 }
 0xc06   :  { %6510 = vmatpush1.bf16.msra.mxu0 %v8641_v43  ;;  %6542 = vmatpush1.bf16.msra.mxu1 %v8629_v30 }
 0xc07   :  { %6512 = vmatprep.subr.bf16.mxu0 %v8652_v53  ;;  %6544 = vmatprep.subr.bf16.mxu1 %v8633_v35 }
 0xc0a   :  { %6514 = vmatpush1.bf16.msra.mxu0 %v8660_v61  ;;  %6546 = vmatpush1.bf16.msra.mxu1 %v8648_v49 }
 0xc0b   :  { %6516 = vmatprep.subr.bf16.mxu0 %v8671_v5  ;;  %6548 = vmatprep.subr.bf16.mxu1 %v8656_v57 }
 0xc0e   :  { %6518 = vmatpush1.bf16.msra.mxu0 %v8677_v7  ;;  %6550 = vmatpush1.bf16.msra.mxu1 %v8667_v0 }
 0xc0f   :  { %6552 = vmatprep.subr.bf16.mxu0 %v8545_v28  ;;  %6584 = vmatprep.subr.bf16.mxu1 %v8525_v13 }
 0xcc4   :  { %v1553_v4 = vpop.f32.mrb[8].mxu0  ;;  %v1624_v29 = vpop.f32.mrb[6].mxu1 }
 0xcc5   :  { %v1555_v23 = vpop.f32.mrb[9].mxu0  ;;  %v1626_v26 = vpop.f32.mrb[7].mxu1  ;;  %v7437_v50 = vadd.f32 %v1624_v29, %v8743_v38  ;;  %v7423_v45 = vadd.f32 %v1553_v4, %v8749_v44 }
 0xcc6   :  { %v7438_v22 = vadd.f32 %v1626_v26, %v8730_v17  ;;  %v7424_v20 = vadd.f32 %v1555_v23, %v8734_v19 }
 0xcc7   :  { %v5731_v31 = vmul.f32 -1.442695, %v7437_v50  ;;  %v5729_v55 = vmul.f32 -1.442695, %v7423_v45 }
 0xcc8   :  { %7675 = vtanh.f32 %v7438_v22 }
 0xcc9   :  { %7677 = vtanh.f32 %v7424_v20 }
 0xcca   :  { %7679 = vpow2.f32 %v5731_v31 }
 0xccb   :  { %7681 = vpow2.f32 %v5729_v55 }
 0xcd2   :  { %v7676_v32 = vpop.eup %7675 }
 0xcd3   :  { %1682 = vrot.lane.b32.xlu0 %v7676_v32, %s8274_s17  ;;  %v7678_v42 = vpop.eup %7677 }
 0xcd4   :  { %v7680_v58 = vpop.eup %7679 }
 0xcd5   :  { %v1657_v62 = vadd.f32 1.0, %v7680_v58  ;;  %v7682_v2 = vpop.eup %7681  ;;  %v5732_v58 = vmul.f32 -1.442695, %v7438_v22 }
 0xcd6   :  { %v1645_v60 = vadd.f32 1.0, %v7682_v2 }
 0xcd7   :  { %1671 = vrot.lane.b32.xlu0 %v7678_v42, %s8274_s17  ;;  %7683 = vrcp.f32 %v1657_v62  ;;  %v5730_v62 = vmul.f32 -1.442695, %v7424_v20 }
 0xcd8   :  { %7685 = vrcp.f32 %v1645_v60 }
 0xcdb   :  { %1666 = vrot.lane.b32.xlu0 %v1486_v51, %s8274_s17 }
 0xce1   :  { %v7684_v54 = vpop.eup %7683 }
 0xce2   :  { %v7686_v15 = vpop.eup %7685  ;;  %v1680_v4 = vmul.f32 %v7684_v54, %v1486_v51 }
 0xd45   :  { %v1683_v8 = vpop.permute.xlu0 %1682 }
 0xd46   :  { %v1685_v27 = vmul.f32 %v7684_v54, %v1683_v8 }
 0xd48   :  { %1687 = vrot.lane.b32.xlu1 %v1685_v27, %s8274_s17 }
 0xd49   :  { %v1672_v23 = vpop.permute.xlu0 %1671 }
 0xd4a   :  { %v1674_v29 = vmul.f32 %v7686_v15, %v1672_v23 }
 0xd4c   :  { %1676 = vrot.lane.b32.xlu1 %v1674_v29, %s8274_s17 }
 0xd4d   :  { %v1667_v26 = vpop.permute.xlu0 %1666 }
 0xd4e   :  { %v1669_v47 = vmul.f32 %v7686_v15, %v1667_v26 }
 0xdba   :  { %v1688_v32 = vpop.permute.xlu1 %1687 }
 0xdbb   :  { %v8974_v42 = vadd.f32 %v1688_v32, %v1680_v4 }
 0xdbd   :  { %7687 = vtanh.f32 %v8974_v42 }
 0xdbe   :  { %v1677_v50 = vpop.permute.xlu1 %1676 }
 0xdbf   :  { %v1679_v45 = vadd.f32 %v1677_v50, %v1669_v47 }
 0xdc1   :  { %7689 = vtanh.f32 %v1679_v45 }
 0xdc2   :  { %7691 = vpow2.f32 %v5732_v58 }
 0xdc3   :  { %7693 = vpow2.f32 %v5730_v62 }
 0xdc7   :  { %v7688_v31 = vpop.eup %7687 }
 0xdc8   :  { %1699 = vrot.lane.b32.xlu0 %v7688_v31, %s8274_s17 }
 0xdcb   :  { %v7690_v55 = vpop.eup %7689 }
 0xdcc   :  { %1693 = vrot.lane.b32.xlu1 %v7690_v55, %s8274_s17  ;;  %v7692_v51 = vpop.eup %7691 }
 0xdcd   :  { %v1658_v2 = vadd.f32 1.0, %v7692_v51  ;;  %v7694_v60 = vpop.eup %7693 }
 0xdce   :  { %v1646_v54 = vadd.f32 1.0, %v7694_v60 }
 0xdcf   :  { %7695 = vrcp.f32 %v1658_v2 }
 0xdd0   :  { %7697 = vrcp.f32 %v1646_v54 }
 0xdd9   :  { %v7696_v8 = vpop.eup %7695 }
 0xdda   :  { %v7698_v23 = vpop.eup %7697 }
 0xe3a   :  { %v1700_v27 = vpop.permute.xlu0 %1699 }
 0xe3b   :  { %v1702_v15 = vmul.f32 %v7696_v8, %v1700_v27 }
 0xe3d   :  { %1706 = vst.msk [vmem:[#allocation5 + $0x18] sm:$0xff] %vm783_vm1, %v1702_v15  ;;  %1708 = vrot.lane.b32.xlu0 %v1702_v15, %s8274_s17 }
 0xe3e   :  { %v1694_v29 = vpop.permute.xlu1 %1693 }
 0xe3f   :  { %v1696_v4 = vmul.f32 %v7698_v23, %v1694_v29 }
 0xe41   :  { %1704 = vst.msk [vmem:[#allocation4 + $0x20] sm:$0xff] %vm783_vm1, %v1696_v4  ;;  %1713 = vrot.lane.b32.xlu0 %v1679_v45, %s8274_s17 }
 0xeaf   :  { %v1709_v22 = vpop.permute.xlu0 %1708 }
 0xeb0   :  { %v1711_v20 = vsel %vm783_vm1, %v1696_v4, %v1709_v22 }
 0xeb1   :  { %1782 = vmatmul.mubr.f32.vlgmr.msra.gmra.mrb[10].mxu0 %v1711_v20  ;;  %1853 = vmatmul.mubr.f32.vlgmr.msra.gmra.mrb[4].mxu1 %v1711_v20 }
 0xeb2   :  { %6554 = vmatpush1.bf16.msra.mxu0 %v8554_v34  ;;  %6586 = vmatpush1.bf16.msra.mxu1 %v8533_v16 }
 0xeb3   :  { %6556 = vmatprep.subr.bf16.mxu0 %v8561_v41  ;;  %6588 = vmatprep.subr.bf16.mxu1 %v8542_v25  ;;  %v1714_v62 = vpop.permute.xlu0 %1713 }
 0xeb4   :  { %2011 = vmatprep.mubr.f32.mxu0 %v8273_v1  ;;  %2082 = vmatprep.mubr.f32.mxu1 %v8273_v1 }
 0xeb6   :  { %6558 = vmatpush1.bf16.msra.mxu0 %v8568_v46  ;;  %6590 = vmatpush1.bf16.msra.mxu1 %v8552_v33 }
 0xeb7   :  { %6560 = vmatprep.subr.bf16.mxu0 %v8580_v56  ;;  %6592 = vmatprep.subr.bf16.mxu1 %v8558_v37 }
 0xeba   :  { %6562 = vmatpush1.bf16.msra.mxu0 %v8584_v59  ;;  %6594 = vmatpush1.bf16.msra.mxu1 %v8572_v48 }
 0xebb   :  { %6564 = vmatprep.subr.bf16.mxu0 %v8599_v6  ;;  %6596 = vmatprep.subr.bf16.mxu1 %v8576_v52 }
 0xebe   :  { %6566 = vmatpush1.bf16.msra.mxu0 %v8603_v9  ;;  %6598 = vmatpush1.bf16.msra.mxu1 %v8591_v63 }
 0xebf   :  { %6568 = vmatprep.subr.bf16.mxu0 %v8618_v21  ;;  %6600 = vmatprep.subr.bf16.mxu1 %v8595_v3 }
 0xec2   :  { %6570 = vmatpush1.bf16.msra.mxu0 %v8622_v24  ;;  %6602 = vmatpush1.bf16.msra.mxu1 %v8610_v14 }
 0xec3   :  { %6572 = vmatprep.subr.bf16.mxu0 %v8637_v39  ;;  %6604 = vmatprep.subr.bf16.mxu1 %v8614_v18 }
 0xec6   :  { %6574 = vmatpush1.bf16.msra.mxu0 %v8641_v43  ;;  %6606 = vmatpush1.bf16.msra.mxu1 %v8629_v30 }
 0xec7   :  { %6576 = vmatprep.subr.bf16.mxu0 %v8652_v53  ;;  %6608 = vmatprep.subr.bf16.mxu1 %v8633_v35 }
 0xeca   :  { %6578 = vmatpush1.bf16.msra.mxu0 %v8660_v61  ;;  %6610 = vmatpush1.bf16.msra.mxu1 %v8648_v49 }
 0xecb   :  { %6580 = vmatprep.subr.bf16.mxu0 %v8671_v5  ;;  %6612 = vmatprep.subr.bf16.mxu1 %v8656_v57 }
 0xece   :  { %6582 = vmatpush1.bf16.msra.mxu0 %v8677_v7  ;;  %6614 = vmatpush1.bf16.msra.mxu1 %v8667_v0 }
 0xecf   :  { %6616 = vmatprep.subr.bf16.mxu0 %v8545_v28  ;;  %6648 = vmatprep.subr.bf16.mxu1 %v8525_v13  ;;  %v1716_v13 = vsel %vm783_vm1, %v1714_v62, %v8974_v42 }
 0xf84   :  { %v1783_v26 = vpop.f32.mrb[10].mxu0  ;;  %v1854_v32 = vpop.f32.mrb[4].mxu1 }
 0xf85   :  { %v1785_v47 = vpop.f32.mrb[11].mxu0  ;;  %v1856_v50 = vpop.f32.mrb[5].mxu1  ;;  %v7435_v28 = vadd.f32 %v1854_v32, %v8743_v38  ;;  %v7425_v51 = vadd.f32 %v1783_v26, %v8749_v44 }
 0xf86   :  { %v7436_v45 = vadd.f32 %v1856_v50, %v8730_v17  ;;  %v7426_v31 = vadd.f32 %v1785_v47, %v8734_v19 }
 0xf87   :  { %v5735_v2 = vmul.f32 -1.442695, %v7435_v28  ;;  %v5733_v60 = vmul.f32 -1.442695, %v7425_v51 }
 0xf88   :  { %7699 = vtanh.f32 %v7436_v45 }
 0xf89   :  { %7701 = vtanh.f32 %v7426_v31 }
 0xf8a   :  { %7703 = vpow2.f32 %v5735_v2  ;;  %v5736_v2 = vmul.f32 -1.442695, %v7436_v45 }
 0xf8b   :  { %7705 = vpow2.f32 %v5733_v60  ;;  %v5734_v60 = vmul.f32 -1.442695, %v7426_v31 }
 0xf92   :  { %v7700_v55 = vpop.eup %7699 }
 0xf93   :  { %1912 = vrot.lane.b32.xlu1 %v7700_v55, %s8274_s17  ;;  %v7702_v58 = vpop.eup %7701 }
 0xf94   :  { %v7704_v54 = vpop.eup %7703 }
 0xf95   :  { %v1887_v8 = vadd.f32 1.0, %v7704_v54  ;;  %v7706_v27 = vpop.eup %7705 }
 0xf96   :  { %v1875_v15 = vadd.f32 1.0, %v7706_v27 }
 0xf97   :  { %1901 = vrot.lane.b32.xlu1 %v7702_v58, %s8274_s17  ;;  %7707 = vrcp.f32 %v1887_v8 }
 0xf98   :  { %7709 = vrcp.f32 %v1875_v15 }
 0xf9b   :  { %1896 = vrot.lane.b32.xlu1 %v1716_v13, %s8274_s17 }
 0xfa1   :  { %v7708_v23 = vpop.eup %7707 }
 0xfa2   :  { %v7710_v42 = vpop.eup %7709  ;;  %v1910_v26 = vmul.f32 %v7708_v23, %v1716_v13 }
0x1005   :  { %v1913_v29 = vpop.permute.xlu1 %1912 }
0x1006   :  { %v1915_v4 = vmul.f32 %v7708_v23, %v1913_v29 }
0x1008   :  { %1917 = vrot.lane.b32.xlu0 %v1915_v4, %s8274_s17 }
0x1009   :  { %v1902_v22 = vpop.permute.xlu1 %1901 }
0x100a   :  { %v1904_v20 = vmul.f32 %v7710_v42, %v1902_v22 }
0x100c   :  { %1906 = vrot.lane.b32.xlu0 %v1904_v20, %s8274_s17 }
0x100d   :  { %v1897_v32 = vpop.permute.xlu1 %1896 }
0x100e   :  { %v1899_v55 = vmul.f32 %v7710_v42, %v1897_v32 }
0x107a   :  { %v1918_v47 = vpop.permute.xlu0 %1917 }
0x107b   :  { %v9029_v50 = vadd.f32 %v1918_v47, %v1910_v26 }
0x107d   :  { %7711 = vtanh.f32 %v9029_v50 }
0x107e   :  { %v1907_v58 = vpop.permute.xlu0 %1906 }
0x107f   :  { %v1909_v62 = vadd.f32 %v1907_v58, %v1899_v55 }
0x1081   :  { %7713 = vtanh.f32 %v1909_v62 }
0x1082   :  { %7715 = vpow2.f32 %v5736_v2 }
0x1083   :  { %7717 = vpow2.f32 %v5734_v60 }
0x1087   :  { %v7712_v28 = vpop.eup %7711 }
0x1088   :  { %1929 = vrot.lane.b32.xlu1 %v7712_v28, %s8274_s17 }
0x108b   :  { %v7714_v51 = vpop.eup %7713 }
0x108c   :  { %1923 = vrot.lane.b32.xlu0 %v7714_v51, %s8274_s17  ;;  %v7716_v13 = vpop.eup %7715 }
0x108d   :  { %v1888_v54 = vadd.f32 1.0, %v7716_v13  ;;  %v7718_v8 = vpop.eup %7717 }
0x108e   :  { %v1876_v27 = vadd.f32 1.0, %v7718_v8 }
0x108f   :  { %7719 = vrcp.f32 %v1888_v54 }
0x1090   :  { %7721 = vrcp.f32 %v1876_v27 }
0x1099   :  { %v7720_v15 = vpop.eup %7719 }
0x109a   :  { %v7722_v4 = vpop.eup %7721 }
0x10fa   :  { %v1930_v23 = vpop.permute.xlu1 %1929 }
0x10fb   :  { %v1932_v29 = vmul.f32 %v7720_v15, %v1930_v23 }
0x10fd   :  { %1936 = vst.msk [vmem:[#allocation5 + $0x10] sm:$0xff] %vm783_vm1, %v1932_v29  ;;  %1938 = vrot.lane.b32.xlu1 %v1932_v29, %s8274_s17 }
0x10fe   :  { %v1924_v42 = vpop.permute.xlu0 %1923 }
0x10ff   :  { %v1926_v22 = vmul.f32 %v7722_v4, %v1924_v42 }
0x1101   :  { %1934 = vst.msk [vmem:[#allocation4 + $0x28] sm:$0xff] %vm783_vm1, %v1926_v22  ;;  %1943 = vrot.lane.b32.xlu1 %v1909_v62, %s8274_s17 }
0x116f   :  { %v1939_v45 = vpop.permute.xlu1 %1938 }
0x1170   :  { %v1941_v31 = vsel %vm783_vm1, %v1926_v22, %v1939_v45 }
0x1171   :  { %2012 = vmatmul.mubr.f32.vlgmr.msra.gmra.mrb[12].mxu0 %v1941_v31  ;;  %2083 = vmatmul.mubr.f32.vlgmr.msra.gmra.mrb[2].mxu1 %v1941_v31 }
0x1172   :  { %6618 = vmatpush1.bf16.msra.mxu0 %v8554_v34  ;;  %6650 = vmatpush1.bf16.msra.mxu1 %v8533_v16 }
0x1173   :  { %6620 = vmatprep.subr.bf16.mxu0 %v8561_v41  ;;  %6652 = vmatprep.subr.bf16.mxu1 %v8542_v25 }
0x1174   :  { %2241 = vmatprep.mubr.f32.mxu0 %v8273_v1  ;;  %2312 = vmatprep.mubr.f32.mxu1 %v8273_v1 }
0x1176   :  { %6622 = vmatpush1.bf16.msra.mxu0 %v8568_v46  ;;  %6654 = vmatpush1.bf16.msra.mxu1 %v8552_v33 }
0x1177   :  { %6624 = vmatprep.subr.bf16.mxu0 %v8580_v56  ;;  %6656 = vmatprep.subr.bf16.mxu1 %v8558_v37 }
0x117a   :  { %6626 = vmatpush1.bf16.msra.mxu0 %v8584_v59  ;;  %6658 = vmatpush1.bf16.msra.mxu1 %v8572_v48 }
0x117b   :  { %6628 = vmatprep.subr.bf16.mxu0 %v8599_v6  ;;  %6660 = vmatprep.subr.bf16.mxu1 %v8576_v52  ;;  %v1944_v52 = vpop.permute.xlu1 %1943 }
0x117c   :  { %v1946_v56 = vsel %vm783_vm1, %v1944_v52, %v9029_v50 }
0x117e   :  { %6630 = vmatpush1.bf16.msra.mxu0 %v8603_v9  ;;  %6662 = vmatpush1.bf16.msra.mxu1 %v8591_v63 }
0x117f   :  { %6632 = vmatprep.subr.bf16.mxu0 %v8618_v21  ;;  %6664 = vmatprep.subr.bf16.mxu1 %v8595_v3 }
0x1182   :  { %6634 = vmatpush1.bf16.msra.mxu0 %v8622_v24  ;;  %6666 = vmatpush1.bf16.msra.mxu1 %v8610_v14 }
0x1183   :  { %6636 = vmatprep.subr.bf16.mxu0 %v8637_v39  ;;  %6668 = vmatprep.subr.bf16.mxu1 %v8614_v18 }
0x1186   :  { %6638 = vmatpush1.bf16.msra.mxu0 %v8641_v43  ;;  %6670 = vmatpush1.bf16.msra.mxu1 %v8629_v30 }
0x1187   :  { %6640 = vmatprep.subr.bf16.mxu0 %v8652_v53  ;;  %6672 = vmatprep.subr.bf16.mxu1 %v8633_v35 }
0x118a   :  { %6642 = vmatpush1.bf16.msra.mxu0 %v8660_v61  ;;  %6674 = vmatpush1.bf16.msra.mxu1 %v8648_v49 }
0x118b   :  { %6644 = vmatprep.subr.bf16.mxu0 %v8671_v5  ;;  %6676 = vmatprep.subr.bf16.mxu1 %v8656_v57 }
0x118e   :  { %6646 = vmatpush1.bf16.msra.mxu0 %v8677_v7  ;;  %6678 = vmatpush1.bf16.msra.mxu1 %v8667_v0 }
0x1244   :  { %v2013_v16 = vpop.f32.mrb[12].mxu0  ;;  %v2084_v25 = vpop.f32.mrb[2].mxu1 }
0x1245   :  { %v2015_v33 = vpop.f32.mrb[13].mxu0  ;;  %v2086_v34 = vpop.f32.mrb[3].mxu1  ;;  %v7433_v59 = vadd.f32 %v2084_v25, %v8743_v38  ;;  %v7427_v63 = vadd.f32 %v2013_v16, %v8749_v44 }
0x1246   :  { %v7434_v37 = vadd.f32 %v2086_v34, %v8730_v17  ;;  %v7428_v41 = vadd.f32 %v2015_v33, %v8734_v19 }
0x1247   :  { %v5739_v3 = vmul.f32 -1.442695, %v7433_v59  ;;  %v5737_v6 = vmul.f32 -1.442695, %v7427_v63 }
0x1248   :  { %7723 = vtanh.f32 %v7434_v37  ;;  %v5740_v47 = vmul.f32 -1.442695, %v7434_v37  ;;  %v5738_v50 = vmul.f32 -1.442695, %v7428_v41 }
0x1249   :  { %7725 = vtanh.f32 %v7428_v41 }
0x124a   :  { %7727 = vpow2.f32 %v5739_v3 }
0x124b   :  { %7729 = vpow2.f32 %v5737_v6 }
0x1252   :  { %v7724_v46 = vpop.eup %7723 }
0x1253   :  { %2142 = vrot.lane.b32.xlu0 %v7724_v46, %s8274_s17  ;;  %v7726_v48 = vpop.eup %7725 }
0x1254   :  { %v7728_v9 = vpop.eup %7727 }
0x1255   :  { %v2117_v14 = vadd.f32 1.0, %v7728_v9  ;;  %v7730_v18 = vpop.eup %7729 }
0x1256   :  { %v2105_v21 = vadd.f32 1.0, %v7730_v18 }
0x1257   :  { %2131 = vrot.lane.b32.xlu0 %v7726_v48, %s8274_s17  ;;  %7731 = vrcp.f32 %v2117_v14 }
0x1258   :  { %7733 = vrcp.f32 %v2105_v21 }
0x125b   :  { %2126 = vrot.lane.b32.xlu0 %v1946_v56, %s8274_s17 }
0x1261   :  { %v7732_v24 = vpop.eup %7731 }
0x1262   :  { %v7734_v39 = vpop.eup %7733  ;;  %v2140_v53 = vmul.f32 %v7732_v24, %v1946_v56 }
0x12c5   :  { %v2143_v30 = vpop.permute.xlu0 %2142 }
0x12c6   :  { %v2145_v35 = vmul.f32 %v7732_v24, %v2143_v30  ;;  %v2406_v24 = vld [vmem:[#allocation5 + $0x18] sm:$0xff]  ;;  %v2452_v30 = vld [vmem:[#allocation12 + $0x8] sm:$0xff] }
0x12c8   :  { %2147 = vrot.lane.b32.xlu1 %v2145_v35, %s8274_s17  ;;  %v2456_v35 = vld [vmem:[#allocation12 + $0x28] sm:$0xff] }
0x12c9   :  { %v2132_v43 = vpop.permute.xlu0 %2131 }
0x12ca   :  { %v2134_v49 = vmul.f32 %v7734_v39, %v2132_v43  ;;  %v6679_v43 = vpack.c.bf16 %v2456_v35, %v2452_v30  ;;  %v2485_v30 = vld [vmem:[#allocation12 + $0x110] sm:$0xff] }
0x12cc   :  { %2136 = vrot.lane.b32.xlu1 %v2134_v49, %s8274_s17  ;;  %v2458_v49 = vld [vmem:[#allocation12 + $0x38] sm:$0xff]  ;;  %6680 = vmatprep.subr.bf16.mxu0 %v6679_v43  ;;  %v2492_v43 = vld [vmem:[#allocation12 + $0x148] sm:$0xff] }
0x12cd   :  { %v2127_v57 = vpop.permute.xlu0 %2126 }
0x12ce   :  { %v2129_v5 = vmul.f32 %v7734_v39, %v2127_v57  ;;  %v2454_v39 = vld [vmem:[#allocation12 + $0x18] sm:$0xff]  ;;  %v2455_v57 = vld [vmem:[#allocation12 + $0x20] sm:$0xff] }
0x133a   :  { %v2148_v61 = vpop.permute.xlu1 %2147 }
0x133b   :  { %v2150_v0 = vadd.f32 %v2148_v61, %v2140_v53  ;;  %v2451_v53 = vld [vmem:[#allocation12] sm:$0xff]  ;;  %v6711_v61 = vpack.c.bf16 %v2458_v49, %v2454_v39  ;;  %v2489_v39 = vld [vmem:[#allocation12 + $0x130] sm:$0xff]  ;;  %v2496_v49 = vld [vmem:[#allocation12 + $0x168] sm:$0xff] }
0x133d   :  { %7735 = vtanh.f32 %v2150_v0  ;;  %6712 = vmatprep.subr.bf16.mxu1 %v6711_v61 }
0x133e   :  { %v2137_v7 = vpop.permute.xlu1 %2136 }
0x133f   :  { %v2139_v20 = vadd.f32 %v2137_v7, %v2129_v5  ;;  %v2453_v5 = vld [vmem:[#allocation12 + $0x10] sm:$0xff] }
0x1340   :  { %v2457_v7 = vld [vmem:[#allocation12 + $0x30] sm:$0xff] }
0x1341   :  { %7737 = vtanh.f32 %v2139_v20 }
0x1342   :  { %7739 = vpow2.f32 %v5740_v47  ;;  %v2462_v47 = vld [vmem:[#allocation12 + $0x58] sm:$0xff] }
0x1343   :  { %7741 = vpow2.f32 %v5738_v50  ;;  %v2466_v50 = vld [vmem:[#allocation12 + $0x78] sm:$0xff] }
0x1347   :  { %v7736_v26 = vpop.eup %7735 }
0x1348   :  { %2159 = vrot.lane.b32.xlu0 %v7736_v26, %s8274_s17  ;;  %v6713_v26 = vpack.c.bf16 %v2457_v7, %v2453_v5  ;;  %v6699_v5 = vpack.c.bf16 %v2496_v49, %v2492_v43  ;;  %v2491_v7 = vld [vmem:[#allocation12 + $0x140] sm:$0xff] }
0x1349   :  { %v2407_v49 = vld [vmem:[#allocation5 + $0x20] sm:$0xff] }
0x134b   :  { %v7738_v32 = vpop.eup %7737 }
0x134c   :  { %2153 = vrot.lane.b32.xlu1 %v7738_v32, %s8274_s17  ;;  %v7740_v55 = vpop.eup %7739  ;;  %v2464_v32 = vld [vmem:[#allocation12 + $0x68] sm:$0xff] }
0x134d   :  { %v2118_v58 = vadd.f32 1.0, %v7740_v55  ;;  %v7742_v62 = vpop.eup %7741 }
0x134e   :  { %v2106_v28 = vadd.f32 1.0, %v7742_v62  ;;  %v2459_v62 = vld [vmem:[#allocation12 + $0x40] sm:$0xff] }
0x134f   :  { %7743 = vrcp.f32 %v2118_v58  ;;  %v6715_v58 = vpack.c.bf16 %v2466_v50, %v2462_v47  ;;  %v2497_v47 = vld [vmem:[#allocation12 + $0x170] sm:$0xff]  ;;  %v2500_v50 = vld [vmem:[#allocation12 + $0x188] sm:$0xff] }
0x1350   :  { %7745 = vrcp.f32 %v2106_v28  ;;  %v2463_v28 = vld [vmem:[#allocation12 + $0x60] sm:$0xff] }
0x1359   :  { %v7744_v51 = vpop.eup %7743 }
0x135a   :  { %v7746_v13 = vpop.eup %7745 }
0x13ba   :  { %v2160_v2 = vpop.permute.xlu0 %2159 }
0x13bb   :  { %v2162_v60 = vmul.f32 %v7744_v51, %v2160_v2  ;;  %v2461_v51 = vld [vmem:[#allocation12 + $0x50] sm:$0xff]  ;;  %v6685_v2 = vpack.c.bf16 %v2463_v28, %v2459_v62  ;;  %v2506_v62 = vld [vmem:[#allocation12 + $0x1b8] sm:$0xff] }
0x13bd   :  { %2166 = vst.msk [vmem:[#allocation5 + $0x8] sm:$0xff] %vm783_vm1, %v2162_v60  ;;  %2168 = vrot.lane.b32.xlu0 %v2162_v60, %s8274_s17  ;;  %v2465_v60 = vld [vmem:[#allocation12 + $0x70] sm:$0xff] }
0x13be   :  { %v2154_v54 = vpop.permute.xlu1 %2153 }
0x13bf   :  { %v2156_v8 = vmul.f32 %v7746_v13, %v2154_v54  ;;  %v2468_v13 = vld [vmem:[#allocation12 + $0x88] sm:$0xff] }
0x13c0   :  { %v2472_v54 = vld [vmem:[#allocation12 + $0xa8] sm:$0xff] }
0x13c1   :  { %2164 = vst.msk [vmem:[#allocation4 + $0x30] sm:$0xff] %vm783_vm1, %v2156_v8  ;;  %2173 = vrot.lane.b32.xlu0 %v2139_v20, %s8274_s17  ;;  %v2460_v20 = vld [vmem:[#allocation12 + $0x48] sm:$0xff] }
0x13c2   :  { %v6683_v55 = vpack.c.bf16 %v2464_v32, %v2460_v20  ;;  %v2495_v20 = vld [vmem:[#allocation12 + $0x160] sm:$0xff] }
0x13c3   :  { %v6701_v28 = vpack.c.bf16 %v2495_v20, %v2491_v7  ;;  %v2795_v7 = vld [vmem:[#allocation14] sm:$0xff] }
0x13c4   :  { %v2799_v20 = vld [vmem:[#allocation14 + $0x20] sm:$0xff] }
0x142f   :  { %v2169_v27 = vpop.permute.xlu0 %2168 }
0x1430   :  { %v2171_v15 = vsel %vm783_vm1, %v2156_v8, %v2169_v27  ;;  %v6717_v8 = vpack.c.bf16 %v2465_v60, %v2461_v51  ;;  %v6687_v27 = vpack.c.bf16 %v2472_v54, %v2468_v13  ;;  %v2499_v60 = vld [vmem:[#allocation12 + $0x180] sm:$0xff]  ;;  %v2501_v54 = vld [vmem:[#allocation12 + $0x190] sm:$0xff] }
0x1431   :  { %2242 = vmatmul.mubr.f32.vlgmr.msra.gmra.mrb[14].mxu0 %v2171_v15  ;;  %2313 = vmatmul.mubr.f32.vlgmr.msra.gmra.mrb[0].mxu1 %v2171_v15  ;;  %v2470_v15 = vld [vmem:[#allocation12 + $0x98] sm:$0xff]  ;;  %v2503_v13 = vld [vmem:[#allocation12 + $0x1a0] sm:$0xff] }
0x1432   :  { %2601 = vmatprep.mubr.f32.mxu0 %v8273_v1  ;;  %2714 = vmatprep.mubr.f32.mxu1 %v8273_v1 }
0x1433   :  { %v2174_v16 = vpop.permute.xlu0 %2173  ;;  %6714 = vmatpush1.bf16.msra.mxu1 %v6713_v26  ;;  %v2493_v26 = vld [vmem:[#allocation12 + $0x150] sm:$0xff] }
0x1434   :  { %v2176_v25 = vsel %vm783_vm1, %v2174_v16, %v2150_v0  ;;  %v6681_v0 = vpack.c.bf16 %v2455_v57, %v2451_v53  ;;  %6716 = vmatprep.subr.bf16.mxu1 %v6715_v58  ;;  %v2473_v16 = vld [vmem:[#allocation12 + $0xb0] sm:$0xff]  ;;  %v2494_v53 = vld [vmem:[#allocation12 + $0x158] sm:$0xff]  ;;  %v6733_v51 = vpack.c.bf16 %v2497_v47, %v2493_v26 }
0x1435   :  { %v2498_v57 = vld [vmem:[#allocation12 + $0x178] sm:$0xff]  ;;  %v2797_v26 = vld [vmem:[#allocation14 + $0x10] sm:$0xff] }
0x1436   :  { %6682 = vmatpush1.bf16.msra.mxu0 %v6681_v0  ;;  %v6729_v0 = vpack.c.bf16 %v2489_v39, %v2485_v30  ;;  %v6731_v32 = vpack.c.bf16 %v2498_v57, %v2494_v53  ;;  %v2502_v58 = vld [vmem:[#allocation12 + $0x198] sm:$0xff]  ;;  %v2405_v39 = vld [vmem:[#allocation5 + $0x10] sm:$0xff] }
0x1437   :  { %6684 = vmatprep.subr.bf16.mxu0 %v6683_v55  ;;  %6718 = vmatpush1.bf16.msra.mxu1 %v6717_v8  ;;  %v2504_v55 = vld [vmem:[#allocation12 + $0x1a8] sm:$0xff]  ;;  %v6735_v8 = vpack.c.bf16 %v2506_v62, %v2502_v58  ;;  %v2410_v57 = vld [vmem:[#allocation5 + $0x38] sm:$0xff] }
0x1438   :  { %v2409_v53 = vld [vmem:[#allocation5 + $0x30] sm:$0xff]  ;;  %v2806_v58 = vld [vmem:[#allocation14 + $0x58] sm:$0xff] }
0x1439   :  { %v2810_v62 = vld [vmem:[#allocation14 + $0x78] sm:$0xff] }
0x143a   :  { %6686 = vmatpush1.bf16.msra.mxu0 %v6685_v2  ;;  %v6703_v2 = vpack.c.bf16 %v2504_v55, %v2500_v50  ;;  %v2804_v50 = vld [vmem:[#allocation14 + $0x48] sm:$0xff] }
0x143b   :  { %6688 = vmatprep.subr.bf16.mxu0 %v6687_v27  ;;  %v2505_v27 = vld [vmem:[#allocation12 + $0x1b0] sm:$0xff]  ;;  %v2808_v55 = vld [vmem:[#allocation14 + $0x68] sm:$0xff] }
0x1504   :  { %v2243_v23 = vpop.f32.mrb[14].mxu0  ;;  %v2314_v29 = vpop.f32.mrb[0].mxu1 }
0x1505   :  { %v2245_v4 = vpop.f32.mrb[15].mxu0  ;;  %v2316_v42 = vpop.f32.mrb[1].mxu1  ;;  %v7429_v52 = vadd.f32 %v2243_v23, %v8749_v44  ;;  %v2404_v44 = vld [vmem:[#allocation5 + $0x8] sm:$0xff]  ;;  %v2474_v23 = vld [vmem:[#allocation12 + $0xb8] sm:$0xff] }
0x1506   :  { %v9092_v22 = vadd.f32 %v2245_v4, %v8734_v19  ;;  %v9096_v45 = vadd.f32 %v2316_v42, %v8730_v17  ;;  %v7431_v19 = vadd.f32 %v2314_v29, %v8743_v38  ;;  %v2467_v29 = vld [vmem:[#allocation12 + $0x80] sm:$0xff]  ;;  %v6719_v4 = vpack.c.bf16 %v2474_v23, %v2470_v15  ;;  %v2508_v15 = vld [vmem:[#allocation12 + $0x1c8] sm:$0xff] }
0x1507   :  { %v5741_v56 = vmul.f32 -1.442695, %v7429_v52  ;;  %v2471_v42 = vld [vmem:[#allocation12 + $0xa0] sm:$0xff]  ;;  %v2512_v23 = vld [vmem:[#allocation12 + $0x1e8] sm:$0xff] }
0x1508   :  { %7747 = vtanh.f32 %v9092_v22  ;;  %v5743_v34 = vmul.f32 -1.442695, %v7431_v19  ;;  %v2480_v19 = vld [vmem:[#allocation12 + $0xe8] sm:$0xff]  ;;  %6720 = vmatprep.subr.bf16.mxu1 %v6719_v4  ;;  %v2514_v4 = vld [vmem:[#allocation12 + $0x1f8] sm:$0xff] }
0x1509   :  { %7749 = vtanh.f32 %v9096_v45 }
0x150a   :  { %7751 = vpow2.f32 %v5743_v34  ;;  %v2478_v34 = vld [vmem:[#allocation12 + $0xd8] sm:$0xff] }
0x1512   :  { %v7748_v31 = vpop.eup %7747 }
0x1513   :  { %2360 = vrot.lane.b32.xlu0 %v7748_v31, %s8274_s17  ;;  %v7750_v33 = vpop.eup %7749  ;;  %v2469_v31 = vld [vmem:[#allocation12 + $0x90] sm:$0xff] }
0x1514   :  { %2371 = vrot.lane.b32.xlu1 %v7750_v33, %s8274_s17  ;;  %v7752_v37 = vpop.eup %7751  ;;  %v2476_v33 = vld [vmem:[#allocation12 + $0xc8] sm:$0xff] }
0x1515   :  { %v2346_v17 = vadd.f32 1.0, %v7752_v37  ;;  %v6721_v37 = vpack.c.bf16 %v2473_v16, %v2469_v31  ;;  %v6737_v31 = vpack.c.bf16 %v2505_v27, %v2501_v54  ;;  %v6707_v16 = vpack.c.bf16 %v2512_v23, %v2508_v15  ;;  %v2805_v54 = vld [vmem:[#allocation14 + $0x50] sm:$0xff] }
0x1516   :  { %v9135_v15 = vpack.c.bf16 %v2808_v55, %v2804_v50  ;;  %v9137_v23 = vpack.c.bf16 %v2810_v62, %v2806_v58  ;;  %v2827_v50 = vld [vmem:[#allocation14 + $0x100] sm:$0xff] }
0x1517   :  { %2355 = vrot.lane.b32.xlu0 %v2176_v25, %s8274_s17  ;;  %7753 = vrcp.f32 %v2346_v17  ;;  %v6691_v17 = vpack.c.bf16 %v2480_v19, %v2476_v33  ;;  %6722 = vmatpush1.bf16.msra.mxu1 %v6721_v37  ;;  %v2511_v33 = vld [vmem:[#allocation12 + $0x1e0] sm:$0xff]  ;;  %v2513_v37 = vld [vmem:[#allocation12 + $0x1f0] sm:$0xff] }
0x1518   :  { %7755 = vpow2.f32 %v5741_v56  ;;  %v2477_v56 = vld [vmem:[#allocation12 + $0xd0] sm:$0xff]  ;;  %v2831_v55 = vld [vmem:[#allocation14 + $0x120] sm:$0xff] }
0x1521   :  { %v7754_v41 = vpop.eup %7753 }
0x1522   :  { %v7756_v59 = vpop.eup %7755  ;;  %v2369_v63 = vmul.f32 %v7754_v41, %v2176_v25  ;;  %v6689_v25 = vpack.c.bf16 %v2471_v42, %v2467_v29  ;;  %v2510_v29 = vld [vmem:[#allocation12 + $0x1d8] sm:$0xff]  ;;  %v6705_v42 = vpack.c.bf16 %v2503_v13, %v2499_v60  ;;  %v2803_v60 = vld [vmem:[#allocation14 + $0x40] sm:$0xff] }
0x1523   :  { %v2334_v6 = vadd.f32 1.0, %v7756_v59  ;;  %v2481_v59 = vld [vmem:[#allocation12 + $0xf0] sm:$0xff]  ;;  %v6739_v19 = vpack.c.bf16 %v2514_v4, %v2510_v29  ;;  %v2807_v13 = vld [vmem:[#allocation14 + $0x60] sm:$0xff]  ;;  %v2812_v29 = vld [vmem:[#allocation14 + $0x88] sm:$0xff] }
0x1524   :  { %6690 = vmatpush1.bf16.msra.mxu0 %v6689_v25  ;;  %v2507_v25 = vld [vmem:[#allocation12 + $0x1c0] sm:$0xff]  ;;  %v2816_v4 = vld [vmem:[#allocation14 + $0xa8] sm:$0xff] }
0x1525   :  { %6692 = vmatprep.subr.bf16.mxu0 %v6691_v17  ;;  %v6709_v17 = vpack.c.bf16 %v2511_v33, %v2507_v25  ;;  %v2396_v25 = vld [vmem:[#allocation4 + $0x8] sm:$0xff]  ;;  %v9141_v33 = vpack.c.bf16 %v2807_v13, %v2803_v60  ;;  %v2829_v60 = vld [vmem:[#allocation14 + $0x110] sm:$0xff] }
0x1526   :  { %v2836_v13 = vld [vmem:[#allocation14 + $0x148] sm:$0xff] }
0x1585   :  { %v2361_v14 = vpop.permute.xlu0 %2360 }
0x1586   :  { %v2372_v46 = vpop.permute.xlu1 %2371 }
0x1587   :  { %v2374_v48 = vmul.f32 %v7754_v41, %v2372_v46  ;;  %v2482_v41 = vld [vmem:[#allocation12 + $0xf8] sm:$0xff]  ;;  %v2475_v46 = vld [vmem:[#allocation12 + $0xc0] sm:$0xff] }
0x1588   :  { %v6723_v52 = vpack.c.bf16 %v2482_v41, %v2478_v34  ;;  %v2509_v34 = vld [vmem:[#allocation12 + $0x1d0] sm:$0xff] }
0x1589   :  { %2376 = vrot.lane.b32.xlu1 %v2374_v48, %s8274_s17  ;;  %v2479_v48 = vld [vmem:[#allocation12 + $0xe0] sm:$0xff]  ;;  %v6741_v41 = vpack.c.bf16 %v2513_v37, %v2509_v34 }
0x158a   :  { %6724 = vmatprep.subr.bf16.mxu1 %v6723_v52  ;;  %v2811_v34 = vld [vmem:[#allocation14 + $0x80] sm:$0xff] }
0x158b   :  { %v2815_v37 = vld [vmem:[#allocation14 + $0xa0] sm:$0xff] }
0x15fb   :  { %v2377_v3 = vpop.permute.xlu1 %2376 }
0x15fc   :  { %v2379_v9 = vadd.f32 %v2377_v3, %v2369_v63  ;;  %v2484_v63 = vld [vmem:[#allocation12 + $0x108] sm:$0xff] }
0x15fd   :  { %v2488_v3 = vld [vmem:[#allocation12 + $0x128] sm:$0xff] }
0x15fe   :  { %7757 = vtanh.f32 %v2379_v9  ;;  %v2490_v9 = vld [vmem:[#allocation12 + $0x138] sm:$0xff] }
0x15ff   :  { %7759 = vrcp.f32 %v2334_v6  ;;  %v2486_v6 = vld [vmem:[#allocation12 + $0x118] sm:$0xff] }
0x1600   :  { %v6727_v35 = vpack.c.bf16 %v2490_v9, %v2486_v6  ;;  %v2802_v6 = vld [vmem:[#allocation14 + $0x38] sm:$0xff] }
0x1608   :  { %v7758_v38 = vpop.eup %7757 }
0x1609   :  { %2388 = vrot.lane.b32.xlu1 %v7758_v38, %s8274_s17  ;;  %v9107_v18 = vpop.eup %7759  ;;  %v6693_v38 = vpack.c.bf16 %v2479_v48, %v2475_v46  ;;  %v5744_v46 = vmul.f32 -1.442695, %v9096_v45 }
0x160a   :  { %v2363_v21 = vmul.f32 %v9107_v18, %v2361_v14  ;;  %v6725_v14 = vpack.c.bf16 %v2481_v59, %v2477_v56  ;;  %v2796_v56 = vld [vmem:[#allocation14 + $0x8] sm:$0xff] }
0x160b   :  { %6694 = vmatpush1.bf16.msra.mxu0 %v6693_v38  ;;  %7761 = vpow2.f32 %v5744_v46  ;;  %v2800_v59 = vld [vmem:[#allocation14 + $0x28] sm:$0xff]  ;;  %v2356_v38 = vpop.permute.xlu0 %2355 }
0x160c   :  { %6726 = vmatpush1.bf16.msra.mxu1 %v6725_v14  ;;  %v2358_v45 = vmul.f32 %v9107_v18, %v2356_v38  ;;  %v2408_v18 = vld [vmem:[#allocation5 + $0x28] sm:$0xff] }
0x160d   :  { %2365 = vrot.lane.b32.xlu1 %v2363_v21, %s8274_s17  ;;  %v6695_v21 = vpack.c.bf16 %v2488_v3, %v2484_v63  ;;  %6728 = vmatprep.subr.bf16.mxu1 %v6727_v35  ;;  %v9114_v63 = vpack.c.bf16 %v2800_v59, %v2796_v56  ;;  %v2798_v3 = vld [vmem:[#allocation14 + $0x18] sm:$0xff]  ;;  %v2820_v56 = vld [vmem:[#allocation14 + $0xc8] sm:$0xff] }
0x160f   :  { %6696 = vmatprep.subr.bf16.mxu0 %v6695_v21  ;;  %v9117_v21 = vpack.c.bf16 %v2802_v6, %v2798_v3  ;;  %v2824_v3 = vld [vmem:[#allocation14 + $0xe8] sm:$0xff]  ;;  %v2822_v6 = vld [vmem:[#allocation14 + $0xd8] sm:$0xff] }
0x1610   :  { %6730 = vmatpush1.bf16.msra.mxu1 %v6729_v0 }
0x1611   :  { %2421 = vrot.lane.b32.xlu1 %v2404_v44, %s8274_s17  ;;  %v2483_v44 = vld [vmem:[#allocation12 + $0x100] sm:$0xff]  ;;  %6732 = vmatprep.subr.bf16.mxu1 %v6731_v32  ;;  %v2801_v32 = vld [vmem:[#allocation14 + $0x30] sm:$0xff] }
0x1614   :  { %6734 = vmatpush1.bf16.msra.mxu1 %v6733_v51  ;;  %v9130_v51 = vpack.c.bf16 %v2799_v20, %v2795_v7  ;;  %v2834_v7 = vld [vmem:[#allocation14 + $0x138] sm:$0xff] }
0x1615   :  { %2425 = vrot.lane.b32.xlu1 %v2406_v24, %s8274_s17  ;;  %v2487_v24 = vld [vmem:[#allocation12 + $0x120] sm:$0xff]  ;;  %6736 = vmatprep.subr.bf16.mxu1 %v6735_v8  ;;  %v7762_v48 = vpop.eup %7761  ;;  %v2809_v8 = vld [vmem:[#allocation14 + $0x70] sm:$0xff] }
0x1616   :  { %v6697_v61 = vpack.c.bf16 %v2487_v24, %v2483_v44  ;;  %v2347_v52 = vadd.f32 1.0, %v7762_v48  ;;  %v9150_v48 = vpack.c.bf16 %v2816_v4, %v2812_v29  ;;  %v9187_v29 = vpack.c.bf16 %v2831_v55, %v2827_v50  ;;  %v2399_v4 = vld [vmem:[#allocation4 + $0x20] sm:$0xff] }
0x1617   :  { %v2855_v50 = vld [vmem:[#allocation14 + $0x1e0] sm:$0xff] }
0x1618   :  { %6698 = vmatpush1.bf16.msra.mxu0 %v6697_v61  ;;  %6738 = vmatpush1.bf16.msra.mxu1 %v6737_v31  ;;  %7763 = vrcp.f32 %v2347_v52  ;;  %v5742_v61 = vmul.f32 -1.442695, %v9092_v22  ;;  %v2818_v31 = vld [vmem:[#allocation14 + $0xb8] sm:$0xff] }
0x1619   :  { %6700 = vmatprep.subr.bf16.mxu0 %v6699_v5  ;;  %6740 = vmatprep.subr.bf16.mxu1 %v6739_v19  ;;  %v9143_v19 = vpack.c.bf16 %v2809_v8, %v2805_v54  ;;  %v2840_v54 = vld [vmem:[#allocation14 + $0x168] sm:$0xff]  ;;  %v2838_v8 = vld [vmem:[#allocation14 + $0x158] sm:$0xff] }
0x161c   :  { %6702 = vmatpush1.bf16.msra.mxu0 %v6701_v28  ;;  %6742 = vmatpush1.bf16.msra.mxu1 %v6741_v41  ;;  %v2395_v28 = vld [vmem:[#allocation4] sm:$0xff]  ;;  %v2817_v41 = vld [vmem:[#allocation14 + $0xb0] sm:$0xff] }
0x161d   :  { %6704 = vmatprep.subr.bf16.mxu0 %v6703_v2  ;;  %6776 = vmatprep.subr.bf16.mxu1 %v9117_v21  ;;  %v9132_v2 = vpack.c.bf16 %v2801_v32, %v2797_v26  ;;  %v2398_v32 = vld [vmem:[#allocation4 + $0x18] sm:$0xff] }
0x1620   :  { %6706 = vmatpush1.bf16.msra.mxu0 %v6705_v42  ;;  %v2814_v42 = vld [vmem:[#allocation14 + $0x98] sm:$0xff] }
0x1621   :  { %6708 = vmatprep.subr.bf16.mxu0 %v6707_v16  ;;  %v9152_v52 = vpack.c.bf16 %v2818_v31, %v2814_v42  ;;  %v2835_v31 = vld [vmem:[#allocation14 + $0x140] sm:$0xff] }
0x1622   :  { %v7764_v9 = vpop.eup %7763 }
0x1624   :  { %6710 = vmatpush1.bf16.msra.mxu0 %v6709_v17  ;;  %v2813_v17 = vld [vmem:[#allocation14 + $0x90] sm:$0xff] }
0x1625   :  { %6744 = vmatprep.subr.bf16.mxu0 %v9114_v63 }
0x167b   :  { %v2389_v14 = vpop.permute.xlu1 %2388 }
0x167c   :  { %v2391_v44 = vmul.f32 %v7764_v9, %v2389_v14  ;;  %v2826_v9 = vld [vmem:[#allocation14 + $0xf8] sm:$0xff] }
0x167e   :  { %2394 = vst.msk [vmem:[#allocation5] sm:$0xff] %vm783_vm1, %v2391_v44  ;;  %v9156_v44 = vpack.c.bf16 %v2815_v37, %v2811_v34  ;;  %v9196_v34 = vpack.c.bf16 %v2840_v54, %v2836_v13  ;;  %v2858_v13 = vld [vmem:[#allocation14 + $0x1f8] sm:$0xff] }
0x167f   :  { %v2366_v24 = vpop.permute.xlu1 %2365 }
0x1680   :  { %v2368_v30 = vadd.f32 %v2366_v24, %v2358_v45  ;;  %v9158_v45 = vpack.c.bf16 %v2817_v41, %v2813_v17  ;;  %v2844_v17 = vld [vmem:[#allocation14 + $0x188] sm:$0xff] }
0x1681   :  { %v2848_v41 = vld [vmem:[#allocation14 + $0x1a8] sm:$0xff] }
0x1682   :  { %7765 = vtanh.f32 %v2368_v30  ;;  %v2397_v30 = vld [vmem:[#allocation4 + $0x10] sm:$0xff] }
0x1683   :  { %7767 = vpow2.f32 %v5742_v61  ;;  %v2422_v47 = vpop.permute.xlu1 %2421  ;;  %v2828_v61 = vld [vmem:[#allocation14 + $0x108] sm:$0xff] }
0x1684   :  { %v2444_v46 = vsel %vm783_vm1, %v2396_v25, %v2422_v47 }
0x1685   :  { %v2403_v35 = vld [vmem:[#allocation5] sm:$0xff] }
0x1686   :  { %2419 = vrot.lane.b32.xlu0 %v2403_v35, %s8274_s17  ;;  %v2819_v35 = vld [vmem:[#allocation14 + $0xc0] sm:$0xff] }
0x1687   :  { %v2426_v16 = vpop.permute.xlu1 %2425 }
0x1688   :  { %v2446_v58 = vsel %vm783_vm1, %v2398_v32, %v2426_v16  ;;  %v2839_v16 = vld [vmem:[#allocation14 + $0x160] sm:$0xff] }
0x1689   :  { %v2851_v32 = vld [vmem:[#allocation14 + $0x1c0] sm:$0xff] }
0x168a   :  { %2423 = vrot.lane.b32.xlu0 %v2405_v39, %s8274_s17  ;;  %v2823_v39 = vld [vmem:[#allocation14 + $0xe0] sm:$0xff] }
0x168b   :  { %v9172_v20 = vpack.c.bf16 %v2823_v39, %v2819_v35  ;;  %v2846_v35 = vld [vmem:[#allocation14 + $0x198] sm:$0xff] }
0x168c   :  { %v7766_v43 = vpop.eup %7765  ;;  %v2850_v39 = vld [vmem:[#allocation14 + $0x1b8] sm:$0xff] }
0x168d   :  { %2382 = vrot.lane.b32.xlu1 %v7766_v43, %s8274_s17  ;;  %v7768_v0 = vpop.eup %7767 }
0x168e   :  { %2427 = vrot.lane.b32.xlu0 %v2407_v49, %s8274_s17  ;;  %v2335_v5 = vadd.f32 1.0, %v7768_v0  ;;  %v9165_v49 = vpack.c.bf16 %v2824_v3, %v2820_v56  ;;  %v2832_v0 = vld [vmem:[#allocation14 + $0x128] sm:$0xff]  ;;  %v2837_v56 = vld [vmem:[#allocation14 + $0x150] sm:$0xff]  ;;  %v9202_v3 = vpack.c.bf16 %v2839_v16, %v2835_v31  ;;  %v9229_v31 = vpack.c.bf16 %v2855_v50, %v2851_v32 }
0x168f   :  { %v9181_v62 = vpack.c.bf16 %v2832_v0, %v2828_v61  ;;  %v2845_v61 = vld [vmem:[#allocation14 + $0x190] sm:$0xff] }
0x1690   :  { %7769 = vrcp.f32 %v2335_v5  ;;  %v2830_v5 = vld [vmem:[#allocation14 + $0x118] sm:$0xff]  ;;  %v2849_v0 = vld [vmem:[#allocation14 + $0x1b0] sm:$0xff] }
0x1691   :  { %2431 = vrot.lane.b32.xlu1 %v2409_v53, %s8274_s17  ;;  %v9167_v53 = vpack.c.bf16 %v2826_v9, %v2822_v6  ;;  %v2400_v6 = vld [vmem:[#allocation4 + $0x28] sm:$0xff]  ;;  %v9206_v9 = vpack.c.bf16 %v2848_v41, %v2844_v17 }
0x1692   :  { %2429 = vrot.lane.b32.xlu0 %v2408_v18, %s8274_s17  ;;  %v2821_v18 = vld [vmem:[#allocation14 + $0xd0] sm:$0xff]  ;;  %v2515_v41 = vld [vmem:[#allocation15] sm:$0xf] }
0x1696   :  { %2433 = vrot.lane.b32.xlu0 %v2410_v57, %s8274_s17  ;;  %v2825_v57 = vld [vmem:[#allocation14 + $0xf0] sm:$0xff] }
0x1697   :  { %v9176_v47 = vpack.c.bf16 %v2825_v57, %v2821_v18  ;;  %v2856_v57 = vld [vmem:[#allocation14 + $0x1e8] sm:$0xff] }
0x169a   :  { %v7770_v38 = vpop.eup %7769 }
0x16f8   :  { %v2420_v22 = vpop.permute.xlu0 %2419 }
0x16f9   :  { %v2443_v27 = vsel %vm783_vm1, %v2395_v28, %v2420_v22  ;;  %v9183_v28 = vpack.c.bf16 %v2834_v7, %v2830_v5  ;;  %v2833_v22 = vld [vmem:[#allocation14 + $0x130] sm:$0xff] }
0x16fa   :  { %2602 = vmatmul.mubr.f32.vlgmr.msra.gmra.mrb[16].mxu0 %v2443_v27  ;;  %2715 = vmatmul.mubr.f32.vlgmr.msra.gmra.mrb[16].mxu1 %v2443_v27  ;;  %v2842_v27 = vld [vmem:[#allocation14 + $0x178] sm:$0xff]  ;;  %v9191_v42 = vpack.c.bf16 %v2833_v22, %v2829_v60  ;;  %v2401_v7 = vld [vmem:[#allocation4 + $0x30] sm:$0xff]  ;;  %v9225_v60 = vpack.c.bf16 %v2849_v0, %v2845_v61 }
0x16fb   :  { %6746 = vmatpush1.bf16.msra.mxu0 %v9130_v51  ;;  %6778 = vmatpush1.bf16.msra.mxu1 %v9132_v2  ;;  %v9198_v37 = vpack.c.bf16 %v2842_v27, %v2838_v8  ;;  %v2854_v22 = vld [vmem:[#allocation14 + $0x1d8] sm:$0xff]  ;;  %v2853_v27 = vld [vmem:[#allocation14 + $0x1d0] sm:$0xff] }
0x16fc   :  { %2607 = vmatprep.mubr.f32.mxu0 %v8273_v1  ;;  %2720 = vmatprep.mubr.f32.mxu1 %v8273_v1  ;;  %v2424_v59 = vpop.permute.xlu0 %2423  ;;  %v9233_v16 = vpack.c.bf16 %v2858_v13, %v2854_v22 }
0x16fd   :  { %6748 = vmatprep.subr.bf16.mxu0 %v9135_v15  ;;  %6780 = vmatprep.subr.bf16.mxu1 %v9137_v23  ;;  %v2445_v43 = vsel %vm783_vm1, %v2397_v30, %v2424_v59  ;;  %v2841_v59 = vld [vmem:[#allocation14 + $0x170] sm:$0xff] }
0x16fe   :  { %2608 = vmatmul.mubr.f32.gmra.mrb[18].mxu0 %v2444_v46  ;;  %2721 = vmatmul.mubr.f32.gmra.mrb[18].mxu1 %v2444_v46  ;;  %v9211_v30 = vpack.c.bf16 %v2841_v59, %v2837_v56 }
0x16ff   :  { %v2383_v14 = vpop.permute.xlu1 %2382  ;;  %6750 = vmatpush1.bf16.msra.mxu0 %v9141_v33  ;;  %6782 = vmatpush1.bf16.msra.mxu1 %v9143_v19 }
0x1700   :  { %v2385_v24 = vmul.f32 %v7770_v38, %v2383_v14  ;;  %2613 = vmatprep.mubr.f32.mxu0 %v8273_v1  ;;  %2726 = vmatprep.mubr.f32.mxu1 %v8273_v1  ;;  %v2428_v26 = vpop.permute.xlu0 %2427  ;;  %v2843_v38 = vld [vmem:[#allocation14 + $0x180] sm:$0xff] }
0x1701   :  { %6752 = vmatprep.subr.bf16.mxu0 %v9150_v48  ;;  %6784 = vmatprep.subr.bf16.mxu1 %v9152_v52  ;;  %v2447_v25 = vsel %vm783_vm1, %v2399_v4, %v2428_v26  ;;  %v2847_v14 = vld [vmem:[#allocation14 + $0x1a0] sm:$0xff]  ;;  %v9219_v26 = vpack.c.bf16 %v2850_v39, %v2846_v35  ;;  %v2857_v4 = vld [vmem:[#allocation14 + $0x1f0] sm:$0xff] }
0x1702   :  { %2393 = vst.msk [vmem:[#allocation4 + $0x38] sm:$0xff] %vm783_vm1, %v2385_v24  ;;  %2614 = vmatmul.mubr.f32.gmra.mrb[20].mxu0 %v2445_v43  ;;  %2727 = vmatmul.mubr.f32.gmra.mrb[20].mxu1 %v2445_v43  ;;  %v2852_v43 = vld [vmem:[#allocation14 + $0x1c8] sm:$0xff]  ;;  %v9215_v5 = vpack.c.bf16 %v2847_v14, %v2843_v38  ;;  %v9238_v17 = vpack.c.bf16 %v2857_v4, %v2853_v27 }
0x1703   :  { %6754 = vmatpush1.bf16.msra.mxu0 %v9156_v44  ;;  %6786 = vmatpush1.bf16.msra.mxu1 %v9158_v45  ;;  %v2432_v18 = vpop.permute.xlu1 %2431  ;;  %v9290_v38 = vrot.slane %v2515_v41, %v219_v11  ;;  %v9302_v11 = vrot.slane %v2515_v41, %v215_v36 }
0x1704   :  { %2619 = vmatprep.mubr.f32.mxu0 %v8273_v1  ;;  %2732 = vmatprep.mubr.f32.mxu1 %v8273_v1  ;;  %v2430_v46 = vpop.permute.xlu0 %2429  ;;  %v2449_v55 = vsel %vm783_vm1, %v2401_v7, %v2432_v18 }
0x1705   :  { %6756 = vmatprep.subr.bf16.mxu0 %v9165_v49  ;;  %6788 = vmatprep.subr.bf16.mxu1 %v9167_v53  ;;  %v2448_v24 = vsel %vm783_vm1, %v2400_v6, %v2430_v46  ;;  %v9285_v46 = vrot.slane %v2515_v41, %v211_v12  ;;  %v9297_v12 = vrot.slane %v2515_v41, %v207_v40 }
0x1706   :  { %2620 = vmatmul.mubr.f32.gmra.mrb[22].mxu0 %v2446_v58  ;;  %2733 = vmatmul.mubr.f32.gmra.mrb[22].mxu1 %v2446_v58  ;;  %v9223_v58 = vpack.c.bf16 %v2856_v57, %v2852_v43 }
0x1707   :  { %6758 = vmatpush1.bf16.msra.mxu0 %v9172_v20  ;;  %2625 = vmatprep.mubr.f32.mxu0 %v8273_v1 }
0x1708   :  { %2738 = vmatprep.mubr.f32.mxu1 %v8273_v1  ;;  %6790 = vmatpush1.bf16.msra.mxu1 %v9176_v47  ;;  %v2434_v54 = vpop.permute.xlu0 %2433 }
0x1709   :  { %6760 = vmatprep.subr.bf16.mxu0 %v9181_v62  ;;  %6792 = vmatprep.subr.bf16.mxu1 %v9183_v28  ;;  %v2402_v8 = vld [vmem:[#allocation4 + $0x38] sm:$0xff] }
0x170a   :  { %2626 = vmatmul.mubr.f32.gmra.mrb[24].mxu0 %v2447_v25  ;;  %2739 = vmatmul.mubr.f32.gmra.mrb[24].mxu1 %v2447_v25  ;;  %v2450_v25 = vsel %vm783_vm1, %v2402_v8, %v2434_v54 }
0x170b   :  { %6762 = vmatpush1.bf16.msra.mxu0 %v9187_v29  ;;  %2631 = vmatprep.mubr.f32.mxu0 %v8273_v1 }
0x170c   :  { %2744 = vmatprep.mubr.f32.mxu1 %v8273_v1  ;;  %6794 = vmatpush1.bf16.msra.mxu1 %v9191_v42 }
0x170d   :  { %6764 = vmatprep.subr.bf16.mxu0 %v9196_v34  ;;  %6796 = vmatprep.subr.bf16.mxu1 %v9198_v37 }
0x170e   :  { %2632 = vmatmul.mubr.f32.gmra.mrb[26].mxu0 %v2448_v24  ;;  %2745 = vmatmul.mubr.f32.gmra.mrb[26].mxu1 %v2448_v24 }
0x170f   :  { %6766 = vmatpush1.bf16.msra.mxu0 %v9202_v3  ;;  %2637 = vmatprep.mubr.f32.mxu0 %v8273_v1 }
0x1710   :  { %2750 = vmatprep.mubr.f32.mxu1 %v8273_v1  ;;  %6768 = vmatprep.subr.bf16.mxu0 %v9206_v9 }
0x1711   :  { %6798 = vmatpush1.bf16.msra.mxu1 %v9211_v30 }
0x1712   :  { %2638 = vmatmul.mubr.f32.gmra.mrb[28].mxu0 %v2449_v55  ;;  %2751 = vmatmul.mubr.f32.gmra.mrb[28].mxu1 %v2449_v55 }
0x1713   :  { %6770 = vmatpush1.bf16.msra.mxu0 %v9215_v5  ;;  %2643 = vmatprep.mubr.f32.mxu0 %v8273_v1 }
0x1714   :  { %2756 = vmatprep.mubr.f32.mxu1 %v8273_v1  ;;  %6800 = vmatprep.subr.bf16.mxu1 %v9219_v26 }
0x1715   :  { %6772 = vmatprep.subr.bf16.mxu0 %v9223_v58  ;;  %6802 = vmatpush1.bf16.msra.mxu1 %v9225_v60 }
0x1716   :  { %2644 = vmatmul.mubr.f32.gmra.mrb[30].mxu0 %v2450_v25  ;;  %2757 = vmatmul.mubr.f32.gmra.mrb[30].mxu1 %v2450_v25 }
0x1717   :  { %6774 = vmatpush1.bf16.msra.mxu0 %v9229_v31  ;;  %2923 = vmatprep.mubr.f32.mxu0 %v8273_v1 }
0x1718   :  { %6804 = vmatprep.subr.bf16.mxu1 %v9233_v16  ;;  %2994 = vmatprep.mubr.f32.mxu1 %v8273_v1 }
0x1719   :  { %6806 = vmatpush1.bf16.msra.mxu1 %v9238_v17  ;;  %6808 = vmatprep.subr.bf16.mxu0 %v9114_v63 }
0x171a   :  { %2924 = vmatmul.mubr.f32.vlgmr.msra.gmra.mrb[16].mxu0 %v8273_v1  ;;  %6840 = vmatprep.subr.bf16.mxu1 %v9117_v21 }
0x171b   :  { %6810 = vmatpush1.bf16.msra.mxu0 %v9130_v51  ;;  %3145 = vmatprep.mubr.f32.mxu0 %v8273_v1 }
0x171c   :  { %6812 = vmatprep.subr.bf16.mxu0 %v9135_v15 }
0x171e   :  { %2995 = vmatmul.mubr.f32.vlgmr.msra.gmra.mrb[30].mxu1 %v8273_v1 }
0x171f   :  { %6842 = vmatpush1.bf16.msra.mxu1 %v9132_v2  ;;  %6814 = vmatpush1.bf16.msra.mxu0 %v9141_v33 }
0x1720   :  { %6844 = vmatprep.subr.bf16.mxu1 %v9137_v23  ;;  %6816 = vmatprep.subr.bf16.mxu0 %v9150_v48 }
0x1721   :  { %3216 = vmatprep.mubr.f32.mxu1 %v8273_v1 }
0x1723   :  { %6846 = vmatpush1.bf16.msra.mxu1 %v9143_v19  ;;  %6818 = vmatpush1.bf16.msra.mxu0 %v9156_v44 }
0x1724   :  { %6848 = vmatprep.subr.bf16.mxu1 %v9152_v52  ;;  %6820 = vmatprep.subr.bf16.mxu0 %v9165_v49 }
0x1727   :  { %6850 = vmatpush1.bf16.msra.mxu1 %v9158_v45  ;;  %6822 = vmatpush1.bf16.msra.mxu0 %v9172_v20 }
0x1728   :  { %6852 = vmatprep.subr.bf16.mxu1 %v9167_v53  ;;  %6824 = vmatprep.subr.bf16.mxu0 %v9181_v62 }
0x172b   :  { %6854 = vmatpush1.bf16.msra.mxu1 %v9176_v47  ;;  %6826 = vmatpush1.bf16.msra.mxu0 %v9187_v29 }
0x172c   :  { %6856 = vmatprep.subr.bf16.mxu1 %v9183_v28  ;;  %6828 = vmatprep.subr.bf16.mxu0 %v9196_v34 }
0x172f   :  { %6858 = vmatpush1.bf16.msra.mxu1 %v9191_v42  ;;  %6830 = vmatpush1.bf16.msra.mxu0 %v9202_v3 }
0x1730   :  { %6860 = vmatprep.subr.bf16.mxu1 %v9198_v37  ;;  %6832 = vmatprep.subr.bf16.mxu0 %v9206_v9 }
0x1733   :  { %6862 = vmatpush1.bf16.msra.mxu1 %v9211_v30  ;;  %6834 = vmatpush1.bf16.msra.mxu0 %v9215_v5 }
0x1734   :  { %6864 = vmatprep.subr.bf16.mxu1 %v9219_v26  ;;  %6836 = vmatprep.subr.bf16.mxu0 %v9223_v58 }
0x1737   :  { %6866 = vmatpush1.bf16.msra.mxu1 %v9225_v60  ;;  %6838 = vmatpush1.bf16.msra.mxu0 %v9229_v31 }
0x1738   :  { %6868 = vmatprep.subr.bf16.mxu1 %v9233_v16  ;;  %6872 = vmatprep.subr.bf16.mxu0 %v9114_v63 }
0x173b   :  { %6870 = vmatpush1.bf16.msra.mxu1 %v9238_v17 }
0x173c   :  { %6904 = vmatprep.subr.bf16.mxu1 %v9117_v21 }
0x17ed   :  { %v2925_v56 = vpop.f32.mrb[16].mxu0 }
0x17ee   :  { %v2927_v59 = vpop.f32.mrb[17].mxu0  ;;  %v7447_v18 = vadd.f32 %v2925_v56, %v9297_v12 }
0x17ef   :  { %v7448_v6 = vadd.f32 %v2927_v59, %v9285_v46 }
0x17f0   :  { %v5745_v57 = vmul.f32 -1.442695, %v7447_v18 }
0x17f1   :  { %7771 = vtanh.f32 %v7448_v6  ;;  %v2996_v14 = vpop.f32.mrb[30].mxu1 }
0x17f2   :  { %v2998_v24 = vpop.f32.mrb[31].mxu1  ;;  %v7477_v61 = vadd.f32 %v2996_v14, %v9302_v11 }
0x17f3   :  { %v7478_v35 = vadd.f32 %v2998_v24, %v9290_v38  ;;  %v5746_v24 = vmul.f32 -1.442695, %v7448_v6 }
0x17f4   :  { %v5747_v0 = vmul.f32 -1.442695, %v7477_v61 }
0x17f5   :  { %7773 = vtanh.f32 %v7478_v35 }
0x17f6   :  { %7775 = vpow2.f32 %v5745_v57 }
0x17f7   :  { %7777 = vpow2.f32 %v5747_v0 }
0x17fb   :  { %v7772_v39 = vpop.eup %7771 }
0x17fc   :  { %3037 = vrot.lane.b32.xlu0 %v7772_v39, %s8274_s17  ;;  %v5748_v39 = vmul.f32 -1.442695, %v7478_v35 }
0x17ff   :  { %v7774_v43 = vpop.eup %7773 }
0x1800   :  { %3048 = vrot.lane.b32.xlu1 %v7774_v43, %s8274_s17  ;;  %v7776_v7 = vpop.eup %7775 }
0x1801   :  { %v3015_v32 = vadd.f32 1.0, %v7776_v7  ;;  %v7778_v50 = vpop.eup %7777 }
0x1802   :  { %v3027_v55 = vadd.f32 1.0, %v7778_v50 }
0x1803   :  { %7779 = vrcp.f32 %v3015_v32 }
0x1804   :  { %7781 = vrcp.f32 %v3027_v55 }
0x180d   :  { %v7780_v40 = vpop.eup %7779 }
0x180e   :  { %v7782_v10 = vpop.eup %7781  ;;  %v3035_v8 = vmul.f32 0.0, %v7780_v40 }
0x180f   :  { %v3046_v25 = vmul.f32 0.0, %v7782_v10 }
0x186e   :  { %v3038_v22 = vpop.permute.xlu0 %3037 }
0x186f   :  { %v3040_v13 = vmul.f32 %v7780_v40, %v3038_v22 }
0x1871   :  { %3042 = vrot.lane.b32.xlu0 %v3040_v13, %s8274_s17 }
0x1872   :  { %v3049_v36 = vpop.permute.xlu1 %3048 }
0x1873   :  { %v3051_v54 = vmul.f32 %v7782_v10, %v3049_v36 }
0x1875   :  { %3053 = vrot.lane.b32.xlu1 %v3051_v54, %s8274_s17 }
0x18e3   :  { %v3043_v27 = vpop.permute.xlu0 %3042 }
0x18e4   :  { %v3045_v4 = vadd.f32 %v3043_v27, %v3035_v8 }
0x18e6   :  { %7783 = vtanh.f32 %v3045_v4 }
0x18e7   :  { %v3054_v41 = vpop.permute.xlu1 %3053 }
0x18e8   :  { %v9307_v56 = vadd.f32 %v3054_v41, %v3046_v25 }
0x18ea   :  { %7785 = vtanh.f32 %v9307_v56 }
0x18eb   :  { %7787 = vpow2.f32 %v5746_v24 }
0x18ec   :  { %7789 = vpow2.f32 %v5748_v39 }
0x18f0   :  { %v7784_v59 = vpop.eup %7783 }
0x18f1   :  { %3059 = vrot.lane.b32.xlu0 %v7784_v59, %s8274_s17 }
0x18f4   :  { %v7786_v14 = vpop.eup %7785 }
0x18f5   :  { %3065 = vrot.lane.b32.xlu1 %v7786_v14, %s8274_s17  ;;  %v7788_v43 = vpop.eup %7787 }
0x18f6   :  { %v3016_v18 = vadd.f32 1.0, %v7788_v43  ;;  %v7790_v57 = vpop.eup %7789 }
0x18f7   :  { %v3028_v61 = vadd.f32 1.0, %v7790_v57 }
0x18f8   :  { %7791 = vrcp.f32 %v3016_v18 }
0x18f9   :  { %7793 = vrcp.f32 %v3028_v61 }
0x1902   :  { %v7792_v0 = vpop.eup %7791 }
0x1903   :  { %v7794_v50 = vpop.eup %7793 }
0x1963   :  { %v3060_v7 = vpop.permute.xlu0 %3059 }
0x1964   :  { %v3062_v32 = vmul.f32 %v7792_v0, %v3060_v7 }
0x1966   :  { %3069 = vst.msk [vmem:[#allocation4] sm:$0xff] %vm783_vm1, %v3062_v32 }
0x1967   :  { %v3066_v55 = vpop.permute.xlu1 %3065 }
0x1968   :  { %v3068_v40 = vmul.f32 %v7794_v50, %v3066_v55 }
0x196a   :  { %3070 = vst.msk [vmem:[#allocation5 + $0x38] sm:$0xff] %vm783_vm1, %v3068_v40  ;;  %3072 = vrot.lane.b32.xlu1 %v3068_v40, %s8274_s17 }
0x196e   :  { %3077 = vrot.lane.b32.xlu1 %v3045_v4, %s8274_s17 }
0x19dc   :  { %v3073_v6 = vpop.permute.xlu1 %3072 }
0x19dd   :  { %v3075_v35 = vsel %vm783_vm1, %v3062_v32, %v3073_v6 }
0x19de   :  { %3146 = vmatmul.mubr.f32.vlgmr.msra.gmra.mrb[18].mxu0 %v3075_v35  ;;  %3217 = vmatmul.mubr.f32.vlgmr.msra.gmra.mrb[28].mxu1 %v3075_v35 }
0x19df   :  { %6874 = vmatpush1.bf16.msra.mxu0 %v9130_v51  ;;  %6906 = vmatpush1.bf16.msra.mxu1 %v9132_v2 }
0x19e0   :  { %6876 = vmatprep.subr.bf16.mxu0 %v9135_v15  ;;  %6908 = vmatprep.subr.bf16.mxu1 %v9137_v23  ;;  %v3078_v25 = vpop.permute.xlu1 %3077 }
0x19e1   :  { %3371 = vmatprep.mubr.f32.mxu0 %v8273_v1  ;;  %3442 = vmatprep.mubr.f32.mxu1 %v8273_v1  ;;  %v3080_v41 = vsel %vm783_vm1, %v3078_v25, %v9307_v56 }
0x19e3   :  { %6878 = vmatpush1.bf16.msra.mxu0 %v9141_v33  ;;  %6910 = vmatpush1.bf16.msra.mxu1 %v9143_v19 }
0x19e4   :  { %6880 = vmatprep.subr.bf16.mxu0 %v9150_v48  ;;  %6912 = vmatprep.subr.bf16.mxu1 %v9152_v52 }
0x19e7   :  { %6882 = vmatpush1.bf16.msra.mxu0 %v9156_v44  ;;  %6914 = vmatpush1.bf16.msra.mxu1 %v9158_v45 }
0x19e8   :  { %6884 = vmatprep.subr.bf16.mxu0 %v9165_v49  ;;  %6916 = vmatprep.subr.bf16.mxu1 %v9167_v53 }
0x19eb   :  { %6886 = vmatpush1.bf16.msra.mxu0 %v9172_v20  ;;  %6918 = vmatpush1.bf16.msra.mxu1 %v9176_v47 }
0x19ec   :  { %6888 = vmatprep.subr.bf16.mxu0 %v9181_v62  ;;  %6920 = vmatprep.subr.bf16.mxu1 %v9183_v28 }
0x19ef   :  { %6890 = vmatpush1.bf16.msra.mxu0 %v9187_v29  ;;  %6922 = vmatpush1.bf16.msra.mxu1 %v9191_v42 }
0x19f0   :  { %6892 = vmatprep.subr.bf16.mxu0 %v9196_v34  ;;  %6924 = vmatprep.subr.bf16.mxu1 %v9198_v37 }
0x19f3   :  { %6894 = vmatpush1.bf16.msra.mxu0 %v9202_v3  ;;  %6926 = vmatpush1.bf16.msra.mxu1 %v9211_v30 }
0x19f4   :  { %6896 = vmatprep.subr.bf16.mxu0 %v9206_v9  ;;  %6928 = vmatprep.subr.bf16.mxu1 %v9219_v26 }
0x19f7   :  { %6898 = vmatpush1.bf16.msra.mxu0 %v9215_v5  ;;  %6930 = vmatpush1.bf16.msra.mxu1 %v9225_v60 }
0x19f8   :  { %6900 = vmatprep.subr.bf16.mxu0 %v9223_v58  ;;  %6932 = vmatprep.subr.bf16.mxu1 %v9233_v16 }
0x19fb   :  { %6902 = vmatpush1.bf16.msra.mxu0 %v9229_v31  ;;  %6934 = vmatpush1.bf16.msra.mxu1 %v9238_v17 }
0x19fc   :  { %6936 = vmatprep.subr.bf16.mxu0 %v9114_v63  ;;  %6968 = vmatprep.subr.bf16.mxu1 %v9117_v21 }
0x1ab1   :  { %v3147_v22 = vpop.f32.mrb[18].mxu0  ;;  %v3218_v13 = vpop.f32.mrb[28].mxu1 }
0x1ab2   :  { %v3149_v10 = vpop.f32.mrb[19].mxu0  ;;  %v3220_v36 = vpop.f32.mrb[29].mxu1  ;;  %v7475_v59 = vadd.f32 %v3218_v13, %v9302_v11  ;;  %v7449_v14 = vadd.f32 %v3147_v22, %v9297_v12 }
0x1ab3   :  { %v7476_v54 = vadd.f32 %v3220_v36, %v9290_v38  ;;  %v7450_v8 = vadd.f32 %v3149_v10, %v9285_v46 }
0x1ab4   :  { %v5751_v24 = vmul.f32 -1.442695, %v7475_v59  ;;  %v5749_v39 = vmul.f32 -1.442695, %v7449_v14 }
0x1ab5   :  { %7795 = vtanh.f32 %v7476_v54  ;;  %v5752_v25 = vmul.f32 -1.442695, %v7476_v54  ;;  %v5750_v59 = vmul.f32 -1.442695, %v7450_v8 }
0x1ab6   :  { %7797 = vtanh.f32 %v7450_v8 }
0x1ab7   :  { %7799 = vpow2.f32 %v5751_v24 }
0x1ab8   :  { %7801 = vpow2.f32 %v5749_v39 }
0x1abf   :  { %v7796_v27 = vpop.eup %7795 }
0x1ac0   :  { %3274 = vrot.lane.b32.xlu0 %v7796_v27, %s8274_s17  ;;  %v7798_v4 = vpop.eup %7797 }
0x1ac1   :  { %v7800_v43 = vpop.eup %7799 }
0x1ac2   :  { %v3249_v18 = vadd.f32 1.0, %v7800_v43  ;;  %v7802_v57 = vpop.eup %7801 }
0x1ac3   :  { %v3237_v61 = vadd.f32 1.0, %v7802_v57 }
0x1ac4   :  { %3263 = vrot.lane.b32.xlu0 %v7798_v4, %s8274_s17  ;;  %7803 = vrcp.f32 %v3249_v18 }
0x1ac5   :  { %7805 = vrcp.f32 %v3237_v61 }
0x1ac8   :  { %3258 = vrot.lane.b32.xlu0 %v3080_v41, %s8274_s17 }
0x1ace   :  { %v7804_v0 = vpop.eup %7803 }
0x1acf   :  { %v7806_v56 = vpop.eup %7805  ;;  %v3272_v40 = vmul.f32 %v7804_v0, %v3080_v41 }
0x1b32   :  { %v3275_v7 = vpop.permute.xlu0 %3274 }
0x1b33   :  { %v3277_v32 = vmul.f32 %v7804_v0, %v3275_v7 }
0x1b35   :  { %3279 = vrot.lane.b32.xlu1 %v3277_v32, %s8274_s17 }
0x1b36   :  { %v3264_v50 = vpop.permute.xlu0 %3263 }
0x1b37   :  { %v3266_v55 = vmul.f32 %v7806_v56, %v3264_v50 }
0x1b39   :  { %3268 = vrot.lane.b32.xlu1 %v3266_v55, %s8274_s17 }
0x1b3a   :  { %v3259_v6 = vpop.permute.xlu0 %3258 }
0x1b3b   :  { %v3261_v13 = vmul.f32 %v7806_v56, %v3259_v6 }
0x1ba7   :  { %v3280_v35 = vpop.permute.xlu1 %3279 }
0x1ba8   :  { %v9362_v22 = vadd.f32 %v3280_v35, %v3272_v40 }
0x1baa   :  { %7807 = vtanh.f32 %v9362_v22 }
0x1bab   :  { %v3269_v10 = vpop.permute.xlu1 %3268 }
0x1bac   :  { %v3271_v36 = vadd.f32 %v3269_v10, %v3261_v13 }
0x1bae   :  { %7809 = vtanh.f32 %v3271_v36 }
0x1baf   :  { %7811 = vpow2.f32 %v5752_v25 }
0x1bb0   :  { %7813 = vpow2.f32 %v5750_v59 }
0x1bb4   :  { %v7808_v27 = vpop.eup %7807 }
0x1bb5   :  { %3291 = vrot.lane.b32.xlu0 %v7808_v27, %s8274_s17 }
0x1bb8   :  { %v7810_v4 = vpop.eup %7809 }
0x1bb9   :  { %3285 = vrot.lane.b32.xlu1 %v7810_v4, %s8274_s17  ;;  %v7812_v41 = vpop.eup %7811 }
0x1bba   :  { %v3250_v14 = vadd.f32 1.0, %v7812_v41  ;;  %v7814_v24 = vpop.eup %7813 }
0x1bbb   :  { %v3238_v39 = vadd.f32 1.0, %v7814_v24 }
0x1bbc   :  { %7815 = vrcp.f32 %v3250_v14 }
0x1bbd   :  { %7817 = vrcp.f32 %v3238_v39 }
0x1bc6   :  { %v7816_v43 = vpop.eup %7815 }
0x1bc7   :  { %v7818_v61 = vpop.eup %7817 }
0x1c27   :  { %v3292_v18 = vpop.permute.xlu0 %3291 }
0x1c28   :  { %v3294_v57 = vmul.f32 %v7816_v43, %v3292_v18 }
0x1c2a   :  { %3296 = vst.msk [vmem:[#allocation5 + $0x30] sm:$0xff] %vm783_vm1, %v3294_v57  ;;  %3298 = vrot.lane.b32.xlu0 %v3294_v57, %s8274_s17 }
0x1c2b   :  { %v3286_v0 = vpop.permute.xlu1 %3285 }
0x1c2c   :  { %v3288_v7 = vmul.f32 %v7818_v61, %v3286_v0 }
0x1c2e   :  { %3295 = vst.msk [vmem:[#allocation4 + $0x8] sm:$0xff] %vm783_vm1, %v3288_v7  ;;  %3303 = vrot.lane.b32.xlu0 %v3271_v36, %s8274_s17 }
0x1c9c   :  { %v3299_v54 = vpop.permute.xlu0 %3298 }
0x1c9d   :  { %v3301_v8 = vsel %vm783_vm1, %v3288_v7, %v3299_v54 }
0x1c9e   :  { %3372 = vmatmul.mubr.f32.vlgmr.msra.gmra.mrb[20].mxu0 %v3301_v8  ;;  %3443 = vmatmul.mubr.f32.vlgmr.msra.gmra.mrb[26].mxu1 %v3301_v8 }
0x1c9f   :  { %6938 = vmatpush1.bf16.msra.mxu0 %v9130_v51  ;;  %6970 = vmatpush1.bf16.msra.mxu1 %v9132_v2 }
0x1ca0   :  { %6940 = vmatprep.subr.bf16.mxu0 %v9135_v15  ;;  %6972 = vmatprep.subr.bf16.mxu1 %v9137_v23  ;;  %v3304_v10 = vpop.permute.xlu0 %3303 }
0x1ca1   :  { %3597 = vmatprep.mubr.f32.mxu0 %v8273_v1  ;;  %3668 = vmatprep.mubr.f32.mxu1 %v8273_v1  ;;  %v3306_v36 = vsel %vm783_vm1, %v3304_v10, %v9362_v22 }
0x1ca3   :  { %6942 = vmatpush1.bf16.msra.mxu0 %v9141_v33  ;;  %6974 = vmatpush1.bf16.msra.mxu1 %v9143_v19 }
0x1ca4   :  { %6944 = vmatprep.subr.bf16.mxu0 %v9150_v48  ;;  %6976 = vmatprep.subr.bf16.mxu1 %v9152_v52 }
0x1ca7   :  { %6946 = vmatpush1.bf16.msra.mxu0 %v9156_v44  ;;  %6978 = vmatpush1.bf16.msra.mxu1 %v9158_v45 }
0x1ca8   :  { %6948 = vmatprep.subr.bf16.mxu0 %v9165_v49  ;;  %6980 = vmatprep.subr.bf16.mxu1 %v9167_v53 }
0x1cab   :  { %6950 = vmatpush1.bf16.msra.mxu0 %v9172_v20  ;;  %6982 = vmatpush1.bf16.msra.mxu1 %v9176_v47 }
0x1cac   :  { %6952 = vmatprep.subr.bf16.mxu0 %v9181_v62  ;;  %6984 = vmatprep.subr.bf16.mxu1 %v9183_v28 }
0x1caf   :  { %6954 = vmatpush1.bf16.msra.mxu0 %v9187_v29  ;;  %6986 = vmatpush1.bf16.msra.mxu1 %v9191_v42 }
0x1cb0   :  { %6956 = vmatprep.subr.bf16.mxu0 %v9196_v34  ;;  %6988 = vmatprep.subr.bf16.mxu1 %v9198_v37 }
0x1cb3   :  { %6958 = vmatpush1.bf16.msra.mxu0 %v9202_v3  ;;  %6990 = vmatpush1.bf16.msra.mxu1 %v9211_v30 }
0x1cb4   :  { %6960 = vmatprep.subr.bf16.mxu0 %v9206_v9  ;;  %6992 = vmatprep.subr.bf16.mxu1 %v9219_v26 }
0x1cb7   :  { %6962 = vmatpush1.bf16.msra.mxu0 %v9215_v5  ;;  %6994 = vmatpush1.bf16.msra.mxu1 %v9225_v60 }
0x1cb8   :  { %6964 = vmatprep.subr.bf16.mxu0 %v9223_v58  ;;  %6996 = vmatprep.subr.bf16.mxu1 %v9233_v16 }
0x1cbb   :  { %6966 = vmatpush1.bf16.msra.mxu0 %v9229_v31  ;;  %6998 = vmatpush1.bf16.msra.mxu1 %v9238_v17 }
0x1cbc   :  { %7000 = vmatprep.subr.bf16.mxu0 %v9114_v63  ;;  %7032 = vmatprep.subr.bf16.mxu1 %v9117_v21 }
0x1d71   :  { %v3373_v32 = vpop.f32.mrb[20].mxu0  ;;  %v3444_v56 = vpop.f32.mrb[26].mxu1 }
0x1d72   :  { %v3375_v50 = vpop.f32.mrb[21].mxu0  ;;  %v3446_v55 = vpop.f32.mrb[27].mxu1  ;;  %v7473_v27 = vadd.f32 %v3444_v56, %v9302_v11  ;;  %v7451_v4 = vadd.f32 %v3373_v32, %v9297_v12 }
0x1d73   :  { %v7474_v40 = vadd.f32 %v3446_v55, %v9290_v38  ;;  %v7452_v6 = vadd.f32 %v3375_v50, %v9285_v46 }
0x1d74   :  { %v5755_v25 = vmul.f32 -1.442695, %v7473_v27  ;;  %v5753_v59 = vmul.f32 -1.442695, %v7451_v4 }
0x1d75   :  { %7819 = vtanh.f32 %v7474_v40  ;;  %v5756_v10 = vmul.f32 -1.442695, %v7474_v40  ;;  %v5754_v27 = vmul.f32 -1.442695, %v7452_v6 }
0x1d76   :  { %7821 = vtanh.f32 %v7452_v6 }
0x1d77   :  { %7823 = vpow2.f32 %v5755_v25 }
0x1d78   :  { %7825 = vpow2.f32 %v5753_v59 }
0x1d7f   :  { %v7820_v35 = vpop.eup %7819 }
0x1d80   :  { %3500 = vrot.lane.b32.xlu1 %v7820_v35, %s8274_s17  ;;  %v7822_v13 = vpop.eup %7821 }
0x1d81   :  { %v7824_v41 = vpop.eup %7823 }
0x1d82   :  { %v3475_v14 = vadd.f32 1.0, %v7824_v41  ;;  %v7826_v24 = vpop.eup %7825 }
0x1d83   :  { %v3463_v39 = vadd.f32 1.0, %v7826_v24 }
0x1d84   :  { %3489 = vrot.lane.b32.xlu1 %v7822_v13, %s8274_s17  ;;  %7827 = vrcp.f32 %v3475_v14 }
0x1d85   :  { %7829 = vrcp.f32 %v3463_v39 }
0x1d88   :  { %3484 = vrot.lane.b32.xlu1 %v3306_v36, %s8274_s17 }
0x1d8e   :  { %v7828_v43 = vpop.eup %7827 }
0x1d8f   :  { %v7830_v22 = vpop.eup %7829  ;;  %v3498_v7 = vmul.f32 %v7828_v43, %v3306_v36 }
0x1df2   :  { %v3501_v18 = vpop.permute.xlu1 %3500 }
0x1df3   :  { %v3503_v57 = vmul.f32 %v7828_v43, %v3501_v18 }
0x1df5   :  { %3505 = vrot.lane.b32.xlu0 %v3503_v57, %s8274_s17 }
0x1df6   :  { %v3490_v61 = vpop.permute.xlu1 %3489 }
0x1df7   :  { %v3492_v0 = vmul.f32 %v7830_v22, %v3490_v61 }
0x1df9   :  { %3494 = vrot.lane.b32.xlu0 %v3492_v0, %s8274_s17 }
0x1dfa   :  { %v3485_v54 = vpop.permute.xlu1 %3484 }
0x1dfb   :  { %v3487_v56 = vmul.f32 %v7830_v22, %v3485_v54 }
0x1e67   :  { %v3506_v8 = vpop.permute.xlu0 %3505 }
0x1e68   :  { %v9417_v32 = vadd.f32 %v3506_v8, %v3498_v7 }
0x1e6a   :  { %7831 = vtanh.f32 %v9417_v32 }
0x1e6b   :  { %v3495_v50 = vpop.permute.xlu0 %3494 }
0x1e6c   :  { %v3497_v55 = vadd.f32 %v3495_v50, %v3487_v56 }
0x1e6e   :  { %7833 = vtanh.f32 %v3497_v55 }
0x1e6f   :  { %7835 = vpow2.f32 %v5756_v10 }
0x1e70   :  { %7837 = vpow2.f32 %v5754_v27 }
0x1e74   :  { %v7832_v35 = vpop.eup %7831 }
0x1e75   :  { %3517 = vrot.lane.b32.xlu1 %v7832_v35, %s8274_s17 }
0x1e78   :  { %v7834_v13 = vpop.eup %7833 }
0x1e79   :  { %3511 = vrot.lane.b32.xlu0 %v7834_v13, %s8274_s17  ;;  %v7836_v36 = vpop.eup %7835 }
0x1e7a   :  { %v3476_v4 = vadd.f32 1.0, %v7836_v36  ;;  %v7838_v25 = vpop.eup %7837 }
0x1e7b   :  { %v3464_v59 = vadd.f32 1.0, %v7838_v25 }
0x1e7c   :  { %7839 = vrcp.f32 %v3476_v4 }
0x1e7d   :  { %7841 = vrcp.f32 %v3464_v59 }
0x1e86   :  { %v7840_v41 = vpop.eup %7839 }
0x1e87   :  { %v7842_v39 = vpop.eup %7841 }
0x1ee7   :  { %v3518_v14 = vpop.permute.xlu1 %3517 }
0x1ee8   :  { %v3520_v24 = vmul.f32 %v7840_v41, %v3518_v14 }
0x1eea   :  { %3522 = vst.msk [vmem:[#allocation5 + $0x28] sm:$0xff] %vm783_vm1, %v3520_v24  ;;  %3524 = vrot.lane.b32.xlu1 %v3520_v24, %s8274_s17 }
0x1eeb   :  { %v3512_v43 = vpop.permute.xlu0 %3511 }
0x1eec   :  { %v3514_v18 = vmul.f32 %v7842_v39, %v3512_v43 }
0x1eee   :  { %3521 = vst.msk [vmem:[#allocation4 + $0x10] sm:$0xff] %vm783_vm1, %v3514_v18  ;;  %3529 = vrot.lane.b32.xlu1 %v3497_v55, %s8274_s17 }
0x1f5c   :  { %v3525_v40 = vpop.permute.xlu1 %3524 }
0x1f5d   :  { %v3527_v6 = vsel %vm783_vm1, %v3514_v18, %v3525_v40 }
0x1f5e   :  { %3598 = vmatmul.mubr.f32.vlgmr.msra.gmra.mrb[22].mxu0 %v3527_v6  ;;  %3669 = vmatmul.mubr.f32.vlgmr.msra.gmra.mrb[24].mxu1 %v3527_v6 }
0x1f5f   :  { %7002 = vmatpush1.bf16.msra.mxu0 %v9130_v51  ;;  %7034 = vmatpush1.bf16.msra.mxu1 %v9132_v2 }
0x1f60   :  { %7004 = vmatprep.subr.bf16.mxu0 %v9135_v15  ;;  %7036 = vmatprep.subr.bf16.mxu1 %v9137_v23  ;;  %v3530_v50 = vpop.permute.xlu1 %3529 }
0x1f61   :  { %3823 = vmatprep.mubr.f32.mxu0 %v8273_v1  ;;  %3894 = vmatprep.mubr.f32.mxu1 %v8273_v1  ;;  %v3532_v55 = vsel %vm783_vm1, %v3530_v50, %v9417_v32 }
0x1f63   :  { %7006 = vmatpush1.bf16.msra.mxu0 %v9141_v33  ;;  %7038 = vmatpush1.bf16.msra.mxu1 %v9143_v19 }
0x1f64   :  { %7008 = vmatprep.subr.bf16.mxu0 %v9150_v48  ;;  %7040 = vmatprep.subr.bf16.mxu1 %v9152_v52 }
0x1f67   :  { %7010 = vmatpush1.bf16.msra.mxu0 %v9156_v44  ;;  %7042 = vmatpush1.bf16.msra.mxu1 %v9158_v45 }
0x1f68   :  { %7012 = vmatprep.subr.bf16.mxu0 %v9165_v49  ;;  %7044 = vmatprep.subr.bf16.mxu1 %v9167_v53 }
0x1f6b   :  { %7014 = vmatpush1.bf16.msra.mxu0 %v9172_v20  ;;  %7046 = vmatpush1.bf16.msra.mxu1 %v9176_v47 }
0x1f6c   :  { %7016 = vmatprep.subr.bf16.mxu0 %v9181_v62  ;;  %7048 = vmatprep.subr.bf16.mxu1 %v9183_v28 }
0x1f6f   :  { %7018 = vmatpush1.bf16.msra.mxu0 %v9187_v29  ;;  %7050 = vmatpush1.bf16.msra.mxu1 %v9191_v42 }
0x1f70   :  { %7020 = vmatprep.subr.bf16.mxu0 %v9196_v34  ;;  %7052 = vmatprep.subr.bf16.mxu1 %v9198_v37 }
0x1f73   :  { %7022 = vmatpush1.bf16.msra.mxu0 %v9202_v3  ;;  %7054 = vmatpush1.bf16.msra.mxu1 %v9211_v30 }
0x1f74   :  { %7024 = vmatprep.subr.bf16.mxu0 %v9206_v9  ;;  %7056 = vmatprep.subr.bf16.mxu1 %v9219_v26 }
0x1f77   :  { %7026 = vmatpush1.bf16.msra.mxu0 %v9215_v5  ;;  %7058 = vmatpush1.bf16.msra.mxu1 %v9225_v60 }
0x1f78   :  { %7028 = vmatprep.subr.bf16.mxu0 %v9223_v58  ;;  %7060 = vmatprep.subr.bf16.mxu1 %v9233_v16 }
0x1f7b   :  { %7030 = vmatpush1.bf16.msra.mxu0 %v9229_v31  ;;  %7062 = vmatpush1.bf16.msra.mxu1 %v9238_v17 }
0x1f7c   :  { %7064 = vmatprep.subr.bf16.mxu0 %v9114_v63  ;;  %7096 = vmatprep.subr.bf16.mxu1 %v9117_v21 }
0x2031   :  { %v3599_v57 = vpop.f32.mrb[22].mxu0  ;;  %v3670_v22 = vpop.f32.mrb[24].mxu1 }
0x2032   :  { %v3601_v61 = vpop.f32.mrb[23].mxu0  ;;  %v3672_v0 = vpop.f32.mrb[25].mxu1  ;;  %v7471_v35 = vadd.f32 %v3670_v22, %v9302_v11  ;;  %v7453_v13 = vadd.f32 %v3599_v57, %v9297_v12 }
0x2033   :  { %v7472_v7 = vadd.f32 %v3672_v0, %v9290_v38  ;;  %v7454_v54 = vadd.f32 %v3601_v61, %v9285_v46 }
0x2034   :  { %v5759_v10 = vmul.f32 -1.442695, %v7471_v35  ;;  %v5757_v27 = vmul.f32 -1.442695, %v7453_v13 }
0x2035   :  { %7843 = vtanh.f32 %v7472_v7  ;;  %v5760_v50 = vmul.f32 -1.442695, %v7472_v7  ;;  %v5758_v35 = vmul.f32 -1.442695, %v7454_v54 }
0x2036   :  { %7845 = vtanh.f32 %v7454_v54 }
0x2037   :  { %7847 = vpow2.f32 %v5759_v10 }
0x2038   :  { %7849 = vpow2.f32 %v5757_v27 }
0x203f   :  { %v7844_v8 = vpop.eup %7843 }
0x2040   :  { %3726 = vrot.lane.b32.xlu0 %v7844_v8, %s8274_s17  ;;  %v7846_v56 = vpop.eup %7845 }
0x2041   :  { %v7848_v36 = vpop.eup %7847 }
0x2042   :  { %v3701_v4 = vadd.f32 1.0, %v7848_v36  ;;  %v7850_v25 = vpop.eup %7849 }
0x2043   :  { %v3689_v59 = vadd.f32 1.0, %v7850_v25 }
0x2044   :  { %3715 = vrot.lane.b32.xlu0 %v7846_v56, %s8274_s17  ;;  %7851 = vrcp.f32 %v3701_v4 }
0x2045   :  { %7853 = vrcp.f32 %v3689_v59 }
0x2048   :  { %3710 = vrot.lane.b32.xlu0 %v3532_v55, %s8274_s17 }
0x204e   :  { %v7852_v41 = vpop.eup %7851 }
0x204f   :  { %v7854_v32 = vpop.eup %7853  ;;  %v3724_v18 = vmul.f32 %v7852_v41, %v3532_v55 }
0x20b2   :  { %v3727_v14 = vpop.permute.xlu0 %3726 }
0x20b3   :  { %v3729_v24 = vmul.f32 %v7852_v41, %v3727_v14 }
0x20b5   :  { %3731 = vrot.lane.b32.xlu1 %v3729_v24, %s8274_s17 }
0x20b6   :  { %v3716_v39 = vpop.permute.xlu0 %3715 }
0x20b7   :  { %v3718_v43 = vmul.f32 %v7854_v32, %v3716_v39 }
0x20b9   :  { %3720 = vrot.lane.b32.xlu1 %v3718_v43, %s8274_s17 }
0x20ba   :  { %v3711_v40 = vpop.permute.xlu0 %3710 }
0x20bb   :  { %v3713_v22 = vmul.f32 %v7854_v32, %v3711_v40 }
0x2127   :  { %v3732_v6 = vpop.permute.xlu1 %3731 }
0x2128   :  { %v9472_v57 = vadd.f32 %v3732_v6, %v3724_v18 }
0x212a   :  { %7855 = vtanh.f32 %v9472_v57 }
0x212b   :  { %v3721_v61 = vpop.permute.xlu1 %3720 }
0x212c   :  { %v3723_v0 = vadd.f32 %v3721_v61, %v3713_v22 }
0x212e   :  { %7857 = vtanh.f32 %v3723_v0 }
0x212f   :  { %7859 = vpow2.f32 %v5760_v50 }
0x2130   :  { %7861 = vpow2.f32 %v5758_v35 }
0x2134   :  { %v7856_v8 = vpop.eup %7855 }
0x2135   :  { %3743 = vrot.lane.b32.xlu0 %v7856_v8, %s8274_s17 }
0x2138   :  { %v7858_v56 = vpop.eup %7857 }
0x2139   :  { %3737 = vrot.lane.b32.xlu1 %v7858_v56, %s8274_s17  ;;  %v7860_v55 = vpop.eup %7859 }
0x213a   :  { %v3702_v13 = vadd.f32 1.0, %v7860_v55  ;;  %v7862_v10 = vpop.eup %7861 }
0x213b   :  { %v3690_v27 = vadd.f32 1.0, %v7862_v10 }
0x213c   :  { %7863 = vrcp.f32 %v3702_v13 }
0x213d   :  { %7865 = vrcp.f32 %v3690_v27 }
0x2146   :  { %v7864_v36 = vpop.eup %7863 }
0x2147   :  { %v7866_v59 = vpop.eup %7865 }
0x21a7   :  { %v3744_v4 = vpop.permute.xlu0 %3743 }
0x21a8   :  { %v3746_v25 = vmul.f32 %v7864_v36, %v3744_v4 }
0x21aa   :  { %3748 = vst.msk [vmem:[#allocation5 + $0x20] sm:$0xff] %vm783_vm1, %v3746_v25  ;;  %3750 = vrot.lane.b32.xlu0 %v3746_v25, %s8274_s17 }
0x21ab   :  { %v3738_v41 = vpop.permute.xlu1 %3737 }
0x21ac   :  { %v3740_v14 = vmul.f32 %v7866_v59, %v3738_v41 }
0x21ae   :  { %3747 = vst.msk [vmem:[#allocation4 + $0x18] sm:$0xff] %vm783_vm1, %v3740_v14  ;;  %3755 = vrot.lane.b32.xlu0 %v3723_v0, %s8274_s17 }
0x221c   :  { %v3751_v7 = vpop.permute.xlu0 %3750 }
0x221d   :  { %v3753_v54 = vsel %vm783_vm1, %v3740_v14, %v3751_v7 }
0x221e   :  { %3824 = vmatmul.mubr.f32.vlgmr.msra.gmra.mrb[24].mxu0 %v3753_v54  ;;  %3895 = vmatmul.mubr.f32.vlgmr.msra.gmra.mrb[22].mxu1 %v3753_v54 }
0x221f   :  { %7066 = vmatpush1.bf16.msra.mxu0 %v9130_v51  ;;  %7098 = vmatpush1.bf16.msra.mxu1 %v9132_v2 }
0x2220   :  { %7068 = vmatprep.subr.bf16.mxu0 %v9135_v15  ;;  %7100 = vmatprep.subr.bf16.mxu1 %v9137_v23  ;;  %v3756_v61 = vpop.permute.xlu0 %3755 }
0x2221   :  { %4049 = vmatprep.mubr.f32.mxu0 %v8273_v1  ;;  %4120 = vmatprep.mubr.f32.mxu1 %v8273_v1  ;;  %v3758_v0 = vsel %vm783_vm1, %v3756_v61, %v9472_v57 }
0x2223   :  { %7070 = vmatpush1.bf16.msra.mxu0 %v9141_v33  ;;  %7102 = vmatpush1.bf16.msra.mxu1 %v9143_v19 }
0x2224   :  { %7072 = vmatprep.subr.bf16.mxu0 %v9150_v48  ;;  %7104 = vmatprep.subr.bf16.mxu1 %v9152_v52 }
0x2227   :  { %7074 = vmatpush1.bf16.msra.mxu0 %v9156_v44  ;;  %7106 = vmatpush1.bf16.msra.mxu1 %v9158_v45 }
0x2228   :  { %7076 = vmatprep.subr.bf16.mxu0 %v9165_v49  ;;  %7108 = vmatprep.subr.bf16.mxu1 %v9167_v53 }
0x222b   :  { %7078 = vmatpush1.bf16.msra.mxu0 %v9172_v20  ;;  %7110 = vmatpush1.bf16.msra.mxu1 %v9176_v47 }
0x222c   :  { %7080 = vmatprep.subr.bf16.mxu0 %v9181_v62  ;;  %7112 = vmatprep.subr.bf16.mxu1 %v9183_v28 }
0x222f   :  { %7082 = vmatpush1.bf16.msra.mxu0 %v9187_v29  ;;  %7114 = vmatpush1.bf16.msra.mxu1 %v9191_v42 }
0x2230   :  { %7084 = vmatprep.subr.bf16.mxu0 %v9196_v34  ;;  %7116 = vmatprep.subr.bf16.mxu1 %v9198_v37 }
0x2233   :  { %7086 = vmatpush1.bf16.msra.mxu0 %v9202_v3  ;;  %7118 = vmatpush1.bf16.msra.mxu1 %v9211_v30 }
0x2234   :  { %7088 = vmatprep.subr.bf16.mxu0 %v9206_v9  ;;  %7120 = vmatprep.subr.bf16.mxu1 %v9219_v26 }
0x2237   :  { %7090 = vmatpush1.bf16.msra.mxu0 %v9215_v5  ;;  %7122 = vmatpush1.bf16.msra.mxu1 %v9225_v60 }
0x2238   :  { %7092 = vmatprep.subr.bf16.mxu0 %v9223_v58  ;;  %7124 = vmatprep.subr.bf16.mxu1 %v9233_v16 }
0x223b   :  { %7094 = vmatpush1.bf16.msra.mxu0 %v9229_v31  ;;  %7126 = vmatpush1.bf16.msra.mxu1 %v9238_v17 }
0x223c   :  { %7128 = vmatprep.subr.bf16.mxu0 %v9114_v63  ;;  %7160 = vmatprep.subr.bf16.mxu1 %v9117_v21 }
0x22f1   :  { %v3825_v24 = vpop.f32.mrb[24].mxu0  ;;  %v3896_v32 = vpop.f32.mrb[22].mxu1 }
0x22f2   :  { %v3827_v39 = vpop.f32.mrb[25].mxu0  ;;  %v3898_v43 = vpop.f32.mrb[23].mxu1  ;;  %v7469_v8 = vadd.f32 %v3896_v32, %v9302_v11  ;;  %v7455_v56 = vadd.f32 %v3825_v24, %v9297_v12 }
0x22f3   :  { %v7470_v18 = vadd.f32 %v3898_v43, %v9290_v38  ;;  %v7456_v40 = vadd.f32 %v3827_v39, %v9285_v46 }
0x22f4   :  { %v5763_v50 = vmul.f32 -1.442695, %v7469_v8  ;;  %v5761_v35 = vmul.f32 -1.442695, %v7455_v56 }
0x22f5   :  { %7867 = vtanh.f32 %v7470_v18  ;;  %v5764_v61 = vmul.f32 -1.442695, %v7470_v18  ;;  %v5762_v8 = vmul.f32 -1.442695, %v7456_v40 }
0x22f6   :  { %7869 = vtanh.f32 %v7456_v40 }
0x22f7   :  { %7871 = vpow2.f32 %v5763_v50 }
0x22f8   :  { %7873 = vpow2.f32 %v5761_v35 }
0x22ff   :  { %v7868_v6 = vpop.eup %7867 }
0x2300   :  { %3952 = vrot.lane.b32.xlu1 %v7868_v6, %s8274_s17  ;;  %v7870_v22 = vpop.eup %7869 }
0x2301   :  { %v7872_v55 = vpop.eup %7871 }
0x2302   :  { %v3927_v13 = vadd.f32 1.0, %v7872_v55  ;;  %v7874_v10 = vpop.eup %7873 }
0x2303   :  { %v3915_v27 = vadd.f32 1.0, %v7874_v10 }
0x2304   :  { %3941 = vrot.lane.b32.xlu1 %v7870_v22, %s8274_s17  ;;  %7875 = vrcp.f32 %v3927_v13 }
0x2305   :  { %7877 = vrcp.f32 %v3915_v27 }
0x2308   :  { %3936 = vrot.lane.b32.xlu1 %v3758_v0, %s8274_s17 }
0x230e   :  { %v7876_v36 = vpop.eup %7875 }
0x230f   :  { %v7878_v57 = vpop.eup %7877  ;;  %v3950_v14 = vmul.f32 %v7876_v36, %v3758_v0 }
0x2372   :  { %v3953_v4 = vpop.permute.xlu1 %3952 }
0x2373   :  { %v3955_v25 = vmul.f32 %v7876_v36, %v3953_v4 }
0x2375   :  { %3957 = vrot.lane.b32.xlu0 %v3955_v25, %s8274_s17 }
0x2376   :  { %v3942_v59 = vpop.permute.xlu1 %3941 }
0x2377   :  { %v3944_v41 = vmul.f32 %v7878_v57, %v3942_v59 }
0x2379   :  { %3946 = vrot.lane.b32.xlu0 %v3944_v41, %s8274_s17 }
0x237a   :  { %v3937_v7 = vpop.permute.xlu1 %3936 }
0x237b   :  { %v3939_v32 = vmul.f32 %v7878_v57, %v3937_v7 }
0x23e7   :  { %v3958_v54 = vpop.permute.xlu0 %3957 }
0x23e8   :  { %v9527_v24 = vadd.f32 %v3958_v54, %v3950_v14 }
0x23ea   :  { %7879 = vtanh.f32 %v9527_v24 }
0x23eb   :  { %v3947_v39 = vpop.permute.xlu0 %3946 }
0x23ec   :  { %v3949_v43 = vadd.f32 %v3947_v39, %v3939_v32 }
0x23ee   :  { %7881 = vtanh.f32 %v3949_v43 }
0x23ef   :  { %7883 = vpow2.f32 %v5764_v61 }
0x23f0   :  { %7885 = vpow2.f32 %v5762_v8 }
0x23f4   :  { %v7880_v6 = vpop.eup %7879 }
0x23f5   :  { %3969 = vrot.lane.b32.xlu1 %v7880_v6, %s8274_s17 }
0x23f8   :  { %v7882_v22 = vpop.eup %7881 }
0x23f9   :  { %3963 = vrot.lane.b32.xlu0 %v7882_v22, %s8274_s17  ;;  %v7884_v0 = vpop.eup %7883 }
0x23fa   :  { %v3928_v56 = vadd.f32 1.0, %v7884_v0  ;;  %v7886_v50 = vpop.eup %7885 }
0x23fb   :  { %v3916_v35 = vadd.f32 1.0, %v7886_v50 }
0x23fc   :  { %7887 = vrcp.f32 %v3928_v56 }
0x23fd   :  { %7889 = vrcp.f32 %v3916_v35 }
0x2406   :  { %v7888_v55 = vpop.eup %7887 }
0x2407   :  { %v7890_v27 = vpop.eup %7889 }
0x2467   :  { %v3970_v13 = vpop.permute.xlu1 %3969 }
0x2468   :  { %v3972_v10 = vmul.f32 %v7888_v55, %v3970_v13 }
0x246a   :  { %3974 = vst.msk [vmem:[#allocation5 + $0x18] sm:$0xff] %vm783_vm1, %v3972_v10  ;;  %3976 = vrot.lane.b32.xlu1 %v3972_v10, %s8274_s17 }
0x246b   :  { %v3964_v36 = vpop.permute.xlu0 %3963 }
0x246c   :  { %v3966_v4 = vmul.f32 %v7890_v27, %v3964_v36 }
0x246e   :  { %3973 = vst.msk [vmem:[#allocation4 + $0x20] sm:$0xff] %vm783_vm1, %v3966_v4  ;;  %3981 = vrot.lane.b32.xlu1 %v3949_v43, %s8274_s17 }
0x24dc   :  { %v3977_v18 = vpop.permute.xlu1 %3976 }
0x24dd   :  { %v3979_v40 = vsel %vm783_vm1, %v3966_v4, %v3977_v18 }
0x24de   :  { %4050 = vmatmul.mubr.f32.vlgmr.msra.gmra.mrb[26].mxu0 %v3979_v40  ;;  %4121 = vmatmul.mubr.f32.vlgmr.msra.gmra.mrb[20].mxu1 %v3979_v40 }
0x24df   :  { %7130 = vmatpush1.bf16.msra.mxu0 %v9130_v51  ;;  %7162 = vmatpush1.bf16.msra.mxu1 %v9132_v2 }
0x24e0   :  { %7132 = vmatprep.subr.bf16.mxu0 %v9135_v15  ;;  %7164 = vmatprep.subr.bf16.mxu1 %v9137_v23  ;;  %v3982_v39 = vpop.permute.xlu1 %3981 }
0x24e1   :  { %4275 = vmatprep.mubr.f32.mxu0 %v8273_v1  ;;  %4346 = vmatprep.mubr.f32.mxu1 %v8273_v1 }
0x24e3   :  { %7134 = vmatpush1.bf16.msra.mxu0 %v9141_v33  ;;  %7166 = vmatpush1.bf16.msra.mxu1 %v9143_v19 }
0x24e4   :  { %7136 = vmatprep.subr.bf16.mxu0 %v9150_v48  ;;  %7168 = vmatprep.subr.bf16.mxu1 %v9152_v52 }
0x24e7   :  { %7138 = vmatpush1.bf16.msra.mxu0 %v9156_v44  ;;  %7170 = vmatpush1.bf16.msra.mxu1 %v9158_v45 }
0x24e8   :  { %7140 = vmatprep.subr.bf16.mxu0 %v9165_v49  ;;  %7172 = vmatprep.subr.bf16.mxu1 %v9167_v53 }
0x24eb   :  { %7142 = vmatpush1.bf16.msra.mxu0 %v9172_v20  ;;  %7174 = vmatpush1.bf16.msra.mxu1 %v9176_v47 }
0x24ec   :  { %7144 = vmatprep.subr.bf16.mxu0 %v9181_v62  ;;  %7176 = vmatprep.subr.bf16.mxu1 %v9183_v28 }
0x24ef   :  { %7146 = vmatpush1.bf16.msra.mxu0 %v9187_v29  ;;  %7178 = vmatpush1.bf16.msra.mxu1 %v9191_v42 }
0x24f0   :  { %7148 = vmatprep.subr.bf16.mxu0 %v9196_v34  ;;  %7180 = vmatprep.subr.bf16.mxu1 %v9198_v37 }
0x24f3   :  { %7150 = vmatpush1.bf16.msra.mxu0 %v9202_v3  ;;  %7182 = vmatpush1.bf16.msra.mxu1 %v9211_v30 }
0x24f4   :  { %7152 = vmatprep.subr.bf16.mxu0 %v9206_v9  ;;  %7184 = vmatprep.subr.bf16.mxu1 %v9219_v26 }
0x24f7   :  { %7154 = vmatpush1.bf16.msra.mxu0 %v9215_v5  ;;  %7186 = vmatpush1.bf16.msra.mxu1 %v9225_v60 }
0x24f8   :  { %7156 = vmatprep.subr.bf16.mxu0 %v9223_v58  ;;  %7188 = vmatprep.subr.bf16.mxu1 %v9233_v16 }
0x24fb   :  { %7158 = vmatpush1.bf16.msra.mxu0 %v9229_v31  ;;  %7190 = vmatpush1.bf16.msra.mxu1 %v9238_v17 }
0x24fc   :  { %7192 = vmatprep.subr.bf16.mxu0 %v9114_v63  ;;  %7224 = vmatprep.subr.bf16.mxu1 %v9117_v21  ;;  %v3984_v63 = vsel %vm783_vm1, %v3982_v39, %v9527_v24 }
0x25b1   :  { %v4051_v25 = vpop.f32.mrb[26].mxu0  ;;  %v4122_v57 = vpop.f32.mrb[20].mxu1 }
0x25b2   :  { %v4053_v59 = vpop.f32.mrb[27].mxu0  ;;  %v4124_v41 = vpop.f32.mrb[21].mxu1  ;;  %v7467_v21 = vadd.f32 %v4122_v57, %v9302_v11  ;;  %v7457_v43 = vadd.f32 %v4051_v25, %v9297_v12 }
0x25b3   :  { %v7468_v14 = vadd.f32 %v4124_v41, %v9290_v38  ;;  %v7458_v7 = vadd.f32 %v4053_v59, %v9285_v46 }
0x25b4   :  { %v5767_v6 = vmul.f32 -1.442695, %v7467_v21  ;;  %v5765_v22 = vmul.f32 -1.442695, %v7457_v43 }
0x25b5   :  { %7891 = vtanh.f32 %v7468_v14 }
0x25b6   :  { %7893 = vtanh.f32 %v7458_v7 }
0x25b7   :  { %7895 = vpow2.f32 %v5767_v6 }
0x25b8   :  { %7897 = vpow2.f32 %v5765_v22 }
0x25bf   :  { %v7892_v54 = vpop.eup %7891 }
0x25c0   :  { %4178 = vrot.lane.b32.xlu0 %v7892_v54, %s8274_s17  ;;  %v7894_v32 = vpop.eup %7893  ;;  %v5768_v54 = vmul.f32 -1.442695, %v7468_v14 }
0x25c1   :  { %v7896_v61 = vpop.eup %7895 }
0x25c2   :  { %v4153_v8 = vadd.f32 1.0, %v7896_v61  ;;  %v7898_v0 = vpop.eup %7897 }
0x25c3   :  { %v4141_v56 = vadd.f32 1.0, %v7898_v0 }
0x25c4   :  { %4167 = vrot.lane.b32.xlu0 %v7894_v32, %s8274_s17  ;;  %7899 = vrcp.f32 %v4153_v8  ;;  %v5766_v32 = vmul.f32 -1.442695, %v7458_v7 }
0x25c5   :  { %7901 = vrcp.f32 %v4141_v56 }
0x25c8   :  { %4162 = vrot.lane.b32.xlu0 %v3984_v63, %s8274_s17 }
0x25ce   :  { %v7900_v50 = vpop.eup %7899 }
0x25cf   :  { %v7902_v24 = vpop.eup %7901  ;;  %v4176_v27 = vmul.f32 %v7900_v50, %v3984_v63 }
0x2632   :  { %v4179_v35 = vpop.permute.xlu0 %4178 }
0x2633   :  { %v4181_v55 = vmul.f32 %v7900_v50, %v4179_v35 }
0x2635   :  { %4183 = vrot.lane.b32.xlu1 %v4181_v55, %s8274_s17 }
0x2636   :  { %v4168_v13 = vpop.permute.xlu0 %4167 }
0x2637   :  { %v4170_v10 = vmul.f32 %v7902_v24, %v4168_v13 }
0x2639   :  { %4172 = vrot.lane.b32.xlu1 %v4170_v10, %s8274_s17 }
0x263a   :  { %v4163_v36 = vpop.permute.xlu0 %4162 }
0x263b   :  { %v4165_v40 = vmul.f32 %v7902_v24, %v4163_v36 }
0x26a7   :  { %v4184_v4 = vpop.permute.xlu1 %4183 }
0x26a8   :  { %v9582_v18 = vadd.f32 %v4184_v4, %v4176_v27 }
0x26aa   :  { %7903 = vtanh.f32 %v9582_v18 }
0x26ab   :  { %v4173_v25 = vpop.permute.xlu1 %4172 }
0x26ac   :  { %v4175_v57 = vadd.f32 %v4173_v25, %v4165_v40 }
0x26ae   :  { %7905 = vtanh.f32 %v4175_v57 }
0x26af   :  { %7907 = vpow2.f32 %v5768_v54 }
0x26b0   :  { %7909 = vpow2.f32 %v5766_v32 }
0x26b4   :  { %v7904_v59 = vpop.eup %7903 }
0x26b5   :  { %4195 = vrot.lane.b32.xlu0 %v7904_v59, %s8274_s17 }
0x26b8   :  { %v7906_v41 = vpop.eup %7905 }
0x26b9   :  { %4189 = vrot.lane.b32.xlu1 %v7906_v41, %s8274_s17  ;;  %v7908_v39 = vpop.eup %7907 }
0x26ba   :  { %v4154_v63 = vadd.f32 1.0, %v7908_v39  ;;  %v7910_v21 = vpop.eup %7909 }
0x26bb   :  { %v4142_v43 = vadd.f32 1.0, %v7910_v21 }
0x26bc   :  { %7911 = vrcp.f32 %v4154_v63 }
0x26bd   :  { %7913 = vrcp.f32 %v4142_v43 }
0x26c6   :  { %v7912_v6 = vpop.eup %7911 }
0x26c7   :  { %v7914_v8 = vpop.eup %7913 }
0x2727   :  { %v4196_v22 = vpop.permute.xlu0 %4195 }
0x2728   :  { %v4198_v61 = vmul.f32 %v7912_v6, %v4196_v22 }
0x272a   :  { %4200 = vst.msk [vmem:[#allocation5 + $0x10] sm:$0xff] %vm783_vm1, %v4198_v61  ;;  %4202 = vrot.lane.b32.xlu0 %v4198_v61, %s8274_s17 }
0x272b   :  { %v4190_v0 = vpop.permute.xlu1 %4189 }
0x272c   :  { %v4192_v56 = vmul.f32 %v7914_v8, %v4190_v0 }
0x272e   :  { %4199 = vst.msk [vmem:[#allocation4 + $0x28] sm:$0xff] %vm783_vm1, %v4192_v56  ;;  %4207 = vrot.lane.b32.xlu0 %v4175_v57, %s8274_s17 }
0x279c   :  { %v4203_v14 = vpop.permute.xlu0 %4202 }
0x279d   :  { %v4205_v7 = vsel %vm783_vm1, %v4192_v56, %v4203_v14 }
0x279e   :  { %4276 = vmatmul.mubr.f32.vlgmr.msra.gmra.mrb[28].mxu0 %v4205_v7  ;;  %4347 = vmatmul.mubr.f32.vlgmr.msra.gmra.mrb[18].mxu1 %v4205_v7 }
0x279f   :  { %7194 = vmatpush1.bf16.msra.mxu0 %v9130_v51  ;;  %7226 = vmatpush1.bf16.msra.mxu1 %v9132_v2 }
0x27a0   :  { %7196 = vmatprep.subr.bf16.mxu0 %v9135_v15  ;;  %7228 = vmatprep.subr.bf16.mxu1 %v9137_v23 }
0x27a1   :  { %4501 = vmatprep.mubr.f32.mxu0 %v8273_v1  ;;  %4572 = vmatprep.mubr.f32.mxu1 %v8273_v1 }
0x27a3   :  { %7198 = vmatpush1.bf16.msra.mxu0 %v9141_v33  ;;  %7230 = vmatpush1.bf16.msra.mxu1 %v9143_v19 }
0x27a4   :  { %7200 = vmatprep.subr.bf16.mxu0 %v9150_v48  ;;  %7232 = vmatprep.subr.bf16.mxu1 %v9152_v52  ;;  %v4208_v52 = vpop.permute.xlu0 %4207 }
0x27a7   :  { %7202 = vmatpush1.bf16.msra.mxu0 %v9156_v44  ;;  %7234 = vmatpush1.bf16.msra.mxu1 %v9158_v45  ;;  %v4210_v44 = vsel %vm783_vm1, %v4208_v52, %v9582_v18 }
0x27a8   :  { %7204 = vmatprep.subr.bf16.mxu0 %v9165_v49  ;;  %7236 = vmatprep.subr.bf16.mxu1 %v9167_v53 }
0x27ab   :  { %7206 = vmatpush1.bf16.msra.mxu0 %v9172_v20  ;;  %7238 = vmatpush1.bf16.msra.mxu1 %v9176_v47 }
0x27ac   :  { %7208 = vmatprep.subr.bf16.mxu0 %v9181_v62  ;;  %7240 = vmatprep.subr.bf16.mxu1 %v9183_v28 }
0x27af   :  { %7210 = vmatpush1.bf16.msra.mxu0 %v9187_v29  ;;  %7242 = vmatpush1.bf16.msra.mxu1 %v9191_v42 }
0x27b0   :  { %7212 = vmatprep.subr.bf16.mxu0 %v9196_v34  ;;  %7244 = vmatprep.subr.bf16.mxu1 %v9198_v37 }
0x27b3   :  { %7214 = vmatpush1.bf16.msra.mxu0 %v9202_v3  ;;  %7246 = vmatpush1.bf16.msra.mxu1 %v9211_v30 }
0x27b4   :  { %7216 = vmatprep.subr.bf16.mxu0 %v9206_v9  ;;  %7248 = vmatprep.subr.bf16.mxu1 %v9219_v26 }
0x27b7   :  { %7218 = vmatpush1.bf16.msra.mxu0 %v9215_v5  ;;  %7250 = vmatpush1.bf16.msra.mxu1 %v9225_v60 }
0x27b8   :  { %7220 = vmatprep.subr.bf16.mxu0 %v9223_v58  ;;  %7252 = vmatprep.subr.bf16.mxu1 %v9233_v16 }
0x27bb   :  { %7222 = vmatpush1.bf16.msra.mxu0 %v9229_v31  ;;  %7254 = vmatpush1.bf16.msra.mxu1 %v9238_v17 }
0x2871   :  { %v4277_v1 = vpop.f32.mrb[28].mxu0  ;;  %v4348_v51 = vpop.f32.mrb[18].mxu1 }
0x2872   :  { %v4279_v2 = vpop.f32.mrb[29].mxu0  ;;  %v4350_v15 = vpop.f32.mrb[19].mxu1  ;;  %v7465_v45 = vadd.f32 %v4348_v51, %v9302_v11  ;;  %v7459_v49 = vadd.f32 %v4277_v1, %v9297_v12 }
0x2873   :  { %v7466_v23 = vadd.f32 %v4350_v15, %v9290_v38  ;;  %v7460_v33 = vadd.f32 %v4279_v2, %v9285_v46 }
0x2874   :  { %v5771_v53 = vmul.f32 -1.442695, %v7465_v45  ;;  %v5769_v20 = vmul.f32 -1.442695, %v7459_v49 }
0x2875   :  { %7915 = vtanh.f32 %v7466_v23  ;;  %v5772_v55 = vmul.f32 -1.442695, %v7466_v23  ;;  %v5770_v24 = vmul.f32 -1.442695, %v7460_v33 }
0x2876   :  { %7917 = vtanh.f32 %v7460_v33 }
0x2877   :  { %7919 = vpow2.f32 %v5771_v53  ;;  %v4663_v53 = vld [vmem:[#allocation5 + $0x10] sm:$0xff] }
0x2878   :  { %7921 = vpow2.f32 %v5769_v20 }
0x287f   :  { %v7916_v19 = vpop.eup %7915 }
0x2880   :  { %4404 = vrot.lane.b32.xlu1 %v7916_v19, %s8274_s17  ;;  %v7918_v48 = vpop.eup %7917 }
0x2881   :  { %v7920_v47 = vpop.eup %7919 }
0x2882   :  { %v4379_v62 = vadd.f32 1.0, %v7920_v47  ;;  %v7922_v28 = vpop.eup %7921  ;;  %v4665_v47 = vld [vmem:[#allocation5 + $0x20] sm:$0xff] }
0x2883   :  { %v4367_v29 = vadd.f32 1.0, %v7922_v28  ;;  %v4709_v28 = vld [vmem:[%s9949_s8] sm:$0xff] }
0x2884   :  { %4393 = vrot.lane.b32.xlu1 %v7918_v48, %s8274_s17  ;;  %7923 = vrcp.f32 %v4379_v62  ;;  %v4666_v62 = vld [vmem:[#allocation5 + $0x28] sm:$0xff] }
0x2885   :  { %7925 = vrcp.f32 %v4367_v29  ;;  %v4710_v29 = vld [vmem:[%s9949_s8 + $0x8] sm:$0xff] }
0x2888   :  { %4388 = vrot.lane.b32.xlu1 %v4210_v44, %s8274_s17 }
0x288e   :  { %v7924_v42 = vpop.eup %7923 }
0x288f   :  { %v7926_v3 = vpop.eup %7925  ;;  %v4402_v5 = vmul.f32 %v7924_v42, %v4210_v44 }
0x28f2   :  { %v4405_v34 = vpop.permute.xlu1 %4404 }
0x28f3   :  { %v4407_v37 = vmul.f32 %v7924_v42, %v4405_v34  ;;  %v4837_v42 = vld [vmem:[%s9951_s10] sm:$0xff]  ;;  %v7255_v34 = vpack.c.bf16 %v4710_v29, %v4709_v28 }
0x28f5   :  { %4409 = vrot.lane.b32.xlu0 %v4407_v37, %s8274_s17  ;;  %v4838_v37 = vld [vmem:[%s9951_s10 + $0x8] sm:$0xff]  ;;  %7256 = vmatprep.subr.bf16.mxu0 %v7255_v34 }
0x28f6   :  { %v4394_v9 = vpop.permute.xlu1 %4393 }
0x28f7   :  { %v4396_v30 = vmul.f32 %v7926_v3, %v4394_v9  ;;  %v4712_v9 = vld [vmem:[%s9949_s8 + $0x18] sm:$0xff] }
0x28f9   :  { %4398 = vrot.lane.b32.xlu0 %v4396_v30, %s8274_s17  ;;  %v7569_v30 = vpack.i.bf16 %v4666_v62, %v4665_v47 }
0x28fa   :  { %v4389_v26 = vpop.permute.xlu1 %4388 }
0x28fb   :  { %v4391_v31 = vmul.f32 %v7926_v3, %v4389_v26  ;;  %v4711_v3 = vld [vmem:[%s9949_s8 + $0x10] sm:$0xff] }
0x28fc   :  { %v7259_v26 = vpack.c.bf16 %v4712_v9, %v4711_v3  ;;  %v4668_v3 = vld [vmem:[#allocation5 + $0x38] sm:$0xff] }
0x2967   :  { %v4410_v58 = vpop.permute.xlu0 %4409 }
0x2968   :  { %v4412_v60 = vadd.f32 %v4410_v58, %v4402_v5  ;;  %v7287_v5 = vpack.c.bf16 %v4838_v37, %v4837_v42  ;;  %v4839_v58 = vld [vmem:[%s9951_s10 + $0x10] sm:$0xff] }
0x2969   :  { %v4667_v37 = vld [vmem:[#allocation5 + $0x30] sm:$0xff] }
0x296a   :  { %7927 = vtanh.f32 %v4412_v60  ;;  %7288 = vmatprep.subr.bf16.mxu1 %v7287_v5  ;;  %v7574_v9 = vpack.i.bf16 %v4668_v3, %v4667_v37 }
0x296b   :  { %v4399_v16 = vpop.permute.xlu0 %4398 }
0x296c   :  { %v4401_v17 = vadd.f32 %v4399_v16, %v4391_v31  ;;  %v4713_v31 = vld [vmem:[%s9949_s8 + $0x20] sm:$0xff] }
0x296e   :  { %7929 = vtanh.f32 %v4401_v17 }
0x296f   :  { %7931 = vpow2.f32 %v5772_v55 }
0x2970   :  { %7933 = vpow2.f32 %v5770_v24  ;;  %v4715_v24 = vld [vmem:[%s9949_s8 + $0x30] sm:$0xff] }
0x2974   :  { %v7928_v50 = vpop.eup %7927 }
0x2975   :  { %4421 = vrot.lane.b32.xlu1 %v7928_v50, %s8274_s17  ;;  %v4841_v50 = vld [vmem:[%s9951_s10 + $0x20] sm:$0xff] }
0x2978   :  { %v7930_v35 = vpop.eup %7929 }
0x2979   :  { %4415 = vrot.lane.b32.xlu0 %v7930_v35, %s8274_s17  ;;  %v7932_v13 = vpop.eup %7931  ;;  %v4842_v35 = vld [vmem:[%s9951_s10 + $0x28] sm:$0xff] }
0x297a   :  { %v4380_v10 = vadd.f32 1.0, %v7932_v13  ;;  %v7934_v27 = vpop.eup %7933  ;;  %v4716_v13 = vld [vmem:[%s9949_s8 + $0x38] sm:$0xff] }
0x297b   :  { %v4368_v36 = vadd.f32 1.0, %v7934_v27  ;;  %v4843_v27 = vld [vmem:[%s9951_s10 + $0x30] sm:$0xff] }
0x297c   :  { %7935 = vrcp.f32 %v4380_v10  ;;  %v7295_v10 = vpack.c.bf16 %v4842_v35, %v4841_v50 }
0x297d   :  { %7937 = vrcp.f32 %v4368_v36  ;;  %v4844_v36 = vld [vmem:[%s9951_s10 + $0x38] sm:$0xff] }
0x2986   :  { %v7936_v4 = vpop.eup %7935 }
0x2987   :  { %v7938_v25 = vpop.eup %7937 }
0x29e7   :  { %v4422_v18 = vpop.permute.xlu1 %4421 }
0x29e8   :  { %v4424_v40 = vmul.f32 %v7936_v4, %v4422_v18  ;;  %v7267_v4 = vpack.c.bf16 %v4716_v13, %v4715_v24  ;;  %v4717_v18 = vld [vmem:[%s9949_s8 + $0x40] sm:$0xff]  ;;  %v4654_v24 = vld [vmem:[#allocation4 + $0x8] sm:$0xff] }
0x29ea   :  { %4426 = vst.msk [vmem:[#allocation5 + $0x8] sm:$0xff] %vm783_vm1, %v4424_v40  ;;  %4428 = vrot.lane.b32.xlu1 %v4424_v40, %s8274_s17  ;;  %v4718_v40 = vld [vmem:[%s9949_s8 + $0x48] sm:$0xff] }
0x29eb   :  { %v4416_v57 = vpop.permute.xlu0 %4415 }
0x29ec   :  { %v4418_v59 = vmul.f32 %v7938_v25, %v4416_v57  ;;  %v7299_v25 = vpack.c.bf16 %v4844_v36, %v4843_v27  ;;  %v4845_v57 = vld [vmem:[%s9951_s10 + $0x40] sm:$0xff]  ;;  %v4655_v36 = vld [vmem:[#allocation4 + $0x10] sm:$0xff] }
0x29ee   :  { %4425 = vst.msk [vmem:[#allocation4 + $0x30] sm:$0xff] %vm783_vm1, %v4418_v59  ;;  %4433 = vrot.lane.b32.xlu1 %v4401_v17, %s8274_s17  ;;  %v4714_v17 = vld [vmem:[%s9949_s8 + $0x28] sm:$0xff] }
0x29ef   :  { %v7263_v55 = vpack.c.bf16 %v4714_v17, %v4713_v31  ;;  %v4968_v31 = vld [vmem:[#allocation17 + $0x18] sm:$0xff] }
0x29f1   :  { %v4662_v29 = vld [vmem:[#allocation5 + $0x8] sm:$0xff] }
0x2a5c   :  { %v4429_v41 = vpop.permute.xlu1 %4428 }
0x2a5d   :  { %v4431_v54 = vsel %vm783_vm1, %v4418_v59, %v4429_v41  ;;  %v4846_v59 = vld [vmem:[%s9951_s10 + $0x48] sm:$0xff]  ;;  %v7271_v41 = vpack.c.bf16 %v4718_v40, %v4717_v18  ;;  %v4970_v18 = vld [vmem:[#allocation17 + $0x28] sm:$0xff] }
0x2a5e   :  { %4502 = vmatmul.mubr.f32.vlgmr.msra.gmra.mrb[30].mxu0 %v4431_v54  ;;  %4573 = vmatmul.mubr.f32.vlgmr.msra.gmra.mrb[16].mxu1 %v4431_v54  ;;  %v4719_v54 = vld [vmem:[%s9949_s8 + $0x50] sm:$0xff] }
0x2a5f   :  { %7258 = vmatpush3.bf16.msra.mxu0 %v7255_v34  ;;  %7290 = vmatpush3.bf16.msra.mxu1 %v7287_v5 }
0x2a60   :  { %v4434_v61 = vpop.permute.xlu1 %4433  ;;  %7260 = vmatprep.subr.bf16.mxu0 %v7259_v26 }
0x2a61   :  { %v4436_v8 = vsel %vm783_vm1, %v4434_v61, %v4412_v60  ;;  %v4840_v60 = vld [vmem:[%s9951_s10 + $0x18] sm:$0xff]  ;;  %v4721_v61 = vld [vmem:[%s9949_s8 + $0x60] sm:$0xff] }
0x2a62   :  { %v7291_v16 = vpack.c.bf16 %v4840_v60, %v4839_v58  ;;  %v4967_v60 = vld [vmem:[#allocation17 + $0x10] sm:$0xff] }
0x2a63   :  { %7262 = vmatpush3.bf16.msra.mxu0 %v7259_v26 }
0x2a64   :  { %7292 = vmatprep.subr.bf16.mxu1 %v7291_v16  ;;  %7264 = vmatprep.subr.bf16.mxu0 %v7263_v55 }
0x2a65   :  { %7294 = vmatpush3.bf16.msra.mxu1 %v7291_v16 }
0x2a66   :  { %7296 = vmatprep.subr.bf16.mxu1 %v7295_v10 }
0x2a67   :  { %7266 = vmatpush3.bf16.msra.mxu0 %v7263_v55  ;;  %v4653_v55 = vld [vmem:[#allocation4] sm:$0xff] }
0x2a68   :  { %7268 = vmatprep.subr.bf16.mxu0 %v7267_v4 }
0x2a69   :  { %7298 = vmatpush3.bf16.msra.mxu1 %v7295_v10 }
0x2a6a   :  { %7300 = vmatprep.subr.bf16.mxu1 %v7299_v25 }
0x2a6b   :  { %7270 = vmatpush3.bf16.msra.mxu0 %v7267_v4  ;;  %v4969_v4 = vld [vmem:[#allocation17 + $0x20] sm:$0xff] }
0x2a6c   :  { %7272 = vmatprep.subr.bf16.mxu0 %v7271_v41 }
0x2a6d   :  { %7302 = vmatpush3.bf16.msra.mxu1 %v7299_v25 }
0x2a6f   :  { %7274 = vmatpush3.bf16.msra.mxu0 %v7271_v41 }
0x2b31   :  { %v4503_v32 = vpop.f32.mrb[30].mxu0  ;;  %v4574_v39 = vpop.f32.mrb[16].mxu1 }
0x2b32   :  { %v4505_v63 = vpop.f32.mrb[31].mxu0  ;;  %v4576_v21 = vpop.f32.mrb[17].mxu1  ;;  %v7461_v2 = vadd.f32 %v4503_v32, %v9297_v12  ;;  %v4664_v12 = vld [vmem:[#allocation5 + $0x18] sm:$0xff] }
0x2b33   :  { %v9643_v43 = vadd.f32 %v4505_v63, %v9285_v46  ;;  %v9647_v6 = vadd.f32 %v4576_v21, %v9290_v38  ;;  %v7463_v46 = vadd.f32 %v4574_v39, %v9302_v11  ;;  %v7564_v20 = vpack.i.bf16 %v4664_v12, %v4663_v53  ;;  %v4720_v32 = vld [vmem:[%s9949_s8 + $0x58] sm:$0xff]  ;;  %v4847_v63 = vld [vmem:[%s9951_s10 + $0x50] sm:$0xff] }
0x2b34   :  { %v5773_v15 = vmul.f32 -1.442695, %v7461_v2  ;;  %v7303_v39 = vpack.c.bf16 %v4846_v59, %v4845_v57  ;;  %v4848_v21 = vld [vmem:[%s9951_s10 + $0x58] sm:$0xff] }
0x2b35   :  { %7939 = vtanh.f32 %v9643_v43  ;;  %v5775_v56 = vmul.f32 -1.442695, %v7463_v46  ;;  %v4849_v46 = vld [vmem:[%s9951_s10 + $0x60] sm:$0xff]  ;;  %v5776_v2 = vmul.f32 -1.442695, %v9647_v6  ;;  %v4966_v53 = vld [vmem:[#allocation17 + $0x8] sm:$0xff] }
0x2b36   :  { %7941 = vtanh.f32 %v9647_v6  ;;  %7304 = vmatprep.subr.bf16.mxu1 %v7303_v39 }
0x2b37   :  { %7943 = vpow2.f32 %v5775_v56  ;;  %v4850_v56 = vld [vmem:[%s9951_s10 + $0x68] sm:$0xff]  ;;  %7306 = vmatpush3.bf16.msra.mxu1 %v7303_v39 }
0x2b3f   :  { %v7940_v22 = vpop.eup %7939 }
0x2b40   :  { %4619 = vrot.lane.b32.xlu1 %v7940_v22, %s8274_s17  ;;  %v7942_v0 = vpop.eup %7941  ;;  %v7275_v22 = vpack.c.bf16 %v4720_v32, %v4719_v54  ;;  %v4656_v54 = vld [vmem:[#allocation4 + $0x18] sm:$0xff]  ;;  %v7327_v32 = vpack.c.bf16 %v4970_v18, %v4969_v4 }
0x2b41   :  { %4630 = vrot.lane.b32.xlu0 %v7942_v0, %s8274_s17  ;;  %v7944_v14 = vpop.eup %7943  ;;  %v7307_v0 = vpack.c.bf16 %v4848_v21, %v4847_v63  ;;  %v4657_v21 = vld [vmem:[#allocation4 + $0x20] sm:$0xff] }
0x2b42   :  { %v4605_v38 = vadd.f32 1.0, %v7944_v14  ;;  %7276 = vmatprep.subr.bf16.mxu0 %v7275_v22 }
0x2b43   :  { %7308 = vmatprep.subr.bf16.mxu1 %v7307_v0  ;;  %7278 = vmatpush3.bf16.msra.mxu0 %v7275_v22  ;;  %v4971_v22 = vld [vmem:[#allocation17 + $0x30] sm:$0xff] }
0x2b44   :  { %4614 = vrot.lane.b32.xlu1 %v4436_v8, %s8274_s17  ;;  %7945 = vrcp.f32 %v4605_v38  ;;  %v4723_v38 = vld [vmem:[%s9949_s8 + $0x70] sm:$0xff]  ;;  %7310 = vmatpush3.bf16.msra.mxu1 %v7307_v0 }
0x2b45   :  { %7947 = vpow2.f32 %v5773_v15 }
0x2b4e   :  { %v7946_v7 = vpop.eup %7945 }
0x2b4f   :  { %v7948_v23 = vpop.eup %7947  ;;  %v4628_v33 = vmul.f32 %v7946_v7, %v4436_v8  ;;  %v4722_v8 = vld [vmem:[%s9949_s8 + $0x68] sm:$0xff] }
0x2b50   :  { %v4593_v48 = vadd.f32 1.0, %v7948_v23  ;;  %v7279_v14 = vpack.c.bf16 %v4722_v8, %v4721_v61  ;;  %v4972_v61 = vld [vmem:[#allocation17 + $0x38] sm:$0xff] }
0x2b52   :  { %7280 = vmatprep.subr.bf16.mxu0 %v7279_v14 }
0x2b53   :  { %7282 = vmatpush3.bf16.msra.mxu0 %v7279_v14  ;;  %v4659_v14 = vld [vmem:[#allocation4 + $0x30] sm:$0xff] }
0x2bb2   :  { %v4620_v44 = vpop.permute.xlu1 %4619 }
0x2bb3   :  { %v4631_v1 = vpop.permute.xlu0 %4630 }
0x2bb4   :  { %v4633_v51 = vmul.f32 %v7946_v7, %v4631_v1  ;;  %v4724_v7 = vld [vmem:[%s9949_s8 + $0x78] sm:$0xff]  ;;  %v7311_v1 = vpack.c.bf16 %v4850_v56, %v4849_v46  ;;  %v4658_v56 = vld [vmem:[#allocation4 + $0x28] sm:$0xff] }
0x2bb6   :  { %4635 = vrot.lane.b32.xlu0 %v4633_v51, %s8274_s17  ;;  %v7283_v51 = vpack.c.bf16 %v4724_v7, %v4723_v38  ;;  %7312 = vmatprep.subr.bf16.mxu1 %v7311_v1  ;;  %v7331_v38 = vpack.c.bf16 %v4972_v61, %v4971_v22 }
0x2bb7   :  { %7314 = vmatpush3.bf16.msra.mxu1 %v7311_v1 }
0x2bb8   :  { %7284 = vmatprep.subr.bf16.mxu0 %v7283_v51 }
0x2bb9   :  { %7286 = vmatpush3.bf16.msra.mxu0 %v7283_v51  ;;  %v4973_v51 = vld [vmem:[#allocation17 + $0x40] sm:$0xff] }
0x2c28   :  { %v4636_v19 = vpop.permute.xlu0 %4635 }
0x2c29   :  { %v4638_v52 = vadd.f32 %v4636_v19, %v4628_v33  ;;  %v4851_v33 = vld [vmem:[%s9951_s10 + $0x70] sm:$0xff]  ;;  %v4852_v19 = vld [vmem:[%s9951_s10 + $0x78] sm:$0xff] }
0x2c2b   :  { %7949 = vtanh.f32 %v4638_v52 }
0x2c2c   :  { %7951 = vrcp.f32 %v4593_v48  ;;  %v7315_v48 = vpack.c.bf16 %v4852_v19, %v4851_v33 }
0x2c2d   :  { %7953 = vpow2.f32 %v5776_v2  ;;  %v4974_v2 = vld [vmem:[#allocation17 + $0x48] sm:$0xff] }
0x2c2e   :  { %7316 = vmatprep.subr.bf16.mxu1 %v7315_v48  ;;  %v7335_v33 = vpack.c.bf16 %v4974_v2, %v4973_v51 }
0x2c2f   :  { %7318 = vmatpush3.bf16.msra.mxu1 %v7315_v48  ;;  %v4975_v48 = vld [vmem:[#allocation17 + $0x50] sm:$0xff] }
0x2c35   :  { %v7950_v11 = vpop.eup %7949 }
0x2c36   :  { %4647 = vrot.lane.b32.xlu0 %v7950_v11, %s8274_s17  ;;  %v9658_v45 = vpop.eup %7951  ;;  %v4615_v11 = vpop.permute.xlu1 %4614 }
0x2c37   :  { %v4622_v49 = vmul.f32 %v9658_v45, %v4620_v44  ;;  %v7954_v15 = vpop.eup %7953 }
0x2c38   :  { %v4606_v23 = vadd.f32 1.0, %v7954_v15 }
0x2c3a   :  { %4624 = vrot.lane.b32.xlu0 %v4622_v49, %s8274_s17  ;;  %7955 = vrcp.f32 %v4606_v23  ;;  %v4965_v49 = vld [vmem:[#allocation17] sm:$0xff] }
0x2c3b   :  { %v7319_v12 = vpack.c.bf16 %v4966_v53, %v4965_v49  ;;  %v4978_v49 = vld [vmem:[#allocation17 + $0x68] sm:$0xff] }
0x2c3d   :  { %7320 = vmatprep.subr.bf16.mxu0 %v7319_v12 }
0x2c3e   :  { %7565 = vrot.lane.b32.xlu0 %v7564_v20, %s8274_s17  ;;  %v4617_v20 = vmul.f32 %v9658_v45, %v4615_v11  ;;  %v5774_v45 = vmul.f32 -1.442695, %v9643_v43  ;;  %v7323_v43 = vpack.c.bf16 %v4968_v31, %v4967_v60 }
0x2c42   :  { %7570 = vrot.lane.b32.xlu0 %v7569_v30, %s8274_s17 }
0x2c44   :  { %v7956_v52 = vpop.eup %7955 }
0x2ca8   :  { %v4648_v44 = vpop.permute.xlu0 %4647 }
0x2ca9   :  { %v4650_v6 = vmul.f32 %v7956_v52, %v4648_v44  ;;  %v4976_v52 = vld [vmem:[#allocation17 + $0x58] sm:$0xff]  ;;  %v4977_v44 = vld [vmem:[#allocation17 + $0x60] sm:$0xff] }
0x2caa   :  { %v7339_v11 = vpack.c.bf16 %v4976_v52, %v4975_v48  ;;  %v7343_v53 = vpack.c.bf16 %v4978_v49, %v4977_v44 }
0x2cab   :  { %4652 = vst.msk [vmem:[#allocation5] sm:$0xff] %vm783_vm1, %v4650_v6  ;;  %v4979_v6 = vld [vmem:[#allocation17 + $0x70] sm:$0xff] }
0x2cac   :  { %v4625_v47 = vpop.permute.xlu0 %4624 }
0x2cad   :  { %v4627_v62 = vadd.f32 %v4625_v47, %v4617_v20  ;;  %v5778_v47 = vld [vmem:[%s9952_s11] ss:$0 sm:$0xff] }
0x2caf   :  { %7957 = vtanh.f32 %v4627_v62  ;;  %v9787_v62 = vld [vmem:[%s9950_s9] ss:$0 sm:$0xff] }
0x2cb0   :  { %7959 = vpow2.f32 %v5774_v45  ;;  %v7566_v26 = vpop.permute.xlu0 %7565 }
0x2cb1   :  { %v7567_v16 = vunpack.i.l.bf16 %v7566_v26  ;;  %v7568_v27 = vunpack.i.h.bf16 %v7566_v26 }
0x2cb2   :  { %v4661_v28 = vld [vmem:[#allocation5] sm:$0xff] }
0x2cb3   :  { %v7559_v42 = vpack.i.bf16 %v4662_v29, %v4661_v28  ;;  %v4703_v59 = vsel %vm783_vm1, %v4655_v36, %v7567_v16  ;;  %v4704_v63 = vsel %vm783_vm1, %v4656_v54, %v7568_v27 }
0x2cb4   :  { %v7571_v35 = vpop.permute.xlu0 %7570 }
0x2cb5   :  { %7560 = vrot.lane.b32.xlu1 %v7559_v42, %s8274_s17  ;;  %v7572_v25 = vunpack.i.l.bf16 %v7571_v35  ;;  %v7573_v39 = vunpack.i.h.bf16 %v7571_v35 }
0x2cb7   :  { %v4705_v0 = vsel %vm783_vm1, %v4657_v21, %v7572_v25  ;;  %v4706_v7 = vsel %vm783_vm1, %v4658_v56, %v7573_v39 }
0x2cb9   :  { %v7958_v34 = vpop.eup %7957 }
0x2cba   :  { %4641 = vrot.lane.b32.xlu1 %v7958_v34, %s8274_s17  ;;  %v7960_v30 = vpop.eup %7959 }
0x2cbb   :  { %v4594_v5 = vadd.f32 1.0, %v7960_v30 }
0x2cbd   :  { %7961 = vrcp.f32 %v4594_v5 }
0x2cbe   :  { %7575 = vrot.lane.b32.xlu1 %v7574_v9, %s8274_s17 }
0x2cc7   :  { %v7962_v40 = vpop.eup %7961 }
0x2d27   :  { %v7561_v58 = vpop.permute.xlu1 %7560 }
0x2d28   :  { %v7563_v17 = vunpack.i.h.bf16 %v7561_v58  ;;  %v7562_v50 = vunpack.i.l.bf16 %v7561_v58 }
0x2d2a   :  { %v4701_v13 = vsel %vm783_vm1, %v4653_v55, %v7562_v50  ;;  %v9769_v10 = vsel %vm783_vm1, %v4654_v24, %v7563_v17 }
0x2d2b   :  { %5959 = vmatprep.mubr.f32.mxu0 %v4701_v13  ;;  %6003 = vmatprep.mubr.f32.mxu1 %v4701_v13 }
0x2d2c   :  { %v4642_v57 = vpop.permute.xlu1 %4641  ;;  %5960 = vmatmul.mubr.f32.vlgmr.msra.gmra.mrb[32].mxu0 %v9769_v10  ;;  %6004 = vmatmul.mubr.f32.vlgmr.msra.gmra.mrb[32].mxu1 %v9769_v10 }
0x2d2d   :  { %v4644_v41 = vmul.f32 %v7962_v40, %v4642_v57  ;;  %7322 = vmatpush3.bf16.msra.mxu0 %v7319_v12  ;;  %5962 = vmatprep.mubr.f32.mxu0 %v4703_v59  ;;  %v4980_v12 = vld [vmem:[#allocation17 + $0x78] sm:$0xff]  ;;  %v5779_v57 = vld [vmem:[#allocation18] ss:$0 sm:$0xff] }
0x2d2e   :  { %6006 = vmatprep.mubr.f32.mxu1 %v4703_v59  ;;  %7324 = vmatprep.subr.bf16.mxu0 %v7323_v43  ;;  %v7347_v20 = vpack.c.bf16 %v4980_v12, %v4979_v6 }
0x2d2f   :  { %4651 = vst.msk [vmem:[#allocation4 + $0x38] sm:$0xff] %vm783_vm1, %v4644_v41 }
0x2d30   :  { %v7576_v8 = vpop.permute.xlu1 %7575  ;;  %5963 = vmatmul.mubr.f32.gmra.mrb[34].mxu0 %v4704_v63  ;;  %6007 = vmatmul.mubr.f32.gmra.mrb[34].mxu1 %v4704_v63 }
0x2d31   :  { %v7577_v46 = vunpack.i.l.bf16 %v7576_v8  ;;  %7326 = vmatpush3.bf16.msra.mxu0 %v7323_v43  ;;  %5965 = vmatprep.mubr.f32.mxu0 %v4705_v0  ;;  %v7578_v15 = vunpack.i.h.bf16 %v7576_v8 }
0x2d32   :  { %6009 = vmatprep.mubr.f32.mxu1 %v4705_v0  ;;  %7328 = vmatprep.subr.bf16.mxu0 %v7327_v32 }
0x2d33   :  { %v4707_v1 = vsel %vm783_vm1, %v4659_v14, %v7577_v46 }
0x2d34   :  { %5966 = vmatmul.mubr.f32.gmra.mrb[36].mxu0 %v4706_v7  ;;  %6010 = vmatmul.mubr.f32.gmra.mrb[36].mxu1 %v4706_v7 }
0x2d35   :  { %7330 = vmatpush3.bf16.msra.mxu0 %v7327_v32  ;;  %5968 = vmatprep.mubr.f32.mxu0 %v4707_v1 }
0x2d36   :  { %6012 = vmatprep.mubr.f32.mxu1 %v4707_v1  ;;  %7332 = vmatprep.subr.bf16.mxu0 %v7331_v38  ;;  %v4660_v23 = vld [vmem:[#allocation4 + $0x38] sm:$0xff] }
0x2d37   :  { %v4708_v19 = vsel %vm783_vm1, %v4660_v23, %v7578_v15 }
0x2d38   :  { %5969 = vmatmul.mubr.f32.gmra.mrb[38].mxu0 %v4708_v19  ;;  %6013 = vmatmul.mubr.f32.gmra.mrb[38].mxu1 %v4708_v19 }
0x2d39   :  { %7334 = vmatpush3.bf16.msra.mxu0 %v7331_v38  ;;  %6047 = vmatprep.mubr.f32.mxu0 %v4701_v13 }
0x2d3a   :  { %7336 = vmatprep.subr.bf16.mxu0 %v7335_v33 }
0x2d3d   :  { %7338 = vmatpush3.bf16.msra.mxu0 %v7335_v33 }
0x2d3e   :  { %7340 = vmatprep.subr.bf16.mxu0 %v7339_v11 }
0x2d41   :  { %7342 = vmatpush3.bf16.msra.mxu0 %v7339_v11 }
0x2d42   :  { %7344 = vmatprep.subr.bf16.mxu0 %v7343_v53 }
0x2d45   :  { %7346 = vmatpush3.bf16.msra.mxu0 %v7343_v53  ;;  %v5207_v53 = vld [vmem:[#allocation7 + $0x8] sm:$0xff] }
0x2d46   :  { %7348 = vmatprep.subr.bf16.mxu0 %v7347_v20 }
0x2d49   :  { %7350 = vmatpush3.bf16.msra.mxu0 %v7347_v20  ;;  %v5206_v20 = vld [vmem:[#allocation7] sm:$0xff] }
0x2d4c   :  { %6048 = vmatmul.mubr.f32.vlgmr.msra.gmra.mrb[40].mxu0 %v9769_v10 }
0x2d4d   :  { %6050 = vmatprep.mubr.f32.mxu0 %v4703_v59 }
0x2d50   :  { %6051 = vmatmul.mubr.f32.gmra.mrb[42].mxu0 %v4704_v63 }
0x2d51   :  { %6053 = vmatprep.mubr.f32.mxu0 %v4705_v0 }
0x2d54   :  { %6054 = vmatmul.mubr.f32.gmra.mrb[44].mxu0 %v4706_v7 }
0x2d55   :  { %6056 = vmatprep.mubr.f32.mxu0 %v4707_v1 }
0x2d58   :  { %6057 = vmatmul.mubr.f32.gmra.mrb[46].mxu0 %v4708_v19 }
0x2dff   :  { %v5961_v28 = vpop.f32.mrb[32].mxu0  ;;  %v6005_v29 = vpop.f32.mrb[32].mxu1 }
0x2e00   :  { %v4932_v42 = vadd.f32 %v6005_v29, %v5778_v47  ;;  %v4798_v34 = vpop.f32.mrb[33].mxu0  ;;  %v4926_v37 = vpop.f32.mrb[33].mxu1  ;;  %v4804_v39 = vadd.f32 %v5961_v28, %v9787_v62 }
0x2e01   :  { %v4799_v3 = vadd.f32 %v9787_v62, %v4798_v34  ;;  %v4927_v9 = vadd.f32 %v5778_v47, %v4926_v37 }
0x2e03   :  { %v7351_v45 = vpack.c.bf16 %v4932_v42, %v4927_v9  ;;  %v5964_v30 = vpop.f32.mrb[34].mxu0  ;;  %v6008_v5 = vpop.f32.mrb[34].mxu1  ;;  %6075 = vmatprep.mubr.f32.mxu1 %v4799_v3  ;;  %v5208_v3 = vld [vmem:[#allocation7 + $0x10] sm:$0xff] }
0x2e04   :  { %v4942_v26 = vadd.f32 %v6008_v5, %v5778_v47  ;;  %v4808_v58 = vpop.f32.mrb[35].mxu0  ;;  %v4936_v60 = vpop.f32.mrb[35].mxu1  ;;  %v4814_v46 = vadd.f32 %v5964_v30, %v9787_v62 }
0x2e05   :  { %v4937_v31 = vadd.f32 %v5778_v47, %v4936_v60  ;;  %7352 = vmatprep.subr.bf16.mxu1 %v7351_v45  ;;  %v4809_v22 = vadd.f32 %v9787_v62, %v4808_v58 }
0x2e06   :  { %7354 = vmatpush3.bf16.xpose.msra.mxu1 %v7351_v45  ;;  %v5209_v45 = vld [vmem:[#allocation7 + $0x18] sm:$0xff] }
0x2e07   :  { %v7355_v16 = vpack.c.bf16 %v4942_v26, %v4937_v31  ;;  %v5967_v17 = vpop.f32.mrb[36].mxu0  ;;  %v6011_v50 = vpop.f32.mrb[36].mxu1  ;;  %v5210_v31 = vld [vmem:[#allocation7 + $0x20] sm:$0xff] }
0x2e08   :  { %v4952_v35 = vadd.f32 %v6011_v50, %v5778_v47  ;;  %v4818_v55 = vpop.f32.mrb[37].mxu0  ;;  %v4946_v24 = vpop.f32.mrb[37].mxu1  ;;  %v4824_v2 = vadd.f32 %v5967_v17, %v9787_v62 }
0x2e09   :  { %v4947_v13 = vadd.f32 %v5778_v47, %v4946_v24  ;;  %7356 = vmatprep.subr.bf16.mxu1 %v7355_v16  ;;  %v4819_v38 = vadd.f32 %v9787_v62, %v4818_v55 }
0x2e0b   :  { %v7359_v10 = vpack.c.bf16 %v4952_v35, %v4947_v13  ;;  %v5970_v43 = vpop.f32.mrb[38].mxu0  ;;  %v6014_v27 = vpop.f32.mrb[38].mxu1  ;;  %v5211_v35 = vld [vmem:[#allocation7 + $0x28] sm:$0xff] }
0x2e0c   :  { %v4962_v36 = vadd.f32 %v6014_v27, %v5778_v47  ;;  %v4828_v4 = vpop.f32.mrb[39].mxu0  ;;  %v4956_v18 = vpop.f32.mrb[39].mxu1  ;;  %v4834_v11 = vadd.f32 %v5970_v43, %v9787_v62 }
0x2e0d   :  { %v4957_v40 = vadd.f32 %v5778_v47, %v4956_v18  ;;  %v4829_v33 = vadd.f32 %v9787_v62, %v4828_v4 }
0x2e0e   :  { %7358 = vmatpush3.bf16.xpose.msra.mxu1 %v7355_v16 }
0x2e0f   :  { %v7363_v25 = vpack.c.bf16 %v4962_v36, %v4957_v40  ;;  %7360 = vmatprep.subr.bf16.mxu1 %v7359_v10  ;;  %v5213_v40 = vld [vmem:[#allocation7 + $0x38] sm:$0xff] }
0x2e16   :  { %7362 = vmatpush3.bf16.xpose.msra.mxu1 %v7359_v10  ;;  %v5212_v10 = vld [vmem:[#allocation7 + $0x30] sm:$0xff] }
0x2e17   :  { %7364 = vmatprep.subr.bf16.mxu1 %v7363_v25 }
0x2e1e   :  { %7366 = vmatpush3.bf16.xpose.msra.mxu1 %v7363_v25 }
0x2e1f   :  { %v6049_v59 = vpop.f32.mrb[40].mxu0 }
0x2e20   :  { %v5060_v41 = vadd.f32 %v6049_v59, %v5779_v57  ;;  %v5054_v54 = vpop.f32.mrb[41].mxu0 }
0x2e21   :  { %v5055_v32 = vadd.f32 %v5779_v57, %v5054_v54 }
0x2e23   :  { %v7367_v63 = vpack.c.bf16 %v5060_v41, %v5055_v32  ;;  %v6052_v21 = vpop.f32.mrb[42].mxu0 }
0x2e24   :  { %v5070_v61 = vadd.f32 %v6052_v21, %v5779_v57  ;;  %v5064_v8 = vpop.f32.mrb[43].mxu0 }
0x2e25   :  { %v5065_v0 = vadd.f32 %v5779_v57, %v5064_v8  ;;  %7368 = vmatprep.subr.bf16.mxu0 %v7367_v63  ;;  %6076 = vmatmul.mubr.f32.vlgmr.msra.gmra.mrb[40].mxu1 %v4804_v39 }
0x2e26   :  { %7370 = vmatpush3.bf16.msra.mxu0 %v7367_v63  ;;  %6078 = vmatprep.mubr.f32.mxu1 %v4809_v22 }
0x2e27   :  { %v7371_v56 = vpack.c.bf16 %v5070_v61, %v5065_v0  ;;  %v6055_v14 = vpop.f32.mrb[44].mxu0 }
0x2e28   :  { %v5080_v7 = vadd.f32 %v6055_v14, %v5779_v57  ;;  %v5074_v1 = vpop.f32.mrb[45].mxu0 }
0x2e29   :  { %v5075_v51 = vadd.f32 %v5779_v57, %v5074_v1  ;;  %7372 = vmatprep.subr.bf16.mxu0 %v7371_v56  ;;  %6079 = vmatmul.mubr.f32.gmra.mrb[42].mxu1 %v4814_v46 }
0x2e2a   :  { %7374 = vmatpush3.bf16.msra.mxu0 %v7371_v56  ;;  %6081 = vmatprep.mubr.f32.mxu1 %v4819_v38 }
0x2e2b   :  { %v7375_v15 = vpack.c.bf16 %v5080_v7, %v5075_v51  ;;  %v6058_v23 = vpop.f32.mrb[46].mxu0 }
0x2e2c   :  { %v5090_v19 = vadd.f32 %v6058_v23, %v5779_v57  ;;  %v5084_v48 = vpop.f32.mrb[47].mxu0 }
0x2e2d   :  { %v5085_v52 = vadd.f32 %v5779_v57, %v5084_v48  ;;  %7376 = vmatprep.subr.bf16.mxu0 %v7375_v15  ;;  %6082 = vmatmul.mubr.f32.gmra.mrb[44].mxu1 %v4824_v2 }
0x2e2e   :  { %7378 = vmatpush3.bf16.msra.mxu0 %v7375_v15  ;;  %6084 = vmatprep.mubr.f32.mxu1 %v4829_v33 }
0x2e2f   :  { %v7379_v44 = vpack.c.bf16 %v5090_v19, %v5085_v52 }
0x2e31   :  { %7380 = vmatprep.subr.bf16.mxu0 %v7379_v44  ;;  %6085 = vmatmul.mubr.f32.gmra.mrb[46].mxu1 %v4834_v11 }
0x2e32   :  { %7382 = vmatpush3.bf16.msra.mxu0 %v7379_v44 }
0x2ef8   :  { %v6077_v49 = vpop.f32.mrb[40].mxu1 }
0x2ef9   :  { %v5199_v6 = vmul.f32 0.088388346, %v6077_v49  ;;  %v5159_v12 = vpop.f32.mrb[41].mxu1 }
0x2efa   :  { %v5198_v47 = vmul.f32 0.088388346, %v5159_v12 }
0x2efb   :  { %v5215_v28 = vadd.f32 %v5207_v53, %v5199_v6 }
0x2efc   :  { %v5214_v29 = vadd.f32 %v5206_v20, %v5198_v47  ;;  %v6080_v42 = vpop.f32.mrb[42].mxu1 }
0x2efd   :  { %v5201_v34 = vmul.f32 0.088388346, %v6080_v42  ;;  %v5169_v37 = vpop.f32.mrb[43].mxu1  ;;  %v5225_v9 = vsel %vm783_vm1, %v5215_v28, -inf }
0x2efe   :  { %v5200_v62 = vmul.f32 0.088388346, %v5169_v37  ;;  %5226 = vmax.xlane.f32.xlu1 %v5225_v9  ;;  %v5222_v30 = vsel %vm783_vm1, %v5214_v29, -inf }
0x2eff   :  { %5223 = vmax.xlane.f32.xlu0 %v5222_v30  ;;  %v5217_v58 = vadd.f32 %v5209_v45, %v5201_v34 }
0x2f00   :  { %v5216_v5 = vadd.f32 %v5208_v3, %v5200_v62  ;;  %v6083_v26 = vpop.f32.mrb[44].mxu1 }
0x2f01   :  { %v5179_v60 = vpop.f32.mrb[45].mxu1  ;;  %v5203_v16 = vmul.f32 0.088388346, %v6083_v26  ;;  %v5231_v43 = vsel %vm783_vm1, %v5217_v58, -inf  ;;  %v5440_v26 = vld [vmem:[%s9955_s14 + $0x8] sm:$0xff] }
0x2f02   :  { %v5202_v17 = vmul.f32 0.088388346, %v5179_v60  ;;  %v5228_v50 = vsel %vm783_vm1, %v5216_v5, -inf }
0x2f03   :  { %5229 = vmax.xlane.f32.xlu0 %v5228_v50  ;;  %v5219_v27 = vadd.f32 %v5211_v35, %v5203_v16  ;;  %v5444_v50 = vld [vmem:[%s9955_s14 + $0x28] sm:$0xff] }
0x2f04   :  { %v5218_v55 = vadd.f32 %v5210_v31, %v5202_v17  ;;  %v6086_v24 = vpop.f32.mrb[46].mxu1  ;;  %v5442_v31 = vld [vmem:[%s9955_s14 + $0x18] sm:$0xff]  ;;  %v5443_v17 = vld [vmem:[%s9955_s14 + $0x20] sm:$0xff] }
0x2f05   :  { %v5189_v13 = vpop.f32.mrb[47].mxu1  ;;  %v5205_v36 = vmul.f32 0.088388346, %v6086_v24  ;;  %v5237_v59 = vsel %vm783_vm1, %v5219_v27, -inf  ;;  %v7391_v35 = vpack.c.bf16 %v5444_v50, %v5443_v17  ;;  %v5446_v24 = vld [vmem:[%s9955_s14 + $0x38] sm:$0xff] }
0x2f06   :  { %v5204_v4 = vmul.f32 0.088388346, %v5189_v13  ;;  %v5234_v18 = vsel %vm783_vm1, %v5218_v55, -inf }
0x2f07   :  { %5232 = vmax.xlane.f32.xlu0 %v5231_v43  ;;  %5235 = vmax.xlane.f32.xlu1 %v5234_v18  ;;  %v5221_v57 = vadd.f32 %v5213_v40, %v5205_v36  ;;  %v5448_v43 = vld [vmem:[%s9955_s14 + $0x48] sm:$0xff]  ;;  %v5449_v36 = vld [vmem:[%s9955_s14 + $0x50] sm:$0xff]  ;;  %v5451_v40 = vld [vmem:[%s9955_s14 + $0x60] sm:$0xff] }
0x2f08   :  { %v5220_v25 = vadd.f32 %v5212_v10, %v5204_v4  ;;  %v5447_v10 = vld [vmem:[%s9955_s14 + $0x40] sm:$0xff]  ;;  %v5450_v4 = vld [vmem:[%s9955_s14 + $0x58] sm:$0xff] }
0x2f09   :  { %v5243_v54 = vsel %vm783_vm1, %v5221_v57, -inf  ;;  %v7403_v18 = vpack.c.bf16 %v5450_v4, %v5449_v36 }
0x2f0a   :  { %v5240_v41 = vsel %vm783_vm1, %v5220_v25, -inf }
0x2f0b   :  { %5238 = vmax.xlane.f32.xlu0 %v5237_v59  ;;  %5241 = vmax.xlane.f32.xlu1 %v5240_v41  ;;  %v5453_v59 = vld [vmem:[%s9955_s14 + $0x70] sm:$0xff]  ;;  %v5454_v41 = vld [vmem:[%s9955_s14 + $0x78] sm:$0xff] }
0x2f0f   :  { %5244 = vmax.xlane.f32.xlu0 %v5243_v54  ;;  %v7411_v54 = vpack.c.bf16 %v5454_v41, %v5453_v59 }
0x2f8b   :  { %v5227_v32 = vpop.xlane.xlu1 %5226 }
0x2f8c   :  { %v5247_v39 = vsub.f32 %v5215_v28, %v5227_v32  ;;  %v5224_v63 = vpop.xlane.xlu0 %5223 }
0x2f8d   :  { %v5246_v21 = vsub.f32 %v5214_v29, %v5224_v63 }
0x2f8e   :  { %v5256_v22 = vmul.f32 1.442695, %v5247_v39 }
0x2f8f   :  { %v5254_v61 = vmul.f32 1.442695, %v5246_v21 }
0x2f90   :  { %7963 = vpow2.f32 %v5256_v22  ;;  %v5230_v8 = vpop.xlane.xlu0 %5229 }
0x2f91   :  { %7965 = vpow2.f32 %v5254_v61  ;;  %v5248_v0 = vsub.f32 %v5216_v5, %v5230_v8  ;;  %v5439_v5 = vld [vmem:[%s9955_s14] sm:$0xff] }
0x2f92   :  { %v7383_v60 = vpack.c.bf16 %v5440_v26, %v5439_v5 }
0x2f93   :  { %v5258_v46 = vmul.f32 1.442695, %v5248_v0 }
0x2f94   :  { %v5233_v56 = vpop.xlane.xlu0 %5232  ;;  %v5236_v14 = vpop.xlane.xlu1 %5235  ;;  %7384 = vmatprep.subr.bf16.mxu1 %v7383_v60 }
0x2f95   :  { %7967 = vpow2.f32 %v5258_v46  ;;  %v5249_v38 = vsub.f32 %v5217_v58, %v5233_v56  ;;  %v5250_v7 = vsub.f32 %v5218_v55, %v5236_v14  ;;  %v5441_v58 = vld [vmem:[%s9955_s14 + $0x10] sm:$0xff]  ;;  %7386 = vmatpush3.bf16.msra.mxu1 %v7383_v60 }
0x2f96   :  { %v7387_v16 = vpack.c.bf16 %v5442_v31, %v5441_v58  ;;  %v5445_v55 = vld [vmem:[%s9955_s14 + $0x30] sm:$0xff] }
0x2f97   :  { %v5260_v1 = vmul.f32 1.442695, %v5249_v38  ;;  %v5262_v51 = vmul.f32 1.442695, %v5250_v7  ;;  %v7395_v13 = vpack.c.bf16 %v5446_v24, %v5445_v55 }
0x2f98   :  { %v5239_v2 = vpop.xlane.xlu0 %5238  ;;  %v5242_v15 = vpop.xlane.xlu1 %5241  ;;  %7388 = vmatprep.subr.bf16.mxu1 %v7387_v16 }
0x2f99   :  { %7969 = vpow2.f32 %v5260_v1  ;;  %v5251_v23 = vsub.f32 %v5219_v27, %v5239_v2  ;;  %v5252_v33 = vsub.f32 %v5220_v25, %v5242_v15  ;;  %7390 = vmatpush3.bf16.msra.mxu1 %v7387_v16  ;;  %v7399_v27 = vpack.c.bf16 %v5448_v43, %v5447_v10  ;;  %v5452_v25 = vld [vmem:[%s9955_s14 + $0x68] sm:$0xff] }
0x2f9a   :  { %v9805_v19 = vpop.eup %7963  ;;  %7971 = vpow2.f32 %v5262_v51  ;;  %7392 = vmatprep.subr.bf16.mxu1 %v7391_v35 }
0x2f9b   :  { %v9807_v48 = vpop.eup %7965  ;;  %v5264_v52 = vmul.f32 1.442695, %v5251_v23  ;;  %v5266_v11 = vmul.f32 1.442695, %v5252_v33  ;;  %v5273_v44 = vsel %vm783_vm1, %v9805_v19, 0.0 }
0x2f9c   :  { %5274 = vadd.xlane.f32.xlu0 %v5273_v44  ;;  %v5245_v49 = vpop.xlane.xlu0 %5244  ;;  %v5270_v53 = vsel %vm783_vm1, %v9807_v48, 0.0 }
0x2f9d   :  { %7973 = vpow2.f32 %v5264_v52  ;;  %v5253_v6 = vsub.f32 %v5221_v57, %v5245_v49  ;;  %5271 = vadd.xlane.f32.xlu1 %v5270_v53  ;;  %7394 = vmatpush3.bf16.msra.mxu1 %v7391_v35  ;;  %v7407_v57 = vpack.c.bf16 %v5452_v25, %v5451_v40 }
0x2f9e   :  { %7975 = vpow2.f32 %v5266_v11  ;;  %7396 = vmatprep.subr.bf16.mxu1 %v7395_v13 }
0x2f9f   :  { %v9813_v12 = vpop.eup %7967  ;;  %v5268_v20 = vmul.f32 1.442695, %v5253_v6 }
0x2fa0   :  { %v5276_v47 = vsel %vm783_vm1, %v9813_v12, 0.0 }
0x2fa1   :  { %7977 = vpow2.f32 %v5268_v20  ;;  %5277 = vadd.xlane.f32.xlu1 %v5276_v47  ;;  %7398 = vmatpush3.bf16.msra.mxu1 %v7395_v13 }
0x2fa2   :  { %7400 = vmatprep.subr.bf16.mxu1 %v7399_v27 }
0x2fa3   :  { %v9817_v28 = vpop.eup %7969 }
0x2fa4   :  { %v9819_v29 = vpop.eup %7971  ;;  %v5279_v42 = vsel %vm783_vm1, %v9817_v28, 0.0 }
0x2fa5   :  { %5280 = vadd.xlane.f32.xlu0 %v5279_v42  ;;  %v5282_v34 = vsel %vm783_vm1, %v9819_v29, 0.0  ;;  %7402 = vmatpush3.bf16.msra.mxu1 %v7399_v27  ;;  %v5788_v42 = vld [vmem:[#allocation20] ss:$0 sm:$0xff] }
0x2fa6   :  { %5283 = vadd.xlane.f32.xlu1 %v5282_v34  ;;  %7404 = vmatprep.subr.bf16.mxu1 %v7403_v18 }
0x2fa7   :  { %v9825_v37 = vpop.eup %7973 }
0x2fa8   :  { %v9827_v3 = vpop.eup %7975  ;;  %v5285_v9 = vsel %vm783_vm1, %v9825_v37, 0.0 }
0x2fa9   :  { %5286 = vadd.xlane.f32.xlu0 %v5285_v9  ;;  %v5288_v45 = vsel %vm783_vm1, %v9827_v3, 0.0  ;;  %7406 = vmatpush3.bf16.msra.mxu1 %v7403_v18  ;;  %v5789_v9 = vld [vmem:[#allocation21] ss:$0 sm:$0xff] }
0x2faa   :  { %5289 = vadd.xlane.f32.xlu1 %v5288_v45  ;;  %7408 = vmatprep.subr.bf16.mxu1 %v7407_v57 }
0x2fab   :  { %v9833_v62 = vpop.eup %7977 }
0x2fac   :  { %v5291_v30 = vsel %vm783_vm1, %v9833_v62, 0.0 }
0x2fad   :  { %5292 = vadd.xlane.f32.xlu0 %v5291_v30  ;;  %7410 = vmatpush3.bf16.msra.mxu1 %v7407_v57 }
0x2fae   :  { %7412 = vmatprep.subr.bf16.mxu1 %v7411_v54 }
0x2fb1   :  { %7414 = vmatpush3.bf16.msra.mxu1 %v7411_v54 }
0x3029   :  { %v5275_v32 = vpop.xlane.xlu0 %5274 }
0x302a   :  { %7979 = vrcp.f32 %v5275_v32  ;;  %v5272_v39 = vpop.xlane.xlu1 %5271 }
0x302b   :  { %7981 = vrcp.f32 %v5272_v39 }
0x302e   :  { %v5278_v63 = vpop.xlane.xlu1 %5277 }
0x302f   :  { %7983 = vrcp.f32 %v5278_v63 }
0x3032   :  { %v5281_v21 = vpop.xlane.xlu0 %5280 }
0x3033   :  { %7985 = vrcp.f32 %v5281_v21  ;;  %v5284_v22 = vpop.xlane.xlu1 %5283 }
0x3034   :  { %v7980_v61 = vpop.eup %7979  ;;  %7987 = vrcp.f32 %v5284_v22 }
0x3035   :  { %v7982_v8 = vpop.eup %7981  ;;  %v5297_v56 = vmul.f32 %v7980_v61, %v9805_v19 }
0x3036   :  { %v5287_v0 = vpop.xlane.xlu0 %5286  ;;  %v5295_v46 = vmul.f32 %v7982_v8, %v9807_v48 }
0x3037   :  { %7989 = vrcp.f32 %v5287_v0  ;;  %v5290_v14 = vpop.xlane.xlu1 %5289 }
0x3038   :  { %7991 = vrcp.f32 %v5290_v14  ;;  %6103 = vmatprep.mubr.msk.f32.mxu0 %vm783_vm1, %v5295_v46  ;;  %v5790_v14 = vld [vmem:[#allocation6] ss:$0 sm:$0xff] }
0x3039   :  { %v7984_v38 = vpop.eup %7983  ;;  %6104 = vmatmul.mubr.msk.f32.vlgmr.msra.gmra.mrb[48].mxu0 %vm783_vm1, %v5297_v56 }
0x303a   :  { %v5293_v7 = vpop.xlane.xlu0 %5292  ;;  %v5299_v1 = vmul.f32 %v7984_v38, %v9813_v12 }
0x303b   :  { %7993 = vrcp.f32 %v5293_v7 }
0x303c   :  { %6106 = vmatprep.mubr.msk.f32.mxu0 %vm783_vm1, %v5299_v1 }
0x303d   :  { %v7986_v51 = vpop.eup %7985 }
0x303e   :  { %v7988_v2 = vpop.eup %7987  ;;  %v5301_v15 = vmul.f32 %v7986_v51, %v9817_v28 }
0x303f   :  { %v5303_v23 = vmul.f32 %v7988_v2, %v9819_v29 }
0x3040   :  { %6107 = vmatmul.mubr.msk.f32.gmra.mrb[50].mxu0 %vm783_vm1, %v5301_v15 }
0x3041   :  { %v7990_v33 = vpop.eup %7989  ;;  %6109 = vmatprep.mubr.msk.f32.mxu0 %vm783_vm1, %v5303_v23 }
0x3042   :  { %v7992_v19 = vpop.eup %7991  ;;  %v5305_v48 = vmul.f32 %v7990_v33, %v9825_v37 }
0x3043   :  { %v5307_v52 = vmul.f32 %v7992_v19, %v9827_v3 }
0x3044   :  { %6110 = vmatmul.mubr.msk.f32.gmra.mrb[52].mxu0 %vm783_vm1, %v5305_v48 }
0x3045   :  { %v7994_v11 = vpop.eup %7993  ;;  %6112 = vmatprep.mubr.msk.f32.mxu0 %vm783_vm1, %v5307_v52 }
0x3046   :  { %v5309_v44 = vmul.f32 %v7994_v11, %v9833_v62 }
0x3048   :  { %6113 = vmatmul.mubr.msk.f32.gmra.mrb[54].mxu0 %vm783_vm1, %v5309_v44 }
0x310c   :  { %v6105_v49 = vpop.f32.mrb[48].mxu0 }
0x310d   :  { %v5400_v53 = vpop.f32.mrb[49].mxu0 }
0x310e   :  { %6147 = vmatprep.mubr.f32.mxu1 %v5400_v53 }
0x310f   :  { %6148 = vmatmul.mubr.f32.vlgmr.msra.gmra.mrb[48].mxu1 %v6105_v49 }
0x3113   :  { %v6108_v6 = vpop.f32.mrb[50].mxu0 }
0x3114   :  { %v5410_v12 = vpop.f32.mrb[51].mxu0 }
0x3115   :  { %6150 = vmatprep.mubr.f32.mxu1 %v5410_v12 }
0x3116   :  { %6151 = vmatmul.mubr.f32.gmra.mrb[50].mxu1 %v6108_v6 }
0x3117   :  { %v6111_v20 = vpop.f32.mrb[52].mxu0 }
0x3118   :  { %v5420_v47 = vpop.f32.mrb[53].mxu0 }
0x3119   :  { %6153 = vmatprep.mubr.f32.mxu1 %v5420_v47 }
0x311a   :  { %6154 = vmatmul.mubr.f32.gmra.mrb[52].mxu1 %v6111_v20 }
0x311b   :  { %v6114_v28 = vpop.f32.mrb[54].mxu0 }
0x311c   :  { %v5430_v29 = vpop.f32.mrb[55].mxu0 }
0x311d   :  { %6156 = vmatprep.mubr.f32.mxu1 %v5430_v29 }
0x311e   :  { %6157 = vmatmul.mubr.f32.gmra.mrb[54].mxu1 %v6114_v28 }
0x31e2   :  { %v6149_v34 = vpop.f32.mrb[48].mxu1 }
0x31e3   :  { %v5534_v37 = vadd.f32 %v6149_v34, %v5788_v42  ;;  %v5528_v3 = vpop.f32.mrb[49].mxu1 }
0x31e4   :  { %v5529_v45 = vadd.f32 %v5788_v42, %v5528_v3 }
0x31e5   :  { %v5568_v62 = vmax.f32 %v5534_v37, 0.0 }
0x31e6   :  { %v5567_v30 = vmax.f32 %v5529_v45, 0.0 }
0x31e7   :  { %v5583_v5 = vmul.f32 %v5789_v9, %v5568_v62 }
0x31e8   :  { %v5582_v26 = vmul.f32 %v5789_v9, %v5567_v30 }
0x31e9   :  { %v6152_v58 = vpop.f32.mrb[50].mxu1  ;;  %v5594_v60 = vsel %vm5590_vm2, %v5583_v5, 0.0 }
0x31ea   :  { %v5544_v31 = vadd.f32 %v6152_v58, %v5788_v42  ;;  %5595 = vadd.xlane.f32.xlu0 %v5594_v60  ;;  %v5538_v16 = vpop.f32.mrb[51].mxu1  ;;  %v5591_v17 = vsel %vm5590_vm2, %v5582_v26, 0.0 }
0x31eb   :  { %v5539_v50 = vadd.f32 %v5788_v42, %v5538_v16  ;;  %5592 = vadd.xlane.f32.xlu1 %v5591_v17 }
0x31ec   :  { %v5570_v35 = vmax.f32 %v5544_v31, 0.0 }
0x31ed   :  { %v5569_v55 = vmax.f32 %v5539_v50, 0.0  ;;  %v6155_v24 = vpop.f32.mrb[52].mxu1 }
0x31ee   :  { %v5585_v13 = vmul.f32 %v5789_v9, %v5570_v35  ;;  %v5554_v10 = vadd.f32 %v6155_v24, %v5788_v42  ;;  %v5548_v43 = vpop.f32.mrb[53].mxu1 }
0x31ef   :  { %v5584_v27 = vmul.f32 %v5789_v9, %v5569_v55  ;;  %v5549_v36 = vadd.f32 %v5788_v42, %v5548_v43 }
0x31f0   :  { %v5572_v4 = vmax.f32 %v5554_v10, 0.0  ;;  %v5600_v18 = vsel %vm5590_vm2, %v5585_v13, 0.0 }
0x31f1   :  { %v5571_v40 = vmax.f32 %v5549_v36, 0.0  ;;  %5601 = vadd.xlane.f32.xlu0 %v5600_v18  ;;  %v6158_v25 = vpop.f32.mrb[54].mxu1  ;;  %v5597_v57 = vsel %vm5590_vm2, %v5584_v27, 0.0 }
0x31f2   :  { %v5587_v59 = vmul.f32 %v5789_v9, %v5572_v4  ;;  %v5564_v41 = vadd.f32 %v6158_v25, %v5788_v42  ;;  %5598 = vadd.xlane.f32.xlu1 %v5597_v57  ;;  %v5558_v54 = vpop.f32.mrb[55].mxu1 }
0x31f3   :  { %v5586_v32 = vmul.f32 %v5789_v9, %v5571_v40  ;;  %v5559_v39 = vadd.f32 %v5788_v42, %v5558_v54 }
0x31f4   :  { %v5574_v63 = vmax.f32 %v5564_v41, 0.0  ;;  %v5606_v21 = vsel %vm5590_vm2, %v5587_v59, 0.0 }
0x31f5   :  { %v5573_v22 = vmax.f32 %v5559_v39, 0.0  ;;  %5607 = vadd.xlane.f32.xlu0 %v5606_v21  ;;  %v5603_v61 = vsel %vm5590_vm2, %v5586_v32, 0.0 }
0x31f6   :  { %v5589_v8 = vmul.f32 %v5789_v9, %v5574_v63  ;;  %5604 = vadd.xlane.f32.xlu1 %v5603_v61 }
0x31f7   :  { %v5588_v0 = vmul.f32 %v5789_v9, %v5573_v22 }
0x31f8   :  { %v5612_v46 = vsel %vm5590_vm2, %v5589_v8, 0.0 }
0x31f9   :  { %5613 = vadd.xlane.f32.xlu0 %v5612_v46  ;;  %v5609_v56 = vsel %vm5590_vm2, %v5588_v0, 0.0 }
0x31fa   :  { %5610 = vadd.xlane.f32.xlu1 %v5609_v56 }
0x3277   :  { %v5596_v38 = vpop.xlane.xlu0 %5595 }
0x3278   :  { %v5623_v7 = vadd.f32 %v5790_v14, %v5596_v38  ;;  %v5593_v1 = vpop.xlane.xlu1 %5592 }
0x3279   :  { %v5622_v51 = vadd.f32 %v5790_v14, %v5593_v1 }
0x327a   :  { %v5792_v2 = vmul.f32 -1.442695, %v5623_v7 }
0x327b   :  { %v5791_v15 = vmul.f32 -1.442695, %v5622_v51 }
0x327c   :  { %7995 = vpow2.f32 %v5792_v2 }
0x327d   :  { %7997 = vpow2.f32 %v5791_v15 }
0x327e   :  { %v5602_v23 = vpop.xlane.xlu0 %5601 }
0x327f   :  { %v5625_v33 = vadd.f32 %v5790_v14, %v5602_v23  ;;  %v5599_v19 = vpop.xlane.xlu1 %5598 }
0x3280   :  { %v5624_v48 = vadd.f32 %v5790_v14, %v5599_v19 }
0x3281   :  { %v5794_v52 = vmul.f32 -1.442695, %v5625_v33 }
0x3282   :  { %v5793_v11 = vmul.f32 -1.442695, %v5624_v48  ;;  %v5608_v44 = vpop.xlane.xlu0 %5607 }
0x3283   :  { %7999 = vpow2.f32 %v5794_v52  ;;  %v5627_v49 = vadd.f32 %v5790_v14, %v5608_v44  ;;  %v5605_v53 = vpop.xlane.xlu1 %5604 }
0x3284   :  { %8001 = vpow2.f32 %v5793_v11  ;;  %v5626_v6 = vadd.f32 %v5790_v14, %v5605_v53 }
0x3285   :  { %v5796_v12 = vmul.f32 -1.442695, %v5627_v49 }
0x3286   :  { %v7996_v20 = vpop.eup %7995  ;;  %v5795_v47 = vmul.f32 -1.442695, %v5626_v6  ;;  %v5614_v28 = vpop.xlane.xlu0 %5613 }
0x3287   :  { %v7998_v29 = vpop.eup %7997  ;;  %v5655_v42 = vadd.f32 1.0, %v7996_v20  ;;  %8003 = vpow2.f32 %v5796_v12  ;;  %v5629_v34 = vadd.f32 %v5790_v14, %v5614_v28  ;;  %v5611_v37 = vpop.xlane.xlu1 %5610 }
0x3288   :  { %v5654_v3 = vadd.f32 1.0, %v7998_v29  ;;  %8005 = vpow2.f32 %v5795_v47  ;;  %v5628_v9 = vadd.f32 %v5790_v14, %v5611_v37 }
0x3289   :  { %8007 = vrcp.f32 %v5655_v42  ;;  %v5798_v45 = vmul.f32 -1.442695, %v5629_v34 }
0x328a   :  { %8009 = vrcp.f32 %v5654_v3  ;;  %v5797_v62 = vmul.f32 -1.442695, %v5628_v9 }
0x328b   :  { %8011 = vpow2.f32 %v5798_v45 }
0x328c   :  { %8013 = vpow2.f32 %v5797_v62 }
0x328d   :  { %v8000_v30 = vpop.eup %7999 }
0x328e   :  { %v8002_v5 = vpop.eup %8001  ;;  %v5657_v26 = vadd.f32 1.0, %v8000_v30 }
0x328f   :  { %v5656_v58 = vadd.f32 1.0, %v8002_v5 }
0x3290   :  { %8015 = vrcp.f32 %v5657_v26 }
0x3291   :  { %v8004_v60 = vpop.eup %8003  ;;  %8017 = vrcp.f32 %v5656_v58 }
0x3292   :  { %v8006_v31 = vpop.eup %8005  ;;  %v5659_v16 = vadd.f32 1.0, %v8004_v60 }
0x3293   :  { %v8008_v17 = vpop.eup %8007  ;;  %v5658_v50 = vadd.f32 1.0, %v8006_v31 }
0x3294   :  { %v8010_v35 = vpop.eup %8009  ;;  %5680 = vst.msk [vmem:[%s9959_s18 + $0x8] sm:$0xff] %vm5678_vm3, %v8008_v17  ;;  %8019 = vrcp.f32 %v5659_v16 }
0x3295   :  { %v8012_v55 = vpop.eup %8011  ;;  %5679 = vst.msk [vmem:[%s9959_s18] sm:$0xff] %vm5678_vm3, %v8010_v35  ;;  %8021 = vrcp.f32 %v5658_v50 }
0x3296   :  { %v8014_v24 = vpop.eup %8013  ;;  %v5661_v13 = vadd.f32 1.0, %v8012_v55 }
0x3297   :  { %v5660_v10 = vadd.f32 1.0, %v8014_v24 }
0x3298   :  { %8023 = vrcp.f32 %v5661_v13 }
0x3299   :  { %8025 = vrcp.f32 %v5660_v10 }
0x329a   :  { %v8016_v43 = vpop.eup %8015 }
0x329b   :  { %v8018_v27 = vpop.eup %8017  ;;  %5682 = vst.msk [vmem:[%s9959_s18 + $0x18] sm:$0xff] %vm5678_vm3, %v8016_v43 }
0x329c   :  { %5681 = vst.msk [vmem:[%s9959_s18 + $0x10] sm:$0xff] %vm5678_vm3, %v8018_v27 }
0x329e   :  { %v8020_v36 = vpop.eup %8019 }
0x329f   :  { %v8022_v4 = vpop.eup %8021  ;;  %5684 = vst.msk [vmem:[%s9959_s18 + $0x28] sm:$0xff] %vm5678_vm3, %v8020_v36 }
0x32a0   :  { %5683 = vst.msk [vmem:[%s9959_s18 + $0x20] sm:$0xff] %vm5678_vm3, %v8022_v4 }
0x32a2   :  { %v8024_v18 = vpop.eup %8023 }
0x32a3   :  { %v8026_v40 = vpop.eup %8025  ;;  %5686 = vst.msk [vmem:[%s9959_s18 + $0x38] sm:$0xff] %vm5678_vm3, %v8024_v18 }
0x32a4   :  { %5685 = vst.msk [vmem:[%s9959_s18 + $0x30] sm:$0xff] %vm5678_vm3, %v8026_v40 }
0x32a5   :  { %5691 = vsyncpa [#allocation8], 1 }
0x32a6   :  { %5692 = vsyncpa [#allocation10], 1 }
0x32a7   :  { %5693 = vsyncpa [#allocation13], 1 }
0x32a8   :  { %5694 = vsyncpa [#allocation16], 1 }
0x32a9   :  { %5695 = vsyncpa [#allocation19], 1 }
0x32aa   :  { %5696 = vsyncpa [#allocation22], 1 }

</bundles_post_ra>
